<compile_context>
chip_gen: v5e
topology: v5e:2x2
jax: 0.10.0
libtpu: 0.0.40
codegen_flags: <defaults>
</compile_context>

<pallas_src>
import math
import jax
import jax.numpy as jnp
from jax.experimental import pallas as pl
from jax.experimental.pallas import tpu as pltpu

INPUT_DIM = 2
EMBED_DIM = 64
HIDDEN_DIM = EMBED_DIM * 2            # 128

GRID_SIZE = 5
SPLINE_ORDER = 3
GRID_RANGE = (-1.0, 1.0)
NUM_COEF = GRID_SIZE + SPLINE_ORDER   # 8 spline basis functions per input feature
_H = (GRID_RANGE[1] - GRID_RANGE[0]) / GRID_SIZE
# efficient-KAN grid row is identical for every input feature -> scalar knots.
KNOTS = tuple(GRID_RANGE[0] + (j - SPLINE_ORDER) * _H
              for j in range(GRID_SIZE + 2 * SPLINE_ORDER + 1))   # 12 knots
# uniform knots: every level-k denominator equals k*_H -> bake reciprocals.
INV_DENOM = tuple(1.0 / (k * _H) for k in range(1, SPLINE_ORDER + 1))

RMS_EPS = 1.1920929e-07               # torch.finfo(float32).eps (nn.RMSNorm eps=None)

COMPUTE_DTYPE = jnp.bfloat16          # MXU input dtype (accumulation stays f32)
LANES = 128                           # TPU lane width; batch lives on lanes
DEFAULT_TB = 1024                     # batch tile (lanes); auto-capped to pad_b // 2


# ----------------------------- kernel math helpers -----------------------------

def _rms_norm_t(x, w_col):
    """RMSNorm over the feature axis (axis 0) of a feature-major (F, TB) tile."""
    ms = jnp.mean(x * x, axis=0, keepdims=True)            # (1, TB) sublane reduce
    return x * jax.lax.rsqrt(ms + RMS_EPS) * w_col


def _bspline_levels(x):
    """Cox-de Boor recursion up to degree SPLINE_ORDER-1 (VALU-lean, low liveness).

    x: (in, TB) f32.  Degree-0 bases come from 12 shared step functions; the
    (x - t[j]) terms are recomputed per use (cheaper than keeping them live).
    Returns 9 degree-2 bases, each (in, TB)."""
    t = KNOTS
    steps = [(x >= t[j]).astype(x.dtype) for j in range(len(t))]
    b = [steps[j] - steps[j + 1] for j in range(len(t) - 1)]        # degree 0 (11)
    for k in range(1, SPLINE_ORDER):
        inv = INV_DENOM[k - 1]
        b = [inv * ((x - t[j]) * b[j] + (t[j + k + 1] - x) * b[j + 1])
             for j in range(len(b) - 1)]
    return b                                                        # degree 2 (9)


def _final_basis(x, b, j):
    """Degree-SPLINE_ORDER basis j from the degree-(SPLINE_ORDER-1) list b."""
    t = KNOTS
    inv = INV_DENOM[SPLINE_ORDER - 1]
    return inv * ((x - t[j]) * b[j] + (t[j + SPLINE_ORDER + 1] - x) * b[j + 1])


def _kan_narrow_t(x, w_ref):
    """KANLinear with tiny in_features (layer 1, in=2), feature-major.

    Sublane-concats the nine (2, TB) pieces into (18, TB) and runs ONE MXU dot
    against the packed (out, 9*in) weight slab."""
    b = _bspline_levels(x)
    pieces = [x * jax.nn.sigmoid(x)] + [_final_basis(x, b, j) for j in range(NUM_COEF)]
    xp = jnp.concatenate(pieces, axis=0).astype(COMPUTE_DTYPE)      # (9*in, TB)
    return jnp.dot(w_ref[...].astype(COMPUTE_DTYPE), xp,
                   preferred_element_type=jnp.float32)              # (out, TB) f32


def _kan_wide_t(x, w_ref, in_f):
    """KANLinear with wide in_features (layer 2, in=128), feature-major.

    Per-basis accumulate dots: each degree-3 basis is produced and immediately
    consumed against its (out, in) weight slab -- no (9*in, TB) concat buffer."""
    silu = (x * jax.nn.sigmoid(x)).astype(COMPUTE_DTYPE)
    acc = jnp.dot(w_ref[:, :in_f].astype(COMPUTE_DTYPE), silu,
                  preferred_element_type=jnp.float32)               # (out, TB) f32
    b = _bspline_levels(x)
    for j in range(NUM_COEF):
        bj = _final_basis(x, b, j).astype(COMPUTE_DTYPE)
        wj = w_ref[:, (1 + j) * in_f:(2 + j) * in_f].astype(COMPUTE_DTYPE)
        acc = acc + jnp.dot(wj, bj, preferred_element_type=jnp.float32)
    return acc


# ---------------------------------- kernel -------------------------------------

def _encoder_kernel(pos_ref, rms2_w_ref, w1_ref, w2_ref, rms_w_ref, out_ref):
    x = _rms_norm_t(pos_ref[...], rms2_w_ref[...])       # (2, TB)   RMSNorm over 2
    h = _kan_narrow_t(x, w1_ref)                         # (128, TB) f32
    e = _kan_wide_t(h, w2_ref, HIDDEN_DIM)               # (64, TB)  f32
    out_ref[...] = _rms_norm_t(e, rms_w_ref[...])        # lane-dense (64, TB) store


# --------------------------------- wrapper --------------------------------------

def adaptive_position_encoder(lat, lon, params, *, tb=DEFAULT_TB):
    pos = jnp.concatenate([lat, lon], axis=-1).astype(jnp.float32)   # (B, 2)
    B = pos.shape[0]

    pad_b = pl.cdiv(B, LANES) * LANES                    # lane-dense batch padding
    tb = max(LANES, (min(tb, pad_b) // LANES) * LANES)
    if pad_b >= 2 * LANES:                               # keep >= 2 grid steps (v7x 2 TCs)
        tb = min(tb, (pad_b // 2 // LANES) * LANES)
    pad_b = pl.cdiv(pad_b, tb) * tb

    pos_t = jnp.pad(pos.T, ((0, 0), (0, pad_b - B)))     # (2, pad_b) feature-major

    def moving(shape):                                   # batch tile moves on lanes
        return pl.BlockSpec(shape, lambda i: (0, i))

    def resident(shape):                                 # VMEM-resident across steps
        return pl.BlockSpec(shape, lambda i: (0, 0))

    out_t = pl.pallas_call(
        _encoder_kernel,
        out_shape=jax.ShapeDtypeStruct((EMBED_DIM, pad_b), jnp.float32),
        grid=(pad_b // tb,),
        in_specs=[
            moving((INPUT_DIM, tb)),                                   # pos tile (2, TB)
            resident((INPUT_DIM, 1)),                                  # RMSNorm2 weight
            resident((HIDDEN_DIM, (1 + NUM_COEF) * INPUT_DIM)),        # KAN1 W (128, 18)
            resident((EMBED_DIM, (1 + NUM_COEF) * HIDDEN_DIM)),        # KAN2 W (64, 1152)
            resident((EMBED_DIM, 1)),                                  # RMSNorm weight
        ],
        out_specs=moving((EMBED_DIM, tb)),                             # (64, TB) lane-dense
        compiler_params=pltpu.CompilerParams(
            dimension_semantics=("parallel",)),          # megacore-shard batch tiles
    )(pos_t, params["rms2_w"], params["w1"], params["w2"], params["rms_w"])

    return out_t[:, :B].T                                              # (B, 64)


# ----------------------- deterministic parameter init ---------------------------

def init_params(key):
    ks = jax.random.split(key, 6)

    def kan_packed(k_base, k_spline, k_scaler, in_f, out_f):
        bound = 1.0 / math.sqrt(in_f)
        base_w = jax.random.uniform(k_base, (out_f, in_f), jnp.float32,
                                    -bound, bound)                       # (out, in)
        spline_w = jax.random.uniform(k_spline, (out_f, in_f, NUM_COEF),
                                      jnp.float32, -0.1 * bound, 0.1 * bound)
        scaler = jax.random.uniform(k_scaler, (out_f, in_f), jnp.float32,
                                    -bound, bound)
        scaled = spline_w * scaler[..., None]                            # (out, in, coef)
        slabs = [base_w] + [scaled[:, :, k] for k in range(NUM_COEF)]
        # feature-major packing along K: (out, (1+coef)*in); bf16 for the MXU.
        return jnp.concatenate(slabs, axis=1).astype(jnp.bfloat16)

    return dict(
        w1=kan_packed(ks[0], ks[1], ks[2], INPUT_DIM, HIDDEN_DIM),       # (128, 18)
        w2=kan_packed(ks[3], ks[4], ks[5], HIDDEN_DIM, EMBED_DIM),       # (64, 1152)
        rms2_w=jnp.ones((INPUT_DIM, 1), jnp.float32),    # nn.RMSNorm weight = ones
        rms_w=jnp.ones((EMBED_DIM, 1), jnp.float32),
    )


# ---------------------------- pure-JAX reference --------------------------------
# Independent row-major f32 formulation (where/divide Cox-de Boor, per-slab
# matmuls of the packed weights) to cross-check the fused bf16 kernel.

def _reference(lat, lon, params):
    pos = jnp.concatenate([lat, lon], axis=-1).astype(jnp.float32)
    w_rms2 = params["rms2_w"].astype(jnp.float32).reshape(1, -1)
    w_rms = params["rms_w"].astype(jnp.float32).reshape(1, -1)

    def rms(x, w):
        return x * jax.lax.rsqrt(jnp.mean(x * x, -1, keepdims=True) + RMS_EPS) * w

    def bases_ref(x):
        t = KNOTS
        b = [jnp.where((x >= t[j]) & (x < t[j + 1]), 1.0, 0.0)
             for j in range(len(t) - 1)]
        for k in range(1, SPLINE_ORDER + 1):
            b = [(x - t[j]) / (t[j + k] - t[j]) * b[j]
                 + (t[j + k + 1] - x) / (t[j + k + 1] - t[j + 1]) * b[j + 1]
                 for j in range(len(b) - 1)]
        return b

    def kan(x, w_packed, in_f):
        w = w_packed.astype(jnp.float32)                 # (out, (1+coef)*in)
        silu = x / (1.0 + jnp.exp(-x))
        y = silu @ w[:, :in_f].T
        for k, bk in enumerate(bases_ref(x)):
            y = y + bk @ w[:, (1 + k) * in_f:(2 + k) * in_f].T
        return y

    x = rms(pos, w_rms2)
    h = kan(x, params["w1"], INPUT_DIM)
    h = kan(h, params["w2"], HIDDEN_DIM)
    return rms(h, w_rms)


if __name__ == "__main__":
    key = jax.random.PRNGKey(0)
    k_lat, k_lon, k_param = jax.random.split(key, 3)
    B = 8
    lat = jax.random.uniform(k_lat, (B, 1), jnp.float32, -90.0, 90.0)
    lon = jax.random.uniform(k_lon, (B, 1), jnp.float32, -180.0, 180.0)
    params = init_params(k_param)

    out = adaptive_position_encoder(lat, lon, params)
    out = jax.block_until_ready(out)

    ref = _reference(lat, lon, params)
    assert out.shape == (B, EMBED_DIM)
    # bf16 MXU inputs (f32 accumulation) vs. pure-f32 reference -> loosened tolerance.
    assert jnp.allclose(out, ref, rtol=5e-2, atol=5e-2), "Pallas kernel != reference"
    print("KERNEL_OK")
</pallas_src>

<mosaic_0001>
module attributes {stable_mosaic.version = 11 : i64} {
  func.func @_encoder_kernel(%arg0: i32, %arg1: memref<2x128xf32, #tpu.memory_space<vmem>>, %arg2: memref<2x1xf32, #tpu.memory_space<vmem>>, %arg3: memref<128x18xbf16, #tpu.memory_space<vmem>>, %arg4: memref<64x1152xbf16, #tpu.memory_space<vmem>>, %arg5: memref<64x1xf32, #tpu.memory_space<vmem>>, %arg6: memref<64x128xf32, #tpu.memory_space<vmem>>) attributes {dimension_semantics = [#tpu.dimension_semantics<parallel>], iteration_bounds = array<i64: 1>, scalar_prefetch = 0 : i64, scratch_operands = 0 : i64, tpu.core_type = #tpu.core_type<tc>, window_params = [{transform_indices = @transform_0, window_bounds = array<i64: 2, 128>}, {pipeline_mode = #tpu.pipeline_mode<synchronous>, transform_indices = @transform_1, window_bounds = array<i64: 2, 1>}, {pipeline_mode = #tpu.pipeline_mode<synchronous>, transform_indices = @transform_2, window_bounds = array<i64: 128, 18>}, {pipeline_mode = #tpu.pipeline_mode<synchronous>, transform_indices = @transform_3, window_bounds = array<i64: 64, 1152>}, {pipeline_mode = #tpu.pipeline_mode<synchronous>, transform_indices = @transform_4, window_bounds = array<i64: 64, 1>}, {transform_indices = @transform_5, window_bounds = array<i64: 64, 128>}]} {
    %c0 = arith.constant 0 : index
    %c0_0 = arith.constant 0 : index
    %0 = vector.load %arg1[%c0, %c0_0] : memref<2x128xf32, #tpu.memory_space<vmem>>, vector<2x128xf32>
    %c0_1 = arith.constant 0 : index
    %c0_2 = arith.constant 0 : index
    %1 = vector.load %arg2[%c0_1, %c0_2] : memref<2x1xf32, #tpu.memory_space<vmem>>, vector<2x1xf32>
    %2 = arith.mulf %0, %0 : vector<2x128xf32>
    %cst = arith.constant dense<0.000000e+00> : vector<128xf32>
    %3 = vector.multi_reduction <add>, %2, %cst [0] : vector<2x128xf32> to vector<128xf32>
    %4 = vector.shape_cast %3 : vector<128xf32> to vector<1x128xf32>
    %cst_3 = arith.constant 2.000000e+00 : f32
    %5 = vector.broadcast %cst_3 : f32 to vector<1x128xf32>
    %6 = arith.divf %4, %5 : vector<1x128xf32>
    %cst_4 = arith.constant 1.1920929E-7 : f32
    %7 = vector.broadcast %cst_4 : f32 to vector<1x128xf32>
    %8 = arith.addf %6, %7 : vector<1x128xf32>
    %9 = math.rsqrt %8 : vector<1x128xf32>
    %10 = vector.broadcast %9 : vector<1x128xf32> to vector<2x128xf32>
    %11 = arith.mulf %0, %10 : vector<2x128xf32>
    %12 = vector.broadcast %1 : vector<2x1xf32> to vector<2x128xf32>
    %13 = arith.mulf %11, %12 : vector<2x128xf32>
    %cst_5 = arith.constant -2.200000e+00 : f32
    %14 = vector.broadcast %cst_5 : f32 to vector<2x128xf32>
    %15 = arith.cmpf oge, %13, %14 : vector<2x128xf32>
    %16 = arith.extui %15 : vector<2x128xi1> to vector<2x128xi32>
    %17 = arith.sitofp %16 : vector<2x128xi32> to vector<2x128xf32>
    %cst_6 = arith.constant -1.800000e+00 : f32
    %18 = vector.broadcast %cst_6 : f32 to vector<2x128xf32>
    %19 = arith.cmpf oge, %13, %18 : vector<2x128xf32>
    %20 = arith.extui %19 : vector<2x128xi1> to vector<2x128xi32>
    %21 = arith.sitofp %20 : vector<2x128xi32> to vector<2x128xf32>
    %cst_7 = arith.constant -1.400000e+00 : f32
    %22 = vector.broadcast %cst_7 : f32 to vector<2x128xf32>
    %23 = arith.cmpf oge, %13, %22 : vector<2x128xf32>
    %24 = arith.extui %23 : vector<2x128xi1> to vector<2x128xi32>
    %25 = arith.sitofp %24 : vector<2x128xi32> to vector<2x128xf32>
    %cst_8 = arith.constant -1.000000e+00 : f32
    %26 = vector.broadcast %cst_8 : f32 to vector<2x128xf32>
    %27 = arith.cmpf oge, %13, %26 : vector<2x128xf32>
    %28 = arith.extui %27 : vector<2x128xi1> to vector<2x128xi32>
    %29 = arith.sitofp %28 : vector<2x128xi32> to vector<2x128xf32>
    %cst_9 = arith.constant -6.000000e-01 : f32
    %30 = vector.broadcast %cst_9 : f32 to vector<2x128xf32>
    %31 = arith.cmpf oge, %13, %30 : vector<2x128xf32>
    %32 = arith.extui %31 : vector<2x128xi1> to vector<2x128xi32>
    %33 = arith.sitofp %32 : vector<2x128xi32> to vector<2x128xf32>
    %cst_10 = arith.constant -2.000000e-01 : f32
    %34 = vector.broadcast %cst_10 : f32 to vector<2x128xf32>
    %35 = arith.cmpf oge, %13, %34 : vector<2x128xf32>
    %36 = arith.extui %35 : vector<2x128xi1> to vector<2x128xi32>
    %37 = arith.sitofp %36 : vector<2x128xi32> to vector<2x128xf32>
    %cst_11 = arith.constant 2.000000e-01 : f32
    %38 = vector.broadcast %cst_11 : f32 to vector<2x128xf32>
    %39 = arith.cmpf oge, %13, %38 : vector<2x128xf32>
    %40 = arith.extui %39 : vector<2x128xi1> to vector<2x128xi32>
    %41 = arith.sitofp %40 : vector<2x128xi32> to vector<2x128xf32>
    %cst_12 = arith.constant 6.000000e-01 : f32
    %42 = vector.broadcast %cst_12 : f32 to vector<2x128xf32>
    %43 = arith.cmpf oge, %13, %42 : vector<2x128xf32>
    %44 = arith.extui %43 : vector<2x128xi1> to vector<2x128xi32>
    %45 = arith.sitofp %44 : vector<2x128xi32> to vector<2x128xf32>
    %cst_13 = arith.constant 1.000000e+00 : f32
    %46 = vector.broadcast %cst_13 : f32 to vector<2x128xf32>
    %47 = arith.cmpf oge, %13, %46 : vector<2x128xf32>
    %48 = arith.extui %47 : vector<2x128xi1> to vector<2x128xi32>
    %49 = arith.sitofp %48 : vector<2x128xi32> to vector<2x128xf32>
    %cst_14 = arith.constant 1.400000e+00 : f32
    %50 = vector.broadcast %cst_14 : f32 to vector<2x128xf32>
    %51 = arith.cmpf oge, %13, %50 : vector<2x128xf32>
    %52 = arith.extui %51 : vector<2x128xi1> to vector<2x128xi32>
    %53 = arith.sitofp %52 : vector<2x128xi32> to vector<2x128xf32>
    %cst_15 = arith.constant 1.800000e+00 : f32
    %54 = vector.broadcast %cst_15 : f32 to vector<2x128xf32>
    %55 = arith.cmpf oge, %13, %54 : vector<2x128xf32>
    %56 = arith.extui %55 : vector<2x128xi1> to vector<2x128xi32>
    %57 = arith.sitofp %56 : vector<2x128xi32> to vector<2x128xf32>
    %cst_16 = arith.constant 2.200000e+00 : f32
    %58 = vector.broadcast %cst_16 : f32 to vector<2x128xf32>
    %59 = arith.cmpf oge, %13, %58 : vector<2x128xf32>
    %60 = arith.extui %59 : vector<2x128xi1> to vector<2x128xi32>
    %61 = arith.sitofp %60 : vector<2x128xi32> to vector<2x128xf32>
    %62 = arith.subf %17, %21 : vector<2x128xf32>
    %63 = arith.subf %21, %25 : vector<2x128xf32>
    %64 = arith.subf %25, %29 : vector<2x128xf32>
    %65 = arith.subf %29, %33 : vector<2x128xf32>
    %66 = arith.subf %33, %37 : vector<2x128xf32>
    %67 = arith.subf %37, %41 : vector<2x128xf32>
    %68 = arith.subf %41, %45 : vector<2x128xf32>
    %69 = arith.subf %45, %49 : vector<2x128xf32>
    %70 = arith.subf %49, %53 : vector<2x128xf32>
    %71 = arith.subf %53, %57 : vector<2x128xf32>
    %72 = arith.subf %57, %61 : vector<2x128xf32>
    %cst_17 = arith.constant -2.200000e+00 : f32
    %73 = vector.broadcast %cst_17 : f32 to vector<2x128xf32>
    %74 = arith.subf %13, %73 : vector<2x128xf32>
    %75 = arith.mulf %74, %62 : vector<2x128xf32>
    %cst_18 = arith.constant -1.400000e+00 : f32
    %76 = vector.broadcast %cst_18 : f32 to vector<2x128xf32>
    %77 = arith.subf %76, %13 : vector<2x128xf32>
    %78 = arith.mulf %77, %63 : vector<2x128xf32>
    %79 = arith.addf %75, %78 : vector<2x128xf32>
    %cst_19 = arith.constant 2.500000e+00 : f32
    %80 = vector.broadcast %cst_19 : f32 to vector<2x128xf32>
    %81 = arith.mulf %80, %79 : vector<2x128xf32>
    %cst_20 = arith.constant -1.800000e+00 : f32
    %82 = vector.broadcast %cst_20 : f32 to vector<2x128xf32>
    %83 = arith.subf %13, %82 : vector<2x128xf32>
    %84 = arith.mulf %83, %63 : vector<2x128xf32>
    %cst_21 = arith.constant -1.000000e+00 : f32
    %85 = vector.broadcast %cst_21 : f32 to vector<2x128xf32>
    %86 = arith.subf %85, %13 : vector<2x128xf32>
    %87 = arith.mulf %86, %64 : vector<2x128xf32>
    %88 = arith.addf %84, %87 : vector<2x128xf32>
    %cst_22 = arith.constant 2.500000e+00 : f32
    %89 = vector.broadcast %cst_22 : f32 to vector<2x128xf32>
    %90 = arith.mulf %89, %88 : vector<2x128xf32>
    %cst_23 = arith.constant -1.400000e+00 : f32
    %91 = vector.broadcast %cst_23 : f32 to vector<2x128xf32>
    %92 = arith.subf %13, %91 : vector<2x128xf32>
    %93 = arith.mulf %92, %64 : vector<2x128xf32>
    %cst_24 = arith.constant -6.000000e-01 : f32
    %94 = vector.broadcast %cst_24 : f32 to vector<2x128xf32>
    %95 = arith.subf %94, %13 : vector<2x128xf32>
    %96 = arith.mulf %95, %65 : vector<2x128xf32>
    %97 = arith.addf %93, %96 : vector<2x128xf32>
    %cst_25 = arith.constant 2.500000e+00 : f32
    %98 = vector.broadcast %cst_25 : f32 to vector<2x128xf32>
    %99 = arith.mulf %98, %97 : vector<2x128xf32>
    %cst_26 = arith.constant -1.000000e+00 : f32
    %100 = vector.broadcast %cst_26 : f32 to vector<2x128xf32>
    %101 = arith.subf %13, %100 : vector<2x128xf32>
    %102 = arith.mulf %101, %65 : vector<2x128xf32>
    %cst_27 = arith.constant -2.000000e-01 : f32
    %103 = vector.broadcast %cst_27 : f32 to vector<2x128xf32>
    %104 = arith.subf %103, %13 : vector<2x128xf32>
    %105 = arith.mulf %104, %66 : vector<2x128xf32>
    %106 = arith.addf %102, %105 : vector<2x128xf32>
    %cst_28 = arith.constant 2.500000e+00 : f32
    %107 = vector.broadcast %cst_28 : f32 to vector<2x128xf32>
    %108 = arith.mulf %107, %106 : vector<2x128xf32>
    %cst_29 = arith.constant -6.000000e-01 : f32
    %109 = vector.broadcast %cst_29 : f32 to vector<2x128xf32>
    %110 = arith.subf %13, %109 : vector<2x128xf32>
    %111 = arith.mulf %110, %66 : vector<2x128xf32>
    %cst_30 = arith.constant 2.000000e-01 : f32
    %112 = vector.broadcast %cst_30 : f32 to vector<2x128xf32>
    %113 = arith.subf %112, %13 : vector<2x128xf32>
    %114 = arith.mulf %113, %67 : vector<2x128xf32>
    %115 = arith.addf %111, %114 : vector<2x128xf32>
    %cst_31 = arith.constant 2.500000e+00 : f32
    %116 = vector.broadcast %cst_31 : f32 to vector<2x128xf32>
    %117 = arith.mulf %116, %115 : vector<2x128xf32>
    %cst_32 = arith.constant -2.000000e-01 : f32
    %118 = vector.broadcast %cst_32 : f32 to vector<2x128xf32>
    %119 = arith.subf %13, %118 : vector<2x128xf32>
    %120 = arith.mulf %119, %67 : vector<2x128xf32>
    %cst_33 = arith.constant 6.000000e-01 : f32
    %121 = vector.broadcast %cst_33 : f32 to vector<2x128xf32>
    %122 = arith.subf %121, %13 : vector<2x128xf32>
    %123 = arith.mulf %122, %68 : vector<2x128xf32>
    %124 = arith.addf %120, %123 : vector<2x128xf32>
    %cst_34 = arith.constant 2.500000e+00 : f32
    %125 = vector.broadcast %cst_34 : f32 to vector<2x128xf32>
    %126 = arith.mulf %125, %124 : vector<2x128xf32>
    %cst_35 = arith.constant 2.000000e-01 : f32
    %127 = vector.broadcast %cst_35 : f32 to vector<2x128xf32>
    %128 = arith.subf %13, %127 : vector<2x128xf32>
    %129 = arith.mulf %128, %68 : vector<2x128xf32>
    %cst_36 = arith.constant 1.000000e+00 : f32
    %130 = vector.broadcast %cst_36 : f32 to vector<2x128xf32>
    %131 = arith.subf %130, %13 : vector<2x128xf32>
    %132 = arith.mulf %131, %69 : vector<2x128xf32>
    %133 = arith.addf %129, %132 : vector<2x128xf32>
    %cst_37 = arith.constant 2.500000e+00 : f32
    %134 = vector.broadcast %cst_37 : f32 to vector<2x128xf32>
    %135 = arith.mulf %134, %133 : vector<2x128xf32>
    %cst_38 = arith.constant 6.000000e-01 : f32
    %136 = vector.broadcast %cst_38 : f32 to vector<2x128xf32>
    %137 = arith.subf %13, %136 : vector<2x128xf32>
    %138 = arith.mulf %137, %69 : vector<2x128xf32>
    %cst_39 = arith.constant 1.400000e+00 : f32
    %139 = vector.broadcast %cst_39 : f32 to vector<2x128xf32>
    %140 = arith.subf %139, %13 : vector<2x128xf32>
    %141 = arith.mulf %140, %70 : vector<2x128xf32>
    %142 = arith.addf %138, %141 : vector<2x128xf32>
    %cst_40 = arith.constant 2.500000e+00 : f32
    %143 = vector.broadcast %cst_40 : f32 to vector<2x128xf32>
    %144 = arith.mulf %143, %142 : vector<2x128xf32>
    %cst_41 = arith.constant 1.000000e+00 : f32
    %145 = vector.broadcast %cst_41 : f32 to vector<2x128xf32>
    %146 = arith.subf %13, %145 : vector<2x128xf32>
    %147 = arith.mulf %146, %70 : vector<2x128xf32>
    %cst_42 = arith.constant 1.800000e+00 : f32
    %148 = vector.broadcast %cst_42 : f32 to vector<2x128xf32>
    %149 = arith.subf %148, %13 : vector<2x128xf32>
    %150 = arith.mulf %149, %71 : vector<2x128xf32>
    %151 = arith.addf %147, %150 : vector<2x128xf32>
    %cst_43 = arith.constant 2.500000e+00 : f32
    %152 = vector.broadcast %cst_43 : f32 to vector<2x128xf32>
    %153 = arith.mulf %152, %151 : vector<2x128xf32>
    %cst_44 = arith.constant 1.400000e+00 : f32
    %154 = vector.broadcast %cst_44 : f32 to vector<2x128xf32>
    %155 = arith.subf %13, %154 : vector<2x128xf32>
    %156 = arith.mulf %155, %71 : vector<2x128xf32>
    %cst_45 = arith.constant 2.200000e+00 : f32
    %157 = vector.broadcast %cst_45 : f32 to vector<2x128xf32>
    %158 = arith.subf %157, %13 : vector<2x128xf32>
    %159 = arith.mulf %158, %72 : vector<2x128xf32>
    %160 = arith.addf %156, %159 : vector<2x128xf32>
    %cst_46 = arith.constant 2.500000e+00 : f32
    %161 = vector.broadcast %cst_46 : f32 to vector<2x128xf32>
    %162 = arith.mulf %161, %160 : vector<2x128xf32>
    %cst_47 = arith.constant -2.200000e+00 : f32
    %163 = vector.broadcast %cst_47 : f32 to vector<2x128xf32>
    %164 = arith.subf %13, %163 : vector<2x128xf32>
    %165 = arith.mulf %164, %81 : vector<2x128xf32>
    %cst_48 = arith.constant -1.000000e+00 : f32
    %166 = vector.broadcast %cst_48 : f32 to vector<2x128xf32>
    %167 = arith.subf %166, %13 : vector<2x128xf32>
    %168 = arith.mulf %167, %90 : vector<2x128xf32>
    %169 = arith.addf %165, %168 : vector<2x128xf32>
    %cst_49 = arith.constant 1.250000e+00 : f32
    %170 = vector.broadcast %cst_49 : f32 to vector<2x128xf32>
    %171 = arith.mulf %170, %169 : vector<2x128xf32>
    %cst_50 = arith.constant -1.800000e+00 : f32
    %172 = vector.broadcast %cst_50 : f32 to vector<2x128xf32>
    %173 = arith.subf %13, %172 : vector<2x128xf32>
    %174 = arith.mulf %173, %90 : vector<2x128xf32>
    %cst_51 = arith.constant -6.000000e-01 : f32
    %175 = vector.broadcast %cst_51 : f32 to vector<2x128xf32>
    %176 = arith.subf %175, %13 : vector<2x128xf32>
    %177 = arith.mulf %176, %99 : vector<2x128xf32>
    %178 = arith.addf %174, %177 : vector<2x128xf32>
    %cst_52 = arith.constant 1.250000e+00 : f32
    %179 = vector.broadcast %cst_52 : f32 to vector<2x128xf32>
    %180 = arith.mulf %179, %178 : vector<2x128xf32>
    %cst_53 = arith.constant -1.400000e+00 : f32
    %181 = vector.broadcast %cst_53 : f32 to vector<2x128xf32>
    %182 = arith.subf %13, %181 : vector<2x128xf32>
    %183 = arith.mulf %182, %99 : vector<2x128xf32>
    %cst_54 = arith.constant -2.000000e-01 : f32
    %184 = vector.broadcast %cst_54 : f32 to vector<2x128xf32>
    %185 = arith.subf %184, %13 : vector<2x128xf32>
    %186 = arith.mulf %185, %108 : vector<2x128xf32>
    %187 = arith.addf %183, %186 : vector<2x128xf32>
    %cst_55 = arith.constant 1.250000e+00 : f32
    %188 = vector.broadcast %cst_55 : f32 to vector<2x128xf32>
    %189 = arith.mulf %188, %187 : vector<2x128xf32>
    %cst_56 = arith.constant -1.000000e+00 : f32
    %190 = vector.broadcast %cst_56 : f32 to vector<2x128xf32>
    %191 = arith.subf %13, %190 : vector<2x128xf32>
    %192 = arith.mulf %191, %108 : vector<2x128xf32>
    %cst_57 = arith.constant 2.000000e-01 : f32
    %193 = vector.broadcast %cst_57 : f32 to vector<2x128xf32>
    %194 = arith.subf %193, %13 : vector<2x128xf32>
    %195 = arith.mulf %194, %117 : vector<2x128xf32>
    %196 = arith.addf %192, %195 : vector<2x128xf32>
    %cst_58 = arith.constant 1.250000e+00 : f32
    %197 = vector.broadcast %cst_58 : f32 to vector<2x128xf32>
    %198 = arith.mulf %197, %196 : vector<2x128xf32>
    %cst_59 = arith.constant -6.000000e-01 : f32
    %199 = vector.broadcast %cst_59 : f32 to vector<2x128xf32>
    %200 = arith.subf %13, %199 : vector<2x128xf32>
    %201 = arith.mulf %200, %117 : vector<2x128xf32>
    %cst_60 = arith.constant 6.000000e-01 : f32
    %202 = vector.broadcast %cst_60 : f32 to vector<2x128xf32>
    %203 = arith.subf %202, %13 : vector<2x128xf32>
    %204 = arith.mulf %203, %126 : vector<2x128xf32>
    %205 = arith.addf %201, %204 : vector<2x128xf32>
    %cst_61 = arith.constant 1.250000e+00 : f32
    %206 = vector.broadcast %cst_61 : f32 to vector<2x128xf32>
    %207 = arith.mulf %206, %205 : vector<2x128xf32>
    %cst_62 = arith.constant -2.000000e-01 : f32
    %208 = vector.broadcast %cst_62 : f32 to vector<2x128xf32>
    %209 = arith.subf %13, %208 : vector<2x128xf32>
    %210 = arith.mulf %209, %126 : vector<2x128xf32>
    %cst_63 = arith.constant 1.000000e+00 : f32
    %211 = vector.broadcast %cst_63 : f32 to vector<2x128xf32>
    %212 = arith.subf %211, %13 : vector<2x128xf32>
    %213 = arith.mulf %212, %135 : vector<2x128xf32>
    %214 = arith.addf %210, %213 : vector<2x128xf32>
    %cst_64 = arith.constant 1.250000e+00 : f32
    %215 = vector.broadcast %cst_64 : f32 to vector<2x128xf32>
    %216 = arith.mulf %215, %214 : vector<2x128xf32>
    %cst_65 = arith.constant 2.000000e-01 : f32
    %217 = vector.broadcast %cst_65 : f32 to vector<2x128xf32>
    %218 = arith.subf %13, %217 : vector<2x128xf32>
    %219 = arith.mulf %218, %135 : vector<2x128xf32>
    %cst_66 = arith.constant 1.400000e+00 : f32
    %220 = vector.broadcast %cst_66 : f32 to vector<2x128xf32>
    %221 = arith.subf %220, %13 : vector<2x128xf32>
    %222 = arith.mulf %221, %144 : vector<2x128xf32>
    %223 = arith.addf %219, %222 : vector<2x128xf32>
    %cst_67 = arith.constant 1.250000e+00 : f32
    %224 = vector.broadcast %cst_67 : f32 to vector<2x128xf32>
    %225 = arith.mulf %224, %223 : vector<2x128xf32>
    %cst_68 = arith.constant 6.000000e-01 : f32
    %226 = vector.broadcast %cst_68 : f32 to vector<2x128xf32>
    %227 = arith.subf %13, %226 : vector<2x128xf32>
    %228 = arith.mulf %227, %144 : vector<2x128xf32>
    %cst_69 = arith.constant 1.800000e+00 : f32
    %229 = vector.broadcast %cst_69 : f32 to vector<2x128xf32>
    %230 = arith.subf %229, %13 : vector<2x128xf32>
    %231 = arith.mulf %230, %153 : vector<2x128xf32>
    %232 = arith.addf %228, %231 : vector<2x128xf32>
    %cst_70 = arith.constant 1.250000e+00 : f32
    %233 = vector.broadcast %cst_70 : f32 to vector<2x128xf32>
    %234 = arith.mulf %233, %232 : vector<2x128xf32>
    %cst_71 = arith.constant 1.000000e+00 : f32
    %235 = vector.broadcast %cst_71 : f32 to vector<2x128xf32>
    %236 = arith.subf %13, %235 : vector<2x128xf32>
    %237 = arith.mulf %236, %153 : vector<2x128xf32>
    %cst_72 = arith.constant 2.200000e+00 : f32
    %238 = vector.broadcast %cst_72 : f32 to vector<2x128xf32>
    %239 = arith.subf %238, %13 : vector<2x128xf32>
    %240 = arith.mulf %239, %162 : vector<2x128xf32>
    %241 = arith.addf %237, %240 : vector<2x128xf32>
    %cst_73 = arith.constant 1.250000e+00 : f32
    %242 = vector.broadcast %cst_73 : f32 to vector<2x128xf32>
    %243 = arith.mulf %242, %241 : vector<2x128xf32>
    %244 = arith.negf %13 : vector<2x128xf32>
    %245 = math.exp %244 : vector<2x128xf32>
    %cst_74 = arith.constant 1.000000e+00 : f32
    %246 = vector.broadcast %cst_74 : f32 to vector<2x128xf32>
    %247 = arith.addf %246, %245 : vector<2x128xf32>
    %248 = arith.divf %246, %247 : vector<2x128xf32>
    %249 = arith.mulf %13, %248 : vector<2x128xf32>
    %cst_75 = arith.constant -2.200000e+00 : f32
    %250 = vector.broadcast %cst_75 : f32 to vector<2x128xf32>
    %251 = arith.subf %13, %250 : vector<2x128xf32>
    %252 = arith.mulf %251, %171 : vector<2x128xf32>
    %cst_76 = arith.constant -6.000000e-01 : f32
    %253 = vector.broadcast %cst_76 : f32 to vector<2x128xf32>
    %254 = arith.subf %253, %13 : vector<2x128xf32>
    %255 = arith.mulf %254, %180 : vector<2x128xf32>
    %256 = arith.addf %252, %255 : vector<2x128xf32>
    %cst_77 = arith.constant 0.833333313 : f32
    %257 = vector.broadcast %cst_77 : f32 to vector<2x128xf32>
    %258 = arith.mulf %257, %256 : vector<2x128xf32>
    %cst_78 = arith.constant -1.800000e+00 : f32
    %259 = vector.broadcast %cst_78 : f32 to vector<2x128xf32>
    %260 = arith.subf %13, %259 : vector<2x128xf32>
    %261 = arith.mulf %260, %180 : vector<2x128xf32>
    %cst_79 = arith.constant -2.000000e-01 : f32
    %262 = vector.broadcast %cst_79 : f32 to vector<2x128xf32>
    %263 = arith.subf %262, %13 : vector<2x128xf32>
    %264 = arith.mulf %263, %189 : vector<2x128xf32>
    %265 = arith.addf %261, %264 : vector<2x128xf32>
    %cst_80 = arith.constant 0.833333313 : f32
    %266 = vector.broadcast %cst_80 : f32 to vector<2x128xf32>
    %267 = arith.mulf %266, %265 : vector<2x128xf32>
    %cst_81 = arith.constant -1.400000e+00 : f32
    %268 = vector.broadcast %cst_81 : f32 to vector<2x128xf32>
    %269 = arith.subf %13, %268 : vector<2x128xf32>
    %270 = arith.mulf %269, %189 : vector<2x128xf32>
    %cst_82 = arith.constant 2.000000e-01 : f32
    %271 = vector.broadcast %cst_82 : f32 to vector<2x128xf32>
    %272 = arith.subf %271, %13 : vector<2x128xf32>
    %273 = arith.mulf %272, %198 : vector<2x128xf32>
    %274 = arith.addf %270, %273 : vector<2x128xf32>
    %cst_83 = arith.constant 0.833333313 : f32
    %275 = vector.broadcast %cst_83 : f32 to vector<2x128xf32>
    %276 = arith.mulf %275, %274 : vector<2x128xf32>
    %cst_84 = arith.constant -1.000000e+00 : f32
    %277 = vector.broadcast %cst_84 : f32 to vector<2x128xf32>
    %278 = arith.subf %13, %277 : vector<2x128xf32>
    %279 = arith.mulf %278, %198 : vector<2x128xf32>
    %cst_85 = arith.constant 6.000000e-01 : f32
    %280 = vector.broadcast %cst_85 : f32 to vector<2x128xf32>
    %281 = arith.subf %280, %13 : vector<2x128xf32>
    %282 = arith.mulf %281, %207 : vector<2x128xf32>
    %283 = arith.addf %279, %282 : vector<2x128xf32>
    %cst_86 = arith.constant 0.833333313 : f32
    %284 = vector.broadcast %cst_86 : f32 to vector<2x128xf32>
    %285 = arith.mulf %284, %283 : vector<2x128xf32>
    %cst_87 = arith.constant -6.000000e-01 : f32
    %286 = vector.broadcast %cst_87 : f32 to vector<2x128xf32>
    %287 = arith.subf %13, %286 : vector<2x128xf32>
    %288 = arith.mulf %287, %207 : vector<2x128xf32>
    %cst_88 = arith.constant 1.000000e+00 : f32
    %289 = vector.broadcast %cst_88 : f32 to vector<2x128xf32>
    %290 = arith.subf %289, %13 : vector<2x128xf32>
    %291 = arith.mulf %290, %216 : vector<2x128xf32>
    %292 = arith.addf %288, %291 : vector<2x128xf32>
    %cst_89 = arith.constant 0.833333313 : f32
    %293 = vector.broadcast %cst_89 : f32 to vector<2x128xf32>
    %294 = arith.mulf %293, %292 : vector<2x128xf32>
    %cst_90 = arith.constant -2.000000e-01 : f32
    %295 = vector.broadcast %cst_90 : f32 to vector<2x128xf32>
    %296 = arith.subf %13, %295 : vector<2x128xf32>
    %297 = arith.mulf %296, %216 : vector<2x128xf32>
    %cst_91 = arith.constant 1.400000e+00 : f32
    %298 = vector.broadcast %cst_91 : f32 to vector<2x128xf32>
    %299 = arith.subf %298, %13 : vector<2x128xf32>
    %300 = arith.mulf %299, %225 : vector<2x128xf32>
    %301 = arith.addf %297, %300 : vector<2x128xf32>
    %cst_92 = arith.constant 0.833333313 : f32
    %302 = vector.broadcast %cst_92 : f32 to vector<2x128xf32>
    %303 = arith.mulf %302, %301 : vector<2x128xf32>
    %cst_93 = arith.constant 2.000000e-01 : f32
    %304 = vector.broadcast %cst_93 : f32 to vector<2x128xf32>
    %305 = arith.subf %13, %304 : vector<2x128xf32>
    %306 = arith.mulf %305, %225 : vector<2x128xf32>
    %cst_94 = arith.constant 1.800000e+00 : f32
    %307 = vector.broadcast %cst_94 : f32 to vector<2x128xf32>
    %308 = arith.subf %307, %13 : vector<2x128xf32>
    %309 = arith.mulf %308, %234 : vector<2x128xf32>
    %310 = arith.addf %306, %309 : vector<2x128xf32>
    %cst_95 = arith.constant 0.833333313 : f32
    %311 = vector.broadcast %cst_95 : f32 to vector<2x128xf32>
    %312 = arith.mulf %311, %310 : vector<2x128xf32>
    %cst_96 = arith.constant 6.000000e-01 : f32
    %313 = vector.broadcast %cst_96 : f32 to vector<2x128xf32>
    %314 = arith.subf %13, %313 : vector<2x128xf32>
    %315 = arith.mulf %314, %234 : vector<2x128xf32>
    %cst_97 = arith.constant 2.200000e+00 : f32
    %316 = vector.broadcast %cst_97 : f32 to vector<2x128xf32>
    %317 = arith.subf %316, %13 : vector<2x128xf32>
    %318 = arith.mulf %317, %243 : vector<2x128xf32>
    %319 = arith.addf %315, %318 : vector<2x128xf32>
    %cst_98 = arith.constant 0.833333313 : f32
    %320 = vector.broadcast %cst_98 : f32 to vector<2x128xf32>
    %321 = arith.mulf %320, %319 : vector<2x128xf32>
    %322 = tpu.concatenate %249, %258, %267, %276, %285, %294, %303, %312, %321 in 0 : vector<2x128xf32>, vector<2x128xf32>, vector<2x128xf32>, vector<2x128xf32>, vector<2x128xf32>, vector<2x128xf32>, vector<2x128xf32>, vector<2x128xf32>, vector<2x128xf32> -> vector<18x128xf32>
    %323 = arith.truncf %322 : vector<18x128xf32> to vector<18x128xbf16>
    %c0_99 = arith.constant 0 : index
    %c0_100 = arith.constant 0 : index
    %324 = vector.load %arg3[%c0_99, %c0_100] : memref<128x18xbf16, #tpu.memory_space<vmem>>, vector<128x18xbf16>
    %cst_101 = arith.constant dense<0.000000e+00> : vector<128x128xf32>
    %325 = tpu.matmul %324, %323, %cst_101 {dimension_numbers = #tpu.dot_dimension_numbers<[1], [0], [0], [1], [0, 0, 1, 1], [], []>} : vector<128x18xbf16>, vector<18x128xbf16>, vector<128x128xf32> -> vector<128x128xf32>
    %326 = arith.negf %325 : vector<128x128xf32>
    %327 = math.exp %326 : vector<128x128xf32>
    %cst_102 = arith.constant 1.000000e+00 : f32
    %328 = vector.broadcast %cst_102 : f32 to vector<128x128xf32>
    %329 = arith.addf %328, %327 : vector<128x128xf32>
    %330 = arith.divf %328, %329 : vector<128x128xf32>
    %331 = arith.mulf %325, %330 : vector<128x128xf32>
    %332 = arith.truncf %331 : vector<128x128xf32> to vector<128x128xbf16>
    %c0_103 = arith.constant 0 : index
    %c0_104 = arith.constant 0 : index
    %333 = vector.load %arg4[%c0_103, %c0_104] : memref<64x1152xbf16, #tpu.memory_space<vmem>>, vector<64x128xbf16>
    %cst_105 = arith.constant dense<0.000000e+00> : vector<64x128xf32>
    %334 = tpu.matmul %333, %332, %cst_105 {dimension_numbers = #tpu.dot_dimension_numbers<[1], [0], [0], [1], [0, 0, 1, 1], [], []>} : vector<64x128xbf16>, vector<128x128xbf16>, vector<64x128xf32> -> vector<64x128xf32>
    %cst_106 = arith.constant -2.200000e+00 : f32
    %335 = vector.broadcast %cst_106 : f32 to vector<128x128xf32>
    %336 = arith.cmpf oge, %325, %335 : vector<128x128xf32>
    %337 = arith.extui %336 : vector<128x128xi1> to vector<128x128xi32>
    %338 = arith.sitofp %337 : vector<128x128xi32> to vector<128x128xf32>
    %cst_107 = arith.constant -1.800000e+00 : f32
    %339 = vector.broadcast %cst_107 : f32 to vector<128x128xf32>
    %340 = arith.cmpf oge, %325, %339 : vector<128x128xf32>
    %341 = arith.extui %340 : vector<128x128xi1> to vector<128x128xi32>
    %342 = arith.sitofp %341 : vector<128x128xi32> to vector<128x128xf32>
    %cst_108 = arith.constant -1.400000e+00 : f32
    %343 = vector.broadcast %cst_108 : f32 to vector<128x128xf32>
    %344 = arith.cmpf oge, %325, %343 : vector<128x128xf32>
    %345 = arith.extui %344 : vector<128x128xi1> to vector<128x128xi32>
    %346 = arith.sitofp %345 : vector<128x128xi32> to vector<128x128xf32>
    %cst_109 = arith.constant -1.000000e+00 : f32
    %347 = vector.broadcast %cst_109 : f32 to vector<128x128xf32>
    %348 = arith.cmpf oge, %325, %347 : vector<128x128xf32>
    %349 = arith.extui %348 : vector<128x128xi1> to vector<128x128xi32>
    %350 = arith.sitofp %349 : vector<128x128xi32> to vector<128x128xf32>
    %cst_110 = arith.constant -6.000000e-01 : f32
    %351 = vector.broadcast %cst_110 : f32 to vector<128x128xf32>
    %352 = arith.cmpf oge, %325, %351 : vector<128x128xf32>
    %353 = arith.extui %352 : vector<128x128xi1> to vector<128x128xi32>
    %354 = arith.sitofp %353 : vector<128x128xi32> to vector<128x128xf32>
    %cst_111 = arith.constant -2.000000e-01 : f32
    %355 = vector.broadcast %cst_111 : f32 to vector<128x128xf32>
    %356 = arith.cmpf oge, %325, %355 : vector<128x128xf32>
    %357 = arith.extui %356 : vector<128x128xi1> to vector<128x128xi32>
    %358 = arith.sitofp %357 : vector<128x128xi32> to vector<128x128xf32>
    %cst_112 = arith.constant 2.000000e-01 : f32
    %359 = vector.broadcast %cst_112 : f32 to vector<128x128xf32>
    %360 = arith.cmpf oge, %325, %359 : vector<128x128xf32>
    %361 = arith.extui %360 : vector<128x128xi1> to vector<128x128xi32>
    %362 = arith.sitofp %361 : vector<128x128xi32> to vector<128x128xf32>
    %cst_113 = arith.constant 6.000000e-01 : f32
    %363 = vector.broadcast %cst_113 : f32 to vector<128x128xf32>
    %364 = arith.cmpf oge, %325, %363 : vector<128x128xf32>
    %365 = arith.extui %364 : vector<128x128xi1> to vector<128x128xi32>
    %366 = arith.sitofp %365 : vector<128x128xi32> to vector<128x128xf32>
    %cst_114 = arith.constant 1.000000e+00 : f32
    %367 = vector.broadcast %cst_114 : f32 to vector<128x128xf32>
    %368 = arith.cmpf oge, %325, %367 : vector<128x128xf32>
    %369 = arith.extui %368 : vector<128x128xi1> to vector<128x128xi32>
    %370 = arith.sitofp %369 : vector<128x128xi32> to vector<128x128xf32>
    %cst_115 = arith.constant 1.400000e+00 : f32
    %371 = vector.broadcast %cst_115 : f32 to vector<128x128xf32>
    %372 = arith.cmpf oge, %325, %371 : vector<128x128xf32>
    %373 = arith.extui %372 : vector<128x128xi1> to vector<128x128xi32>
    %374 = arith.sitofp %373 : vector<128x128xi32> to vector<128x128xf32>
    %cst_116 = arith.constant 1.800000e+00 : f32
    %375 = vector.broadcast %cst_116 : f32 to vector<128x128xf32>
    %376 = arith.cmpf oge, %325, %375 : vector<128x128xf32>
    %377 = arith.extui %376 : vector<128x128xi1> to vector<128x128xi32>
    %378 = arith.sitofp %377 : vector<128x128xi32> to vector<128x128xf32>
    %cst_117 = arith.constant 2.200000e+00 : f32
    %379 = vector.broadcast %cst_117 : f32 to vector<128x128xf32>
    %380 = arith.cmpf oge, %325, %379 : vector<128x128xf32>
    %381 = arith.extui %380 : vector<128x128xi1> to vector<128x128xi32>
    %382 = arith.sitofp %381 : vector<128x128xi32> to vector<128x128xf32>
    %383 = arith.subf %338, %342 : vector<128x128xf32>
    %384 = arith.subf %342, %346 : vector<128x128xf32>
    %385 = arith.subf %346, %350 : vector<128x128xf32>
    %386 = arith.subf %350, %354 : vector<128x128xf32>
    %387 = arith.subf %354, %358 : vector<128x128xf32>
    %388 = arith.subf %358, %362 : vector<128x128xf32>
    %389 = arith.subf %362, %366 : vector<128x128xf32>
    %390 = arith.subf %366, %370 : vector<128x128xf32>
    %391 = arith.subf %370, %374 : vector<128x128xf32>
    %392 = arith.subf %374, %378 : vector<128x128xf32>
    %393 = arith.subf %378, %382 : vector<128x128xf32>
    %cst_118 = arith.constant -2.200000e+00 : f32
    %394 = vector.broadcast %cst_118 : f32 to vector<128x128xf32>
    %395 = arith.subf %325, %394 : vector<128x128xf32>
    %396 = arith.mulf %395, %383 : vector<128x128xf32>
    %cst_119 = arith.constant -1.400000e+00 : f32
    %397 = vector.broadcast %cst_119 : f32 to vector<128x128xf32>
    %398 = arith.subf %397, %325 : vector<128x128xf32>
    %399 = arith.mulf %398, %384 : vector<128x128xf32>
    %400 = arith.addf %396, %399 : vector<128x128xf32>
    %cst_120 = arith.constant 2.500000e+00 : f32
    %401 = vector.broadcast %cst_120 : f32 to vector<128x128xf32>
    %402 = arith.mulf %401, %400 : vector<128x128xf32>
    %cst_121 = arith.constant -1.800000e+00 : f32
    %403 = vector.broadcast %cst_121 : f32 to vector<128x128xf32>
    %404 = arith.subf %325, %403 : vector<128x128xf32>
    %405 = arith.mulf %404, %384 : vector<128x128xf32>
    %cst_122 = arith.constant -1.000000e+00 : f32
    %406 = vector.broadcast %cst_122 : f32 to vector<128x128xf32>
    %407 = arith.subf %406, %325 : vector<128x128xf32>
    %408 = arith.mulf %407, %385 : vector<128x128xf32>
    %409 = arith.addf %405, %408 : vector<128x128xf32>
    %cst_123 = arith.constant 2.500000e+00 : f32
    %410 = vector.broadcast %cst_123 : f32 to vector<128x128xf32>
    %411 = arith.mulf %410, %409 : vector<128x128xf32>
    %cst_124 = arith.constant -1.400000e+00 : f32
    %412 = vector.broadcast %cst_124 : f32 to vector<128x128xf32>
    %413 = arith.subf %325, %412 : vector<128x128xf32>
    %414 = arith.mulf %413, %385 : vector<128x128xf32>
    %cst_125 = arith.constant -6.000000e-01 : f32
    %415 = vector.broadcast %cst_125 : f32 to vector<128x128xf32>
    %416 = arith.subf %415, %325 : vector<128x128xf32>
    %417 = arith.mulf %416, %386 : vector<128x128xf32>
    %418 = arith.addf %414, %417 : vector<128x128xf32>
    %cst_126 = arith.constant 2.500000e+00 : f32
    %419 = vector.broadcast %cst_126 : f32 to vector<128x128xf32>
    %420 = arith.mulf %419, %418 : vector<128x128xf32>
    %cst_127 = arith.constant -1.000000e+00 : f32
    %421 = vector.broadcast %cst_127 : f32 to vector<128x128xf32>
    %422 = arith.subf %325, %421 : vector<128x128xf32>
    %423 = arith.mulf %422, %386 : vector<128x128xf32>
    %cst_128 = arith.constant -2.000000e-01 : f32
    %424 = vector.broadcast %cst_128 : f32 to vector<128x128xf32>
    %425 = arith.subf %424, %325 : vector<128x128xf32>
    %426 = arith.mulf %425, %387 : vector<128x128xf32>
    %427 = arith.addf %423, %426 : vector<128x128xf32>
    %cst_129 = arith.constant 2.500000e+00 : f32
    %428 = vector.broadcast %cst_129 : f32 to vector<128x128xf32>
    %429 = arith.mulf %428, %427 : vector<128x128xf32>
    %cst_130 = arith.constant -6.000000e-01 : f32
    %430 = vector.broadcast %cst_130 : f32 to vector<128x128xf32>
    %431 = arith.subf %325, %430 : vector<128x128xf32>
    %432 = arith.mulf %431, %387 : vector<128x128xf32>
    %cst_131 = arith.constant 2.000000e-01 : f32
    %433 = vector.broadcast %cst_131 : f32 to vector<128x128xf32>
    %434 = arith.subf %433, %325 : vector<128x128xf32>
    %435 = arith.mulf %434, %388 : vector<128x128xf32>
    %436 = arith.addf %432, %435 : vector<128x128xf32>
    %cst_132 = arith.constant 2.500000e+00 : f32
    %437 = vector.broadcast %cst_132 : f32 to vector<128x128xf32>
    %438 = arith.mulf %437, %436 : vector<128x128xf32>
    %cst_133 = arith.constant -2.000000e-01 : f32
    %439 = vector.broadcast %cst_133 : f32 to vector<128x128xf32>
    %440 = arith.subf %325, %439 : vector<128x128xf32>
    %441 = arith.mulf %440, %388 : vector<128x128xf32>
    %cst_134 = arith.constant 6.000000e-01 : f32
    %442 = vector.broadcast %cst_134 : f32 to vector<128x128xf32>
    %443 = arith.subf %442, %325 : vector<128x128xf32>
    %444 = arith.mulf %443, %389 : vector<128x128xf32>
    %445 = arith.addf %441, %444 : vector<128x128xf32>
    %cst_135 = arith.constant 2.500000e+00 : f32
    %446 = vector.broadcast %cst_135 : f32 to vector<128x128xf32>
    %447 = arith.mulf %446, %445 : vector<128x128xf32>
    %cst_136 = arith.constant 2.000000e-01 : f32
    %448 = vector.broadcast %cst_136 : f32 to vector<128x128xf32>
    %449 = arith.subf %325, %448 : vector<128x128xf32>
    %450 = arith.mulf %449, %389 : vector<128x128xf32>
    %cst_137 = arith.constant 1.000000e+00 : f32
    %451 = vector.broadcast %cst_137 : f32 to vector<128x128xf32>
    %452 = arith.subf %451, %325 : vector<128x128xf32>
    %453 = arith.mulf %452, %390 : vector<128x128xf32>
    %454 = arith.addf %450, %453 : vector<128x128xf32>
    %cst_138 = arith.constant 2.500000e+00 : f32
    %455 = vector.broadcast %cst_138 : f32 to vector<128x128xf32>
    %456 = arith.mulf %455, %454 : vector<128x128xf32>
    %cst_139 = arith.constant 6.000000e-01 : f32
    %457 = vector.broadcast %cst_139 : f32 to vector<128x128xf32>
    %458 = arith.subf %325, %457 : vector<128x128xf32>
    %459 = arith.mulf %458, %390 : vector<128x128xf32>
    %cst_140 = arith.constant 1.400000e+00 : f32
    %460 = vector.broadcast %cst_140 : f32 to vector<128x128xf32>
    %461 = arith.subf %460, %325 : vector<128x128xf32>
    %462 = arith.mulf %461, %391 : vector<128x128xf32>
    %463 = arith.addf %459, %462 : vector<128x128xf32>
    %cst_141 = arith.constant 2.500000e+00 : f32
    %464 = vector.broadcast %cst_141 : f32 to vector<128x128xf32>
    %465 = arith.mulf %464, %463 : vector<128x128xf32>
    %cst_142 = arith.constant 1.000000e+00 : f32
    %466 = vector.broadcast %cst_142 : f32 to vector<128x128xf32>
    %467 = arith.subf %325, %466 : vector<128x128xf32>
    %468 = arith.mulf %467, %391 : vector<128x128xf32>
    %cst_143 = arith.constant 1.800000e+00 : f32
    %469 = vector.broadcast %cst_143 : f32 to vector<128x128xf32>
    %470 = arith.subf %469, %325 : vector<128x128xf32>
    %471 = arith.mulf %470, %392 : vector<128x128xf32>
    %472 = arith.addf %468, %471 : vector<128x128xf32>
    %cst_144 = arith.constant 2.500000e+00 : f32
    %473 = vector.broadcast %cst_144 : f32 to vector<128x128xf32>
    %474 = arith.mulf %473, %472 : vector<128x128xf32>
    %cst_145 = arith.constant 1.400000e+00 : f32
    %475 = vector.broadcast %cst_145 : f32 to vector<128x128xf32>
    %476 = arith.subf %325, %475 : vector<128x128xf32>
    %477 = arith.mulf %476, %392 : vector<128x128xf32>
    %cst_146 = arith.constant 2.200000e+00 : f32
    %478 = vector.broadcast %cst_146 : f32 to vector<128x128xf32>
    %479 = arith.subf %478, %325 : vector<128x128xf32>
    %480 = arith.mulf %479, %393 : vector<128x128xf32>
    %481 = arith.addf %477, %480 : vector<128x128xf32>
    %cst_147 = arith.constant 2.500000e+00 : f32
    %482 = vector.broadcast %cst_147 : f32 to vector<128x128xf32>
    %483 = arith.mulf %482, %481 : vector<128x128xf32>
    %cst_148 = arith.constant -2.200000e+00 : f32
    %484 = vector.broadcast %cst_148 : f32 to vector<128x128xf32>
    %485 = arith.subf %325, %484 : vector<128x128xf32>
    %486 = arith.mulf %485, %402 : vector<128x128xf32>
    %cst_149 = arith.constant -1.000000e+00 : f32
    %487 = vector.broadcast %cst_149 : f32 to vector<128x128xf32>
    %488 = arith.subf %487, %325 : vector<128x128xf32>
    %489 = arith.mulf %488, %411 : vector<128x128xf32>
    %490 = arith.addf %486, %489 : vector<128x128xf32>
    %cst_150 = arith.constant 1.250000e+00 : f32
    %491 = vector.broadcast %cst_150 : f32 to vector<128x128xf32>
    %492 = arith.mulf %491, %490 : vector<128x128xf32>
    %cst_151 = arith.constant -1.800000e+00 : f32
    %493 = vector.broadcast %cst_151 : f32 to vector<128x128xf32>
    %494 = arith.subf %325, %493 : vector<128x128xf32>
    %495 = arith.mulf %494, %411 : vector<128x128xf32>
    %cst_152 = arith.constant -6.000000e-01 : f32
    %496 = vector.broadcast %cst_152 : f32 to vector<128x128xf32>
    %497 = arith.subf %496, %325 : vector<128x128xf32>
    %498 = arith.mulf %497, %420 : vector<128x128xf32>
    %499 = arith.addf %495, %498 : vector<128x128xf32>
    %cst_153 = arith.constant 1.250000e+00 : f32
    %500 = vector.broadcast %cst_153 : f32 to vector<128x128xf32>
    %501 = arith.mulf %500, %499 : vector<128x128xf32>
    %cst_154 = arith.constant -1.400000e+00 : f32
    %502 = vector.broadcast %cst_154 : f32 to vector<128x128xf32>
    %503 = arith.subf %325, %502 : vector<128x128xf32>
    %504 = arith.mulf %503, %420 : vector<128x128xf32>
    %cst_155 = arith.constant -2.000000e-01 : f32
    %505 = vector.broadcast %cst_155 : f32 to vector<128x128xf32>
    %506 = arith.subf %505, %325 : vector<128x128xf32>
    %507 = arith.mulf %506, %429 : vector<128x128xf32>
    %508 = arith.addf %504, %507 : vector<128x128xf32>
    %cst_156 = arith.constant 1.250000e+00 : f32
    %509 = vector.broadcast %cst_156 : f32 to vector<128x128xf32>
    %510 = arith.mulf %509, %508 : vector<128x128xf32>
    %cst_157 = arith.constant -1.000000e+00 : f32
    %511 = vector.broadcast %cst_157 : f32 to vector<128x128xf32>
    %512 = arith.subf %325, %511 : vector<128x128xf32>
    %513 = arith.mulf %512, %429 : vector<128x128xf32>
    %cst_158 = arith.constant 2.000000e-01 : f32
    %514 = vector.broadcast %cst_158 : f32 to vector<128x128xf32>
    %515 = arith.subf %514, %325 : vector<128x128xf32>
    %516 = arith.mulf %515, %438 : vector<128x128xf32>
    %517 = arith.addf %513, %516 : vector<128x128xf32>
    %cst_159 = arith.constant 1.250000e+00 : f32
    %518 = vector.broadcast %cst_159 : f32 to vector<128x128xf32>
    %519 = arith.mulf %518, %517 : vector<128x128xf32>
    %cst_160 = arith.constant -6.000000e-01 : f32
    %520 = vector.broadcast %cst_160 : f32 to vector<128x128xf32>
    %521 = arith.subf %325, %520 : vector<128x128xf32>
    %522 = arith.mulf %521, %438 : vector<128x128xf32>
    %cst_161 = arith.constant 6.000000e-01 : f32
    %523 = vector.broadcast %cst_161 : f32 to vector<128x128xf32>
    %524 = arith.subf %523, %325 : vector<128x128xf32>
    %525 = arith.mulf %524, %447 : vector<128x128xf32>
    %526 = arith.addf %522, %525 : vector<128x128xf32>
    %cst_162 = arith.constant 1.250000e+00 : f32
    %527 = vector.broadcast %cst_162 : f32 to vector<128x128xf32>
    %528 = arith.mulf %527, %526 : vector<128x128xf32>
    %cst_163 = arith.constant -2.000000e-01 : f32
    %529 = vector.broadcast %cst_163 : f32 to vector<128x128xf32>
    %530 = arith.subf %325, %529 : vector<128x128xf32>
    %531 = arith.mulf %530, %447 : vector<128x128xf32>
    %cst_164 = arith.constant 1.000000e+00 : f32
    %532 = vector.broadcast %cst_164 : f32 to vector<128x128xf32>
    %533 = arith.subf %532, %325 : vector<128x128xf32>
    %534 = arith.mulf %533, %456 : vector<128x128xf32>
    %535 = arith.addf %531, %534 : vector<128x128xf32>
    %cst_165 = arith.constant 1.250000e+00 : f32
    %536 = vector.broadcast %cst_165 : f32 to vector<128x128xf32>
    %537 = arith.mulf %536, %535 : vector<128x128xf32>
    %cst_166 = arith.constant 2.000000e-01 : f32
    %538 = vector.broadcast %cst_166 : f32 to vector<128x128xf32>
    %539 = arith.subf %325, %538 : vector<128x128xf32>
    %540 = arith.mulf %539, %456 : vector<128x128xf32>
    %cst_167 = arith.constant 1.400000e+00 : f32
    %541 = vector.broadcast %cst_167 : f32 to vector<128x128xf32>
    %542 = arith.subf %541, %325 : vector<128x128xf32>
    %543 = arith.mulf %542, %465 : vector<128x128xf32>
    %544 = arith.addf %540, %543 : vector<128x128xf32>
    %cst_168 = arith.constant 1.250000e+00 : f32
    %545 = vector.broadcast %cst_168 : f32 to vector<128x128xf32>
    %546 = arith.mulf %545, %544 : vector<128x128xf32>
    %cst_169 = arith.constant 6.000000e-01 : f32
    %547 = vector.broadcast %cst_169 : f32 to vector<128x128xf32>
    %548 = arith.subf %325, %547 : vector<128x128xf32>
    %549 = arith.mulf %548, %465 : vector<128x128xf32>
    %cst_170 = arith.constant 1.800000e+00 : f32
    %550 = vector.broadcast %cst_170 : f32 to vector<128x128xf32>
    %551 = arith.subf %550, %325 : vector<128x128xf32>
    %552 = arith.mulf %551, %474 : vector<128x128xf32>
    %553 = arith.addf %549, %552 : vector<128x128xf32>
    %cst_171 = arith.constant 1.250000e+00 : f32
    %554 = vector.broadcast %cst_171 : f32 to vector<128x128xf32>
    %555 = arith.mulf %554, %553 : vector<128x128xf32>
    %cst_172 = arith.constant 1.000000e+00 : f32
    %556 = vector.broadcast %cst_172 : f32 to vector<128x128xf32>
    %557 = arith.subf %325, %556 : vector<128x128xf32>
    %558 = arith.mulf %557, %474 : vector<128x128xf32>
    %cst_173 = arith.constant 2.200000e+00 : f32
    %559 = vector.broadcast %cst_173 : f32 to vector<128x128xf32>
    %560 = arith.subf %559, %325 : vector<128x128xf32>
    %561 = arith.mulf %560, %483 : vector<128x128xf32>
    %562 = arith.addf %558, %561 : vector<128x128xf32>
    %cst_174 = arith.constant 1.250000e+00 : f32
    %563 = vector.broadcast %cst_174 : f32 to vector<128x128xf32>
    %564 = arith.mulf %563, %562 : vector<128x128xf32>
    %cst_175 = arith.constant -2.200000e+00 : f32
    %565 = vector.broadcast %cst_175 : f32 to vector<128x128xf32>
    %566 = arith.subf %325, %565 : vector<128x128xf32>
    %567 = arith.mulf %566, %492 : vector<128x128xf32>
    %cst_176 = arith.constant -6.000000e-01 : f32
    %568 = vector.broadcast %cst_176 : f32 to vector<128x128xf32>
    %569 = arith.subf %568, %325 : vector<128x128xf32>
    %570 = arith.mulf %569, %501 : vector<128x128xf32>
    %571 = arith.addf %567, %570 : vector<128x128xf32>
    %cst_177 = arith.constant 0.833333313 : f32
    %572 = vector.broadcast %cst_177 : f32 to vector<128x128xf32>
    %573 = arith.mulf %572, %571 : vector<128x128xf32>
    %574 = arith.truncf %573 : vector<128x128xf32> to vector<128x128xbf16>
    %c0_178 = arith.constant 0 : index
    %c128 = arith.constant 128 : index
    %575 = vector.load %arg4[%c0_178, %c128] : memref<64x1152xbf16, #tpu.memory_space<vmem>>, vector<64x128xbf16>
    %cst_179 = arith.constant dense<0.000000e+00> : vector<64x128xf32>
    %576 = tpu.matmul %575, %574, %cst_179 {dimension_numbers = #tpu.dot_dimension_numbers<[1], [0], [0], [1], [0, 0, 1, 1], [], []>} : vector<64x128xbf16>, vector<128x128xbf16>, vector<64x128xf32> -> vector<64x128xf32>
    %577 = arith.addf %334, %576 : vector<64x128xf32>
    %cst_180 = arith.constant -1.800000e+00 : f32
    %578 = vector.broadcast %cst_180 : f32 to vector<128x128xf32>
    %579 = arith.subf %325, %578 : vector<128x128xf32>
    %580 = arith.mulf %579, %501 : vector<128x128xf32>
    %cst_181 = arith.constant -2.000000e-01 : f32
    %581 = vector.broadcast %cst_181 : f32 to vector<128x128xf32>
    %582 = arith.subf %581, %325 : vector<128x128xf32>
    %583 = arith.mulf %582, %510 : vector<128x128xf32>
    %584 = arith.addf %580, %583 : vector<128x128xf32>
    %cst_182 = arith.constant 0.833333313 : f32
    %585 = vector.broadcast %cst_182 : f32 to vector<128x128xf32>
    %586 = arith.mulf %585, %584 : vector<128x128xf32>
    %587 = arith.truncf %586 : vector<128x128xf32> to vector<128x128xbf16>
    %c0_183 = arith.constant 0 : index
    %c256 = arith.constant 256 : index
    %588 = vector.load %arg4[%c0_183, %c256] : memref<64x1152xbf16, #tpu.memory_space<vmem>>, vector<64x128xbf16>
    %cst_184 = arith.constant dense<0.000000e+00> : vector<64x128xf32>
    %589 = tpu.matmul %588, %587, %cst_184 {dimension_numbers = #tpu.dot_dimension_numbers<[1], [0], [0], [1], [0, 0, 1, 1], [], []>} : vector<64x128xbf16>, vector<128x128xbf16>, vector<64x128xf32> -> vector<64x128xf32>
    %590 = arith.addf %577, %589 : vector<64x128xf32>
    %cst_185 = arith.constant -1.400000e+00 : f32
    %591 = vector.broadcast %cst_185 : f32 to vector<128x128xf32>
    %592 = arith.subf %325, %591 : vector<128x128xf32>
    %593 = arith.mulf %592, %510 : vector<128x128xf32>
    %cst_186 = arith.constant 2.000000e-01 : f32
    %594 = vector.broadcast %cst_186 : f32 to vector<128x128xf32>
    %595 = arith.subf %594, %325 : vector<128x128xf32>
    %596 = arith.mulf %595, %519 : vector<128x128xf32>
    %597 = arith.addf %593, %596 : vector<128x128xf32>
    %cst_187 = arith.constant 0.833333313 : f32
    %598 = vector.broadcast %cst_187 : f32 to vector<128x128xf32>
    %599 = arith.mulf %598, %597 : vector<128x128xf32>
    %600 = arith.truncf %599 : vector<128x128xf32> to vector<128x128xbf16>
    %c0_188 = arith.constant 0 : index
    %c384 = arith.constant 384 : index
    %601 = vector.load %arg4[%c0_188, %c384] : memref<64x1152xbf16, #tpu.memory_space<vmem>>, vector<64x128xbf16>
    %cst_189 = arith.constant dense<0.000000e+00> : vector<64x128xf32>
    %602 = tpu.matmul %601, %600, %cst_189 {dimension_numbers = #tpu.dot_dimension_numbers<[1], [0], [0], [1], [0, 0, 1, 1], [], []>} : vector<64x128xbf16>, vector<128x128xbf16>, vector<64x128xf32> -> vector<64x128xf32>
    %603 = arith.addf %590, %602 : vector<64x128xf32>
    %cst_190 = arith.constant -1.000000e+00 : f32
    %604 = vector.broadcast %cst_190 : f32 to vector<128x128xf32>
    %605 = arith.subf %325, %604 : vector<128x128xf32>
    %606 = arith.mulf %605, %519 : vector<128x128xf32>
    %cst_191 = arith.constant 6.000000e-01 : f32
    %607 = vector.broadcast %cst_191 : f32 to vector<128x128xf32>
    %608 = arith.subf %607, %325 : vector<128x128xf32>
    %609 = arith.mulf %608, %528 : vector<128x128xf32>
    %610 = arith.addf %606, %609 : vector<128x128xf32>
    %cst_192 = arith.constant 0.833333313 : f32
    %611 = vector.broadcast %cst_192 : f32 to vector<128x128xf32>
    %612 = arith.mulf %611, %610 : vector<128x128xf32>
    %613 = arith.truncf %612 : vector<128x128xf32> to vector<128x128xbf16>
    %c0_193 = arith.constant 0 : index
    %c512 = arith.constant 512 : index
    %614 = vector.load %arg4[%c0_193, %c512] : memref<64x1152xbf16, #tpu.memory_space<vmem>>, vector<64x128xbf16>
    %cst_194 = arith.constant dense<0.000000e+00> : vector<64x128xf32>
    %615 = tpu.matmul %614, %613, %cst_194 {dimension_numbers = #tpu.dot_dimension_numbers<[1], [0], [0], [1], [0, 0, 1, 1], [], []>} : vector<64x128xbf16>, vector<128x128xbf16>, vector<64x128xf32> -> vector<64x128xf32>
    %616 = arith.addf %603, %615 : vector<64x128xf32>
    %cst_195 = arith.constant -6.000000e-01 : f32
    %617 = vector.broadcast %cst_195 : f32 to vector<128x128xf32>
    %618 = arith.subf %325, %617 : vector<128x128xf32>
    %619 = arith.mulf %618, %528 : vector<128x128xf32>
    %cst_196 = arith.constant 1.000000e+00 : f32
    %620 = vector.broadcast %cst_196 : f32 to vector<128x128xf32>
    %621 = arith.subf %620, %325 : vector<128x128xf32>
    %622 = arith.mulf %621, %537 : vector<128x128xf32>
    %623 = arith.addf %619, %622 : vector<128x128xf32>
    %cst_197 = arith.constant 0.833333313 : f32
    %624 = vector.broadcast %cst_197 : f32 to vector<128x128xf32>
    %625 = arith.mulf %624, %623 : vector<128x128xf32>
    %626 = arith.truncf %625 : vector<128x128xf32> to vector<128x128xbf16>
    %c0_198 = arith.constant 0 : index
    %c640 = arith.constant 640 : index
    %627 = vector.load %arg4[%c0_198, %c640] : memref<64x1152xbf16, #tpu.memory_space<vmem>>, vector<64x128xbf16>
    %cst_199 = arith.constant dense<0.000000e+00> : vector<64x128xf32>
    %628 = tpu.matmul %627, %626, %cst_199 {dimension_numbers = #tpu.dot_dimension_numbers<[1], [0], [0], [1], [0, 0, 1, 1], [], []>} : vector<64x128xbf16>, vector<128x128xbf16>, vector<64x128xf32> -> vector<64x128xf32>
    %629 = arith.addf %616, %628 : vector<64x128xf32>
    %cst_200 = arith.constant -2.000000e-01 : f32
    %630 = vector.broadcast %cst_200 : f32 to vector<128x128xf32>
    %631 = arith.subf %325, %630 : vector<128x128xf32>
    %632 = arith.mulf %631, %537 : vector<128x128xf32>
    %cst_201 = arith.constant 1.400000e+00 : f32
    %633 = vector.broadcast %cst_201 : f32 to vector<128x128xf32>
    %634 = arith.subf %633, %325 : vector<128x128xf32>
    %635 = arith.mulf %634, %546 : vector<128x128xf32>
    %636 = arith.addf %632, %635 : vector<128x128xf32>
    %cst_202 = arith.constant 0.833333313 : f32
    %637 = vector.broadcast %cst_202 : f32 to vector<128x128xf32>
    %638 = arith.mulf %637, %636 : vector<128x128xf32>
    %639 = arith.truncf %638 : vector<128x128xf32> to vector<128x128xbf16>
    %c0_203 = arith.constant 0 : index
    %c768 = arith.constant 768 : index
    %640 = vector.load %arg4[%c0_203, %c768] : memref<64x1152xbf16, #tpu.memory_space<vmem>>, vector<64x128xbf16>
    %cst_204 = arith.constant dense<0.000000e+00> : vector<64x128xf32>
    %641 = tpu.matmul %640, %639, %cst_204 {dimension_numbers = #tpu.dot_dimension_numbers<[1], [0], [0], [1], [0, 0, 1, 1], [], []>} : vector<64x128xbf16>, vector<128x128xbf16>, vector<64x128xf32> -> vector<64x128xf32>
    %642 = arith.addf %629, %641 : vector<64x128xf32>
    %cst_205 = arith.constant 2.000000e-01 : f32
    %643 = vector.broadcast %cst_205 : f32 to vector<128x128xf32>
    %644 = arith.subf %325, %643 : vector<128x128xf32>
    %645 = arith.mulf %644, %546 : vector<128x128xf32>
    %cst_206 = arith.constant 1.800000e+00 : f32
    %646 = vector.broadcast %cst_206 : f32 to vector<128x128xf32>
    %647 = arith.subf %646, %325 : vector<128x128xf32>
    %648 = arith.mulf %647, %555 : vector<128x128xf32>
    %649 = arith.addf %645, %648 : vector<128x128xf32>
    %cst_207 = arith.constant 0.833333313 : f32
    %650 = vector.broadcast %cst_207 : f32 to vector<128x128xf32>
    %651 = arith.mulf %650, %649 : vector<128x128xf32>
    %652 = arith.truncf %651 : vector<128x128xf32> to vector<128x128xbf16>
    %c0_208 = arith.constant 0 : index
    %c896 = arith.constant 896 : index
    %653 = vector.load %arg4[%c0_208, %c896] : memref<64x1152xbf16, #tpu.memory_space<vmem>>, vector<64x128xbf16>
    %cst_209 = arith.constant dense<0.000000e+00> : vector<64x128xf32>
    %654 = tpu.matmul %653, %652, %cst_209 {dimension_numbers = #tpu.dot_dimension_numbers<[1], [0], [0], [1], [0, 0, 1, 1], [], []>} : vector<64x128xbf16>, vector<128x128xbf16>, vector<64x128xf32> -> vector<64x128xf32>
    %655 = arith.addf %642, %654 : vector<64x128xf32>
    %cst_210 = arith.constant 6.000000e-01 : f32
    %656 = vector.broadcast %cst_210 : f32 to vector<128x128xf32>
    %657 = arith.subf %325, %656 : vector<128x128xf32>
    %658 = arith.mulf %657, %555 : vector<128x128xf32>
    %cst_211 = arith.constant 2.200000e+00 : f32
    %659 = vector.broadcast %cst_211 : f32 to vector<128x128xf32>
    %660 = arith.subf %659, %325 : vector<128x128xf32>
    %661 = arith.mulf %660, %564 : vector<128x128xf32>
    %662 = arith.addf %658, %661 : vector<128x128xf32>
    %cst_212 = arith.constant 0.833333313 : f32
    %663 = vector.broadcast %cst_212 : f32 to vector<128x128xf32>
    %664 = arith.mulf %663, %662 : vector<128x128xf32>
    %665 = arith.truncf %664 : vector<128x128xf32> to vector<128x128xbf16>
    %c0_213 = arith.constant 0 : index
    %c1024 = arith.constant 1024 : index
    %666 = vector.load %arg4[%c0_213, %c1024] : memref<64x1152xbf16, #tpu.memory_space<vmem>>, vector<64x128xbf16>
    %cst_214 = arith.constant dense<0.000000e+00> : vector<64x128xf32>
    %667 = tpu.matmul %666, %665, %cst_214 {dimension_numbers = #tpu.dot_dimension_numbers<[1], [0], [0], [1], [0, 0, 1, 1], [], []>} : vector<64x128xbf16>, vector<128x128xbf16>, vector<64x128xf32> -> vector<64x128xf32>
    %668 = arith.addf %655, %667 : vector<64x128xf32>
    %c0_215 = arith.constant 0 : index
    %c0_216 = arith.constant 0 : index
    %669 = vector.load %arg5[%c0_215, %c0_216] : memref<64x1xf32, #tpu.memory_space<vmem>>, vector<64x1xf32>
    %670 = arith.mulf %668, %668 : vector<64x128xf32>
    %cst_217 = arith.constant dense<0.000000e+00> : vector<128xf32>
    %671 = vector.multi_reduction <add>, %670, %cst_217 [0] : vector<64x128xf32> to vector<128xf32>
    %672 = vector.shape_cast %671 : vector<128xf32> to vector<1x128xf32>
    %cst_218 = arith.constant 6.400000e+01 : f32
    %673 = vector.broadcast %cst_218 : f32 to vector<1x128xf32>
    %674 = arith.divf %672, %673 : vector<1x128xf32>
    %cst_219 = arith.constant 1.1920929E-7 : f32
    %675 = vector.broadcast %cst_219 : f32 to vector<1x128xf32>
    %676 = arith.addf %674, %675 : vector<1x128xf32>
    %677 = math.rsqrt %676 : vector<1x128xf32>
    %678 = vector.broadcast %677 : vector<1x128xf32> to vector<64x128xf32>
    %679 = arith.mulf %668, %678 : vector<64x128xf32>
    %680 = vector.broadcast %669 : vector<64x1xf32> to vector<64x128xf32>
    %681 = arith.mulf %679, %680 : vector<64x128xf32>
    %c0_220 = arith.constant 0 : index
    %c0_221 = arith.constant 0 : index
    %682 = vector.load %arg6[%c0_220, %c0_221] : memref<64x128xf32, #tpu.memory_space<vmem>>, vector<64x128xf32>
    tpu.vector_store %arg6[%c0_220, %c0_221], %681 {strides = array<i32>} : memref<64x128xf32, #tpu.memory_space<vmem>>, vector<64x128xf32>,
    return
  }
  func.func @transform_0(%arg0: i32) -> (i32, i32) {
    %c0_i32 = arith.constant 0 : i32
    %c0_i32_0 = arith.constant 0 : i32
    return %c0_i32, %arg0 : i32, i32
  }
  func.func @transform_1(%arg0: i32) -> (i32, i32) {
    %c0_i32 = arith.constant 0 : i32
    %c0_i32_0 = arith.constant 0 : i32
    %c0_i32_1 = arith.constant 0 : i32
    return %c0_i32, %c0_i32_0 : i32, i32
  }
  func.func @transform_2(%arg0: i32) -> (i32, i32) {
    %c0_i32 = arith.constant 0 : i32
    %c0_i32_0 = arith.constant 0 : i32
    %c0_i32_1 = arith.constant 0 : i32
    return %c0_i32, %c0_i32_0 : i32, i32
  }
  func.func @transform_3(%arg0: i32) -> (i32, i32) {
    %c0_i32 = arith.constant 0 : i32
    %c0_i32_0 = arith.constant 0 : i32
    %c0_i32_1 = arith.constant 0 : i32
    return %c0_i32, %c0_i32_0 : i32, i32
  }
  func.func @transform_4(%arg0: i32) -> (i32, i32) {
    %c0_i32 = arith.constant 0 : i32
    %c0_i32_0 = arith.constant 0 : i32
    %c0_i32_1 = arith.constant 0 : i32
    return %c0_i32, %c0_i32_0 : i32, i32
  }
  func.func @transform_5(%arg0: i32) -> (i32, i32) {
    %c0_i32 = arith.constant 0 : i32
    %c0_i32_0 = arith.constant 0 : i32
    return %c0_i32, %arg0 : i32, i32
  }
}

</mosaic_0001>

<bundles_post_ra>
// kernel: tpu_custom_call.1
= control target key start
LH: loop header
LB: loop body
LE: loop exit
PB: predicated region body
PF: predicated region fallthrough
CT: control target
= control target key end

     0   :  { %10 = vsyncpa [#allocation3], 0  ;;  %s8594_s0 = inlined_call_operand.vmem [shape: f32[2,128], index: 0, kind: input, shape index: {}]   ;;  %s8595_s1 = inlined_call_operand.vmem [shape: f32[2,1], index: 1, kind: input, shape index: {}]   ;;  %s8596_s2 = inlined_call_operand.vmem [shape: bf16[128,18], index: 2, kind: input, shape index: {}]   ;;  %s8597_s3 = inlined_call_operand.hbm [shape: bf16[64,1152], index: 3, kind: input, shape index: {}]   ;;  %s8598_s4 = inlined_call_operand.vmem [shape: f32[64,1], index: 4, kind: input, shape index: {}]   ;;  %s8599_s5 = inlined_call_operand.hbm [shape: f32[64,128], index: 5, kind: output, shape index: {}]  }
   0x1   :  { %11 = vsyncpa [#allocation4], 0  ;;  %s22_s20 = sshll.u32 %s8597_s3, 4  ;;  %s5136_s21 = smov [#allocation2]   ;;  %s23_s20 = int_to_ptr.hbm [resolvable:$true] %s22_s20 }
   0x2   :  { %s24_s22 = sshll.u32 %s5136_s21, 4  ;;  %s5137_s23 = smov 576   ;;  %s25_s22 = int_to_ptr.vmem [resolvable:$true] %s24_s22 }
   0x3   :  { %s5138_s24 = smov 36  }
   0x4   :  { %30 = dma.hbm_to_vmem [thread:$0]  %s23_s20, 4608, %s25_s22, [#allocation3], %s5137_s23, %s5137_s23, %s5138_s24  }
   0x5   :  { %5132 = dma.done.wait [#allocation3], 4608  }
   0x6   :  { %5133 = vsyncadd [#allocation3], 4294962688  ;;  %v5139_v0 = vmov 0   ;;  %v39_v1 = vld [vmem:[%s8595_s1] sm:$0x3]  ;;  %v4234_v3 = vld [vmem:[%s8598_s4 + $0x28] sm:$0xff] }
   0x7   :  { %5005 = vset.pattern.permute.xlu0 %v5139_v0  ;;  %5006 = vset.pattern.permute.xlu1 %v5139_v0  ;;  %v4229_v2 = vld [vmem:[%s8598_s4] sm:$0xff]  ;;  %vm41_vm0 = vcmask 1041408   ;;  %v5140_v4 = vmov 2.0   ;;  %v8600_v32 = vmov 0.0   ;;  %s4347_s7 = sshll.u32 %s8599_s5, 4  ;;  %s5144_s8 = smov 128   ;;  %s4348_s7 = int_to_ptr.hbm [resolvable:$true] %s4347_s7 }
   0x8   :  { %5007 = vset.pattern.permute.xlu2 %v5139_v0  ;;  %71 = vperm.xlu0 %5005, %v39_v1   ;;  %5008 = vrcp.f32 %v5140_v4  ;;  %v38_v5 = vld [vmem:[%s8594_s0] sm:$0x3]  ;;  %s5145_s9 = smov 8  }
   0x9   :  { %v40_v6 = vmul.f32 %v38_v5, %v38_v5 }
   0xb   :  { %v42_v7 = vsel %vm41_vm0, %v40_v6, 0.0 }
   0xc   :  { %v43_v8 = vrot.slane %v42_v7, 4 }
   0xe   :  { %v5009_v9 = vpop.eup %5008  ;;  %v44_v10 = vadd.f32 %v43_v8, %v42_v7 }
   0xf   :  { %v50_v11 = vmul.f32 2.0, %v5009_v9  ;;  %vm54_vm1 = vweird.f32 %v5009_v9 }
  0x10   :  { %4287 = vperm.xlu0 %5005, %v4229_v2   ;;  %v45_v12 = vrot.slane %v44_v10, 2 }
  0x11   :  { %v51_v13 = vsub.f32 1.0, %v50_v11 }
  0x12   :  { %v46_v14 = vadd.f32 %v45_v12, %v44_v10 }
  0x13   :  { %v52_v15 = vmul.f32 %v5009_v9, %v51_v13 }
  0x14   :  { %v47_v16 = vrot.slane %v46_v14, 1 }
  0x15   :  { %v53_v17 = vadd.f32 %v5009_v9, %v52_v15 }
  0x16   :  { %v48_v18 = vadd.f32 %v47_v16, %v46_v14 }
  0x17   :  { %v55_v19 = vsel %vm54_vm1, %v5009_v9, %v53_v17 }
  0x18   :  { %4312 = vperm.xlu0 %5005, %v4234_v3   ;;  %v56_v20 = vmul.f32 %v55_v19, %v48_v18 }
  0x1a   :  { %v57_v21 = vadd.f32 1.1920929e-07, %v56_v20 }
  0x1c   :  { %5010 = vrsqrt.f32 %v57_v21  ;;  %vm64_vm2 = vweird.f32 %v57_v21 }
  0x22   :  { %v5011_v22 = vpop.eup %5010 }
  0x23   :  { %v59_v23 = vmul.f32 %v5011_v22, %v57_v21  ;;  %vm65_vm3 = vweird.f32 %v5011_v22 }
  0x24   :  { %vm66_vm4 = vmor %vm64_vm2, %vm65_vm3  ;;  %vm379_vm2 = vcmask 1040384  }
  0x25   :  { %v60_v24 = vmul.f32 %v5011_v22, %v59_v23 }
  0x27   :  { %v61_v25 = vmul.f32 0.5, %v60_v24 }
  0x29   :  { %v62_v26 = vsub.f32 1.5, %v61_v25 }
  0x2b   :  { %v63_v27 = vmul.f32 %v5011_v22, %v62_v26 }
  0x2d   :  { %v67_v28 = vsel %vm66_vm4, %v5011_v22, %v63_v27 }
  0x2e   :  { %v68_v29 = vmul.f32 %v67_v28, %v38_v5 }
  0x7a   :  { %v72_v30 = vpop.permute.xlu0 %71 }
  0x7b   :  { %v5192_v31 = vmul.f32 %v72_v30, %v68_v29 }
  0x7d   :  { %vm96_vm5 = vcmp.ge.f32.partialorder %v5192_v31, 0.6  ;;  %vm99_vm6 = vcmp.ge.f32.partialorder %v5192_v31, 1.0  ;;  %vm102_vm7 = vcmp.ge.f32.partialorder %v5192_v31, 1.4  ;;  %v4380_v44 = vadd.f32 -1.0, %v5192_v31 }
  0x7e   :  { %v4367_v33 = vsel %vm96_vm5, 1.0, %v8600_v32  ;;  %v4368_v34 = vsel %vm99_vm6, 1.0, %v8600_v32  ;;  %vm105_vm8 = vcmp.ge.f32.partialorder %v5192_v31, 1.8  ;;  %v4369_v35 = vsel %vm102_vm7, 1.0, %v8600_v32 }
  0x7f   :  { %v4370_v36 = vsel %vm105_vm8, 1.0, %v8600_v32  ;;  %vm108_vm9 = vcmp.ge.f32.partialorder %v5192_v31, 2.2  ;;  %v118_v38 = vsub.f32 %v4367_v33, %v4368_v34  ;;  %v119_v39 = vsub.f32 %v4368_v34, %v4369_v35 }
  0x80   :  { %v4371_v37 = vsel %vm108_vm9, 1.0, %v8600_v32  ;;  %v120_v40 = vsub.f32 %v4369_v35, %v4370_v36  ;;  %v4379_v42 = vadd.f32 -0.6, %v5192_v31  ;;  %v5206_v43 = vsub.f32 1.4, %v5192_v31 }
  0x81   :  { %v121_v41 = vsub.f32 %v4370_v36, %v4371_v37  ;;  %v5210_v45 = vsub.f32 1.8, %v5192_v31  ;;  %v4381_v46 = vadd.f32 -1.4, %v5192_v31  ;;  %v178_v49 = vsub.f32 2.2, %v5192_v31 }
  0x82   :  { %v165_v47 = vmul.f32 %v4379_v42, %v118_v38  ;;  %v167_v48 = vmul.f32 %v5206_v43, %v119_v39  ;;  %vm90_vm10 = vcmp.ge.f32.partialorder %v5192_v31, -0.2  ;;  %v171_v50 = vmul.f32 %v4380_v44, %v119_v39 }
  0x83   :  { %v173_v51 = vmul.f32 %v5210_v45, %v120_v40  ;;  %v177_v52 = vmul.f32 %v4381_v46, %v120_v40  ;;  %vm93_vm11 = vcmp.ge.f32.partialorder %v5192_v31, 0.2  ;;  %v179_v54 = vmul.f32 %v178_v49, %v121_v41 }
  0x84   :  { %v168_v53 = vadd.f32 %v167_v48, %v165_v47  ;;  %vm75_vm12 = vcmp.ge.f32.partialorder %v5192_v31, -2.2  ;;  %vm78_vm13 = vcmp.ge.f32.partialorder %v5192_v31, -1.8  ;;  %vm81_vm14 = vcmp.ge.f32.partialorder %v5192_v31, -1.4 }
  0x85   :  { %v174_v55 = vadd.f32 %v173_v51, %v171_v50  ;;  %v180_v57 = vadd.f32 %v179_v54, %v177_v52  ;;  %vm84_vm15 = vcmp.ge.f32.partialorder %v5192_v31, -1.0  ;;  %vm87_vm1 = vcmp.ge.f32.partialorder %v5192_v31, -0.6 }
  0x86   :  { %v5221_v56 = vmul.f32 2.5, %v168_v53  ;;  %v4365_v58 = vsel %vm90_vm10, 1.0, %v8600_v32  ;;  %v4366_v59 = vsel %vm93_vm11, 1.0, %v8600_v32  ;;  %v4360_v61 = vsel %vm75_vm12, 1.0, %v8600_v32 }
  0x87   :  { %v175_v60 = vmul.f32 2.5, %v174_v55  ;;  %v181_v62 = vmul.f32 2.5, %v180_v57  ;;  %v4361_v0 = vsel %vm78_vm13, 1.0, %v8600_v32  ;;  %v4362_v1 = vsel %vm81_vm14, 1.0, %v8600_v32 }
  0x88   :  { %v210_v63 = vmul.f32 %v4379_v42, %v5221_v56  ;;  %v4363_v4 = vsel %vm84_vm15, 1.0, %v8600_v32  ;;  %v4364_v5 = vsel %vm87_vm1, 1.0, %v8600_v32  ;;  %v116_v6 = vsub.f32 %v4365_v58, %v4366_v59 }
  0x89   :  { %v211_v2 = vmul.f32 %v175_v60, %v5210_v45  ;;  %v214_v3 = vmul.f32 %v4380_v44, %v175_v60  ;;  %v5235_v7 = vsub.f32 1.0, %v5192_v31  ;;  %v215_v8 = vmul.f32 %v181_v62, %v178_v49 }
  0x8a   :  { %v117_v9 = vsub.f32 %v4366_v59, %v4367_v33  ;;  %v111_v11 = vsub.f32 %v4360_v61, %v4361_v0  ;;  %v112_v12 = vsub.f32 %v4361_v0, %v4362_v1  ;;  %v113_v15 = vsub.f32 %v4362_v1, %v4363_v4 }
  0x8b   :  { %v212_v10 = vadd.f32 %v211_v2, %v210_v63  ;;  %v161_v13 = vmul.f32 %v5235_v7, %v118_v38  ;;  %v216_v14 = vadd.f32 %v215_v8, %v214_v3  ;;  %v114_v16 = vsub.f32 %v4363_v4, %v4364_v5 }
  0x8c   :  { %v115_v18 = vsub.f32 %v4364_v5, %v4365_v58  ;;  %v5241_v19 = vadd.f32 2.2, %v5192_v31  ;;  %v124_v20 = vsub.f32 -1.4, %v5192_v31  ;;  %v5245_v22 = vadd.f32 1.8, %v5192_v31 }
  0x8d   :  { %v5238_v17 = vmul.f32 1.25, %v212_v10  ;;  %v217_v21 = vmul.f32 1.25, %v216_v14  ;;  %v130_v23 = vsub.f32 -1.0, %v5192_v31  ;;  %v5249_v24 = vadd.f32 1.4, %v5192_v31 }
  0x8e   :  { %v123_v26 = vmul.f32 %v5241_v19, %v111_v11  ;;  %v125_v27 = vmul.f32 %v124_v20, %v112_v12  ;;  %v5254_v28 = vsub.f32 -0.6, %v5192_v31  ;;  %v129_v30 = vmul.f32 %v5245_v22, %v112_v12 }
  0x8f   :  { %v266_v25 = vmul.f32 %v4379_v42, %v5238_v17  ;;  %v267_v29 = vmul.f32 %v217_v21, %v178_v49  ;;  %v131_v33 = vmul.f32 %v130_v23, %v113_v15  ;;  %v135_v34 = vmul.f32 %v5249_v24, %v113_v15 }
  0x90   :  { %v137_v35 = vmul.f32 %v5254_v28, %v114_v16  ;;  %v5260_v36 = vadd.f32 1.0, %v5192_v31  ;;  %v4376_v37 = vadd.f32 0.6, %v5192_v31  ;;  %v5264_v38 = vsub.f32 0.2, %v5192_v31 }
  0x91   :  { %v268_v39 = vadd.f32 %v267_v29, %v266_v25  ;;  %v5267_v40 = vsub.f32 -0.2, %v5192_v31  ;;  %v5270_v41 = vadd.f32 0.2, %v5192_v31  ;;  %v5273_v42 = vsub.f32 0.6, %v5192_v31 }
  0x92   :  { %v141_v44 = vmul.f32 %v5260_v36, %v114_v16  ;;  %v147_v46 = vmul.f32 %v4376_v37, %v115_v18  ;;  %v149_v47 = vmul.f32 %v5264_v38, %v116_v6  ;;  %v5278_v48 = vadd.f32 -0.2, %v5192_v31 }
  0x93   :  { %v269_v49 = vmul.f32 0.8333333, %v268_v39  ;;  %v143_v50 = vmul.f32 %v5267_v40, %v115_v18  ;;  %v153_v51 = vmul.f32 %v5270_v41, %v116_v6  ;;  %v155_v52 = vmul.f32 %v5273_v42, %v117_v9 }
  0x94   :  { %v150_v53 = vadd.f32 %v149_v47, %v147_v46  ;;  %v159_v54 = vmul.f32 %v5278_v48, %v117_v9  ;;  %v126_v57 = vadd.f32 %v125_v27, %v123_v26  ;;  %v132_v59 = vadd.f32 %v131_v33, %v129_v30 }
  0x95   :  { %v297_v55 = vpack.c.bf16 %v269_v49, %v269_v49  ;;  %v156_v58 = vadd.f32 %v155_v52, %v153_v51  ;;  %v138_v60 = vadd.f32 %v137_v35, %v135_v34  ;;  %v144_v0 = vadd.f32 %v143_v50, %v141_v44 }
  0x96   :  { %v151_v61 = vmul.f32 2.5, %v150_v53  ;;  %v162_v62 = vadd.f32 %v161_v13, %v159_v54  ;;  %v127_v6 = vmul.f32 2.5, %v126_v57  ;;  %v133_v8 = vmul.f32 2.5, %v132_v59 }
  0x97   :  { %v381_v63 = vsel %vm379_vm2, %v297_v55, 0  ;;  %v157_v1 = vmul.f32 2.5, %v156_v58  ;;  %v139_v9 = vmul.f32 2.5, %v138_v60  ;;  %v145_v11 = vmul.f32 2.5, %v144_v0 }
  0x98   :  { %389 = vmatpush.bf16.msra.mxu0 %v381_v63  ;;  %v163_v2 = vmul.f32 2.5, %v162_v62  ;;  %v198_v3 = vmul.f32 %v4376_v37, %v151_v61  ;;  %v4382_v12 = vmul.f32 -1.442695, %v5192_v31  ;;  %v207_v13 = vmul.f32 %v5221_v56, %v5206_v43 }
  0x99   :  { %v199_v4 = vmul.f32 %v157_v1, %v5273_v42  ;;  %v202_v5 = vmul.f32 %v5270_v41, %v157_v1  ;;  %v182_v18 = vmul.f32 %v5241_v19, %v127_v6  ;;  %v183_v20 = vmul.f32 %v133_v8, %v130_v23 }
  0x9a   :  { %v203_v10 = vmul.f32 %v163_v2, %v5235_v7  ;;  %v206_v14 = vmul.f32 %v5278_v48, %v163_v2  ;;  %5012 = vpow2.f32 %v4382_v12  ;;  %v186_v21 = vmul.f32 %v5245_v22, %v133_v8 }
  0x9b   :  { %v200_v15 = vadd.f32 %v199_v4, %v198_v3  ;;  %v187_v25 = vmul.f32 %v139_v9, %v5254_v28  ;;  %v190_v26 = vmul.f32 %v5249_v24, %v139_v9  ;;  %v191_v27 = vmul.f32 %v145_v11, %v5267_v40 }
  0x9c   :  { %v204_v16 = vadd.f32 %v203_v10, %v202_v5  ;;  %v194_v29 = vmul.f32 %v5260_v36, %v145_v11  ;;  %v195_v56 = vmul.f32 %v151_v61, %v5264_v38  ;;  %v208_v30 = vadd.f32 %v207_v13, %v206_v14 }
  0x9d   :  { %v201_v33 = vmul.f32 1.25, %v200_v15  ;;  %v184_v35 = vadd.f32 %v183_v20, %v182_v18  ;;  %v188_v39 = vadd.f32 %v187_v25, %v186_v21  ;;  %v192_v46 = vadd.f32 %v191_v27, %v190_v26 }
  0x9e   :  { %v205_v34 = vmul.f32 1.25, %v204_v16  ;;  %v196_v23 = vadd.f32 %v195_v56, %v194_v29  ;;  %v209_v47 = vmul.f32 1.25, %v208_v30  ;;  %v263_v60 = vmul.f32 %v5238_v17, %v5210_v45 }
  0x9f   :  { %v254_v50 = vmul.f32 %v4376_v37, %v201_v33  ;;  %v185_v52 = vmul.f32 1.25, %v184_v35  ;;  %v189_v53 = vmul.f32 1.25, %v188_v39  ;;  %v193_v54 = vmul.f32 1.25, %v192_v46  ;;  %v4935_v39 = vld [vmem:[%s8596_s2] sm:$0xff]  ;;  %v4938_v46 = vld [vmem:[%s8596_s2 + $0x18] sm:$0xff] }
  0xa0   :  { %v5013_v44 = vpop.eup %5012  ;;  %v255_v51 = vmul.f32 %v205_v34, %v5235_v7  ;;  %v197_v55 = vmul.f32 1.25, %v196_v23  ;;  %v258_v57 = vmul.f32 %v5270_v41, %v205_v34  ;;  %v259_v58 = vmul.f32 %v209_v47, %v5206_v43  ;;  %v4939_v23 = vld [vmem:[%s8596_s2 + $0x20] sm:$0xff] }
  0xa1   :  { %v221_v49 = vadd.f32 1.0, %v5013_v44  ;;  %v238_v61 = vmul.f32 %v5241_v19, %v185_v52  ;;  %v239_v62 = vmul.f32 %v189_v53, %v5254_v28  ;;  %v242_v37 = vmul.f32 %v5245_v22, %v189_v53  ;;  %v4937_v44 = vld [vmem:[%s8596_s2 + $0x10] sm:$0xff] }
  0xa2   :  { %v256_v59 = vadd.f32 %v255_v51, %v254_v50  ;;  %v243_v7 = vmul.f32 %v193_v54, %v5267_v40  ;;  %v250_v63 = vmul.f32 %v5260_v36, %v197_v55  ;;  %v251_v0 = vmul.f32 %v201_v33, %v5273_v42  ;;  %v4942_v50 = vld [vmem:[%s8596_s2 + $0x38] sm:$0xff] }
  0xa3   :  { %5014 = vrcp.f32 %v221_v49  ;;  %v246_v41 = vmul.f32 %v5249_v24, %v193_v54  ;;  %v247_v43 = vmul.f32 %v197_v55, %v5264_v38  ;;  %v260_v2 = vadd.f32 %v259_v58, %v258_v57 }
  0xa4   :  { %v262_v45 = vmul.f32 %v5278_v48, %v209_v47  ;;  %v257_v19 = vmul.f32 0.8333333, %v256_v59  ;;  %v240_v3 = vadd.f32 %v239_v62, %v238_v61  ;;  %v244_v4 = vadd.f32 %v243_v7, %v242_v37  ;;  %v4940_v47 = vld [vmem:[%s8596_s2 + $0x28] sm:$0xff] }
  0xa5   :  { %v252_v22 = vadd.f32 %v251_v0, %v250_v63  ;;  %v233_v5 = vand.u32 2147483648, %v221_v49  ;;  %v248_v40 = vadd.f32 %v247_v43, %v246_v41  ;;  %v261_v6 = vmul.f32 0.8333333, %v260_v2 }
  0xa6   :  { %v264_v36 = vadd.f32 %v263_v60, %v262_v45  ;;  %v231_v42 = vand.u32 2147483647, %v221_v49  ;;  %v280_v9 = vrot.slane %v257_v19, 6  ;;  %v241_v24 = vmul.f32 0.8333333, %v240_v3 }
  0xa7   :  { %vm227_vm4 = vweird.f32 %v221_v49  ;;  %v245_v38 = vmul.f32 0.8333333, %v244_v4  ;;  %v253_v11 = vmul.f32 0.8333333, %v252_v22  ;;  %v234_v48 = vor.u32 1.1754944e-38, %v233_v5 }
  0xa8   :  { %v249_v12 = vmul.f32 0.8333333, %v248_v40  ;;  %v283_v13 = vrot.slane %v261_v6, 4  ;;  %vm289_vm6 = vcmask 1043456   ;;  %vm232_vm7 = vcmp.eq.f32.partialorder %v231_v42, 8.507059e+37 }
  0xa9   :  { %v5015_v1 = vpop.eup %5014  ;;  %v265_v15 = vmul.f32 0.8333333, %v264_v36  ;;  %v293_v16 = vsel %vm41_vm0, %v253_v11, %v280_v9  ;;  %v271_v21 = vrot.slane %v241_v24, 6  ;;  %v274_v25 = vrot.slane %v245_v38, 4 }
  0xaa   :  { %v223_v17 = vmul.f32 %v5015_v1, %v221_v49  ;;  %vm228_vm3 = vweird.f32 %v5015_v1  ;;  %vm291_vm8 = vcmask 1045504   ;;  %v294_v26 = vsel %vm289_vm6, %v293_v16, %v283_v13  ;;  %v4941_v49 = vld [vmem:[%s8596_s2 + $0x30] sm:$0xff] }
  0xab   :  { %vm229_vm5 = vmor %vm227_vm4, %vm228_vm3  ;;  %v277_v27 = vrot.slane %v249_v12, 2  ;;  %v286_v29 = vrot.slane %v265_v15, 2  ;;  %vm354_vm9 = vcmask 146432  }
  0xac   :  { %v224_v28 = vsub.f32 1.0, %v223_v17 }
  0xad   :  { %v295_v34 = vsel %vm291_vm8, %v294_v26, %v286_v29 }
  0xae   :  { %v225_v8 = vmul.f32 %v5015_v1, %v224_v28 }
  0xb0   :  { %v226_v10 = vadd.f32 %v5015_v1, %v225_v8 }
  0xb2   :  { %v230_v14 = vsel %vm229_vm5, %v5015_v1, %v226_v10 }
  0xb3   :  { %v235_v18 = vsel %vm232_vm7, %v234_v48, %v230_v14 }
  0xb4   :  { %v237_v20 = vmul.f32 %v235_v18, %v5192_v31  ;;  %v4936_v31 = vld [vmem:[%s8596_s2 + $0x8] sm:$0xff] }
  0xb6   :  { %v288_v56 = vsel %vm41_vm0, %v237_v20, %v271_v21 }
  0xb7   :  { %v290_v30 = vsel %vm289_vm6, %v288_v56, %v274_v25 }
  0xb8   :  { %v292_v33 = vsel %vm291_vm8, %v290_v30, %v277_v27 }
  0xb9   :  { %v296_v35 = vpack.c.bf16 %v295_v34, %v292_v33 }
  0xbb   :  { %390 = vmatpush.bf16.msra.mxu0 %v296_v35 }
  0xbe   :  { %4415 = vmatmul.msk.bf16.vlgmr.msra.gmra.mxu0 %vm354_vm9, %v4935_v39 }
  0xce   :  { %4416 = vmatmul.msk.bf16.gmra.mxu0 %vm354_vm9, %v4936_v31 }
  0xde   :  { %4417 = vmatmul.msk.bf16.gmra.mxu0 %vm354_vm9, %v4937_v44 }
  0xee   :  { %4418 = vmatmul.msk.bf16.gmra.mxu0 %vm354_vm9, %v4938_v46 }
  0xfe   :  { %4419 = vmatmul.msk.bf16.gmra.mxu0 %vm354_vm9, %v4939_v23 }
 0x10e   :  { %4420 = vmatmul.msk.bf16.gmra.mxu0 %vm354_vm9, %v4940_v47 }
 0x11e   :  { %4421 = vmatmul.msk.bf16.gmra.mxu0 %vm354_vm9, %v4941_v49 }
 0x12e   :  { %4422 = vmatmul.msk.bf16.gmra.mxu0 %vm354_vm9, %v4942_v50 }
 0x13b   :  { %v5339_v51 = vpop.f32.mrf.mxu0 }
 0x13c   :  { %9003 = vst [vmem:[#allocation8_spill] sm:$0xff] %v5339_v51 }
 0x143   :  { %v5341_v52 = vpop.f32.mrf.mxu0 }
 0x144   :  { %9004 = vst [vmem:[#allocation9_spill] sm:$0xff] %v5341_v52 }
 0x14b   :  { %v5343_v53 = vpop.f32.mrf.mxu0 }
 0x14c   :  { %9005 = vst [vmem:[#allocation10_spill] sm:$0xff] %v5343_v53 }
 0x153   :  { %v5345_v54 = vpop.f32.mrf.mxu0 }
 0x154   :  { %9006 = vst [vmem:[#allocation11_spill] sm:$0xff] %v5345_v54 }
 0x15b   :  { %v5347_v55 = vpop.f32.mrf.mxu0 }
 0x15c   :  { %9007 = vst [vmem:[#allocation12_spill] sm:$0xff] %v5347_v55 }
 0x163   :  { %v5349_v57 = vpop.f32.mrf.mxu0 }
 0x164   :  { %9008 = vst [vmem:[#allocation13_spill] sm:$0xff] %v5349_v57 }
 0x16b   :  { %v5351_v58 = vpop.f32.mrf.mxu0 }
 0x16c   :  { %9009 = vst [vmem:[#allocation14_spill] sm:$0xff] %v5351_v58 }
 0x173   :  { %v5353_v59 = vpop.f32.mrf.mxu0 }
 0x174   :  { %9010 = vst [vmem:[#allocation15_spill] sm:$0xff] %v5353_v59 }
 0x17b   :  { %v5355_v60 = vpop.f32.mrf.mxu0 }
 0x17c   :  { %9011 = vst [vmem:[#allocation16_spill] sm:$0xff] %v5355_v60  ;;  %v6157_v52 = vadd.f32 0.2, %v5355_v60  ;;  %v6191_v51 = vsub.f32 1.0, %v5355_v60 }
 0x17e   :  { %9148 = vst [vmem:[#allocation144_spill] sm:$0xff] %v6191_v51 }
 0x183   :  { %v5357_v61 = vpop.f32.mrf.mxu0 }
 0x184   :  { %9012 = vst [vmem:[#allocation17_spill] sm:$0xff] %v5357_v61 }
 0x18b   :  { %v5359_v62 = vpop.f32.mrf.mxu0 }
 0x18c   :  { %9013 = vst [vmem:[#allocation18_spill] sm:$0xff] %v5359_v62 }
 0x193   :  { %v5361_v37 = vpop.f32.mrf.mxu0 }
 0x194   :  { %9014 = vst [vmem:[#allocation19_spill] sm:$0xff] %v5361_v37 }
 0x19b   :  { %v5363_v7 = vpop.f32.mrf.mxu0 }
 0x19c   :  { %9015 = vst [vmem:[#allocation20_spill] sm:$0xff] %v5363_v7 }
 0x1a3   :  { %v5365_v63 = vpop.f32.mrf.mxu0 }
 0x1a4   :  { %9016 = vst [vmem:[#allocation21_spill] sm:$0xff] %v5365_v63 }
 0x1ab   :  { %v5367_v0 = vpop.f32.mrf.mxu0 }
 0x1ac   :  { %9017 = vst [vmem:[#allocation22_spill] sm:$0xff] %v5367_v0  ;;  %vm782_vm0 = vcmp.ge.f32.partialorder %v5367_v0, -2.2  ;;  %vm830_vm10 = vcmp.ge.f32.partialorder %v5367_v0, -1.8  ;;  %vm926_vm12 = vcmp.ge.f32.partialorder %v5367_v0, -1.0 }
 0x1ad   :  { %vm878_vm11 = vcmp.ge.f32.partialorder %v5367_v0, -1.4  ;;  %v4453_v1 = vsel %vm782_vm0, 1.0, %v8600_v32  ;;  %v4469_v41 = vsel %vm830_vm10, 1.0, %v8600_v32  ;;  %v4501_v2 = vsel %vm926_vm12, 1.0, %v8600_v32 }
 0x1ae   :  { %v4485_v43 = vsel %vm878_vm11, 1.0, %v8600_v32  ;;  %vm974_vm13 = vcmp.ge.f32.partialorder %v5367_v0, -0.6  ;;  %v1358_v45 = vsub.f32 %v4453_v1, %v4469_v41  ;;  %v5382_v28 = vadd.f32 2.2, %v5367_v0 }
 0x1af   :  { %v1374_v17 = vsub.f32 %v4469_v41, %v4485_v43  ;;  %v5379_v19 = vsel %vm974_vm13, 1.0, %v8600_v32  ;;  %v1390_v3 = vsub.f32 %v4485_v43, %v4501_v2  ;;  %v1566_v4 = vsub.f32 -1.4, %v5367_v0 }
 0x1b0   :  { %9018 = vst [vmem:[#allocation23_spill] sm:$0xff] %v5379_v19  ;;  %v5386_v22 = vsub.f32 %v4501_v2, %v5379_v19  ;;  %v5389_v5 = vadd.f32 1.8, %v5367_v0  ;;  %v1662_v40 = vsub.f32 -1.0, %v5367_v0  ;;  %v1550_v6 = vmul.f32 %v5382_v28, %v1358_v45 }
 0x1b1   :  { %v1582_v36 = vmul.f32 %v1566_v4, %v1374_v17  ;;  %v5394_v8 = vadd.f32 1.4, %v5367_v0  ;;  %v5397_v42 = vsub.f32 -0.6, %v5367_v0  ;;  %vm1022_vm4 = vcmp.ge.f32.partialorder %v5367_v0, -0.2 }
 0x1b2   :  { %9019 = vst [vmem:[#allocation24_spill] sm:$0xff] %v5386_v22  ;;  %v1646_v9 = vmul.f32 %v5389_v5, %v1374_v17  ;;  %v1678_v24 = vmul.f32 %v1662_v40, %v1390_v3  ;;  %vm1070_vm6 = vcmp.ge.f32.partialorder %v5367_v0, 0.2  ;;  %vm1118_vm7 = vcmp.ge.f32.partialorder %v5367_v0, 0.6 }
 0x1b3   :  { %9020 = vst [vmem:[#allocation25_spill] sm:$0xff] %v5389_v5  ;;  %v5400_v10 = vpop.f32.mrf.mxu0  ;;  %v1598_v38 = vadd.f32 %v1582_v36, %v1550_v6  ;;  %v1742_v11 = vmul.f32 %v5394_v8, %v1390_v3  ;;  %v1774_v48 = vmul.f32 %v5397_v42, %v5386_v22  ;;  %vm1166_vm0 = vcmp.ge.f32.partialorder %v5367_v0, 1.0 }
 0x1b4   :  { %9021 = vst [vmem:[#allocation26_spill] sm:$0xff] %v5394_v8  ;;  %vm783_vm14 = vcmp.ge.f32.partialorder %v5400_v10, -2.2  ;;  %vm831_vm15 = vcmp.ge.f32.partialorder %v5400_v10, -1.8  ;;  %v1694_v12 = vadd.f32 %v1678_v24, %v1646_v9  ;;  %vm927_vm2 = vcmp.ge.f32.partialorder %v5400_v10, -1.0 }
 0x1b5   :  { %9022 = vst [vmem:[#allocation27_spill] sm:$0xff] %v5400_v10  ;;  %vm879_vm1 = vcmp.ge.f32.partialorder %v5400_v10, -1.4  ;;  %v4454_v13 = vsel %vm783_vm14, 1.0, %v8600_v32  ;;  %v4470_v14 = vsel %vm831_vm15, 1.0, %v8600_v32  ;;  %v4502_v16 = vsel %vm927_vm2, 1.0, %v8600_v32 }
 0x1b6   :  { %v4486_v15 = vsel %vm879_vm1, 1.0, %v8600_v32  ;;  %vm975_vm3 = vcmp.ge.f32.partialorder %v5400_v10, -0.6  ;;  %v1359_v18 = vsub.f32 %v4454_v13, %v4470_v14  ;;  %v4646_v26 = vadd.f32 2.2, %v5400_v10 }
 0x1b7   :  { %v1375_v20 = vsub.f32 %v4470_v14, %v4486_v15  ;;  %v5415_v21 = vsel %vm975_vm3, 1.0, %v8600_v32  ;;  %v1391_v25 = vsub.f32 %v4486_v15, %v4502_v16  ;;  %v1567_v27 = vsub.f32 -1.4, %v5400_v10 }
 0x1b8   :  { %9023 = vst [vmem:[#allocation28_spill] sm:$0xff] %v5415_v21  ;;  %v5420_v29 = vsub.f32 %v4502_v16, %v5415_v21  ;;  %v1614_v56 = vmul.f32 2.5, %v1598_v38  ;;  %v5423_v30 = vadd.f32 1.8, %v5400_v10  ;;  %v1663_v33 = vsub.f32 -1.0, %v5400_v10 }
 0x1b9   :  { %v1551_v34 = vmul.f32 %v4646_v26, %v1359_v18  ;;  %v1583_v35 = vmul.f32 %v1567_v27, %v1375_v20  ;;  %v1710_v39 = vmul.f32 2.5, %v1694_v12  ;;  %v5427_v31 = vadd.f32 1.4, %v5400_v10 }
 0x1ba   :  { %9024 = vst [vmem:[#allocation29_spill] sm:$0xff] %v5420_v29  ;;  %v1647_v44 = vmul.f32 %v5423_v30, %v1375_v20  ;;  %v1679_v46 = vmul.f32 %v1663_v33, %v1391_v25  ;;  %v1759_v23 = vsub.f32 -0.6, %v5400_v10  ;;  %v1790_v47 = vadd.f32 %v1774_v48, %v1742_v11 }
 0x1bb   :  { %9025 = vst [vmem:[#allocation30_spill] sm:$0xff] %v5423_v30  ;;  %v1599_v49 = vadd.f32 %v1583_v35, %v1551_v34  ;;  %v1743_v50 = vmul.f32 %v5427_v31, %v1391_v25  ;;  %v2494_v1 = vmul.f32 %v5382_v28, %v1614_v56  ;;  %v2510_v41 = vmul.f32 %v1710_v39, %v1662_v40 }
 0x1bc   :  { %9026 = vst [vmem:[#allocation31_spill] sm:$0xff] %v5427_v31  ;;  %v1695_v43 = vadd.f32 %v1679_v46, %v1647_v44  ;;  %v1775_v2 = vmul.f32 %v1759_v23, %v5420_v29  ;;  %v5434_v45 = vmul.f32 2.5, %v1790_v47  ;;  %v2558_v17 = vmul.f32 %v5389_v5, %v1710_v39 }
 0x1bd   :  { %v1615_v3 = vmul.f32 2.5, %v1599_v49  ;;  %v2526_v4 = vadd.f32 %v2510_v41, %v2494_v1  ;;  %v5444_v13 = vsel %vm1022_vm4, 1.0, %v8600_v32  ;;  %vm1023_vm5 = vcmp.ge.f32.partialorder %v5400_v10, -0.2 }
 0x1be   :  { %9027 = vst [vmem:[#allocation32_spill] sm:$0xff] %v5434_v45  ;;  %v1711_v6 = vmul.f32 2.5, %v1695_v43  ;;  %v1791_v36 = vadd.f32 %v1775_v2, %v1743_v50  ;;  %v2574_v9 = vmul.f32 %v5434_v45, %v5397_v42  ;;  %vm1071_vm8 = vcmp.ge.f32.partialorder %v5400_v10, 0.2 }
 0x1bf   :  { %v2495_v24 = vmul.f32 %v4646_v26, %v1615_v3  ;;  %v2542_v38 = vmul.f32 1.25, %v2526_v4  ;;  %9029 = vst [vmem:[#allocation34_spill] sm:$0xff] %v5444_v13  ;;  %vm1119_vm9 = vcmp.ge.f32.partialorder %v5400_v10, 0.6  ;;  %vm1167_vm10 = vcmp.ge.f32.partialorder %v5400_v10, 1.0 }
 0x1c0   :  { %v5440_v11 = vmul.f32 2.5, %v1791_v36  ;;  %v2511_v40 = vmul.f32 %v1711_v6, %v1663_v33  ;;  %v2559_v48 = vmul.f32 %v5423_v30, %v1711_v6  ;;  %v2590_v12 = vadd.f32 %v2574_v9, %v2558_v17 }
 0x1c1   :  { %v3070_v18 = vmul.f32 %v5382_v28, %v2542_v38  ;;  %vm1214_vm11 = vcmp.ge.f32.partialorder %v5367_v0, 1.4  ;;  %vm1215_vm12 = vcmp.ge.f32.partialorder %v5400_v10, 1.4  ;;  %v5464_v34 = vsel %vm1023_vm5, 1.0, %v8600_v32 }
 0x1c2   :  { %9028 = vst [vmem:[#allocation33_spill] sm:$0xff] %v5440_v11  ;;  %v2527_v14 = vadd.f32 %v2511_v40, %v2495_v24  ;;  %v2575_v15 = vmul.f32 %v5440_v11, %v1759_v23  ;;  %v5447_v16 = vmul.f32 1.25, %v2590_v12  ;;  %v4550_v35 = vsel %vm1071_vm8, 1.0, %v8600_v32 }
 0x1c3   :  { %9032 = vst [vmem:[#allocation37_spill] sm:$0xff] %v5464_v34  ;;  %v4565_v39 = vsel %vm1118_vm7, 1.0, %v8600_v32  ;;  %v4566_v46 = vsel %vm1119_vm9, 1.0, %v8600_v32  ;;  %v4582_v47 = vsel %vm1167_vm10, 1.0, %v8600_v32  ;;  %v5476_v49 = vsel %vm1214_vm11, 1.0, %v8600_v32 }
 0x1c4   :  { %9030 = vst [vmem:[#allocation35_spill] sm:$0xff] %v5447_v16  ;;  %v2543_v20 = vmul.f32 1.25, %v2527_v14  ;;  %v2591_v25 = vadd.f32 %v2575_v15, %v2559_v48  ;;  %v3086_v27 = vmul.f32 %v5447_v16, %v5397_v42  ;;  %v4549_v42 = vsel %vm1070_vm6, 1.0, %v8600_v32 }
 0x1c5   :  { %v5479_v50 = vsel %vm1215_vm12, 1.0, %v8600_v32  ;;  %v5482_v43 = vsub.f32 %v5444_v13, %v4549_v42  ;;  %v5485_v2 = vsub.f32 %v5464_v34, %v4550_v35  ;;  %v1455_v17 = vsub.f32 %v4550_v35, %v4566_v46 }
 0x1c6   :  { %v5460_v28 = vmul.f32 1.25, %v2591_v25  ;;  %v3071_v56 = vmul.f32 %v4646_v26, %v2543_v20  ;;  %v3102_v33 = vadd.f32 %v3086_v27, %v3070_v18  ;;  %v4581_v26 = vsel %vm1166_vm0, 1.0, %v8600_v32 }
 0x1c7   :  { %9033 = vst [vmem:[#allocation38_spill] sm:$0xff] %v5482_v43  ;;  %v1470_v3 = vsub.f32 %v4565_v39, %v4581_v26  ;;  %v1471_v4 = vsub.f32 %v4566_v46, %v4582_v47  ;;  %v5488_v36 = vsub.f32 %v4581_v26, %v5476_v49  ;;  %v5491_v9 = vadd.f32 0.2, %v5367_v0 }
 0x1c8   :  { %9031 = vst [vmem:[#allocation36_spill] sm:$0xff] %v5460_v28  ;;  %v3087_v44 = vmul.f32 %v5460_v28, %v1759_v23  ;;  %v3118_v41 = vmul.f32 0.8333333, %v3102_v33  ;;  %v1454_v23 = vsub.f32 %v4549_v42, %v4565_v39  ;;  %v5494_v24 = vadd.f32 0.2, %v5400_v10 }
 0x1c9   :  { %9034 = vst [vmem:[#allocation39_spill] sm:$0xff] %v5485_v2  ;;  %v5497_v38 = vsub.f32 %v4582_v47, %v5479_v50  ;;  %v5500_v40 = vsub.f32 0.6, %v5367_v0  ;;  %v5503_v48 = vsub.f32 0.6, %v5400_v10  ;;  %v2030_v15 = vmul.f32 %v5491_v9, %v5482_v43 }
 0x1ca   :  { %v3103_v1 = vadd.f32 %v3087_v44, %v3071_v56  ;;  %v5506_v12 = vadd.f32 -0.2, %v5367_v0  ;;  %v2031_v18 = vmul.f32 %v5494_v24, %v5485_v2  ;;  %v5513_v20 = vadd.f32 -0.2, %v5400_v10 }
 0x1cb   :  { %9035 = vst [vmem:[#allocation40_spill] sm:$0xff] %v5500_v40  ;;  %v2062_v25 = vmul.f32 %v5500_v40, %v1454_v23  ;;  %v2063_v27 = vmul.f32 %v5503_v48, %v1455_v17  ;;  %v2142_v33 = vsub.f32 1.0, %v5367_v0  ;;  %v2143_v35 = vsub.f32 1.0, %v5400_v10 }
 0x1cc   :  { %v3119_v6 = vmul.f32 0.8333333, %v3103_v1  ;;  %9036 = vst [vmem:[#allocation41_spill] sm:$0xff] %v5503_v48  ;;  %v2126_v56 = vmul.f32 %v5506_v12, %v1454_v23  ;;  %v2127_v42 = vmul.f32 %v5513_v20, %v1455_v17  ;;  %v5522_v39 = vadd.f32 -0.6, %v5367_v0 }
 0x1cd   :  { %v5525_v44 = vadd.f32 -0.6, %v5400_v10  ;;  %v2078_v46 = vadd.f32 %v2062_v25, %v2030_v15  ;;  %v2079_v26 = vadd.f32 %v2063_v27, %v2031_v18  ;;  %v2158_v47 = vmul.f32 %v2142_v33, %v1470_v3 }
 0x1ce   :  { %v3127_v14 = vpack.c.bf16 %v3119_v6, %v3118_v41  ;;  %9037 = vst [vmem:[#allocation42_spill] sm:$0xff] %v5522_v39  ;;  %v2238_v1 = vsub.f32 1.4, %v5367_v0  ;;  %v2159_v41 = vmul.f32 %v2143_v35, %v1471_v4  ;;  %v2222_v23 = vmul.f32 %v5522_v39, %v1470_v3 }
 0x1cf   :  { %9038 = vst [vmem:[#allocation43_spill] sm:$0xff] %v5525_v44  ;;  %v2223_v6 = vmul.f32 %v5525_v44, %v1471_v4  ;;  %v2239_v17 = vsub.f32 1.4, %v5400_v10  ;;  %v5533_v32 = vmul.f32 2.5, %v2079_v26  ;;  %v2174_v48 = vadd.f32 %v2158_v47, %v2126_v56 }
 0x1d0   :  { %3160 = vmatpush.bf16.msra.mxu1 %v3127_v14  ;;  %4979 = vmatpush.bf16.msra.mxu3 %v3127_v14  ;;  %v5531_v14 = vmul.f32 2.5, %v2078_v46  ;;  %v2254_v40 = vmul.f32 %v2238_v1, %v5488_v36  ;;  %v2175_v2 = vadd.f32 %v2159_v41, %v2127_v42  ;;  %vm780_vm13 = vcmp.ge.f32.partialorder %v5363_v7, -2.2 }
 0x1d1   :  { %9040 = vst [vmem:[#allocation45_spill] sm:$0xff] %v5533_v32  ;;  %v2255_v15 = vmul.f32 %v2239_v17, %v5497_v38  ;;  %v2190_v18 = vmul.f32 2.5, %v2174_v48  ;;  %v2815_v4 = vmul.f32 %v5494_v24, %v5533_v32  ;;  %vm781_vm14 = vcmp.ge.f32.partialorder %v5365_v63, -2.2 }
 0x1d2   :  { %9039 = vst [vmem:[#allocation44_spill] sm:$0xff] %v5531_v14  ;;  %v2270_v25 = vadd.f32 %v2254_v40, %v2222_v23  ;;  %v2814_v27 = vmul.f32 %v5491_v9, %v5531_v14  ;;  %v2191_v3 = vmul.f32 2.5, %v2175_v2  ;;  %v9041_v41 = vmov 0.0  }
 0x1d3   :  { %v2271_v30 = vadd.f32 %v2255_v15, %v2223_v6  ;;  %v2830_v56 = vmul.f32 %v2190_v18, %v2142_v33  ;;  %v2878_v26 = vmul.f32 %v5506_v12, %v2190_v18  ;;  %v4451_v23 = vsel %vm780_vm13, 1.0, %v9041_v41 }
 0x1d4   :  { %v5542_v46 = vmul.f32 2.5, %v2270_v25  ;;  %v2831_v40 = vmul.f32 %v2191_v3, %v2143_v35  ;;  %v2879_v48 = vmul.f32 %v5513_v20, %v2191_v3  ;;  %v4452_v25 = vsel %vm781_vm14, 1.0, %v9041_v41 }
 0x1d5   :  { %v5546_v42 = vmul.f32 2.5, %v2271_v30  ;;  %v2846_v47 = vadd.f32 %v2830_v56, %v2814_v27  ;;  %vm828_vm15 = vcmp.ge.f32.partialorder %v5363_v7, -1.8  ;;  %vm829_vm1 = vcmp.ge.f32.partialorder %v5365_v63, -1.8 }
 0x1d6   :  { %v2894_v2 = vmul.f32 %v5542_v46, %v2238_v1  ;;  %v2847_v6 = vadd.f32 %v2831_v40, %v2815_v4  ;;  %v4467_v30 = vsel %vm828_vm15, 1.0, %v9041_v41  ;;  %v4468_v27 = vsel %vm829_vm1, 1.0, %v9041_v41 }
 0x1d7   :  { %v2895_v15 = vmul.f32 %v5546_v42, %v2239_v17  ;;  %v2862_v18 = vmul.f32 1.25, %v2846_v47  ;;  %vm876_vm2 = vcmp.ge.f32.partialorder %v5363_v7, -1.4  ;;  %vm877_vm3 = vcmp.ge.f32.partialorder %v5365_v63, -1.4 }
 0x1d8   :  { %v2910_v32 = vadd.f32 %v2894_v2, %v2878_v26  ;;  %v2863_v14 = vmul.f32 1.25, %v2847_v6  ;;  %v4483_v2 = vsel %vm876_vm2, 1.0, %v9041_v41  ;;  %vm924_vm4 = vcmp.ge.f32.partialorder %v5363_v7, -1.0 }
 0x1d9   :  { %v2911_v3 = vadd.f32 %v2895_v15, %v2879_v48  ;;  %v5558_v4 = vmul.f32 %v2862_v18, %v2142_v33  ;;  %v3820_v40 = vmul.f32 %v5491_v9, %v2862_v18  ;;  %v4484_v15 = vsel %vm877_vm3, 1.0, %v9041_v41 }
 0x1da   :  { %v2926_v56 = vmul.f32 1.25, %v2910_v32  ;;  %v5562_v47 = vmul.f32 %v2863_v14, %v2143_v35  ;;  %v3821_v26 = vmul.f32 %v5494_v24, %v2863_v14  ;;  %vm925_vm5 = vcmp.ge.f32.partialorder %v5365_v63, -1.0 }
 0x1db   :  { %9042 = vst [vmem:[#allocation46_spill] sm:$0xff] %v5558_v4  ;;  %v2927_v28 = vmul.f32 1.25, %v2911_v3  ;;  %v4499_v33 = vsel %vm924_vm4, 1.0, %v9041_v41  ;;  %v4500_v24 = vsel %vm925_vm5, 1.0, %v9041_v41  ;;  %vm972_vm6 = vcmp.ge.f32.partialorder %v5363_v7, -0.6 }
 0x1dc   :  { %9043 = vst [vmem:[#allocation47_spill] sm:$0xff] %v5562_v47  ;;  %v3836_v6 = vmul.f32 %v2926_v56, %v2238_v1  ;;  %v5567_v48 = vmul.f32 %v5506_v12, %v2926_v56  ;;  %vm973_vm7 = vcmp.ge.f32.partialorder %v5365_v63, -0.6  ;;  %v5580_v1 = vsel %vm972_vm6, 1.0, %v9041_v41 }
 0x1dd   :  { %v3837_v32 = vmul.f32 %v2927_v28, %v2239_v17  ;;  %v5572_v9 = vmul.f32 %v5513_v20, %v2927_v28  ;;  %9046 = vst [vmem:[#allocation50_spill] sm:$0xff] %v5580_v1  ;;  %v5583_v17 = vsel %vm973_vm7, 1.0, %v9041_v41  ;;  %v1356_v28 = vsub.f32 %v4451_v23, %v4467_v30 }
 0x1de   :  { %9044 = vst [vmem:[#allocation48_spill] sm:$0xff] %v5567_v48  ;;  %v3852_v35 = vadd.f32 %v3836_v6, %v3820_v40  ;;  %v1357_v14 = vsub.f32 %v4452_v25, %v4468_v27  ;;  %v1372_v18 = vsub.f32 %v4467_v30, %v4483_v2  ;;  %v1373_v3 = vsub.f32 %v4468_v27, %v4484_v15 }
 0x1df   :  { %9045 = vst [vmem:[#allocation49_spill] sm:$0xff] %v5572_v9  ;;  %v3853_v12 = vadd.f32 %v3837_v32, %v3821_v26  ;;  %v1388_v40 = vsub.f32 %v4483_v2, %v4499_v33  ;;  %v1389_v6 = vsub.f32 %v4484_v15, %v4500_v24  ;;  %v5586_v9 = vsub.f32 %v4499_v33, %v5580_v1 }
 0x1e0   :  { %9047 = vst [vmem:[#allocation51_spill] sm:$0xff] %v5583_v17  ;;  %v3868_v20 = vmul.f32 0.8333333, %v3852_v35  ;;  %v5589_v48 = vsub.f32 %v4500_v24, %v5583_v17  ;;  %v4643_v26 = vadd.f32 2.2, %v5363_v7  ;;  %v1660_v24 = vsub.f32 -1.0, %v5363_v7 }
 0x1e1   :  { %v3869_v56 = vmul.f32 0.8333333, %v3853_v12  ;;  %9048 = vst [vmem:[#allocation52_spill] sm:$0xff] %v5586_v9  ;;  %v5593_v32 = vadd.f32 2.2, %v5365_v63  ;;  %vm1164_vm13 = vcmp.ge.f32.partialorder %v5363_v7, 1.0 }
 0x1e2   :  { %9049 = vst [vmem:[#allocation53_spill] sm:$0xff] %v5589_v48  ;;  %v1564_v23 = vsub.f32 -1.4, %v5363_v7  ;;  %v1565_v25 = vsub.f32 -1.4, %v5365_v63  ;;  %v1548_v2 = vmul.f32 %v4643_v26, %v1356_v28  ;;  %v1676_v17 = vmul.f32 %v1660_v24, %v1388_v40 }
 0x1e3   :  { %v3877_v35 = vpack.c.bf16 %v3869_v56, %v3868_v20  ;;  %v5598_v30 = vadd.f32 1.8, %v5363_v7  ;;  %v5601_v27 = vadd.f32 1.8, %v5365_v63  ;;  %v1549_v15 = vmul.f32 %v5593_v32, %v1357_v14 }
 0x1e4   :  { %v1580_v33 = vmul.f32 %v1564_v23, %v1372_v18  ;;  %v1581_v12 = vmul.f32 %v1565_v25, %v1373_v3  ;;  %v1661_v56 = vsub.f32 -1.0, %v5365_v63  ;;  %v5609_v1 = vadd.f32 1.4, %v5363_v7 }
 0x1e5   :  { %9050 = vst [vmem:[#allocation54_spill] sm:$0xff] %v5598_v30  ;;  %3910 = vmatpush.bf16.msrb.mxu0 %v3877_v35  ;;  %v1644_v47 = vmul.f32 %v5598_v30, %v1372_v18  ;;  %v1645_v20 = vmul.f32 %v5601_v27, %v1373_v3  ;;  %v5612_v28 = vadd.f32 1.4, %v5365_v63  ;;  %v1756_v43 = vsub.f32 -0.6, %v5363_v7 }
 0x1e6   :  { %9051 = vst [vmem:[#allocation55_spill] sm:$0xff] %v5601_v27  ;;  %v1596_v4 = vadd.f32 %v1580_v33, %v1548_v2  ;;  %v1597_v14 = vadd.f32 %v1581_v12, %v1549_v15  ;;  %v1677_v23 = vmul.f32 %v1661_v56, %v1389_v6  ;;  %v1757_v35 = vsub.f32 -0.6, %v5365_v63 }
 0x1e7   :  { %9052 = vst [vmem:[#allocation56_spill] sm:$0xff] %v5609_v1  ;;  %v1692_v18 = vadd.f32 %v1676_v17, %v1644_v47  ;;  %v1740_v3 = vmul.f32 %v5609_v1, %v1388_v40  ;;  %v1741_v5 = vmul.f32 %v5612_v28, %v1389_v6  ;;  %v1772_v16 = vmul.f32 %v1756_v43, %v5586_v9 }
 0x1e8   :  { %9053 = vst [vmem:[#allocation57_spill] sm:$0xff] %v5612_v28  ;;  %v1612_v25 = vmul.f32 2.5, %v1596_v4  ;;  %v1613_v2 = vmul.f32 2.5, %v1597_v14  ;;  %v1693_v33 = vadd.f32 %v1677_v23, %v1645_v20  ;;  %v1773_v31 = vmul.f32 %v1757_v35, %v5589_v48 }
 0x1e9   :  { %v1708_v11 = vmul.f32 2.5, %v1692_v18  ;;  %v1788_v12 = vadd.f32 %v1772_v16, %v1740_v3  ;;  %vm1020_vm8 = vcmp.ge.f32.partialorder %v5363_v7, -0.2  ;;  %vm1021_vm9 = vcmp.ge.f32.partialorder %v5365_v63, -0.2 }
 0x1ea   :  { %v2492_v8 = vmul.f32 %v4643_v26, %v1612_v25  ;;  %v1709_v15 = vmul.f32 2.5, %v1693_v33  ;;  %v1789_v45 = vadd.f32 %v1773_v31, %v1741_v5  ;;  %v2493_v29 = vmul.f32 %v5593_v32, %v1613_v2 }
 0x1eb   :  { %v2508_v22 = vmul.f32 %v1708_v11, %v1660_v24  ;;  %v2556_v4 = vmul.f32 %v5598_v30, %v1708_v11  ;;  %v5624_v47 = vmul.f32 2.5, %v1788_v12  ;;  %v5632_v16 = vsel %vm1020_vm8, 1.0, %v9041_v41 }
 0x1ec   :  { %v5626_v17 = vmul.f32 2.5, %v1789_v45  ;;  %v2509_v40 = vmul.f32 %v1709_v15, %v1661_v56  ;;  %v2557_v6 = vmul.f32 %v5601_v27, %v1709_v15  ;;  %9056 = vst [vmem:[#allocation60_spill] sm:$0xff] %v5632_v16  ;;  %v5635_v24 = vsel %vm1021_vm9, 1.0, %v9041_v41 }
 0x1ed   :  { %9054 = vst [vmem:[#allocation58_spill] sm:$0xff] %v5624_v47  ;;  %v2524_v20 = vadd.f32 %v2508_v22, %v2492_v8  ;;  %v2572_v5 = vmul.f32 %v5624_v47, %v1756_v43  ;;  %vm1068_vm0 = vcmp.ge.f32.partialorder %v5363_v7, 0.2  ;;  %vm1069_vm10 = vcmp.ge.f32.partialorder %v5365_v63, 0.2 }
 0x1ee   :  { %9055 = vst [vmem:[#allocation59_spill] sm:$0xff] %v5626_v17  ;;  %v2525_v14 = vadd.f32 %v2509_v40, %v2493_v29  ;;  %v2573_v31 = vmul.f32 %v5626_v17, %v1757_v35  ;;  %vm1116_vm11 = vcmp.ge.f32.partialorder %v5363_v7, 0.6  ;;  %vm1117_vm12 = vcmp.ge.f32.partialorder %v5365_v63, 0.6 }
 0x1ef   :  { %v2540_v11 = vmul.f32 1.25, %v2524_v20  ;;  %9057 = vst [vmem:[#allocation61_spill] sm:$0xff] %v5635_v24  ;;  %v2588_v56 = vadd.f32 %v2572_v5, %v2556_v4  ;;  %vm1165_vm14 = vcmp.ge.f32.partialorder %v5365_v63, 1.0  ;;  %vm1212_vm15 = vcmp.ge.f32.partialorder %v5363_v7, 1.4 }
 0x1f0   :  { %v2541_v45 = vmul.f32 1.25, %v2525_v14  ;;  %v2589_v23 = vadd.f32 %v2573_v31, %v2557_v6  ;;  %v4547_v18 = vsel %vm1068_vm0, 1.0, %v9041_v41  ;;  %v4548_v3 = vsel %vm1069_vm10, 1.0, %v9041_v41 }
 0x1f1   :  { %v3068_v22 = vmul.f32 %v4643_v26, %v2540_v11  ;;  %v5643_v8 = vmul.f32 1.25, %v2588_v56  ;;  %v4563_v26 = vsel %vm1116_vm11, 1.0, %v9041_v41  ;;  %vm1213_vm1 = vcmp.ge.f32.partialorder %v5365_v63, 1.4 }
 0x1f2   :  { %v5645_v29 = vmul.f32 1.25, %v2589_v23  ;;  %v3069_v25 = vmul.f32 %v5593_v32, %v2541_v45  ;;  %v4564_v15 = vsel %vm1117_vm12, 1.0, %v9041_v41  ;;  %v4579_v12 = vsel %vm1164_vm13, 1.0, %v9041_v41 }
 0x1f3   :  { %9058 = vst [vmem:[#allocation62_spill] sm:$0xff] %v5643_v8  ;;  %v3084_v2 = vmul.f32 %v5643_v8, %v1756_v43  ;;  %v4580_v32 = vsel %vm1165_vm14, 1.0, %v9041_v41  ;;  %v5659_v4 = vsel %vm1212_vm15, 1.0, %v9041_v41  ;;  %v5662_v20 = vsel %vm1213_vm1, 1.0, %v9041_v41 }
 0x1f4   :  { %9059 = vst [vmem:[#allocation63_spill] sm:$0xff] %v5645_v29  ;;  %v3085_v33 = vmul.f32 %v5645_v29, %v1757_v35  ;;  %v5665_v14 = vsub.f32 %v5632_v16, %v4547_v18  ;;  %v5668_v43 = vsub.f32 %v5635_v24, %v4548_v3  ;;  %v1452_v35 = vsub.f32 %v4547_v18, %v4563_v26 }
 0x1f5   :  { %v3100_v40 = vadd.f32 %v3084_v2, %v3068_v22  ;;  %v1453_v5 = vsub.f32 %v4548_v3, %v4564_v15  ;;  %v1468_v31 = vsub.f32 %v4563_v26, %v4579_v12  ;;  %v1469_v56 = vsub.f32 %v4564_v15, %v4580_v32 }
 0x1f6   :  { %v3101_v6 = vadd.f32 %v3085_v33, %v3069_v25  ;;  %9060 = vst [vmem:[#allocation64_spill] sm:$0xff] %v5665_v14  ;;  %v5671_v23 = vsub.f32 %v4579_v12, %v5659_v4  ;;  %v5674_v22 = vsub.f32 %v4580_v32, %v5662_v20  ;;  %v5677_v25 = vadd.f32 0.2, %v5363_v7 }
 0x1f7   :  { %9061 = vst [vmem:[#allocation65_spill] sm:$0xff] %v5668_v43  ;;  %v3116_v11 = vmul.f32 0.8333333, %v3100_v40  ;;  %v5680_v2 = vadd.f32 0.2, %v5365_v63  ;;  %v5706_v29 = vsub.f32 1.0, %v5365_v63 }
 0x1f8   :  { %v3117_v45 = vmul.f32 0.8333333, %v3101_v6  ;;  %9062 = vst [vmem:[#allocation66_spill] sm:$0xff] %v5671_v23  ;;  %v5683_v33 = vsub.f32 0.6, %v5363_v7  ;;  %v2028_v12 = vmul.f32 %v5677_v25, %v5665_v14  ;;  %v5700_v6 = vsub.f32 1.0, %v5363_v7 }
 0x1f9   :  { %9063 = vst [vmem:[#allocation67_spill] sm:$0xff] %v5674_v22  ;;  %v5686_v3 = vsub.f32 0.6, %v5365_v63  ;;  %v5689_v26 = vadd.f32 -0.2, %v5363_v7  ;;  %v2029_v32 = vmul.f32 %v5680_v2, %v5668_v43  ;;  %vm922_vm8 = vcmp.ge.f32.partialorder %v5359_v62, -1.0 }
 0x1fa   :  { %9064 = vst [vmem:[#allocation68_spill] sm:$0xff] %v5683_v33  ;;  %v3126_v18 = vpack.c.bf16 %v3117_v45, %v3116_v11  ;;  %v5692_v15 = vadd.f32 -0.2, %v5365_v63  ;;  %v2060_v40 = vmul.f32 %v5683_v33, %v1452_v35  ;;  %v2156_v30 = vmul.f32 %v5700_v6, %v1468_v31 }
 0x1fb   :  { %9065 = vst [vmem:[#allocation69_spill] sm:$0xff] %v5686_v3  ;;  %v2061_v11 = vmul.f32 %v5686_v3, %v1453_v5  ;;  %v2124_v45 = vmul.f32 %v5689_v26, %v1452_v35  ;;  %v5710_v43 = vadd.f32 -0.6, %v5363_v7  ;;  %v5713_v33 = vadd.f32 -0.6, %v5365_v63 }
 0x1fc   :  { %9066 = vst [vmem:[#allocation70_spill] sm:$0xff] %v5689_v26  ;;  %3161 = vmatpush.bf16.msra.mxu1 %v3126_v18  ;;  %4980 = vmatpush.bf16.msra.mxu3 %v3126_v18  ;;  %v2125_v27 = vmul.f32 %v5692_v15, %v1453_v5  ;;  %v2076_v14 = vadd.f32 %v2060_v40, %v2028_v12  ;;  %v2236_v3 = vsub.f32 1.4, %v5363_v7  ;;  %v2237_v35 = vsub.f32 1.4, %v5365_v63 }
 0x1fd   :  { %9067 = vst [vmem:[#allocation71_spill] sm:$0xff] %v5692_v15  ;;  %v2077_v8 = vadd.f32 %v2061_v11, %v2029_v32  ;;  %v2157_v18 = vmul.f32 %v5706_v29, %v1469_v56  ;;  %v2172_v28 = vadd.f32 %v2156_v30, %v2124_v45  ;;  %v2220_v12 = vmul.f32 %v5710_v43, %v1468_v31 }
 0x1fe   :  { %9068 = vst [vmem:[#allocation72_spill] sm:$0xff] %v5700_v6  ;;  %v5718_v5 = vmul.f32 2.5, %v2076_v14  ;;  %v2221_v40 = vmul.f32 %v5713_v33, %v1469_v56  ;;  %v2252_v47 = vmul.f32 %v2236_v3, %v5671_v23  ;;  %v2253_v32 = vmul.f32 %v2237_v35, %v5674_v22 }
 0x1ff   :  { %9069 = vst [vmem:[#allocation73_spill] sm:$0xff] %v5706_v29  ;;  %v5722_v17 = vmul.f32 2.5, %v2077_v8  ;;  %v2173_v1 = vadd.f32 %v2157_v18, %v2125_v27  ;;  %v2188_v11 = vmul.f32 2.5, %v2172_v28  ;;  %vm778_vm2 = vcmp.ge.f32.partialorder %v5359_v62, -2.2 }
 0x200   :  { %9070 = vst [vmem:[#allocation74_spill] sm:$0xff] %v5710_v43  ;;  %v2812_v48 = vmul.f32 %v5677_v25, %v5718_v5  ;;  %v2268_v9 = vadd.f32 %v2252_v47, %v2220_v12  ;;  %v2269_v30 = vadd.f32 %v2253_v32, %v2221_v40  ;;  %vm779_vm3 = vcmp.ge.f32.partialorder %v5361_v37, -2.2 }
 0x201   :  { %9071 = vst [vmem:[#allocation75_spill] sm:$0xff] %v5713_v33  ;;  %v2189_v14 = vmul.f32 2.5, %v2173_v1  ;;  %v2813_v31 = vmul.f32 %v5680_v2, %v5722_v17  ;;  %v2828_v8 = vmul.f32 %v2188_v11, %v5700_v6  ;;  %v2876_v27 = vmul.f32 %v5689_v26, %v2188_v11 }
 0x202   :  { %9072 = vst [vmem:[#allocation76_spill] sm:$0xff] %v5718_v5  ;;  %v4449_v56 = vsel %vm778_vm2, 1.0, %v9041_v41  ;;  %v5735_v28 = vmul.f32 2.5, %v2268_v9  ;;  %v5737_v45 = vmul.f32 2.5, %v2269_v30  ;;  %vm826_vm4 = vcmp.ge.f32.partialorder %v5359_v62, -1.8 }
 0x203   :  { %9073 = vst [vmem:[#allocation77_spill] sm:$0xff] %v5722_v17  ;;  %v2829_v18 = vmul.f32 %v2189_v14, %v5706_v29  ;;  %v2877_v1 = vmul.f32 %v5692_v15, %v2189_v14  ;;  %v2844_v47 = vadd.f32 %v2828_v8, %v2812_v48  ;;  %vm827_vm5 = vcmp.ge.f32.partialorder %v5361_v37, -1.8 }
 0x204   :  { %9074 = vst [vmem:[#allocation78_spill] sm:$0xff] %v5735_v28  ;;  %vm874_vm6 = vcmp.ge.f32.partialorder %v5359_v62, -1.4  ;;  %v2892_v40 = vmul.f32 %v5735_v28, %v2236_v3  ;;  %v2893_v32 = vmul.f32 %v5737_v45, %v2237_v35  ;;  %v4450_v9 = vsel %vm779_vm3, 1.0, %v9041_v41 }
 0x205   :  { %9075 = vst [vmem:[#allocation79_spill] sm:$0xff] %v5737_v45  ;;  %v2845_v12 = vadd.f32 %v2829_v18, %v2813_v31  ;;  %v5747_v11 = vmul.f32 1.25, %v2844_v47  ;;  %v4465_v30 = vsel %vm826_vm4, 1.0, %v9041_v41  ;;  %v4466_v14 = vsel %vm827_vm5, 1.0, %v9041_v41 }
 0x206   :  { %vm875_vm7 = vcmp.ge.f32.partialorder %v5361_v37, -1.4  ;;  %v2908_v8 = vadd.f32 %v2892_v40, %v2876_v27  ;;  %v2909_v15 = vadd.f32 %v2893_v32, %v2877_v1  ;;  %v4481_v31 = vsel %vm874_vm6, 1.0, %v9041_v41 }
 0x207   :  { %9076 = vst [vmem:[#allocation80_spill] sm:$0xff] %v5747_v11  ;;  %v5752_v48 = vmul.f32 1.25, %v2845_v12  ;;  %v4482_v18 = vsel %vm875_vm7, 1.0, %v9041_v41  ;;  %vm923_vm9 = vcmp.ge.f32.partialorder %v5361_v37, -1.0  ;;  %vm970_vm0 = vcmp.ge.f32.partialorder %v5359_v62, -0.6 }
 0x208   :  { %v5759_v47 = vmul.f32 1.25, %v2908_v8  ;;  %v5761_v26 = vmul.f32 1.25, %v2909_v15  ;;  %v3818_v12 = vmul.f32 %v5677_v25, %v5747_v11  ;;  %v4497_v1 = vsel %vm922_vm8, 1.0, %v9041_v41 }
 0x209   :  { %9077 = vst [vmem:[#allocation81_spill] sm:$0xff] %v5752_v48  ;;  %v3819_v27 = vmul.f32 %v5680_v2, %v5752_v48  ;;  %v4498_v40 = vsel %vm923_vm9, 1.0, %v9041_v41  ;;  %vm971_vm10 = vcmp.ge.f32.partialorder %v5361_v37, -0.6  ;;  %v5773_v8 = vsel %vm970_vm0, 1.0, %v9041_v41 }
 0x20a   :  { %9078 = vst [vmem:[#allocation82_spill] sm:$0xff] %v5759_v47  ;;  %v3834_v32 = vmul.f32 %v5759_v47, %v2236_v3  ;;  %v3835_v33 = vmul.f32 %v5761_v26, %v2237_v35  ;;  %v1354_v15 = vsub.f32 %v4449_v56, %v4465_v30  ;;  %v5776_v45 = vsel %vm971_vm10, 1.0, %v9041_v41 }
 0x20b   :  { %9079 = vst [vmem:[#allocation83_spill] sm:$0xff] %v5761_v26  ;;  %v1355_v25 = vsub.f32 %v4450_v9, %v4466_v14  ;;  %v1370_v43 = vsub.f32 %v4465_v30, %v4481_v31  ;;  %v1371_v2 = vsub.f32 %v4466_v14, %v4482_v18  ;;  %v1386_v23 = vsub.f32 %v4481_v31, %v4497_v1 }
 0x20c   :  { %9080 = vst [vmem:[#allocation84_spill] sm:$0xff] %v5773_v8  ;;  %v3850_v28 = vadd.f32 %v3834_v32, %v3818_v12  ;;  %v3851_v22 = vadd.f32 %v3835_v33, %v3819_v27  ;;  %v1387_v48 = vsub.f32 %v4482_v18, %v4498_v40  ;;  %v5779_v29 = vsub.f32 %v4497_v1, %v5773_v8 }
 0x20d   :  { %9081 = vst [vmem:[#allocation85_spill] sm:$0xff] %v5776_v45  ;;  %v5782_v3 = vadd.f32 2.2, %v5359_v62  ;;  %v5785_v35 = vadd.f32 2.2, %v5361_v37  ;;  %v5789_v9 = vsub.f32 %v4498_v40, %v5776_v45  ;;  %v1659_v32 = vsub.f32 -1.0, %v5361_v37 }
 0x20e   :  { %9082 = vst [vmem:[#allocation86_spill] sm:$0xff] %v5779_v29  ;;  %v1562_v56 = vsub.f32 -1.4, %v5359_v62  ;;  %v3866_v26 = vmul.f32 0.8333333, %v3850_v28  ;;  %vm1162_vm2 = vcmp.ge.f32.partialorder %v5359_v62, 1.0 }
 0x20f   :  { %v3867_v47 = vmul.f32 0.8333333, %v3851_v22  ;;  %9083 = vst [vmem:[#allocation87_spill] sm:$0xff] %v5789_v9  ;;  %v1563_v33 = vsub.f32 -1.4, %v5361_v37  ;;  %v1546_v30 = vmul.f32 %v5782_v3, %v1354_v15  ;;  %v1547_v14 = vmul.f32 %v5785_v35, %v1355_v25 }
 0x210   :  { %v1578_v31 = vmul.f32 %v1562_v56, %v1370_v43  ;;  %v5795_v18 = vadd.f32 1.8, %v5359_v62  ;;  %v5798_v1 = vadd.f32 1.8, %v5361_v37  ;;  %v1658_v22 = vsub.f32 -1.0, %v5359_v62 }
 0x211   :  { %v3876_v12 = vpack.c.bf16 %v3867_v47, %v3866_v26  ;;  %v1579_v27 = vmul.f32 %v1563_v33, %v1371_v2  ;;  %v5804_v15 = vadd.f32 1.4, %v5359_v62  ;;  %v5808_v26 = vadd.f32 1.4, %v5361_v37 }
 0x212   :  { %9084 = vst [vmem:[#allocation88_spill] sm:$0xff] %v5795_v18  ;;  %v1594_v28 = vadd.f32 %v1578_v31, %v1546_v30  ;;  %v1642_v40 = vmul.f32 %v5795_v18, %v1370_v43  ;;  %v1643_v56 = vmul.f32 %v5798_v1, %v1371_v2  ;;  %v1674_v11 = vmul.f32 %v1658_v22, %v1386_v23 }
 0x213   :  { %9085 = vst [vmem:[#allocation89_spill] sm:$0xff] %v5798_v1  ;;  %3911 = vmatpush.bf16.msrb.mxu0 %v3876_v12  ;;  %v1595_v25 = vadd.f32 %v1579_v27, %v1547_v14  ;;  %v1675_v33 = vmul.f32 %v1659_v32, %v1387_v48  ;;  %v1738_v6 = vmul.f32 %v5804_v15, %v1386_v23  ;;  %v1754_v30 = vsub.f32 -0.6, %v5359_v62 }
 0x214   :  { %9086 = vst [vmem:[#allocation90_spill] sm:$0xff] %v5804_v15  ;;  %v1610_v47 = vmul.f32 2.5, %v1594_v28  ;;  %v1690_v31 = vadd.f32 %v1674_v11, %v1642_v40  ;;  %v1739_v17 = vmul.f32 %v5808_v26, %v1387_v48  ;;  %v1755_v5 = vsub.f32 -0.6, %v5361_v37 }
 0x215   :  { %9087 = vst [vmem:[#allocation91_spill] sm:$0xff] %v5808_v26  ;;  %v1611_v43 = vmul.f32 2.5, %v1595_v25  ;;  %v1691_v12 = vadd.f32 %v1675_v33, %v1643_v56  ;;  %v1770_v14 = vmul.f32 %v1754_v30, %v5779_v29  ;;  %v4437_v2 = vmul.f32 -1.442695, %v5367_v0 }
 0x216   :  { %v1706_v27 = vmul.f32 2.5, %v1690_v31  ;;  %v1771_v45 = vmul.f32 %v1755_v5, %v5789_v9  ;;  %v2490_v28 = vmul.f32 %v5782_v3, %v1610_v47  ;;  %v4438_v23 = vmul.f32 -1.442695, %v5400_v10 }
 0x217   :  { %v1707_v15 = vmul.f32 2.5, %v1691_v12  ;;  %v1786_v8 = vadd.f32 %v1770_v14, %v1738_v6  ;;  %v2491_v11 = vmul.f32 %v5785_v35, %v1611_v43  ;;  %5016 = vpow2.f32 %v4437_v2 }
 0x218   :  { %v1787_v48 = vadd.f32 %v1771_v45, %v1739_v17  ;;  %v2506_v40 = vmul.f32 %v1706_v27, %v1658_v22  ;;  %5018 = vpow2.f32 %v4438_v23  ;;  %v2554_v33 = vmul.f32 %v5795_v18, %v1706_v27 }
 0x219   :  { %v5820_v25 = vmul.f32 2.5, %v1786_v8  ;;  %v2507_v56 = vmul.f32 %v1707_v15, %v1659_v32  ;;  %v2555_v47 = vmul.f32 %v5798_v1, %v1707_v15  ;;  %vm1018_vm11 = vcmp.ge.f32.partialorder %v5359_v62, -0.2 }
 0x21a   :  { %v5823_v31 = vmul.f32 2.5, %v1787_v48  ;;  %v2522_v26 = vadd.f32 %v2506_v40, %v2490_v28  ;;  %vm1019_vm12 = vcmp.ge.f32.partialorder %v5361_v37, -0.2  ;;  %v5833_v2 = vsel %vm1018_vm11, 1.0, %v9041_v41 }
 0x21b   :  { %9088 = vst [vmem:[#allocation92_spill] sm:$0xff] %v5820_v25  ;;  %v2523_v9 = vadd.f32 %v2507_v56, %v2491_v11  ;;  %v2570_v12 = vmul.f32 %v5820_v25, %v1754_v30  ;;  %vm1066_vm13 = vcmp.ge.f32.partialorder %v5359_v62, 0.2  ;;  %vm1067_vm14 = vcmp.ge.f32.partialorder %v5361_v37, 0.2 }
 0x21c   :  { %9089 = vst [vmem:[#allocation93_spill] sm:$0xff] %v5823_v31  ;;  %v2538_v6 = vmul.f32 1.25, %v2522_v26  ;;  %v2571_v17 = vmul.f32 %v5823_v31, %v1755_v5  ;;  %vm1114_vm15 = vcmp.ge.f32.partialorder %v5359_v62, 0.6  ;;  %v4545_v40 = vsel %vm1066_vm13, 1.0, %v9041_v41 }
 0x21d   :  { %v5017_v45 = vpop.eup %5016  ;;  %v2539_v22 = vmul.f32 1.25, %v2523_v9  ;;  %v2586_v8 = vadd.f32 %v2570_v12, %v2554_v33  ;;  %9090 = vst [vmem:[#allocation94_spill] sm:$0xff] %v5833_v2  ;;  %vm1115_vm1 = vcmp.ge.f32.partialorder %v5361_v37, 0.6  ;;  %vm1163_vm3 = vcmp.ge.f32.partialorder %v5361_v37, 1.0 }
 0x21e   :  { %v5019_v32 = vpop.eup %5018  ;;  %v2587_v43 = vadd.f32 %v2571_v17, %v2555_v47  ;;  %v5830_v14 = vadd.f32 1.0, %v5017_v45  ;;  %v3066_v26 = vmul.f32 %v5782_v3, %v2538_v6  ;;  %v5853_v3 = vsel %vm1019_vm12, 1.0, %v9041_v41 }
 0x21f   :  { %v5836_v15 = vmul.f32 1.25, %v2586_v8  ;;  %v5839_v27 = vadd.f32 1.0, %v5019_v32  ;;  %v3067_v28 = vmul.f32 %v5785_v35, %v2539_v22  ;;  %9093 = vst [vmem:[#allocation97_spill] sm:$0xff] %v5853_v3  ;;  %v4546_v35 = vsel %vm1067_vm14, 1.0, %v9041_v41 }
 0x220   :  { %v5842_v9 = vmul.f32 1.25, %v2587_v43  ;;  %5020 = vrcp.f32 %v5830_v14  ;;  %v717_v11 = vand.u32 2147483648, %v5830_v14  ;;  %v4561_v47 = vsel %vm1114_vm15, 1.0, %v9041_v41 }
 0x221   :  { %9091 = vst [vmem:[#allocation95_spill] sm:$0xff] %v5836_v15  ;;  %v3082_v23 = vmul.f32 %v5836_v15, %v1754_v30  ;;  %5022 = vrcp.f32 %v5839_v27  ;;  %v715_v30 = vand.u32 2147483647, %v5830_v14  ;;  %v732_v33 = vand.u32 2147483648, %v5839_v27 }
 0x222   :  { %9092 = vst [vmem:[#allocation96_spill] sm:$0xff] %v5842_v9  ;;  %v3083_v48 = vmul.f32 %v5842_v9, %v1755_v5  ;;  %v730_v6 = vand.u32 2147483647, %v5839_v27  ;;  %vm711_vm4 = vweird.f32 %v5830_v14  ;;  %v718_v5 = vor.u32 1.1754944e-38, %v717_v11 }
 0x223   :  { %v3098_v56 = vadd.f32 %v3082_v23, %v3066_v26  ;;  %v4562_v17 = vsel %vm1115_vm1, 1.0, %v9041_v41  ;;  %vm1210_vm5 = vcmp.ge.f32.partialorder %v5359_v62, 1.4  ;;  %vm726_vm6 = vweird.f32 %v5839_v27 }
 0x224   :  { %v3099_v12 = vadd.f32 %v3083_v48, %v3067_v28  ;;  %vm1211_vm7 = vcmp.ge.f32.partialorder %v5361_v37, 1.4  ;;  %vm5871_vm8 = vcmp.eq.f32.partialorder %v715_v30, 8.507059e+37  ;;  %v733_v28 = vor.u32 1.1754944e-38, %v732_v33 }
 0x225   :  { %v3114_v22 = vmul.f32 0.8333333, %v3098_v56  ;;  %v4577_v23 = vsel %vm1162_vm2, 1.0, %v9041_v41  ;;  %v4578_v11 = vsel %vm1163_vm3, 1.0, %v9041_v41  ;;  %vm5878_vm9 = vcmp.eq.f32.partialorder %v730_v6, 8.507059e+37 }
 0x226   :  { %v5021_v45 = vpop.eup %5020  ;;  %v3115_v8 = vmul.f32 0.8333333, %v3099_v12  ;;  %v5883_v1 = vsel %vm1210_vm5, 1.0, %v9041_v41  ;;  %v5886_v30 = vsub.f32 %v5833_v2, %v4545_v40  ;;  %v5889_v33 = vsel %vm1211_vm7, 1.0, %v9041_v41 }
 0x227   :  { %v5023_v32 = vpop.eup %5022  ;;  %v707_v43 = vmul.f32 %v5021_v45, %v5830_v14  ;;  %vm712_vm0 = vweird.f32 %v5021_v45  ;;  %v5892_v18 = vsub.f32 %v5853_v3, %v4546_v35  ;;  %v1466_v31 = vsub.f32 %v4561_v47, %v4577_v23 }
 0x228   :  { %v3125_v48 = vpack.c.bf16 %v3115_v8, %v3114_v22  ;;  %v722_v56 = vmul.f32 %v5023_v32, %v5839_v27  ;;  %9098 = vst [vmem:[#allocation98_spill] sm:$0xff] %v5886_v30  ;;  %vm727_vm10 = vweird.f32 %v5023_v32  ;;  %v1450_v22 = vsub.f32 %v4545_v40, %v4561_v47  ;;  %vm713_vm11 = vmor %vm711_vm4, %vm712_vm0 }
 0x229   :  { %v708_v9 = vsub.f32 1.0, %v707_v43  ;;  %9099 = vst [vmem:[#allocation99_spill] sm:$0xff] %v5892_v18  ;;  %v1451_v8 = vsub.f32 %v4546_v35, %v4562_v17  ;;  %v1467_v25 = vsub.f32 %v4562_v17, %v4578_v11  ;;  %v5895_v29 = vsub.f32 %v4577_v23, %v5883_v1  ;;  %vm728_vm12 = vmor %vm726_vm6, %vm727_vm10 }
 0x22a   :  { %3162 = vmatpush.bf16.msra.mxu1 %v3125_v48  ;;  %4981 = vmatpush.bf16.msra.mxu3 %v3125_v48  ;;  %v723_v6 = vsub.f32 1.0, %v722_v56  ;;  %v5898_v2 = vsub.f32 %v4578_v11, %v5889_v33  ;;  %v5901_v24 = vadd.f32 0.2, %v5359_v62  ;;  %v5904_v3 = vadd.f32 0.2, %v5361_v37 }
 0x22b   :  { %v709_v15 = vmul.f32 %v5021_v45, %v708_v9  ;;  %9100 = vst [vmem:[#allocation100_spill] sm:$0xff] %v5895_v29  ;;  %v5907_v40 = vsub.f32 0.6, %v5359_v62  ;;  %v5910_v9 = vsub.f32 0.6, %v5361_v37  ;;  %v5935_v16 = vsub.f32 1.0, %v5359_v62 }
 0x22c   :  { %v724_v43 = vmul.f32 %v5023_v32, %v723_v6  ;;  %9101 = vst [vmem:[#allocation101_spill] sm:$0xff] %v5898_v2  ;;  %v5913_v35 = vadd.f32 -0.2, %v5359_v62  ;;  %v2026_v17 = vmul.f32 %v5901_v24, %v5886_v30  ;;  %v5923_v23 = vadd.f32 -0.2, %v5361_v37 }
 0x22d   :  { %v710_v48 = vadd.f32 %v5021_v45, %v709_v15  ;;  %9102 = vst [vmem:[#allocation102_spill] sm:$0xff] %v5907_v40  ;;  %v2027_v15 = vmul.f32 %v5904_v3, %v5892_v18  ;;  %v2058_v56 = vmul.f32 %v5907_v40, %v1450_v22  ;;  %v2059_v14 = vmul.f32 %v5910_v9, %v1451_v8 }
 0x22e   :  { %9103 = vst [vmem:[#allocation103_spill] sm:$0xff] %v5910_v9  ;;  %v725_v47 = vadd.f32 %v5023_v32, %v724_v43  ;;  %v2122_v6 = vmul.f32 %v5913_v35, %v1450_v22  ;;  %v2123_v18 = vmul.f32 %v5923_v23, %v1451_v8  ;;  %v5942_v22 = vsub.f32 1.0, %v5361_v37 }
 0x22f   :  { %9104 = vst [vmem:[#allocation104_spill] sm:$0xff] %v5913_v35  ;;  %v714_v11 = vsel %vm713_vm11, %v5021_v45, %v710_v48  ;;  %v2074_v48 = vadd.f32 %v2058_v56, %v2026_v17  ;;  %v2075_v40 = vadd.f32 %v2059_v14, %v2027_v15  ;;  %v2234_v12 = vsub.f32 1.4, %v5359_v62 }
 0x230   :  { %9105 = vst [vmem:[#allocation105_spill] sm:$0xff] %v5923_v23  ;;  %v719_v43 = vsel %vm5871_vm8, %v718_v5, %v714_v11  ;;  %v729_v30 = vsel %vm728_vm12, %v5023_v32, %v725_v47  ;;  %v2154_v5 = vmul.f32 %v5935_v16, %v1466_v31  ;;  %v5946_v32 = vadd.f32 -0.6, %v5359_v62 }
 0x231   :  { %9106 = vst [vmem:[#allocation106_spill] sm:$0xff] %v5935_v16  ;;  %v734_v45 = vsel %vm5878_vm9, %v733_v28, %v729_v30  ;;  %v750_v27 = vmul.f32 %v719_v43, %v5367_v0  ;;  %v5948_v26 = vmul.f32 2.5, %v2074_v48  ;;  %v5950_v8 = vmul.f32 2.5, %v2075_v40 }
 0x232   :  { %v751_v9 = vmul.f32 %v734_v45, %v5400_v10  ;;  %9107 = vst [vmem:[#allocation107_spill] sm:$0xff] %v5942_v22  ;;  %v5953_v28 = vadd.f32 -0.6, %v5361_v37  ;;  %v2155_v47 = vmul.f32 %v5942_v22, %v1467_v25  ;;  %v2170_v17 = vadd.f32 %v2154_v5, %v2122_v6 }
 0x233   :  { %9108 = vst [vmem:[#allocation108_spill] sm:$0xff] %v5946_v32  ;;  %v2218_v15 = vmul.f32 %v5946_v32, %v1466_v31  ;;  %v2235_v56 = vsub.f32 1.4, %v5361_v37  ;;  %v2250_v14 = vmul.f32 %v2234_v12, %v5895_v29  ;;  %v2810_v45 = vmul.f32 %v5901_v24, %v5948_v26 }
 0x234   :  { %9109 = vst [vmem:[#allocation109_spill] sm:$0xff] %v5948_v26  ;;  %v759_v30 = vpack.c.bf16 %v751_v9, %v750_v27  ;;  %v2219_v11 = vmul.f32 %v5953_v28, %v1467_v25  ;;  %v2171_v40 = vadd.f32 %v2155_v47, %v2123_v18  ;;  %v2186_v43 = vmul.f32 2.5, %v2170_v17 }
 0x235   :  { %9110 = vst [vmem:[#allocation110_spill] sm:$0xff] %v5950_v8  ;;  %vm776_vm13 = vcmp.ge.f32.partialorder %v5355_v60, -2.2  ;;  %v2251_v9 = vmul.f32 %v2235_v56, %v5898_v2  ;;  %v2266_v27 = vadd.f32 %v2250_v14, %v2218_v15  ;;  %v2811_v31 = vmul.f32 %v5904_v3, %v5950_v8 }
 0x236   :  { %9111 = vst [vmem:[#allocation111_spill] sm:$0xff] %v5953_v28  ;;  %3213 = vmatpush.bf16.msra.mxu2 %v759_v30  ;;  %vm777_vm14 = vcmp.ge.f32.partialorder %v5357_v61, -2.2  ;;  %v2187_v25 = vmul.f32 2.5, %v2171_v40  ;;  %v2826_v6 = vmul.f32 %v2186_v43, %v5935_v16  ;;  %v2874_v48 = vmul.f32 %v5913_v35, %v2186_v43 }
 0x237   :  { %v4447_v18 = vsel %vm776_vm13, 1.0, %v9041_v41  ;;  %v2267_v5 = vadd.f32 %v2251_v9, %v2219_v11  ;;  %v5971_v30 = vmul.f32 2.5, %v2266_v27  ;;  %vm824_vm15 = vcmp.ge.f32.partialorder %v5355_v60, -1.8 }
 0x238   :  { %vm825_vm1 = vcmp.ge.f32.partialorder %v5357_v61, -1.8  ;;  %v2827_v47 = vmul.f32 %v2187_v25, %v5942_v22  ;;  %v2842_v17 = vadd.f32 %v2826_v6, %v2810_v45  ;;  %v2875_v15 = vmul.f32 %v5923_v23, %v2187_v25 }
 0x239   :  { %9112 = vst [vmem:[#allocation112_spill] sm:$0xff] %v5971_v30  ;;  %v4448_v14 = vsel %vm777_vm14, 1.0, %v9041_v41  ;;  %v5978_v40 = vmul.f32 2.5, %v2267_v5  ;;  %v2890_v43 = vmul.f32 %v5971_v30, %v2234_v12  ;;  %v4463_v35 = vsel %vm824_vm15, 1.0, %v9041_v41 }
 0x23a   :  { %vm872_vm2 = vcmp.ge.f32.partialorder %v5355_v60, -1.4  ;;  %v2843_v11 = vadd.f32 %v2827_v47, %v2811_v31  ;;  %v5983_v9 = vmul.f32 1.25, %v2842_v17  ;;  %v4464_v27 = vsel %vm825_vm1, 1.0, %v9041_v41 }
 0x23b   :  { %9113 = vst [vmem:[#allocation113_spill] sm:$0xff] %v5978_v40  ;;  %vm873_vm3 = vcmp.ge.f32.partialorder %v5357_v61, -1.4  ;;  %v2891_v45 = vmul.f32 %v5978_v40, %v2235_v56  ;;  %v2906_v25 = vadd.f32 %v2890_v43, %v2874_v48  ;;  %v4479_v6 = vsel %vm872_vm2, 1.0, %v9041_v41 }
 0x23c   :  { %9114 = vst [vmem:[#allocation114_spill] sm:$0xff] %v5983_v9  ;;  %vm920_vm4 = vcmp.ge.f32.partialorder %v5355_v60, -1.0  ;;  %v5990_v5 = vmul.f32 1.25, %v2843_v11  ;;  %v3816_v23 = vmul.f32 %v5901_v24, %v5983_v9  ;;  %v4480_v31 = vsel %vm873_vm3, 1.0, %v9041_v41 }
 0x23d   :  { %vm921_vm5 = vcmp.ge.f32.partialorder %v5357_v61, -1.0  ;;  %v2907_v47 = vadd.f32 %v2891_v45, %v2875_v15  ;;  %v5996_v17 = vmul.f32 1.25, %v2906_v25  ;;  %v4495_v28 = vsel %vm920_vm4, 1.0, %v9041_v41 }
 0x23e   :  { %9115 = vst [vmem:[#allocation115_spill] sm:$0xff] %v5990_v5  ;;  %vm968_vm6 = vcmp.ge.f32.partialorder %v5355_v60, -0.6  ;;  %v3817_v48 = vmul.f32 %v5904_v3, %v5990_v5  ;;  %v4496_v43 = vsel %vm921_vm5, 1.0, %v9041_v41  ;;  %vm969_vm7 = vcmp.ge.f32.partialorder %v5357_v61, -0.6 }
 0x23f   :  { %9116 = vst [vmem:[#allocation116_spill] sm:$0xff] %v5996_v17  ;;  %v6005_v24 = vsel %vm968_vm6, 1.0, %v9041_v41  ;;  %v6007_v11 = vmul.f32 1.25, %v2907_v47  ;;  %v3832_v15 = vmul.f32 %v5996_v17, %v2234_v12  ;;  %v6011_v45 = vsel %vm969_vm7, 1.0, %v9041_v41 }
 0x240   :  { %9117 = vst [vmem:[#allocation117_spill] sm:$0xff] %v6005_v24  ;;  %v1352_v25 = vsub.f32 %v4447_v18, %v4463_v35  ;;  %v1353_v40 = vsub.f32 %v4448_v14, %v4464_v27  ;;  %v1368_v32 = vsub.f32 %v4463_v35, %v4479_v6  ;;  %v1369_v30 = vsub.f32 %v4464_v27, %v4480_v31 }
 0x241   :  { %9118 = vst [vmem:[#allocation118_spill] sm:$0xff] %v6007_v11  ;;  %v1384_v2 = vsub.f32 %v4479_v6, %v4495_v28  ;;  %v3833_v3 = vmul.f32 %v6007_v11, %v2235_v56  ;;  %v3848_v29 = vadd.f32 %v3832_v15, %v3816_v23  ;;  %v1385_v5 = vsub.f32 %v4480_v31, %v4496_v43 }
 0x242   :  { %9119 = vst [vmem:[#allocation119_spill] sm:$0xff] %v6011_v45  ;;  %v6015_v22 = vsub.f32 %v4495_v28, %v6005_v24  ;;  %v6018_v47 = vsub.f32 %v4496_v43, %v6011_v45  ;;  %v6021_v12 = vadd.f32 2.2, %v5355_v60  ;;  %v6024_v17 = vadd.f32 2.2, %v5357_v61 }
 0x243   :  { %v1560_v35 = vsub.f32 -1.4, %v5355_v60  ;;  %v3849_v18 = vadd.f32 %v3833_v3, %v3817_v48  ;;  %v3864_v14 = vmul.f32 0.8333333, %v3848_v29  ;;  %v1561_v56 = vsub.f32 -1.4, %v5357_v61 }
 0x244   :  { %9120 = vst [vmem:[#allocation120_spill] sm:$0xff] %v6015_v22  ;;  %v6029_v23 = vadd.f32 1.8, %v5355_v60  ;;  %v1544_v28 = vmul.f32 %v6021_v12, %v1352_v25  ;;  %v1545_v27 = vmul.f32 %v6024_v17, %v1353_v40  ;;  %v6034_v31 = vadd.f32 1.8, %v5357_v61 }
 0x245   :  { %9121 = vst [vmem:[#allocation121_spill] sm:$0xff] %v6018_v47  ;;  %v1576_v6 = vmul.f32 %v1560_v35, %v1368_v32  ;;  %v3865_v43 = vmul.f32 0.8333333, %v3849_v18  ;;  %v1577_v15 = vmul.f32 %v1561_v56, %v1369_v30  ;;  %v1656_v48 = vsub.f32 -1.0, %v5355_v60 }
 0x246   :  { %9122 = vst [vmem:[#allocation122_spill] sm:$0xff] %v6029_v23  ;;  %v1640_v11 = vmul.f32 %v6029_v23, %v1368_v32  ;;  %v1641_v3 = vmul.f32 %v6034_v31, %v1369_v30  ;;  %v1657_v9 = vsub.f32 -1.0, %v5357_v61  ;;  %v6041_v16 = vadd.f32 1.4, %v5355_v60 }
 0x247   :  { %9123 = vst [vmem:[#allocation123_spill] sm:$0xff] %v6034_v31  ;;  %v1592_v29 = vadd.f32 %v1576_v6, %v1544_v28  ;;  %v3875_v25 = vpack.c.bf16 %v3865_v43, %v3864_v14  ;;  %v1593_v40 = vadd.f32 %v1577_v15, %v1545_v27  ;;  %v1672_v35 = vmul.f32 %v1656_v48, %v1384_v2 }
 0x248   :  { %9124 = vst [vmem:[#allocation124_spill] sm:$0xff] %v6041_v16  ;;  %v6044_v8 = vadd.f32 1.4, %v5357_v61  ;;  %v1673_v56 = vmul.f32 %v1657_v9, %v1385_v5  ;;  %v1736_v32 = vmul.f32 %v6041_v16, %v1384_v2  ;;  %v1752_v26 = vsub.f32 -0.6, %v5355_v60 }
 0x249   :  { %v1608_v18 = vmul.f32 2.5, %v1592_v29  ;;  %3912 = vmatpush.bf16.msrb.mxu0 %v3875_v25  ;;  %v1609_v28 = vmul.f32 2.5, %v1593_v40  ;;  %v1688_v30 = vadd.f32 %v1672_v35, %v1640_v11  ;;  %v1753_v45 = vsub.f32 -0.6, %v5357_v61 }
 0x24a   :  { %9125 = vst [vmem:[#allocation125_spill] sm:$0xff] %v6044_v8  ;;  %v1737_v6 = vmul.f32 %v6044_v8, %v1385_v5  ;;  %vm1262_vm8 = vcmp.ge.f32.partialorder %v5367_v0, 1.8  ;;  %v1689_v14 = vadd.f32 %v1673_v56, %v1641_v3  ;;  %v1768_v27 = vmul.f32 %v1752_v26, %v6015_v22 }
 0x24b   :  { %v4435_v43 = vmul.f32 -1.442695, %v5363_v7  ;;  %v1704_v15 = vmul.f32 2.5, %v1688_v30  ;;  %v1769_v29 = vmul.f32 %v1753_v45, %v6018_v47  ;;  %v2488_v2 = vmul.f32 %v6021_v12, %v1608_v18 }
 0x24c   :  { %v4436_v25 = vmul.f32 -1.442695, %v5365_v63  ;;  %v1705_v40 = vmul.f32 2.5, %v1689_v14  ;;  %v1784_v11 = vadd.f32 %v1768_v27, %v1736_v32  ;;  %v2489_v5 = vmul.f32 %v6024_v17, %v1609_v28 }
 0x24d   :  { %5024 = vpow2.f32 %v4435_v43  ;;  %vm1263_vm9 = vcmp.ge.f32.partialorder %v5400_v10, 1.8  ;;  %v1785_v35 = vadd.f32 %v1769_v29, %v1737_v6  ;;  %v2504_v3 = vmul.f32 %v1704_v15, %v1656_v48 }
 0x24e   :  { %5026 = vpow2.f32 %v4436_v25  ;;  %vm1310_vm0 = vcmp.ge.f32.partialorder %v5367_v0, 2.2  ;;  %v6059_v56 = vmul.f32 2.5, %v1784_v11  ;;  %v2505_v30 = vmul.f32 %v1705_v40, %v1657_v9 }
 0x24f   :  { %v2552_v8 = vmul.f32 %v6029_v23, %v1704_v15  ;;  %vm1311_vm10 = vcmp.ge.f32.partialorder %v5400_v10, 2.2  ;;  %v6063_v18 = vmul.f32 2.5, %v1785_v35  ;;  %v2520_v32 = vadd.f32 %v2504_v3, %v2488_v2 }
 0x250   :  { %9126 = vst [vmem:[#allocation126_spill] sm:$0xff] %v6059_v56  ;;  %v2553_v28 = vmul.f32 %v6034_v31, %v1705_v40  ;;  %v6069_v6 = vsel %vm1262_vm8, 1.0, %v9041_v41  ;;  %v2521_v48 = vadd.f32 %v2505_v30, %v2489_v5  ;;  %v2568_v14 = vmul.f32 %v6059_v56, %v1752_v26 }
 0x251   :  { %9127 = vst [vmem:[#allocation127_spill] sm:$0xff] %v6063_v18  ;;  %vm1016_vm11 = vcmp.ge.f32.partialorder %v5355_v60, -0.2  ;;  %v6076_v9 = vsel %vm1263_vm9, 1.0, %v9041_v41  ;;  %v6079_v27 = vsel %vm1310_vm0, 1.0, %v9041_v41  ;;  %v2536_v43 = vmul.f32 1.25, %v2520_v32 }
 0x252   :  { %9128 = vst [vmem:[#allocation128_spill] sm:$0xff] %v6069_v6  ;;  %v2569_v15 = vmul.f32 %v6063_v18, %v1753_v45  ;;  %v6083_v2 = vsel %vm1311_vm10, 1.0, %v9041_v41  ;;  %v2537_v25 = vmul.f32 1.25, %v2521_v48  ;;  %v2584_v40 = vadd.f32 %v2568_v14, %v2552_v8 }
 0x253   :  { %9129 = vst [vmem:[#allocation129_spill] sm:$0xff] %v6076_v9  ;;  %v5025_v29 = vpop.eup %5024  ;;  %vm1017_vm12 = vcmp.ge.f32.partialorder %v5357_v61, -0.2  ;;  %v6089_v3 = vsel %vm1016_vm11, 1.0, %v9041_v41  ;;  %vm1064_vm13 = vcmp.ge.f32.partialorder %v5355_v60, 0.2  ;;  %v3064_v32 = vmul.f32 %v6021_v12, %v2536_v43 }
 0x254   :  { %9130 = vst [vmem:[#allocation130_spill] sm:$0xff] %v6079_v27  ;;  %v5027_v11 = vpop.eup %5026  ;;  %v2585_v5 = vadd.f32 %v2569_v15, %v2553_v28  ;;  %v6086_v35 = vadd.f32 1.0, %v5025_v29  ;;  %v6092_v30 = vmul.f32 1.25, %v2584_v40  ;;  %vm1065_vm14 = vcmp.ge.f32.partialorder %v5357_v61, 0.2 }
 0x255   :  { %9131 = vst [vmem:[#allocation131_spill] sm:$0xff] %v6083_v2  ;;  %v6095_v31 = vadd.f32 1.0, %v5027_v11  ;;  %v3065_v48 = vmul.f32 %v6024_v17, %v2537_v25  ;;  %vm1112_vm15 = vcmp.ge.f32.partialorder %v5355_v60, 0.6  ;;  %v6109_v12 = vsel %vm1017_vm12, 1.0, %v9041_v41 }
 0x256   :  { %9132 = vst [vmem:[#allocation132_spill] sm:$0xff] %v6089_v3  ;;  %v6098_v8 = vmul.f32 1.25, %v2585_v5  ;;  %5028 = vrcp.f32 %v6086_v35  ;;  %v3080_v28 = vmul.f32 %v6092_v30, %v1752_v26  ;;  %v687_v14 = vand.u32 2147483648, %v6086_v35 }
 0x257   :  { %9133 = vst [vmem:[#allocation133_spill] sm:$0xff] %v6092_v30  ;;  %5030 = vrcp.f32 %v6095_v31  ;;  %v4543_v15 = vsel %vm1064_vm13, 1.0, %v9041_v41  ;;  %v4544_v17 = vsel %vm1065_vm14, 1.0, %v9041_v41  ;;  %vm1113_vm1 = vcmp.ge.f32.partialorder %v5357_v61, 0.6 }
 0x258   :  { %9134 = vst [vmem:[#allocation134_spill] sm:$0xff] %v6098_v8  ;;  %v3081_v43 = vmul.f32 %v6098_v8, %v1753_v45  ;;  %v3096_v29 = vadd.f32 %v3080_v28, %v3064_v32  ;;  %v685_v26 = vand.u32 2147483647, %v6086_v35  ;;  %v702_v25 = vand.u32 2147483648, %v6095_v31 }
 0x259   :  { %9135 = vst [vmem:[#allocation135_spill] sm:$0xff] %v6109_v12  ;;  %v4559_v40 = vsel %vm1112_vm15, 1.0, %v9041_v41  ;;  %v700_v5 = vand.u32 2147483647, %v6095_v31  ;;  %vm1160_vm2 = vcmp.ge.f32.partialorder %v5355_v60, 1.0  ;;  %vm1161_vm3 = vcmp.ge.f32.partialorder %v5357_v61, 1.0 }
 0x25a   :  { %v3097_v11 = vadd.f32 %v3081_v43, %v3065_v48  ;;  %vm681_vm4 = vweird.f32 %v6086_v35  ;;  %v688_v45 = vor.u32 1.1754944e-38, %v687_v14  ;;  %v4560_v8 = vsel %vm1113_vm1, 1.0, %v9041_v41 }
 0x25b   :  { %vm1208_vm5 = vcmp.ge.f32.partialorder %v5355_v60, 1.4  ;;  %v3112_v28 = vmul.f32 0.8333333, %v3096_v29  ;;  %vm696_vm6 = vweird.f32 %v6095_v31  ;;  %vm1209_vm7 = vcmp.ge.f32.partialorder %v5357_v61, 1.4 }
 0x25c   :  { %v5029_v32 = vpop.eup %5028  ;;  %v3113_v23 = vmul.f32 0.8333333, %v3097_v11  ;;  %vm6127_vm8 = vcmp.eq.f32.partialorder %v685_v26, 8.507059e+37  ;;  %v703_v18 = vor.u32 1.1754944e-38, %v702_v25  ;;  %v4575_v14 = vsel %vm1160_vm2, 1.0, %v9041_v41 }
 0x25d   :  { %v5031_v48 = vpop.eup %5030  ;;  %v677_v43 = vmul.f32 %v5029_v32, %v6086_v35  ;;  %v4576_v47 = vsel %vm1161_vm3, 1.0, %v9041_v41  ;;  %vm6134_vm9 = vcmp.eq.f32.partialorder %v700_v5, 8.507059e+37  ;;  %v6139_v16 = vsel %vm1208_vm5, 1.0, %v9041_v41 }
 0x25e   :  { %v3124_v22 = vpack.c.bf16 %v3113_v23, %v3112_v28  ;;  %v692_v29 = vmul.f32 %v5031_v48, %v6095_v31  ;;  %v6142_v26 = vsub.f32 %v6089_v3, %v4543_v15  ;;  %vm682_vm0 = vweird.f32 %v5029_v32 }
 0x25f   :  { %v678_v56 = vsub.f32 1.0, %v677_v43  ;;  %v6145_v25 = vsel %vm1209_vm7, 1.0, %v9041_v41  ;;  %v6148_v24 = vsub.f32 %v6109_v12, %v4544_v17  ;;  %vm697_vm10 = vweird.f32 %v5031_v48  ;;  %vm683_vm11 = vmor %vm681_vm4, %vm682_vm0 }
 0x260   :  { %9140 = vst [vmem:[#allocation136_spill] sm:$0xff] %v6142_v26  ;;  %3163 = vmatpush.bf16.msra.mxu1 %v3124_v22  ;;  %4982 = vmatpush.bf16.msra.mxu3 %v3124_v22  ;;  %v693_v23 = vsub.f32 1.0, %v692_v29  ;;  %v1448_v5 = vsub.f32 %v4543_v15, %v4559_v40  ;;  %v1449_v28 = vsub.f32 %v4544_v17, %v4560_v8  ;;  %v6160_v12 = vadd.f32 0.2, %v5357_v61  ;;  %vm698_vm12 = vmor %vm696_vm6, %vm697_vm10 }
 0x261   :  { %9141 = vst [vmem:[#allocation137_spill] sm:$0xff] %v6148_v24  ;;  %v679_v21 = vmul.f32 %v5029_v32, %v678_v56  ;;  %v1464_v34 = vsub.f32 %v4559_v40, %v4575_v14  ;;  %v1465_v19 = vsub.f32 %v4560_v8, %v4576_v47  ;;  %v6151_v3 = vsub.f32 %v4575_v14, %v6139_v16 }
 0x262   :  { %v694_v43 = vmul.f32 %v5031_v48, %v693_v23  ;;  %v6154_v13 = vsub.f32 %v4576_v47, %v6145_v25  ;;  %v6163_v15 = vsub.f32 0.6, %v5355_v60  ;;  %v6166_v56 = vsub.f32 0.6, %v5357_v61 }
 0x263   :  { %9142 = vst [vmem:[#allocation138_spill] sm:$0xff] %v6151_v3  ;;  %v680_v22 = vadd.f32 %v5029_v32, %v679_v21  ;;  %v6169_v8 = vadd.f32 -0.2, %v5355_v60  ;;  %v2024_v17 = vmul.f32 %v6157_v52, %v6142_v26  ;;  %v2025_v21 = vmul.f32 %v6160_v12, %v6148_v24 }
 0x264   :  { %9143 = vst [vmem:[#allocation139_spill] sm:$0xff] %v6154_v13  ;;  %v695_v47 = vadd.f32 %v5031_v48, %v694_v43  ;;  %v6179_v40 = vadd.f32 -0.2, %v5357_v61  ;;  %v2056_v29 = vmul.f32 %v6163_v15, %v1448_v5  ;;  %v2057_v35 = vmul.f32 %v6166_v56, %v1449_v28 }
 0x265   :  { %9144 = vst [vmem:[#allocation140_spill] sm:$0xff] %v6163_v15  ;;  %v684_v14 = vsel %vm683_vm11, %v5029_v32, %v680_v22  ;;  %v2120_v23 = vmul.f32 %v6169_v8, %v1448_v5  ;;  %v6198_v5 = vsub.f32 1.0, %v5357_v61  ;;  %v2152_v30 = vmul.f32 %v6191_v51, %v1464_v34 }
 0x266   :  { %9145 = vst [vmem:[#allocation141_spill] sm:$0xff] %v6166_v56  ;;  %v689_v43 = vsel %vm6127_vm8, %v688_v45, %v684_v14  ;;  %v699_v26 = vsel %vm698_vm12, %v5031_v48, %v695_v47  ;;  %v2121_v24 = vmul.f32 %v6179_v40, %v1449_v28  ;;  %v2072_v22 = vadd.f32 %v2056_v29, %v2024_v17 }
 0x267   :  { %9146 = vst [vmem:[#allocation142_spill] sm:$0xff] %v6169_v8  ;;  %v704_v32 = vsel %vm6134_vm9, %v703_v18, %v699_v26  ;;  %v748_v31 = vmul.f32 %v689_v43, %v5363_v7  ;;  %v2073_v15 = vadd.f32 %v2057_v35, %v2025_v21  ;;  %v6202_v45 = vadd.f32 -0.6, %v5355_v60 }
 0x268   :  { %9147 = vst [vmem:[#allocation143_spill] sm:$0xff] %v6179_v40  ;;  %v749_v56 = vmul.f32 %v704_v32, %v5365_v63  ;;  %v6204_v48 = vmul.f32 2.5, %v2072_v22  ;;  %v6209_v18 = vadd.f32 -0.6, %v5357_v61  ;;  %v2232_v11 = vsub.f32 1.4, %v5355_v60 }
 0x269   :  { %9149 = vst [vmem:[#allocation145_spill] sm:$0xff] %v6198_v5  ;;  %v6206_v28 = vmul.f32 2.5, %v2073_v15  ;;  %v2153_v47 = vmul.f32 %v6198_v5, %v1465_v19  ;;  %v2168_v17 = vadd.f32 %v2152_v30, %v2120_v23  ;;  %v2216_v21 = vmul.f32 %v6202_v45, %v1464_v34 }
 0x26a   :  { %9150 = vst [vmem:[#allocation146_spill] sm:$0xff] %v6202_v45  ;;  %v758_v26 = vpack.c.bf16 %v749_v56, %v748_v31  ;;  %v6216_v14 = vsub.f32 %v5476_v49, %v6069_v6  ;;  %v2217_v29 = vmul.f32 %v6209_v18, %v1465_v19  ;;  %v2233_v15 = vsub.f32 1.4, %v5357_v61 }
 0x26b   :  { %9151 = vst [vmem:[#allocation147_spill] sm:$0xff] %v6204_v48  ;;  %v2248_v35 = vmul.f32 %v2232_v11, %v6151_v3  ;;  %v2169_v43 = vadd.f32 %v2153_v47, %v2121_v24  ;;  %v2184_v32 = vmul.f32 2.5, %v2168_v17  ;;  %v2808_v56 = vmul.f32 %v6157_v52, %v6204_v48 }
 0x26c   :  { %9152 = vst [vmem:[#allocation148_spill] sm:$0xff] %v6206_v28  ;;  %3214 = vmatpush.bf16.msra.mxu2 %v758_v26  ;;  %vm774_vm13 = vcmp.ge.f32.partialorder %v5351_v58, -2.2  ;;  %v2249_v34 = vmul.f32 %v2233_v15, %v6154_v13  ;;  %v2809_v49 = vmul.f32 %v6160_v12, %v6206_v28  ;;  %vm775_vm14 = vcmp.ge.f32.partialorder %v5353_v59, -2.2 }
 0x26d   :  { %9153 = vst [vmem:[#allocation149_spill] sm:$0xff] %v6209_v18  ;;  %v2264_v23 = vadd.f32 %v2248_v35, %v2216_v21  ;;  %v2185_v19 = vmul.f32 2.5, %v2169_v43  ;;  %v2824_v31 = vmul.f32 %v2184_v32, %v6191_v51  ;;  %v2872_v22 = vmul.f32 %v6169_v8, %v2184_v32 }
 0x26e   :  { %9154 = vst [vmem:[#allocation150_spill] sm:$0xff] %v6216_v14  ;;  %v4445_v24 = vsel %vm774_vm13, 1.0, %v9041_v41  ;;  %v2265_v30 = vadd.f32 %v2249_v34, %v2217_v29  ;;  %vm822_vm15 = vcmp.ge.f32.partialorder %v5351_v58, -1.8  ;;  %vm823_vm1 = vcmp.ge.f32.partialorder %v5353_v59, -1.8 }
 0x26f   :  { %v6231_v26 = vmul.f32 2.5, %v2264_v23  ;;  %v2825_v47 = vmul.f32 %v2185_v19, %v6198_v5  ;;  %v2840_v17 = vadd.f32 %v2824_v31, %v2808_v56  ;;  %v2873_v21 = vmul.f32 %v6179_v40, %v2185_v19 }
 0x270   :  { %v4446_v35 = vsel %vm775_vm14, 1.0, %v9041_v41  ;;  %v6238_v43 = vmul.f32 2.5, %v2265_v30  ;;  %v4461_v8 = vsel %vm822_vm15, 1.0, %v9041_v41  ;;  %vm870_vm2 = vcmp.ge.f32.partialorder %v5351_v58, -1.4 }
 0x271   :  { %9155 = vst [vmem:[#allocation151_spill] sm:$0xff] %v6231_v26  ;;  %v2888_v32 = vmul.f32 %v6231_v26, %v2232_v11  ;;  %v2841_v29 = vadd.f32 %v2825_v47, %v2809_v49  ;;  %v6243_v34 = vmul.f32 1.25, %v2840_v17  ;;  %v4462_v23 = vsel %vm823_vm1, 1.0, %v9041_v41 }
 0x272   :  { %9156 = vst [vmem:[#allocation152_spill] sm:$0xff] %v6238_v43  ;;  %vm871_vm3 = vcmp.ge.f32.partialorder %v5353_v59, -1.4  ;;  %v2889_v56 = vmul.f32 %v6238_v43, %v2233_v15  ;;  %v4477_v31 = vsel %vm870_vm2, 1.0, %v9041_v41  ;;  %vm918_vm4 = vcmp.ge.f32.partialorder %v5351_v58, -1.0 }
 0x273   :  { %9157 = vst [vmem:[#allocation153_spill] sm:$0xff] %v6243_v34  ;;  %v2904_v19 = vadd.f32 %v2888_v32, %v2872_v22  ;;  %v6250_v30 = vmul.f32 1.25, %v2841_v29  ;;  %v3814_v40 = vmul.f32 %v6157_v52, %v6243_v34  ;;  %v4478_v49 = vsel %vm871_vm3, 1.0, %v9041_v41 }
 0x274   :  { %vm919_vm5 = vcmp.ge.f32.partialorder %v5353_v59, -1.0  ;;  %v2905_v47 = vadd.f32 %v2889_v56, %v2873_v21  ;;  %v4493_v18 = vsel %vm918_vm4, 1.0, %v9041_v41  ;;  %vm966_vm6 = vcmp.ge.f32.partialorder %v5351_v58, -0.6 }
 0x275   :  { %9158 = vst [vmem:[#allocation154_spill] sm:$0xff] %v6250_v30  ;;  %v6256_v17 = vmul.f32 1.25, %v2904_v19  ;;  %v3815_v22 = vmul.f32 %v6160_v12, %v6250_v30  ;;  %v4494_v32 = vsel %vm919_vm5, 1.0, %v9041_v41  ;;  %vm967_vm7 = vcmp.ge.f32.partialorder %v5353_v59, -0.6 }
 0x276   :  { %v6265_v52 = vsel %vm966_vm6, 1.0, %v9041_v41  ;;  %v6267_v29 = vmul.f32 1.25, %v2905_v47  ;;  %v6271_v56 = vsel %vm967_vm7, 1.0, %v9041_v41  ;;  %v1350_v19 = vsub.f32 %v4445_v24, %v4461_v8 }
 0x277   :  { %9159 = vst [vmem:[#allocation155_spill] sm:$0xff] %v6256_v17  ;;  %v3830_v21 = vmul.f32 %v6256_v17, %v2232_v11  ;;  %v1351_v43 = vsub.f32 %v4446_v35, %v4462_v23  ;;  %v1366_v45 = vsub.f32 %v4461_v8, %v4477_v31  ;;  %v1367_v26 = vsub.f32 %v4462_v23, %v4478_v49 }
 0x278   :  { %9160 = vst [vmem:[#allocation156_spill] sm:$0xff] %v6265_v52  ;;  %v1382_v13 = vsub.f32 %v4477_v31, %v4493_v18  ;;  %v3831_v12 = vmul.f32 %v6267_v29, %v2233_v15  ;;  %v1383_v30 = vsub.f32 %v4478_v49, %v4494_v32  ;;  %v6275_v5 = vsub.f32 %v4493_v18, %v6265_v52 }
 0x279   :  { %9161 = vst [vmem:[#allocation157_spill] sm:$0xff] %v6267_v29  ;;  %v3846_v3 = vadd.f32 %v3830_v21, %v3814_v40  ;;  %v6278_v47 = vsub.f32 %v4494_v32, %v6271_v56  ;;  %v6281_v11 = vadd.f32 2.2, %v5351_v58  ;;  %v6284_v17 = vadd.f32 2.2, %v5353_v59 }
 0x27a   :  { %9162 = vst [vmem:[#allocation158_spill] sm:$0xff] %v6271_v56  ;;  %v1558_v8 = vsub.f32 -1.4, %v5351_v58  ;;  %v3847_v24 = vadd.f32 %v3831_v12, %v3815_v22  ;;  %v1559_v15 = vsub.f32 -1.4, %v5353_v59  ;;  %v1654_v22 = vsub.f32 -1.0, %v5351_v58 }
 0x27b   :  { %9163 = vst [vmem:[#allocation159_spill] sm:$0xff] %v6275_v5  ;;  %v3862_v35 = vmul.f32 0.8333333, %v3846_v3  ;;  %v6289_v40 = vadd.f32 1.8, %v5351_v58  ;;  %v1542_v18 = vmul.f32 %v6281_v11, %v1350_v19  ;;  %v1543_v23 = vmul.f32 %v6284_v17, %v1351_v43 }
 0x27c   :  { %9164 = vst [vmem:[#allocation160_spill] sm:$0xff] %v6278_v47  ;;  %v1574_v31 = vmul.f32 %v1558_v8, %v1366_v45  ;;  %v6294_v49 = vadd.f32 1.8, %v5353_v59  ;;  %v3863_v32 = vmul.f32 0.8333333, %v3847_v24  ;;  %v1575_v21 = vmul.f32 %v1559_v15, %v1367_v26 }
 0x27d   :  { %9165 = vst [vmem:[#allocation161_spill] sm:$0xff] %v6289_v40  ;;  %v1638_v29 = vmul.f32 %v6289_v40, %v1366_v45  ;;  %v1655_v34 = vsub.f32 -1.0, %v5353_v59  ;;  %v6301_v51 = vadd.f32 1.4, %v5351_v58  ;;  %v1670_v8 = vmul.f32 %v1654_v22, %v1382_v13 }
 0x27e   :  { %9166 = vst [vmem:[#allocation162_spill] sm:$0xff] %v6294_v49  ;;  %v1590_v3 = vadd.f32 %v1574_v31, %v1542_v18  ;;  %v1639_v12 = vmul.f32 %v6294_v49, %v1367_v26  ;;  %v3874_v19 = vpack.c.bf16 %v3863_v32, %v3862_v35  ;;  %v1591_v43 = vadd.f32 %v1575_v21, %v1543_v23 }
 0x27f   :  { %9167 = vst [vmem:[#allocation163_spill] sm:$0xff] %v6301_v51  ;;  %v6304_v14 = vadd.f32 1.4, %v5353_v59  ;;  %v1671_v15 = vmul.f32 %v1655_v34, %v1383_v30  ;;  %v1734_v45 = vmul.f32 %v6301_v51, %v1382_v13  ;;  %v1750_v28 = vsub.f32 -0.6, %v5351_v58  ;;  %v9350_v51 = vld [vmem:[#allocation31_spill] sm:$0xff] }
 0x280   :  { %v1606_v24 = vmul.f32 2.5, %v1590_v3  ;;  %3913 = vmatpush.bf16.msrb.mxu0 %v3874_v19  ;;  %v1607_v18 = vmul.f32 2.5, %v1591_v43  ;;  %v1686_v26 = vadd.f32 %v1670_v8, %v1638_v29  ;;  %v1751_v48 = vsub.f32 -0.6, %v5353_v59 }
 0x281   :  { %9168 = vst [vmem:[#allocation164_spill] sm:$0xff] %v6304_v14  ;;  %v1735_v31 = vmul.f32 %v6304_v14, %v1383_v30  ;;  %v6312_v35 = vsub.f32 %v5479_v50, %v6076_v9  ;;  %v1687_v23 = vadd.f32 %v1671_v15, %v1639_v12  ;;  %v1766_v32 = vmul.f32 %v1750_v28, %v6275_v5 }
 0x282   :  { %v4433_v21 = vmul.f32 -1.442695, %v5359_v62  ;;  %v1702_v3 = vmul.f32 2.5, %v1686_v26  ;;  %v1767_v13 = vmul.f32 %v1751_v48, %v6278_v47  ;;  %v2486_v19 = vmul.f32 %v6281_v11, %v1606_v24  ;;  %v9351_v47 = vld [vmem:[#allocation35_spill] sm:$0xff] }
 0x283   :  { %9169 = vst [vmem:[#allocation165_spill] sm:$0xff] %v6312_v35  ;;  %v4434_v29 = vmul.f32 -1.442695, %v5361_v37  ;;  %v1703_v43 = vmul.f32 2.5, %v1687_v23  ;;  %v1782_v30 = vadd.f32 %v1766_v32, %v1734_v45  ;;  %v2487_v8 = vmul.f32 %v6284_v17, %v1607_v18 }
 0x284   :  { %5032 = vpow2.f32 %v4433_v21  ;;  %v1783_v12 = vadd.f32 %v1767_v13, %v1735_v31  ;;  %v2502_v15 = vmul.f32 %v1702_v3, %v1654_v22  ;;  %v6323_v35 = vadd.f32 -1.0, %v5367_v0 }
 0x285   :  { %5034 = vpow2.f32 %v4434_v29  ;;  %v6325_v26 = vmul.f32 2.5, %v1782_v30  ;;  %v2503_v14 = vmul.f32 %v1703_v43, %v1655_v34  ;;  %v2550_v24 = vmul.f32 %v6289_v40, %v1702_v3 }
 0x286   :  { %9170 = vst [vmem:[#allocation166_spill] sm:$0xff] %v6323_v35  ;;  %v6329_v23 = vadd.f32 -1.0, %v5400_v10  ;;  %v6331_v45 = vmul.f32 2.5, %v1783_v12  ;;  %v2518_v18 = vadd.f32 %v2502_v15, %v2486_v19  ;;  %v2551_v32 = vmul.f32 %v6294_v49, %v1703_v43 }
 0x287   :  { %9171 = vst [vmem:[#allocation167_spill] sm:$0xff] %v6325_v26  ;;  %v2519_v31 = vadd.f32 %v2503_v14, %v2487_v8  ;;  %v2566_v21 = vmul.f32 %v6325_v26, %v1750_v28  ;;  %vm1014_vm8 = vcmp.ge.f32.partialorder %v5351_v58, -0.2  ;;  %v6340_v34 = vmul.f32 %v6323_v35, %v5488_v36 }
 0x288   :  { %9172 = vst [vmem:[#allocation168_spill] sm:$0xff] %v6329_v23  ;;  %v6344_v3 = vmul.f32 %v6329_v23, %v5497_v38  ;;  %v2534_v13 = vmul.f32 1.25, %v2518_v18  ;;  %v2567_v19 = vmul.f32 %v6331_v45, %v1751_v48  ;;  %v6349_v43 = vmul.f32 %v5522_v39, %v5542_v46 }
 0x289   :  { %9173 = vst [vmem:[#allocation169_spill] sm:$0xff] %v6331_v45  ;;  %v2535_v14 = vmul.f32 1.25, %v2519_v31  ;;  %v2582_v30 = vadd.f32 %v2566_v21, %v2550_v24  ;;  %vm1015_vm9 = vcmp.ge.f32.partialorder %v5353_v59, -0.2  ;;  %v6355_v15 = vsel %vm1014_vm8, 1.0, %v9041_v41 }
 0x28a   :  { %9174 = vst [vmem:[#allocation170_spill] sm:$0xff] %v6340_v34  ;;  %v5033_v29 = vpop.eup %5032  ;;  %v2583_v12 = vadd.f32 %v2567_v19, %v2551_v32  ;;  %vm1062_vm0 = vcmp.ge.f32.partialorder %v5351_v58, 0.2  ;;  %v3062_v18 = vmul.f32 %v6281_v11, %v2534_v13  ;;  %vm1063_vm10 = vcmp.ge.f32.partialorder %v5353_v59, 0.2 }
 0x28b   :  { %9175 = vst [vmem:[#allocation171_spill] sm:$0xff] %v6344_v3  ;;  %v5035_v8 = vpop.eup %5034  ;;  %v6352_v36 = vadd.f32 1.0, %v5033_v29  ;;  %v6358_v38 = vmul.f32 1.25, %v2582_v30  ;;  %v3063_v24 = vmul.f32 %v6284_v17, %v2535_v14  ;;  %vm1110_vm11 = vcmp.ge.f32.partialorder %v5351_v58, 0.6 }
 0x28c   :  { %9176 = vst [vmem:[#allocation172_spill] sm:$0xff] %v6349_v43  ;;  %v6361_v22 = vadd.f32 1.0, %v5035_v8  ;;  %v6364_v46 = vmul.f32 1.25, %v2583_v12  ;;  %v6375_v11 = vsel %vm1015_vm9, 1.0, %v9041_v41  ;;  %v4541_v13 = vsel %vm1062_vm0, 1.0, %v9041_v41 }
 0x28d   :  { %9177 = vst [vmem:[#allocation173_spill] sm:$0xff] %v6355_v15  ;;  %5036 = vrcp.f32 %v6352_v36  ;;  %v3078_v32 = vmul.f32 %v6358_v38, %v1750_v28  ;;  %v657_v31 = vand.u32 2147483648, %v6352_v36  ;;  %v4542_v17 = vsel %vm1063_vm10, 1.0, %v9041_v41 }
 0x28e   :  { %9178 = vst [vmem:[#allocation174_spill] sm:$0xff] %v6358_v38  ;;  %5038 = vrcp.f32 %v6361_v22  ;;  %v3079_v21 = vmul.f32 %v6364_v46, %v1751_v48  ;;  %vm1111_vm12 = vcmp.ge.f32.partialorder %v5353_v59, 0.6  ;;  %v655_v28 = vand.u32 2147483647, %v6352_v36 }
 0x28f   :  { %9179 = vst [vmem:[#allocation175_spill] sm:$0xff] %v6364_v46  ;;  %v3094_v19 = vadd.f32 %v3078_v32, %v3062_v18  ;;  %v672_v29 = vand.u32 2147483648, %v6361_v22  ;;  %v4557_v14 = vsel %vm1110_vm11, 1.0, %v9041_v41  ;;  %v670_v8 = vand.u32 2147483647, %v6361_v22 }
 0x290   :  { %9180 = vst [vmem:[#allocation176_spill] sm:$0xff] %v6375_v11  ;;  %v3095_v30 = vadd.f32 %v3079_v21, %v3063_v24  ;;  %vm1158_vm13 = vcmp.ge.f32.partialorder %v5351_v58, 1.0  ;;  %vm1159_vm14 = vcmp.ge.f32.partialorder %v5353_v59, 1.0  ;;  %vm651_vm15 = vweird.f32 %v6352_v36 }
 0x291   :  { %v658_v48 = vor.u32 1.1754944e-38, %v657_v31  ;;  %v4558_v12 = vsel %vm1111_vm12, 1.0, %v9041_v41  ;;  %vm1206_vm1 = vcmp.ge.f32.partialorder %v5351_v58, 1.4  ;;  %v3110_v32 = vmul.f32 0.8333333, %v3094_v19 }
 0x292   :  { %v3111_v50 = vmul.f32 0.8333333, %v3095_v30  ;;  %vm666_vm2 = vweird.f32 %v6361_v22  ;;  %vm1207_vm3 = vcmp.ge.f32.partialorder %v5353_v59, 1.4  ;;  %vm6393_vm4 = vcmp.eq.f32.partialorder %v655_v28, 8.507059e+37 }
 0x293   :  { %v5037_v18 = vpop.eup %5036  ;;  %v673_v23 = vor.u32 1.1754944e-38, %v672_v29  ;;  %v4573_v31 = vsel %vm1158_vm13, 1.0, %v9041_v41  ;;  %v4574_v2 = vsel %vm1159_vm14, 1.0, %v9041_v41  ;;  %vm6400_vm5 = vcmp.eq.f32.partialorder %v670_v8, 8.507059e+37 }
 0x294   :  { %v5039_v24 = vpop.eup %5038  ;;  %v647_v21 = vmul.f32 %v5037_v18, %v6352_v36  ;;  %v3123_v9 = vpack.c.bf16 %v3111_v50, %v3110_v32  ;;  %v6405_v27 = vsel %vm1206_vm1, 1.0, %v9041_v41  ;;  %v6408_v28 = vsub.f32 %v6355_v15, %v4541_v13 }
 0x295   :  { %v662_v19 = vmul.f32 %v5039_v24, %v6361_v22  ;;  %vm652_vm6 = vweird.f32 %v5037_v18  ;;  %v6411_v29 = vsel %vm1207_vm3, 1.0, %v9041_v41  ;;  %v6414_v35 = vsub.f32 %v6375_v11, %v4542_v17 }
 0x296   :  { %9185 = vst [vmem:[#allocation177_spill] sm:$0xff] %v6408_v28  ;;  %v648_v6 = vsub.f32 1.0, %v647_v21  ;;  %3164 = vmatpush.bf16.msra.mxu1 %v3123_v9  ;;  %4983 = vmatpush.bf16.msra.mxu3 %v3123_v9  ;;  %vm667_vm7 = vweird.f32 %v5039_v24  ;;  %v1446_v8 = vsub.f32 %v4541_v13, %v4557_v14  ;;  %v1447_v32 = vsub.f32 %v4542_v17, %v4558_v12  ;;  %vm653_vm8 = vmor %vm651_vm15, %vm652_vm6 }
 0x297   :  { %9186 = vst [vmem:[#allocation178_spill] sm:$0xff] %v6414_v35  ;;  %v663_v50 = vsub.f32 1.0, %v662_v19  ;;  %v1462_v3 = vsub.f32 %v4557_v14, %v4573_v31  ;;  %v1463_v34 = vsub.f32 %v4558_v12, %v4574_v2  ;;  %v6417_v49 = vsub.f32 %v4573_v31, %v6405_v27  ;;  %vm668_vm9 = vmor %vm666_vm2, %vm667_vm7 }
 0x298   :  { %v649_v43 = vmul.f32 %v5037_v18, %v648_v6  ;;  %v6420_v46 = vsub.f32 %v4574_v2, %v6411_v29  ;;  %v6423_v40 = vadd.f32 0.2, %v5351_v58  ;;  %v6426_v38 = vadd.f32 0.2, %v5353_v59 }
 0x299   :  { %9187 = vst [vmem:[#allocation179_spill] sm:$0xff] %v6417_v49  ;;  %v664_v21 = vmul.f32 %v5039_v24, %v663_v50  ;;  %v6429_v13 = vsub.f32 0.6, %v5351_v58  ;;  %v6432_v6 = vsub.f32 0.6, %v5353_v59  ;;  %v6457_v45 = vsub.f32 1.0, %v5351_v58 }
 0x29a   :  { %9188 = vst [vmem:[#allocation180_spill] sm:$0xff] %v6420_v46  ;;  %v650_v9 = vadd.f32 %v5037_v18, %v649_v43  ;;  %v6435_v17 = vadd.f32 -0.2, %v5351_v58  ;;  %v2022_v14 = vmul.f32 %v6423_v40, %v6408_v28  ;;  %v2023_v43 = vmul.f32 %v6426_v38, %v6414_v35 }
 0x29b   :  { %9189 = vst [vmem:[#allocation181_spill] sm:$0xff] %v6429_v13  ;;  %v665_v2 = vadd.f32 %v5039_v24, %v664_v21  ;;  %v6445_v12 = vadd.f32 -0.2, %v5353_v59  ;;  %v2054_v19 = vmul.f32 %v6429_v13, %v1446_v8  ;;  %v2055_v36 = vmul.f32 %v6432_v6, %v1447_v32 }
 0x29c   :  { %9190 = vst [vmem:[#allocation182_spill] sm:$0xff] %v6432_v6  ;;  %v654_v31 = vsel %vm653_vm8, %v5037_v18, %v650_v9  ;;  %v2118_v50 = vmul.f32 %v6435_v17, %v1446_v8  ;;  %v6464_v8 = vsub.f32 1.0, %v5353_v59  ;;  %v2150_v39 = vmul.f32 %v6457_v45, %v1462_v3 }
 0x29d   :  { %9191 = vst [vmem:[#allocation183_spill] sm:$0xff] %v6435_v17  ;;  %v659_v21 = vsel %vm6393_vm4, %v658_v48, %v654_v31  ;;  %v669_v28 = vsel %vm668_vm9, %v5039_v24, %v665_v2  ;;  %v2119_v35 = vmul.f32 %v6445_v12, %v1447_v32  ;;  %v2070_v9 = vadd.f32 %v2054_v19, %v2022_v14 }
 0x29e   :  { %9192 = vst [vmem:[#allocation184_spill] sm:$0xff] %v6445_v12  ;;  %v674_v18 = vsel %vm6400_vm5, %v673_v23, %v669_v28  ;;  %v746_v22 = vmul.f32 %v659_v21, %v5359_v62  ;;  %v2071_v13 = vadd.f32 %v2055_v36, %v2023_v43  ;;  %v6468_v48 = vadd.f32 -0.6, %v5351_v58 }
 0x29f   :  { %9193 = vst [vmem:[#allocation185_spill] sm:$0xff] %v6457_v45  ;;  %v747_v6 = vmul.f32 %v674_v18, %v5361_v37  ;;  %v6470_v24 = vmul.f32 2.5, %v2070_v9  ;;  %v6475_v23 = vadd.f32 -0.6, %v5353_v59  ;;  %v2230_v30 = vsub.f32 1.4, %v5351_v58 }
 0x2a0   :  { %9194 = vst [vmem:[#allocation186_spill] sm:$0xff] %v6464_v8  ;;  %v6472_v32 = vmul.f32 2.5, %v2071_v13  ;;  %v2151_v2 = vmul.f32 %v6464_v8, %v1463_v34  ;;  %v2166_v14 = vadd.f32 %v2150_v39, %v2118_v50  ;;  %v2214_v43 = vmul.f32 %v6468_v48, %v1462_v3 }
 0x2a1   :  { %9195 = vst [vmem:[#allocation187_spill] sm:$0xff] %v6468_v48  ;;  %v757_v28 = vpack.c.bf16 %v747_v6, %v746_v22  ;;  %v6482_v31 = vmul.f32 %v5525_v44, %v5546_v42  ;;  %v2215_v19 = vmul.f32 %v6475_v23, %v1463_v34  ;;  %v2231_v13 = vsub.f32 1.4, %v5353_v59 }
 0x2a2   :  { %9196 = vst [vmem:[#allocation188_spill] sm:$0xff] %v6470_v24  ;;  %v2246_v36 = vmul.f32 %v2230_v30, %v6417_v49  ;;  %v2167_v21 = vadd.f32 %v2151_v2, %v2119_v35  ;;  %v2182_v18 = vmul.f32 2.5, %v2166_v14  ;;  %v2806_v6 = vmul.f32 %v6423_v40, %v6470_v24 }
 0x2a3   :  { %9197 = vst [vmem:[#allocation189_spill] sm:$0xff] %v6472_v32  ;;  %3215 = vmatpush.bf16.msra.mxu2 %v757_v28  ;;  %vm772_vm0 = vcmp.ge.f32.partialorder %v5347_v55, -2.2  ;;  %v2247_v3 = vmul.f32 %v2231_v13, %v6420_v46  ;;  %v2807_v42 = vmul.f32 %v6426_v38, %v6472_v32  ;;  %vm773_vm10 = vcmp.ge.f32.partialorder %v5349_v57, -2.2 }
 0x2a4   :  { %9198 = vst [vmem:[#allocation190_spill] sm:$0xff] %v6475_v23  ;;  %v2262_v50 = vadd.f32 %v2246_v36, %v2214_v43  ;;  %v2183_v34 = vmul.f32 2.5, %v2167_v21  ;;  %v2822_v22 = vmul.f32 %v2182_v18, %v6457_v45  ;;  %v2870_v9 = vmul.f32 %v6435_v17, %v2182_v18 }
 0x2a5   :  { %9199 = vst [vmem:[#allocation191_spill] sm:$0xff] %v6482_v31  ;;  %v4443_v35 = vsel %vm772_vm0, 1.0, %v9041_v41  ;;  %v2263_v39 = vadd.f32 %v2247_v3, %v2215_v19  ;;  %vm820_vm11 = vcmp.ge.f32.partialorder %v5347_v55, -1.8  ;;  %vm821_vm12 = vcmp.ge.f32.partialorder %v5349_v57, -1.8 }
 0x2a6   :  { %v6497_v28 = vmul.f32 2.5, %v2262_v50  ;;  %v2823_v2 = vmul.f32 %v2183_v34, %v6464_v8  ;;  %v2838_v14 = vadd.f32 %v2822_v22, %v2806_v6  ;;  %v2871_v43 = vmul.f32 %v6445_v12, %v2183_v34 }
 0x2a7   :  { %v4444_v36 = vsel %vm773_vm10, 1.0, %v9041_v41  ;;  %v6504_v21 = vmul.f32 2.5, %v2263_v39  ;;  %v4459_v17 = vsel %vm820_vm11, 1.0, %v9041_v41  ;;  %vm868_vm13 = vcmp.ge.f32.partialorder %v5347_v55, -1.4 }
 0x2a8   :  { %9200 = vst [vmem:[#allocation192_spill] sm:$0xff] %v6497_v28  ;;  %v2886_v18 = vmul.f32 %v6497_v28, %v2230_v30  ;;  %v2839_v19 = vadd.f32 %v2823_v2, %v2807_v42  ;;  %v6509_v3 = vmul.f32 1.25, %v2838_v14  ;;  %v4460_v50 = vsel %vm821_vm12, 1.0, %v9041_v41 }
 0x2a9   :  { %9201 = vst [vmem:[#allocation193_spill] sm:$0xff] %v6504_v21  ;;  %vm869_vm14 = vcmp.ge.f32.partialorder %v5349_v57, -1.4  ;;  %v2887_v6 = vmul.f32 %v6504_v21, %v2231_v13  ;;  %v4475_v22 = vsel %vm868_vm13, 1.0, %v9041_v41  ;;  %vm916_vm15 = vcmp.ge.f32.partialorder %v5347_v55, -1.0 }
 0x2aa   :  { %9202 = vst [vmem:[#allocation194_spill] sm:$0xff] %v6509_v3  ;;  %v2902_v34 = vadd.f32 %v2886_v18, %v2870_v9  ;;  %v6516_v39 = vmul.f32 1.25, %v2839_v19  ;;  %v3812_v12 = vmul.f32 %v6423_v40, %v6509_v3  ;;  %v4476_v42 = vsel %vm869_vm14, 1.0, %v9041_v41 }
 0x2ab   :  { %vm917_vm1 = vcmp.ge.f32.partialorder %v5349_v57, -1.0  ;;  %v2903_v2 = vadd.f32 %v2887_v6, %v2871_v43  ;;  %v4491_v23 = vsel %vm916_vm15, 1.0, %v9041_v41  ;;  %vm964_vm2 = vcmp.ge.f32.partialorder %v5347_v55, -0.6 }
 0x2ac   :  { %9203 = vst [vmem:[#allocation195_spill] sm:$0xff] %v6516_v39  ;;  %v6522_v14 = vmul.f32 1.25, %v2902_v34  ;;  %v3813_v9 = vmul.f32 %v6426_v38, %v6516_v39  ;;  %v4492_v18 = vsel %vm917_vm1, 1.0, %v9041_v41  ;;  %vm965_vm3 = vcmp.ge.f32.partialorder %v5349_v57, -0.6 }
 0x2ad   :  { %v6531_v40 = vsel %vm964_vm2, 1.0, %v9041_v41  ;;  %vm1260_vm4 = vcmp.ge.f32.partialorder %v5363_v7, 1.8  ;;  %v6534_v19 = vmul.f32 1.25, %v2903_v2  ;;  %v6538_v6 = vsel %vm965_vm3, 1.0, %v9041_v41 }
 0x2ae   :  { %9204 = vst [vmem:[#allocation196_spill] sm:$0xff] %v6522_v14  ;;  %v3828_v43 = vmul.f32 %v6522_v14, %v2230_v30  ;;  %v1348_v34 = vsub.f32 %v4443_v35, %v4459_v17  ;;  %v1349_v21 = vsub.f32 %v4444_v36, %v4460_v50  ;;  %v1364_v48 = vsub.f32 %v4459_v17, %v4475_v22 }
 0x2af   :  { %9205 = vst [vmem:[#allocation197_spill] sm:$0xff] %v6531_v40  ;;  %v1365_v38 = vsub.f32 %v4460_v50, %v4476_v42  ;;  %v1380_v28 = vsub.f32 %v4475_v22, %v4491_v23  ;;  %v3829_v46 = vmul.f32 %v6534_v19, %v2231_v13  ;;  %v1381_v39 = vsub.f32 %v4476_v42, %v4492_v18 }
 0x2b0   :  { %9206 = vst [vmem:[#allocation198_spill] sm:$0xff] %v6534_v19  ;;  %v3844_v49 = vadd.f32 %v3828_v43, %v3812_v12  ;;  %v6542_v8 = vsub.f32 %v4491_v23, %v6531_v40  ;;  %vm1261_vm5 = vcmp.ge.f32.partialorder %v5365_v63, 1.8  ;;  %v6546_v2 = vsub.f32 %v4492_v18, %v6538_v6 }
 0x2b1   :  { %9207 = vst [vmem:[#allocation199_spill] sm:$0xff] %v6538_v6  ;;  %v6549_v30 = vadd.f32 2.2, %v5347_v55  ;;  %v6552_v35 = vadd.f32 2.2, %v5349_v57  ;;  %v3845_v36 = vadd.f32 %v3829_v46, %v3813_v9  ;;  %v1652_v46 = vsub.f32 -1.0, %v5347_v55 }
 0x2b2   :  { %9208 = vst [vmem:[#allocation200_spill] sm:$0xff] %v6542_v8  ;;  %v1556_v17 = vsub.f32 -1.4, %v5347_v55  ;;  %v3860_v13 = vmul.f32 0.8333333, %v3844_v49  ;;  %v1653_v3 = vsub.f32 -1.0, %v5349_v57 }
 0x2b3   :  { %9209 = vst [vmem:[#allocation201_spill] sm:$0xff] %v6546_v2  ;;  %v1557_v12 = vsub.f32 -1.4, %v5349_v57  ;;  %v6557_v23 = vadd.f32 1.8, %v5347_v55  ;;  %v1540_v50 = vmul.f32 %v6549_v30, %v1348_v34  ;;  %v1541_v22 = vmul.f32 %v6552_v35, %v1349_v21 }
 0x2b4   :  { %v1572_v42 = vmul.f32 %v1556_v17, %v1364_v48  ;;  %v6562_v18 = vadd.f32 1.8, %v5349_v57  ;;  %v3861_v43 = vmul.f32 0.8333333, %v3845_v36  ;;  %v6569_v45 = vadd.f32 1.4, %v5347_v55 }
 0x2b5   :  { %9210 = vst [vmem:[#allocation202_spill] sm:$0xff] %v6557_v23  ;;  %v1573_v19 = vmul.f32 %v1557_v12, %v1365_v38  ;;  %v1636_v14 = vmul.f32 %v6557_v23, %v1364_v48  ;;  %v1668_v17 = vmul.f32 %v1652_v46, %v1380_v28  ;;  %v6572_v44 = vadd.f32 1.4, %v5349_v57 }
 0x2b6   :  { %9211 = vst [vmem:[#allocation203_spill] sm:$0xff] %v6562_v18  ;;  %v1588_v49 = vadd.f32 %v1572_v42, %v1540_v50  ;;  %v1637_v9 = vmul.f32 %v6562_v18, %v1365_v38  ;;  %v3873_v34 = vpack.c.bf16 %v3861_v43, %v3860_v13  ;;  %v1669_v12 = vmul.f32 %v1653_v3, %v1381_v39 }
 0x2b7   :  { %9212 = vst [vmem:[#allocation204_spill] sm:$0xff] %v6569_v45  ;;  %v1589_v21 = vadd.f32 %v1573_v19, %v1541_v22  ;;  %v1732_v48 = vmul.f32 %v6569_v45, %v1380_v28  ;;  %v1748_v31 = vsub.f32 -0.6, %v5347_v55  ;;  %v1684_v38 = vadd.f32 %v1668_v17, %v1636_v14 }
 0x2b8   :  { %9213 = vst [vmem:[#allocation205_spill] sm:$0xff] %v6572_v44  ;;  %v1604_v36 = vmul.f32 2.5, %v1588_v49  ;;  %3914 = vmatpush.bf16.msrb.mxu0 %v3873_v34  ;;  %v1733_v42 = vmul.f32 %v6572_v44, %v1381_v39  ;;  %v1749_v32 = vsub.f32 -0.6, %v5349_v57  ;;  %v6581_v19 = vsel %vm1260_vm4, 1.0, %v9041_v41 }
 0x2b9   :  { %v1605_v50 = vmul.f32 2.5, %v1589_v21  ;;  %9214 = vst [vmem:[#allocation206_spill] sm:$0xff] %v6581_v19  ;;  %v1685_v13 = vadd.f32 %v1669_v12, %v1637_v9  ;;  %v1764_v22 = vmul.f32 %v1748_v31, %v6542_v8  ;;  %v4431_v43 = vmul.f32 -1.442695, %v5355_v60 }
 0x2ba   :  { %v1700_v28 = vmul.f32 2.5, %v1684_v38  ;;  %v1765_v49 = vmul.f32 %v1749_v32, %v6546_v2  ;;  %v2484_v34 = vmul.f32 %v6549_v30, %v1604_v36  ;;  %v4432_v14 = vmul.f32 -1.442695, %v5357_v61 }
 0x2bb   :  { %v1701_v39 = vmul.f32 2.5, %v1685_v13  ;;  %v1780_v21 = vadd.f32 %v1764_v22, %v1732_v48  ;;  %v2485_v17 = vmul.f32 %v6552_v35, %v1605_v50  ;;  %5040 = vpow2.f32 %v4431_v43 }
 0x2bc   :  { %v6592_v9 = vsel %vm1261_vm5, 1.0, %v9041_v41  ;;  %v1781_v12 = vadd.f32 %v1765_v49, %v1733_v42  ;;  %v2500_v24 = vmul.f32 %v1700_v28, %v1652_v46  ;;  %5042 = vpow2.f32 %v4432_v14 }
 0x2bd   :  { %9215 = vst [vmem:[#allocation207_spill] sm:$0xff] %v6592_v9  ;;  %vm1258_vm6 = vcmp.ge.f32.partialorder %v5359_v62, 1.8  ;;  %v6595_v38 = vmul.f32 2.5, %v1780_v21  ;;  %v2501_v36 = vmul.f32 %v1701_v39, %v1653_v3  ;;  %v2548_v44 = vmul.f32 %v6557_v23, %v1700_v28 }
 0x2be   :  { %vm1259_vm7 = vcmp.ge.f32.partialorder %v5361_v37, 1.8  ;;  %v6599_v48 = vmul.f32 2.5, %v1781_v12  ;;  %v2516_v50 = vadd.f32 %v2500_v24, %v2484_v34  ;;  %v2549_v13 = vmul.f32 %v6562_v18, %v1701_v39 }
 0x2bf   :  { %9216 = vst [vmem:[#allocation208_spill] sm:$0xff] %v6595_v38  ;;  %v6604_v22 = vsub.f32 %v5659_v4, %v6581_v19  ;;  %v2517_v46 = vadd.f32 %v2501_v36, %v2485_v17  ;;  %v2564_v42 = vmul.f32 %v6595_v38, %v1748_v31  ;;  %vm1012_vm8 = vcmp.ge.f32.partialorder %v5347_v55, -0.2 }
 0x2c0   :  { %9217 = vst [vmem:[#allocation209_spill] sm:$0xff] %v6599_v48  ;;  %v6610_v3 = vsub.f32 %v5662_v20, %v6592_v9  ;;  %v6613_v43 = vsel %vm1258_vm6, 1.0, %v9041_v41  ;;  %v2532_v28 = vmul.f32 1.25, %v2516_v50  ;;  %v2565_v24 = vmul.f32 %v6599_v48, %v1749_v32 }
 0x2c1   :  { %9218 = vst [vmem:[#allocation210_spill] sm:$0xff] %v6604_v22  ;;  %v5041_v49 = vpop.eup %5040  ;;  %v6617_v34 = vsel %vm1259_vm7, 1.0, %v9041_v41  ;;  %v2533_v4 = vmul.f32 1.25, %v2517_v46  ;;  %v2580_v14 = vadd.f32 %v2564_v42, %v2548_v44  ;;  %vm1013_vm9 = vcmp.ge.f32.partialorder %v5349_v57, -0.2 }
 0x2c2   :  { %9219 = vst [vmem:[#allocation211_spill] sm:$0xff] %v6610_v3  ;;  %v5043_v39 = vpop.eup %5042  ;;  %v2581_v21 = vadd.f32 %v2565_v24, %v2549_v13  ;;  %v6620_v17 = vadd.f32 1.0, %v5041_v49  ;;  %v6623_v20 = vsel %vm1012_vm8, 1.0, %v9041_v41  ;;  %vm1060_vm0 = vcmp.ge.f32.partialorder %v5347_v55, 0.2 }
 0x2c3   :  { %9220 = vst [vmem:[#allocation212_spill] sm:$0xff] %v6613_v43  ;;  %v6626_v12 = vmul.f32 1.25, %v2580_v14  ;;  %v3060_v36 = vmul.f32 %v6549_v30, %v2532_v28  ;;  %v6629_v50 = vadd.f32 1.0, %v5043_v39  ;;  %vm1061_vm10 = vcmp.ge.f32.partialorder %v5349_v57, 0.2 }
 0x2c4   :  { %9221 = vst [vmem:[#allocation213_spill] sm:$0xff] %v6617_v34  ;;  %v6632_v44 = vmul.f32 1.25, %v2581_v21  ;;  %v3061_v46 = vmul.f32 %v6552_v35, %v2533_v4  ;;  %5044 = vrcp.f32 %v6620_v17  ;;  %vm1108_vm11 = vcmp.ge.f32.partialorder %v5347_v55, 0.6 }
 0x2c5   :  { %9222 = vst [vmem:[#allocation214_spill] sm:$0xff] %v6623_v20  ;;  %v3076_v13 = vmul.f32 %v6626_v12, %v1748_v31  ;;  %v627_v42 = vand.u32 2147483648, %v6620_v17  ;;  %5046 = vrcp.f32 %v6629_v50  ;;  %v6643_v30 = vsel %vm1013_vm9, 1.0, %v9041_v41 }
 0x2c6   :  { %9223 = vst [vmem:[#allocation215_spill] sm:$0xff] %v6626_v12  ;;  %v3077_v28 = vmul.f32 %v6632_v44, %v1749_v32  ;;  %v4539_v24 = vsel %vm1060_vm0, 1.0, %v9041_v41  ;;  %v4540_v35 = vsel %vm1061_vm10, 1.0, %v9041_v41  ;;  %vm1109_vm12 = vcmp.ge.f32.partialorder %v5349_v57, 0.6 }
 0x2c7   :  { %9224 = vst [vmem:[#allocation216_spill] sm:$0xff] %v6632_v44  ;;  %v3092_v49 = vadd.f32 %v3076_v13, %v3060_v36  ;;  %v625_v31 = vand.u32 2147483647, %v6620_v17  ;;  %v642_v4 = vand.u32 2147483648, %v6629_v50  ;;  %v4555_v14 = vsel %vm1108_vm11, 1.0, %v9041_v41 }
 0x2c8   :  { %9225 = vst [vmem:[#allocation217_spill] sm:$0xff] %v6643_v30  ;;  %v3093_v39 = vadd.f32 %v3077_v28, %v3061_v46  ;;  %v640_v21 = vand.u32 2147483647, %v6629_v50  ;;  %vm1156_vm13 = vcmp.ge.f32.partialorder %v5347_v55, 1.0  ;;  %vm1157_vm14 = vcmp.ge.f32.partialorder %v5349_v57, 1.0 }
 0x2c9   :  { %vm621_vm15 = vweird.f32 %v6620_v17  ;;  %v628_v32 = vor.u32 1.1754944e-38, %v627_v42  ;;  %v4556_v9 = vsel %vm1109_vm12, 1.0, %v9041_v41  ;;  %vm1204_vm1 = vcmp.ge.f32.partialorder %v5347_v55, 1.4 }
 0x2ca   :  { %v5045_v36 = vpop.eup %5044  ;;  %v3108_v13 = vmul.f32 0.8333333, %v3092_v49  ;;  %v3109_v19 = vmul.f32 0.8333333, %v3093_v39  ;;  %vm636_vm2 = vweird.f32 %v6629_v50  ;;  %vm1205_vm3 = vcmp.ge.f32.partialorder %v5349_v57, 1.4 }
 0x2cb   :  { %v5047_v46 = vpop.eup %5046  ;;  %v617_v28 = vmul.f32 %v5045_v36, %v6620_v17  ;;  %vm6661_vm4 = vcmp.eq.f32.partialorder %v625_v31, 8.507059e+37  ;;  %v643_v22 = vor.u32 1.1754944e-38, %v642_v4  ;;  %v4571_v42 = vsel %vm1156_vm13, 1.0, %v9041_v41 }
 0x2cc   :  { %v4572_v18 = vsel %vm1157_vm14, 1.0, %v9041_v41  ;;  %v3122_v44 = vpack.c.bf16 %v3109_v19, %v3108_v13  ;;  %v632_v49 = vmul.f32 %v5047_v46, %v6629_v50  ;;  %vm6668_vm5 = vcmp.eq.f32.partialorder %v640_v21, 8.507059e+37 }
 0x2cd   :  { %v6673_v23 = vsel %vm1204_vm1, 1.0, %v9041_v41  ;;  %v6676_v31 = vsub.f32 %v6623_v20, %v4539_v24  ;;  %v618_v12 = vsub.f32 1.0, %v617_v28  ;;  %vm622_vm6 = vweird.f32 %v5045_v36 }
 0x2ce   :  { %v6679_v4 = vsel %vm1205_vm3, 1.0, %v9041_v41  ;;  %v6682_v48 = vsub.f32 %v6643_v30, %v4540_v35  ;;  %3165 = vmatpush.bf16.msra.mxu1 %v3122_v44  ;;  %4984 = vmatpush.bf16.msra.mxu3 %v3122_v44  ;;  %v633_v19 = vsub.f32 1.0, %v632_v49  ;;  %vm637_vm7 = vweird.f32 %v5047_v46  ;;  %vm623_vm8 = vmor %vm621_vm15, %vm622_vm6 }
 0x2cf   :  { %9230 = vst [vmem:[#allocation218_spill] sm:$0xff] %v6676_v31  ;;  %v1444_v21 = vsub.f32 %v4539_v24, %v4555_v14  ;;  %v1445_v13 = vsub.f32 %v4540_v35, %v4556_v9  ;;  %v619_v45 = vmul.f32 %v5045_v36, %v618_v12  ;;  %v1460_v38 = vsub.f32 %v4555_v14, %v4571_v42  ;;  %vm638_vm9 = vmor %vm636_vm2, %vm637_vm7 }
 0x2d0   :  { %9231 = vst [vmem:[#allocation219_spill] sm:$0xff] %v6682_v48  ;;  %v1461_v2 = vsub.f32 %v4556_v9, %v4572_v18  ;;  %v6685_v8 = vsub.f32 %v4571_v42, %v6673_v23  ;;  %v634_v28 = vmul.f32 %v5047_v46, %v633_v19  ;;  %v6688_v6 = vsub.f32 %v4572_v18, %v6679_v4 }
 0x2d1   :  { %v6691_v40 = vadd.f32 0.2, %v5347_v55  ;;  %v6694_v30 = vadd.f32 0.2, %v5349_v57  ;;  %v620_v44 = vadd.f32 %v5045_v36, %v619_v45  ;;  %v6697_v24 = vsub.f32 0.6, %v5347_v55 }
 0x2d2   :  { %9232 = vst [vmem:[#allocation220_spill] sm:$0xff] %v6685_v8  ;;  %v6700_v12 = vsub.f32 0.6, %v5349_v57  ;;  %v6703_v9 = vadd.f32 -0.2, %v5347_v55  ;;  %v635_v18 = vadd.f32 %v5047_v46, %v634_v28  ;;  %v6725_v20 = vsub.f32 1.0, %v5347_v55 }
 0x2d3   :  { %9233 = vst [vmem:[#allocation221_spill] sm:$0xff] %v6688_v6  ;;  %v2020_v35 = vmul.f32 %v6691_v40, %v6676_v31  ;;  %v2021_v45 = vmul.f32 %v6694_v30, %v6682_v48  ;;  %v6713_v14 = vadd.f32 -0.2, %v5349_v57  ;;  %v624_v42 = vsel %vm623_vm8, %v5045_v36, %v620_v44 }
 0x2d4   :  { %9234 = vst [vmem:[#allocation222_spill] sm:$0xff] %v6697_v24  ;;  %v2052_v49 = vmul.f32 %v6697_v24, %v1444_v21  ;;  %v2053_v17 = vmul.f32 %v6700_v12, %v1445_v13  ;;  %v2116_v19 = vmul.f32 %v6703_v9, %v1444_v21  ;;  %v629_v28 = vsel %vm6661_vm4, %v628_v32, %v624_v42 }
 0x2d5   :  { %9235 = vst [vmem:[#allocation223_spill] sm:$0xff] %v6700_v12  ;;  %v639_v31 = vsel %vm638_vm9, %v5047_v46, %v635_v18  ;;  %v2117_v48 = vmul.f32 %v6713_v14, %v1445_v13  ;;  %v744_v50 = vmul.f32 %v629_v28, %v5355_v60  ;;  %v6732_v21 = vsub.f32 1.0, %v5349_v57 }
 0x2d6   :  { %9236 = vst [vmem:[#allocation224_spill] sm:$0xff] %v6703_v9  ;;  %v644_v36 = vsel %vm6668_vm5, %v643_v22, %v639_v31  ;;  %v2068_v44 = vadd.f32 %v2052_v49, %v2020_v35  ;;  %v2069_v24 = vadd.f32 %v2053_v17, %v2021_v45  ;;  %v2148_v3 = vmul.f32 %v6725_v20, %v1460_v38 }
 0x2d7   :  { %9237 = vst [vmem:[#allocation225_spill] sm:$0xff] %v6713_v14  ;;  %v745_v12 = vmul.f32 %v644_v36, %v5357_v61  ;;  %v6736_v32 = vadd.f32 -0.6, %v5347_v55  ;;  %v6743_v22 = vadd.f32 -0.6, %v5349_v57  ;;  %v2149_v18 = vmul.f32 %v6732_v21, %v1461_v2 }
 0x2d8   :  { %9238 = vst [vmem:[#allocation226_spill] sm:$0xff] %v6725_v20  ;;  %v6738_v46 = vmul.f32 2.5, %v2068_v44  ;;  %v6740_v13 = vmul.f32 2.5, %v2069_v24  ;;  %v2228_v39 = vsub.f32 1.4, %v5347_v55  ;;  %v2164_v35 = vadd.f32 %v2148_v3, %v2116_v19 }
 0x2d9   :  { %9239 = vst [vmem:[#allocation227_spill] sm:$0xff] %v6732_v21  ;;  %v756_v31 = vpack.c.bf16 %v745_v12, %v744_v50  ;;  %v2212_v45 = vmul.f32 %v6736_v32, %v1460_v38  ;;  %v6750_v42 = vsub.f32 %v5883_v1, %v6613_v43  ;;  %v2213_v49 = vmul.f32 %v6743_v22, %v1461_v2 }
 0x2da   :  { %9240 = vst [vmem:[#allocation228_spill] sm:$0xff] %v6736_v32  ;;  %v2229_v24 = vsub.f32 1.4, %v5349_v57  ;;  %v2244_v17 = vmul.f32 %v2228_v39, %v6685_v8  ;;  %v2165_v28 = vadd.f32 %v2149_v18, %v2117_v48  ;;  %v2180_v36 = vmul.f32 2.5, %v2164_v35 }
 0x2db   :  { %9241 = vst [vmem:[#allocation229_spill] sm:$0xff] %v6738_v46  ;;  %3216 = vmatpush.bf16.msra.mxu2 %v756_v31  ;;  %v2804_v12 = vmul.f32 %v6691_v40, %v6738_v46  ;;  %vm770_vm0 = vcmp.ge.f32.partialorder %v5343_v53, -2.2  ;;  %v2805_v1 = vmul.f32 %v6694_v30, %v6740_v13  ;;  %vm771_vm10 = vcmp.ge.f32.partialorder %v5345_v54, -2.2 }
 0x2dc   :  { %9242 = vst [vmem:[#allocation230_spill] sm:$0xff] %v6740_v13  ;;  %v2245_v38 = vmul.f32 %v2229_v24, %v6688_v6  ;;  %v2260_v19 = vadd.f32 %v2244_v17, %v2212_v45  ;;  %v2181_v2 = vmul.f32 2.5, %v2165_v28  ;;  %v2820_v50 = vmul.f32 %v2180_v36, %v6725_v20 }
 0x2dd   :  { %9243 = vst [vmem:[#allocation231_spill] sm:$0xff] %v6743_v22  ;;  %v2868_v44 = vmul.f32 %v6703_v9, %v2180_v36  ;;  %v4441_v48 = vsel %vm770_vm0, 1.0, %v9041_v41  ;;  %vm818_vm11 = vcmp.ge.f32.partialorder %v5343_v53, -1.8  ;;  %vm819_vm12 = vcmp.ge.f32.partialorder %v5345_v54, -1.8 }
 0x2de   :  { %9244 = vst [vmem:[#allocation232_spill] sm:$0xff] %v6750_v42  ;;  %v2261_v3 = vadd.f32 %v2245_v38, %v2213_v49  ;;  %v6765_v31 = vmul.f32 2.5, %v2260_v19  ;;  %v2821_v18 = vmul.f32 %v2181_v2, %v6732_v21  ;;  %v2836_v35 = vadd.f32 %v2820_v50, %v2804_v12 }
 0x2df   :  { %v2869_v45 = vmul.f32 %v6713_v14, %v2181_v2  ;;  %v4442_v17 = vsel %vm771_vm10, 1.0, %v9041_v41  ;;  %v4457_v9 = vsel %vm818_vm11, 1.0, %v9041_v41  ;;  %vm866_vm13 = vcmp.ge.f32.partialorder %v5343_v53, -1.4 }
 0x2e0   :  { %9245 = vst [vmem:[#allocation233_spill] sm:$0xff] %v6765_v31  ;;  %v6772_v28 = vmul.f32 2.5, %v2261_v3  ;;  %v2884_v36 = vmul.f32 %v6765_v31, %v2228_v39  ;;  %v2837_v49 = vadd.f32 %v2821_v18, %v2805_v1  ;;  %v6777_v38 = vmul.f32 1.25, %v2836_v35 }
 0x2e1   :  { %v4458_v19 = vsel %vm819_vm12, 1.0, %v9041_v41  ;;  %vm867_vm14 = vcmp.ge.f32.partialorder %v5345_v54, -1.4  ;;  %v4473_v50 = vsel %vm866_vm13, 1.0, %v9041_v41  ;;  %vm914_vm15 = vcmp.ge.f32.partialorder %v5343_v53, -1.0 }
 0x2e2   :  { %9246 = vst [vmem:[#allocation234_spill] sm:$0xff] %v6772_v28  ;;  %v2885_v12 = vmul.f32 %v6772_v28, %v2229_v24  ;;  %v2900_v2 = vadd.f32 %v2884_v36, %v2868_v44  ;;  %v6784_v3 = vmul.f32 1.25, %v2837_v49  ;;  %v3810_v14 = vmul.f32 %v6691_v40, %v6777_v38 }
 0x2e3   :  { %9247 = vst [vmem:[#allocation235_spill] sm:$0xff] %v6777_v38  ;;  %v4474_v1 = vsel %vm867_vm14, 1.0, %v9041_v41  ;;  %vm915_vm1 = vcmp.ge.f32.partialorder %v5345_v54, -1.0  ;;  %v4489_v22 = vsel %vm914_vm15, 1.0, %v9041_v41  ;;  %vm962_vm2 = vcmp.ge.f32.partialorder %v5343_v53, -0.6 }
 0x2e4   :  { %9248 = vst [vmem:[#allocation236_spill] sm:$0xff] %v6784_v3  ;;  %v2901_v18 = vadd.f32 %v2885_v12, %v2869_v45  ;;  %v6790_v35 = vmul.f32 1.25, %v2900_v2  ;;  %v3811_v44 = vmul.f32 %v6694_v30, %v6784_v3  ;;  %v4490_v36 = vsel %vm915_vm1, 1.0, %v9041_v41 }
 0x2e5   :  { %vm963_vm3 = vcmp.ge.f32.partialorder %v5345_v54, -0.6  ;;  %v6799_v40 = vsel %vm962_vm2, 1.0, %v9041_v41  ;;  %v1346_v2 = vsub.f32 %v4441_v48, %v4457_v9  ;;  %v1347_v28 = vsub.f32 %v4442_v17, %v4458_v19 }
 0x2e6   :  { %9249 = vst [vmem:[#allocation237_spill] sm:$0xff] %v6790_v35  ;;  %v6801_v49 = vmul.f32 1.25, %v2901_v18  ;;  %v3826_v45 = vmul.f32 %v6790_v35, %v2228_v39  ;;  %v6805_v12 = vsel %vm963_vm3, 1.0, %v9041_v41  ;;  %v1362_v32 = vsub.f32 %v4457_v9, %v4473_v50 }
 0x2e7   :  { %9250 = vst [vmem:[#allocation238_spill] sm:$0xff] %v6799_v40  ;;  %v1363_v31 = vsub.f32 %v4458_v19, %v4474_v1  ;;  %v1378_v6 = vsub.f32 %v4473_v50, %v4489_v22  ;;  %v1379_v3 = vsub.f32 %v4474_v1, %v4490_v36  ;;  %v6809_v21 = vsub.f32 %v4489_v22, %v6799_v40 }
 0x2e8   :  { %9251 = vst [vmem:[#allocation239_spill] sm:$0xff] %v6801_v49  ;;  %v3827_v30 = vmul.f32 %v6801_v49, %v2229_v24  ;;  %v3842_v8 = vadd.f32 %v3826_v45, %v3810_v14  ;;  %vm1256_vm4 = vcmp.ge.f32.partialorder %v5355_v60, 1.8  ;;  %v6813_v18 = vsub.f32 %v4490_v36, %v6805_v12 }
 0x2e9   :  { %9252 = vst [vmem:[#allocation240_spill] sm:$0xff] %v6805_v12  ;;  %v6816_v39 = vadd.f32 2.2, %v5343_v53  ;;  %v6819_v48 = vadd.f32 2.2, %v5345_v54  ;;  %v1651_v38 = vsub.f32 -1.0, %v5345_v54 }
 0x2ea   :  { %9253 = vst [vmem:[#allocation241_spill] sm:$0xff] %v6809_v21  ;;  %v1554_v9 = vsub.f32 -1.4, %v5343_v53  ;;  %v3843_v17 = vadd.f32 %v3827_v30, %v3811_v44  ;;  %v3858_v24 = vmul.f32 0.8333333, %v3842_v8  ;;  %v1650_v44 = vsub.f32 -1.0, %v5343_v53 }
 0x2eb   :  { %9254 = vst [vmem:[#allocation242_spill] sm:$0xff] %v6813_v18  ;;  %v1555_v14 = vsub.f32 -1.4, %v5345_v54  ;;  %v6824_v22 = vadd.f32 1.8, %v5343_v53  ;;  %v1538_v19 = vmul.f32 %v6816_v39, %v1346_v2  ;;  %v1539_v50 = vmul.f32 %v6819_v48, %v1347_v28 }
 0x2ec   :  { %v1570_v1 = vmul.f32 %v1554_v9, %v1362_v32  ;;  %v6829_v36 = vadd.f32 1.8, %v5345_v54  ;;  %v3859_v45 = vmul.f32 0.8333333, %v3843_v17  ;;  %v6836_v20 = vadd.f32 1.4, %v5343_v53 }
 0x2ed   :  { %9255 = vst [vmem:[#allocation243_spill] sm:$0xff] %v6824_v22  ;;  %v1571_v49 = vmul.f32 %v1555_v14, %v1363_v31  ;;  %v1634_v35 = vmul.f32 %v6824_v22, %v1362_v32  ;;  %v1666_v9 = vmul.f32 %v1650_v44, %v1378_v6  ;;  %v6839_v43 = vadd.f32 1.4, %v5345_v54 }
 0x2ee   :  { %9256 = vst [vmem:[#allocation244_spill] sm:$0xff] %v6829_v36  ;;  %v1586_v8 = vadd.f32 %v1570_v1, %v1538_v19  ;;  %v1635_v30 = vmul.f32 %v6829_v36, %v1363_v31  ;;  %v3872_v2 = vpack.c.bf16 %v3859_v45, %v3858_v24  ;;  %v1667_v14 = vmul.f32 %v1651_v38, %v1379_v3 }
 0x2ef   :  { %9257 = vst [vmem:[#allocation245_spill] sm:$0xff] %v6836_v20  ;;  %v1587_v28 = vadd.f32 %v1571_v49, %v1539_v50  ;;  %v1730_v32 = vmul.f32 %v6836_v20, %v1378_v6  ;;  %v1746_v42 = vsub.f32 -0.6, %v5343_v53  ;;  %v1682_v31 = vadd.f32 %v1666_v9, %v1634_v35 }
 0x2f0   :  { %9258 = vst [vmem:[#allocation246_spill] sm:$0xff] %v6839_v43  ;;  %v1602_v17 = vmul.f32 2.5, %v1586_v8  ;;  %3915 = vmatpush.bf16.msrb.mxu0 %v3872_v2  ;;  %v1731_v1 = vmul.f32 %v6839_v43, %v1379_v3  ;;  %v1747_v13 = vsub.f32 -0.6, %v5345_v54  ;;  %vm1257_vm5 = vcmp.ge.f32.partialorder %v5357_v61, 1.8 }
 0x2f1   :  { %v1603_v19 = vmul.f32 2.5, %v1587_v28  ;;  %v1683_v49 = vadd.f32 %v1667_v14, %v1635_v30  ;;  %v1762_v24 = vmul.f32 %v1746_v42, %v6809_v21  ;;  %v4429_v50 = vmul.f32 -1.442695, %v5351_v58 }
 0x2f2   :  { %v1698_v45 = vmul.f32 2.5, %v1682_v31  ;;  %v1763_v8 = vmul.f32 %v1747_v13, %v6813_v18  ;;  %v2482_v6 = vmul.f32 %v6816_v39, %v1602_v17  ;;  %v4430_v2 = vmul.f32 -1.442695, %v5353_v59 }
 0x2f3   :  { %v1699_v28 = vmul.f32 2.5, %v1683_v49  ;;  %v1778_v35 = vadd.f32 %v1762_v24, %v1730_v32  ;;  %v2483_v3 = vmul.f32 %v6819_v48, %v1603_v19  ;;  %5048 = vpow2.f32 %v4429_v50 }
 0x2f4   :  { %v6855_v30 = vsel %vm1256_vm4, 1.0, %v9041_v41  ;;  %v1779_v9 = vadd.f32 %v1763_v8, %v1731_v1  ;;  %v2498_v14 = vmul.f32 %v1698_v45, %v1650_v44  ;;  %5050 = vpow2.f32 %v4430_v2 }
 0x2f5   :  { %9259 = vst [vmem:[#allocation247_spill] sm:$0xff] %v6855_v30  ;;  %v6860_v31 = vsel %vm1257_vm5, 1.0, %v9041_v41  ;;  %v6862_v17 = vmul.f32 2.5, %v1778_v35  ;;  %v2499_v49 = vmul.f32 %v1699_v28, %v1651_v38  ;;  %v2546_v32 = vmul.f32 %v6824_v22, %v1698_v45 }
 0x2f6   :  { %9260 = vst [vmem:[#allocation248_spill] sm:$0xff] %v6860_v31  ;;  %vm1254_vm6 = vcmp.ge.f32.partialorder %v5351_v58, 1.8  ;;  %v6866_v19 = vmul.f32 2.5, %v1779_v9  ;;  %v2514_v24 = vadd.f32 %v2498_v14, %v2482_v6  ;;  %v2547_v50 = vmul.f32 %v6829_v36, %v1699_v28 }
 0x2f7   :  { %9261 = vst [vmem:[#allocation249_spill] sm:$0xff] %v6862_v17  ;;  %v6871_v44 = vsub.f32 %v5889_v33, %v6617_v34  ;;  %v2515_v1 = vadd.f32 %v2499_v49, %v2483_v3  ;;  %v2562_v8 = vmul.f32 %v6862_v17, %v1746_v42  ;;  %vm1010_vm7 = vcmp.ge.f32.partialorder %v5343_v53, -0.2 }
 0x2f8   :  { %9262 = vst [vmem:[#allocation250_spill] sm:$0xff] %v6866_v19  ;;  %v6877_v38 = vsub.f32 %v6139_v16, %v6855_v30  ;;  %v6881_v45 = vsub.f32 %v6145_v25, %v6860_v31  ;;  %v2530_v6 = vmul.f32 1.25, %v2514_v24  ;;  %v2563_v2 = vmul.f32 %v6866_v19, %v1747_v13 }
 0x2f9   :  { %9263 = vst [vmem:[#allocation251_spill] sm:$0xff] %v6871_v44  ;;  %v5049_v28 = vpop.eup %5048  ;;  %v6885_v33 = vsel %vm1254_vm6, 1.0, %v9041_v41  ;;  %v2531_v35 = vmul.f32 1.25, %v2515_v1  ;;  %v2578_v3 = vadd.f32 %v2562_v8, %v2546_v32  ;;  %vm1011_vm8 = vcmp.ge.f32.partialorder %v5345_v54, -0.2 }
 0x2fa   :  { %9264 = vst [vmem:[#allocation252_spill] sm:$0xff] %v6877_v38  ;;  %v5051_v9 = vpop.eup %5050  ;;  %v2579_v14 = vadd.f32 %v2563_v2, %v2547_v50  ;;  %v6888_v49 = vadd.f32 1.0, %v5049_v28  ;;  %v6891_v16 = vsel %vm1010_vm7, 1.0, %v9041_v41  ;;  %vm1058_vm9 = vcmp.ge.f32.partialorder %v5343_v53, 0.2 }
 0x2fb   :  { %9265 = vst [vmem:[#allocation253_spill] sm:$0xff] %v6881_v45  ;;  %v6894_v25 = vmul.f32 1.25, %v2578_v3  ;;  %v3058_v24 = vmul.f32 %v6816_v39, %v2530_v6  ;;  %v6897_v31 = vadd.f32 1.0, %v5051_v9  ;;  %vm1059_vm0 = vcmp.ge.f32.partialorder %v5345_v54, 0.2 }
 0x2fc   :  { %9266 = vst [vmem:[#allocation254_spill] sm:$0xff] %v6885_v33  ;;  %v6900_v32 = vmul.f32 1.25, %v2579_v14  ;;  %v3059_v1 = vmul.f32 %v6819_v48, %v2531_v35  ;;  %5052 = vrcp.f32 %v6888_v49  ;;  %vm1106_vm10 = vcmp.ge.f32.partialorder %v5343_v53, 0.6 }
 0x2fd   :  { %9267 = vst [vmem:[#allocation255_spill] sm:$0xff] %v6891_v16  ;;  %v3074_v50 = vmul.f32 %v6894_v25, %v1746_v42  ;;  %v597_v8 = vand.u32 2147483648, %v6888_v49  ;;  %5054 = vrcp.f32 %v6897_v31  ;;  %v6911_v39 = vsel %vm1011_vm8, 1.0, %v9041_v41 }
 0x2fe   :  { %9268 = vst [vmem:[#allocation256_spill] sm:$0xff] %v6894_v25  ;;  %v3075_v6 = vmul.f32 %v6900_v32, %v1747_v13  ;;  %v4537_v2 = vsel %vm1058_vm9, 1.0, %v9041_v41  ;;  %v4538_v48 = vsel %vm1059_vm0, 1.0, %v9041_v41  ;;  %vm1107_vm11 = vcmp.ge.f32.partialorder %v5345_v54, 0.6 }
 0x2ff   :  { %9269 = vst [vmem:[#allocation257_spill] sm:$0xff] %v6900_v32  ;;  %v3090_v28 = vadd.f32 %v3074_v50, %v3058_v24  ;;  %v595_v42 = vand.u32 2147483647, %v6888_v49  ;;  %v612_v35 = vand.u32 2147483648, %v6897_v31  ;;  %v4553_v3 = vsel %vm1106_vm10, 1.0, %v9041_v41 }
 0x300   :  { %9270 = vst [vmem:[#allocation258_spill] sm:$0xff] %v6911_v39  ;;  %v3091_v9 = vadd.f32 %v3075_v6, %v3059_v1  ;;  %v610_v14 = vand.u32 2147483647, %v6897_v31  ;;  %vm1154_vm12 = vcmp.ge.f32.partialorder %v5343_v53, 1.0  ;;  %vm1155_vm13 = vcmp.ge.f32.partialorder %v5345_v54, 1.0 }
 0x301   :  { %vm591_vm14 = vweird.f32 %v6888_v49  ;;  %v598_v13 = vor.u32 1.1754944e-38, %v597_v8  ;;  %v4554_v30 = vsel %vm1107_vm11, 1.0, %v9041_v41  ;;  %vm1202_vm15 = vcmp.ge.f32.partialorder %v5343_v53, 1.4 }
 0x302   :  { %v5053_v24 = vpop.eup %5052  ;;  %v3106_v50 = vmul.f32 0.8333333, %v3090_v28  ;;  %v3107_v34 = vmul.f32 0.8333333, %v3091_v9  ;;  %vm606_vm1 = vweird.f32 %v6897_v31  ;;  %vm1203_vm2 = vcmp.ge.f32.partialorder %v5345_v54, 1.4 }
 0x303   :  { %v5055_v1 = vpop.eup %5054  ;;  %v587_v6 = vmul.f32 %v5053_v24, %v6888_v49  ;;  %vm6929_vm3 = vcmp.eq.f32.partialorder %v595_v42, 8.507059e+37  ;;  %v613_v38 = vor.u32 1.1754944e-38, %v612_v35  ;;  %v4569_v8 = vsel %vm1154_vm12, 1.0, %v9041_v41 }
 0x304   :  { %v4570_v44 = vsel %vm1155_vm13, 1.0, %v9041_v41  ;;  %v3121_v46 = vpack.c.bf16 %v3107_v34, %v3106_v50  ;;  %v602_v28 = vmul.f32 %v5055_v1, %v6897_v31  ;;  %vm6936_vm4 = vcmp.eq.f32.partialorder %v610_v14, 8.507059e+37 }
 0x305   :  { %v6941_v36 = vsel %vm1202_vm15, 1.0, %v9041_v41  ;;  %v6944_v42 = vsub.f32 %v6891_v16, %v4537_v2  ;;  %v588_v32 = vsub.f32 1.0, %v587_v6  ;;  %vm592_vm5 = vweird.f32 %v5053_v24 }
 0x306   :  { %v6947_v35 = vsel %vm1203_vm2, 1.0, %v9041_v41  ;;  %v6950_v22 = vsub.f32 %v6911_v39, %v4538_v48  ;;  %vm1255_vm6 = vcmp.ge.f32.partialorder %v5353_v59, 1.8  ;;  %3166 = vmatpush.bf16.msra.mxu1 %v3121_v46  ;;  %4985 = vmatpush.bf16.msra.mxu3 %v3121_v46  ;;  %v603_v34 = vsub.f32 1.0, %v602_v28  ;;  %vm593_vm8 = vmor %vm591_vm14, %vm592_vm5 }
 0x307   :  { %9275 = vst [vmem:[#allocation259_spill] sm:$0xff] %v6944_v42  ;;  %vm607_vm7 = vweird.f32 %v5055_v1  ;;  %v1442_v14 = vsub.f32 %v4537_v2, %v4553_v3  ;;  %v1443_v50 = vsub.f32 %v4538_v48, %v4554_v30  ;;  %v589_v25 = vmul.f32 %v5053_v24, %v588_v32 }
 0x308   :  { %9276 = vst [vmem:[#allocation260_spill] sm:$0xff] %v6950_v22  ;;  %v1458_v43 = vsub.f32 %v4553_v3, %v4569_v8  ;;  %v1459_v19 = vsub.f32 %v4554_v30, %v4570_v44  ;;  %v6954_v6 = vsub.f32 %v4569_v8, %v6941_v36  ;;  %v604_v20 = vmul.f32 %v5055_v1, %v603_v34  ;;  %vm608_vm9 = vmor %vm606_vm1, %vm607_vm7 }
 0x309   :  { %v6957_v17 = vsub.f32 %v4570_v44, %v6947_v35  ;;  %v6960_v18 = vadd.f32 0.2, %v5343_v53  ;;  %v6963_v21 = vadd.f32 0.2, %v5345_v54  ;;  %v590_v46 = vadd.f32 %v5053_v24, %v589_v25 }
 0x30a   :  { %9277 = vst [vmem:[#allocation261_spill] sm:$0xff] %v6954_v6  ;;  %v6966_v2 = vsub.f32 0.6, %v5343_v53  ;;  %v6969_v32 = vsub.f32 0.6, %v5345_v54  ;;  %v605_v44 = vadd.f32 %v5055_v1, %v604_v20  ;;  %v6994_v12 = vsub.f32 1.0, %v5343_v53 }
 0x30b   :  { %9278 = vst [vmem:[#allocation262_spill] sm:$0xff] %v6957_v17  ;;  %v6972_v30 = vadd.f32 -0.2, %v5343_v53  ;;  %v2018_v48 = vmul.f32 %v6960_v18, %v6944_v42  ;;  %v2019_v25 = vmul.f32 %v6963_v21, %v6950_v22  ;;  %v6982_v3 = vadd.f32 -0.2, %v5345_v54 }
 0x30c   :  { %9279 = vst [vmem:[#allocation263_spill] sm:$0xff] %v6966_v2  ;;  %v594_v8 = vsel %vm593_vm8, %v5053_v24, %v590_v46  ;;  %v2050_v28 = vmul.f32 %v6966_v2, %v1442_v14  ;;  %v2051_v49 = vmul.f32 %v6969_v32, %v1443_v50  ;;  %v609_v42 = vsel %vm608_vm9, %v5055_v1, %v605_v44 }
 0x30d   :  { %9280 = vst [vmem:[#allocation264_spill] sm:$0xff] %v6969_v32  ;;  %v2114_v20 = vmul.f32 %v6972_v30, %v1442_v14  ;;  %v599_v34 = vsel %vm6929_vm3, %v598_v13, %v594_v8  ;;  %v2115_v22 = vmul.f32 %v6982_v3, %v1443_v50  ;;  %v614_v24 = vsel %vm6936_vm4, %v613_v38, %v609_v42 }
 0x30e   :  { %9281 = vst [vmem:[#allocation265_spill] sm:$0xff] %v6972_v30  ;;  %v742_v31 = vmul.f32 %v599_v34, %v5351_v58  ;;  %v2066_v46 = vadd.f32 %v2050_v28, %v2018_v48  ;;  %v2067_v2 = vadd.f32 %v2051_v49, %v2019_v25  ;;  %v743_v32 = vmul.f32 %v614_v24, %v5353_v59 }
 0x30f   :  { %9282 = vst [vmem:[#allocation266_spill] sm:$0xff] %v6982_v3  ;;  %v7001_v14 = vsub.f32 1.0, %v5345_v54  ;;  %v2146_v45 = vmul.f32 %v6994_v12, %v1458_v43  ;;  %v7005_v13 = vadd.f32 -0.6, %v5343_v53  ;;  %v7012_v38 = vadd.f32 -0.6, %v5345_v54 }
 0x310   :  { %9283 = vst [vmem:[#allocation267_spill] sm:$0xff] %v6994_v12  ;;  %v7007_v1 = vmul.f32 2.5, %v2066_v46  ;;  %v7009_v50 = vmul.f32 2.5, %v2067_v2  ;;  %v2226_v9 = vsub.f32 1.4, %v5343_v53  ;;  %v755_v42 = vpack.c.bf16 %v743_v32, %v742_v31 }
 0x311   :  { %9284 = vst [vmem:[#allocation268_spill] sm:$0xff] %v7001_v14  ;;  %v2147_v44 = vmul.f32 %v7001_v14, %v1459_v19  ;;  %v2162_v48 = vadd.f32 %v2146_v45, %v2114_v20  ;;  %v2210_v25 = vmul.f32 %v7005_v13, %v1458_v43  ;;  %v7020_v8 = vsel %vm1255_vm6, 1.0, %v9041_v41  ;;  %v9290_v20 = vld [vmem:[#allocation8_spill] sm:$0xff]  ;;  %v9291_v45 = vld [vmem:[#allocation9_spill] sm:$0xff] }
 0x312   :  { %9285 = vst [vmem:[#allocation269_spill] sm:$0xff] %v7005_v13  ;;  %v2211_v28 = vmul.f32 %v7012_v38, %v1459_v19  ;;  %v2227_v2 = vsub.f32 1.4, %v5345_v54  ;;  %v2242_v49 = vmul.f32 %v2226_v9, %v6954_v6  ;;  %3217 = vmatpush.bf16.msra.mxu2 %v755_v42  ;;  %v2802_v32 = vmul.f32 %v6960_v18, %v7007_v1 }
 0x313   :  { %9286 = vst [vmem:[#allocation270_spill] sm:$0xff] %v7007_v1  ;;  %v2163_v34 = vadd.f32 %v2147_v44, %v2115_v22  ;;  %v2178_v24 = vmul.f32 2.5, %v2162_v48  ;;  %vm768_vm0 = vcmp.ge.f32.partialorder %v9290_v20, -2.2  ;;  %v2803_v46 = vmul.f32 %v6963_v21, %v7009_v50 }
 0x314   :  { %9287 = vst [vmem:[#allocation271_spill] sm:$0xff] %v7009_v50  ;;  %v2243_v43 = vmul.f32 %v2227_v2, %v6957_v17  ;;  %v2258_v31 = vadd.f32 %v2242_v49, %v2210_v25  ;;  %vm769_vm10 = vcmp.ge.f32.partialorder %v9291_v45, -2.2  ;;  %v4439_v22 = vsel %vm768_vm0, 1.0, %v9041_v41 }
 0x315   :  { %9288 = vst [vmem:[#allocation272_spill] sm:$0xff] %v7012_v38  ;;  %v2179_v19 = vmul.f32 2.5, %v2163_v34  ;;  %v2818_v38 = vmul.f32 %v2178_v24, %v6994_v12  ;;  %v2866_v42 = vmul.f32 %v6972_v30, %v2178_v24  ;;  %vm816_vm11 = vcmp.ge.f32.partialorder %v9290_v20, -1.8 }
 0x316   :  { %9289 = vst [vmem:[#allocation273_spill] sm:$0xff] %v7020_v8  ;;  %v2259_v44 = vadd.f32 %v2243_v43, %v2211_v28  ;;  %v7035_v48 = vmul.f32 2.5, %v2258_v31  ;;  %vm817_vm12 = vcmp.ge.f32.partialorder %v9291_v45, -1.8  ;;  %v4440_v34 = vsel %vm769_vm10, 1.0, %v9041_v41 }
 0x317   :  { %v2819_v25 = vmul.f32 %v2179_v19, %v7001_v14  ;;  %v2834_v49 = vadd.f32 %v2818_v38, %v2802_v32  ;;  %v2867_v13 = vmul.f32 %v6982_v3, %v2179_v19  ;;  %v4455_v30 = vsel %vm816_vm11, 1.0, %v9041_v41 }
 0x318   :  { %9292 = vst [vmem:[#allocation274_spill] sm:$0xff] %v7035_v48  ;;  %v7042_v17 = vmul.f32 2.5, %v2259_v44  ;;  %v2882_v24 = vmul.f32 %v7035_v48, %v2226_v9  ;;  %vm864_vm13 = vcmp.ge.f32.partialorder %v9290_v20, -1.4  ;;  %v4456_v31 = vsel %vm817_vm12, 1.0, %v9041_v41 }
 0x319   :  { %v2835_v28 = vadd.f32 %v2819_v25, %v2803_v46  ;;  %v7047_v43 = vmul.f32 1.25, %v2834_v49  ;;  %vm865_vm14 = vcmp.ge.f32.partialorder %v9291_v45, -1.4  ;;  %v4471_v19 = vsel %vm864_vm13, 1.0, %v9041_v41 }
 0x31a   :  { %9293 = vst [vmem:[#allocation275_spill] sm:$0xff] %v7042_v17  ;;  %v2883_v38 = vmul.f32 %v7042_v17, %v2227_v2  ;;  %v2898_v32 = vadd.f32 %v2882_v24, %v2866_v42  ;;  %vm912_vm15 = vcmp.ge.f32.partialorder %v9290_v20, -1.0  ;;  %v4472_v46 = vsel %vm865_vm14, 1.0, %v9041_v41 }
 0x31b   :  { %9294 = vst [vmem:[#allocation276_spill] sm:$0xff] %v7047_v43  ;;  %v7054_v44 = vmul.f32 1.25, %v2835_v28  ;;  %v3808_v3 = vmul.f32 %v6960_v18, %v7047_v43  ;;  %vm913_vm1 = vcmp.ge.f32.partialorder %v9291_v45, -1.0  ;;  %v4487_v48 = vsel %vm912_vm15, 1.0, %v9041_v41 }
 0x31c   :  { %v2899_v25 = vadd.f32 %v2883_v38, %v2867_v13  ;;  %v7060_v49 = vmul.f32 1.25, %v2898_v32  ;;  %vm960_vm2 = vcmp.ge.f32.partialorder %v9290_v20, -0.6  ;;  %v4488_v24 = vsel %vm913_vm1, 1.0, %v9041_v41 }
 0x31d   :  { %9295 = vst [vmem:[#allocation277_spill] sm:$0xff] %v7054_v44  ;;  %v3809_v42 = vmul.f32 %v6963_v21, %v7054_v44  ;;  %vm961_vm3 = vcmp.ge.f32.partialorder %v9291_v45, -0.6  ;;  %v7069_v18 = vsel %vm960_vm2, 1.0, %v9041_v41  ;;  %v1344_v32 = vsub.f32 %v4439_v22, %v4455_v30 }
 0x31e   :  { %9296 = vst [vmem:[#allocation278_spill] sm:$0xff] %v7060_v49  ;;  %v7071_v28 = vmul.f32 1.25, %v2899_v25  ;;  %v3824_v13 = vmul.f32 %v7060_v49, %v2226_v9  ;;  %v7075_v38 = vsel %vm961_vm3, 1.0, %v9041_v41  ;;  %v1345_v17 = vsub.f32 %v4440_v34, %v4456_v31 }
 0x31f   :  { %9297 = vst [vmem:[#allocation279_spill] sm:$0xff] %v7069_v18  ;;  %v1360_v6 = vsub.f32 %v4455_v30, %v4471_v19  ;;  %v1361_v14 = vsub.f32 %v4456_v31, %v4472_v46  ;;  %v1376_v43 = vsub.f32 %v4471_v19, %v4487_v48  ;;  %v1377_v12 = vsub.f32 %v4472_v46, %v4488_v24 }
 0x320   :  { %9298 = vst [vmem:[#allocation280_spill] sm:$0xff] %v7071_v28  ;;  %v3825_v21 = vmul.f32 %v7071_v28, %v2227_v2  ;;  %v3840_v44 = vadd.f32 %v3824_v13, %v3808_v3  ;;  %v7079_v50 = vsub.f32 %v4487_v48, %v7069_v18  ;;  %v7082_v25 = vsub.f32 %v4488_v24, %v7075_v38 }
 0x321   :  { %9299 = vst [vmem:[#allocation281_spill] sm:$0xff] %v7075_v38  ;;  %v7085_v9 = vadd.f32 2.2, %v9290_v20  ;;  %v7088_v49 = vadd.f32 2.2, %v9291_v45  ;;  %v1649_v1 = vsub.f32 -1.0, %v9291_v45 }
 0x322   :  { %9300 = vst [vmem:[#allocation282_spill] sm:$0xff] %v7079_v50  ;;  %v1552_v30 = vsub.f32 -1.4, %v9290_v20  ;;  %v3841_v22 = vadd.f32 %v3825_v21, %v3809_v42  ;;  %v3856_v34 = vmul.f32 0.8333333, %v3840_v44  ;;  %v1648_v42 = vsub.f32 -1.0, %v9290_v20 }
 0x323   :  { %9301 = vst [vmem:[#allocation283_spill] sm:$0xff] %v7082_v25  ;;  %v1553_v2 = vsub.f32 -1.4, %v9291_v45  ;;  %v7093_v3 = vadd.f32 1.8, %v9290_v20  ;;  %v1536_v48 = vmul.f32 %v7085_v9, %v1344_v32  ;;  %v1537_v31 = vmul.f32 %v7088_v49, %v1345_v17 }
 0x324   :  { %v1568_v19 = vmul.f32 %v1552_v30, %v1360_v6  ;;  %v7098_v46 = vadd.f32 1.8, %v9291_v45  ;;  %v3857_v24 = vmul.f32 0.8333333, %v3841_v22  ;;  %v7105_v38 = vadd.f32 1.4, %v9290_v20 }
 0x325   :  { %9302 = vst [vmem:[#allocation284_spill] sm:$0xff] %v7093_v3  ;;  %v1569_v13 = vmul.f32 %v1553_v2, %v1361_v14  ;;  %v1632_v28 = vmul.f32 %v7093_v3, %v1360_v6  ;;  %v1664_v30 = vmul.f32 %v1648_v42, %v1376_v43  ;;  %v7108_v18 = vadd.f32 1.4, %v9291_v45 }
 0x326   :  { %9303 = vst [vmem:[#allocation285_spill] sm:$0xff] %v7098_v46  ;;  %v1584_v44 = vadd.f32 %v1568_v19, %v1536_v48  ;;  %v1633_v21 = vmul.f32 %v7098_v46, %v1361_v14  ;;  %v3871_v32 = vpack.c.bf16 %v3857_v24, %v3856_v34  ;;  %v1665_v2 = vmul.f32 %v1649_v1, %v1377_v12 }
 0x327   :  { %9304 = vst [vmem:[#allocation286_spill] sm:$0xff] %v7105_v38  ;;  %v1585_v17 = vadd.f32 %v1569_v13, %v1537_v31  ;;  %v1728_v6 = vmul.f32 %v7105_v38, %v1376_v43  ;;  %v1744_v39 = vsub.f32 -0.6, %v9290_v20  ;;  %v1680_v14 = vadd.f32 %v1664_v30, %v1632_v28 }
 0x328   :  { %9305 = vst [vmem:[#allocation287_spill] sm:$0xff] %v7108_v18  ;;  %v1600_v22 = vmul.f32 2.5, %v1584_v44  ;;  %3916 = vmatpush.bf16.msrb.mxu0 %v3871_v32  ;;  %v1729_v19 = vmul.f32 %v7108_v18, %v1377_v12  ;;  %v1745_v40 = vsub.f32 -0.6, %v9291_v45  ;;  %v7116_v34 = vsub.f32 %v6405_v27, %v6885_v33 }
 0x329   :  { %v1601_v48 = vmul.f32 2.5, %v1585_v17  ;;  %v1681_v31 = vadd.f32 %v1665_v2, %v1633_v21  ;;  %v1760_v24 = vmul.f32 %v1744_v39, %v7079_v50  ;;  %v4427_v13 = vmul.f32 -1.442695, %v5347_v55 }
 0x32a   :  { %9306 = vst [vmem:[#allocation288_spill] sm:$0xff] %v7116_v34  ;;  %v1696_v44 = vmul.f32 2.5, %v1680_v14  ;;  %v1761_v43 = vmul.f32 %v1745_v40, %v7082_v25  ;;  %v2480_v32 = vmul.f32 %v7085_v9, %v1600_v22  ;;  %v4428_v28 = vmul.f32 -1.442695, %v5349_v57 }
 0x32b   :  { %v1697_v17 = vmul.f32 2.5, %v1681_v31  ;;  %v1776_v12 = vadd.f32 %v1760_v24, %v1728_v6  ;;  %v2481_v30 = vmul.f32 %v7088_v49, %v1601_v48  ;;  %5056 = vpow2.f32 %v4427_v13 }
 0x32c   :  { %vm1252_vm4 = vcmp.ge.f32.partialorder %v5347_v55, 1.8  ;;  %v1777_v27 = vadd.f32 %v1761_v43, %v1729_v19  ;;  %v2496_v21 = vmul.f32 %v1696_v44, %v1648_v42  ;;  %5058 = vpow2.f32 %v4428_v28 }
 0x32d   :  { %vm1253_vm5 = vcmp.ge.f32.partialorder %v5349_v57, 1.8  ;;  %v7126_v2 = vmul.f32 2.5, %v1776_v12  ;;  %v2497_v14 = vmul.f32 %v1697_v17, %v1649_v1  ;;  %v2544_v33 = vmul.f32 %v7093_v3, %v1696_v44 }
 0x32e   :  { %vm1250_vm6 = vcmp.ge.f32.partialorder %v5343_v53, 1.8  ;;  %v7130_v22 = vmul.f32 2.5, %v1777_v27  ;;  %v2512_v6 = vadd.f32 %v2496_v21, %v2480_v32  ;;  %v2545_v48 = vmul.f32 %v7098_v46, %v1697_v17 }
 0x32f   :  { %9307 = vst [vmem:[#allocation289_spill] sm:$0xff] %v7126_v2  ;;  %v7135_v31 = vsub.f32 %v6411_v29, %v7020_v8  ;;  %v2513_v42 = vadd.f32 %v2497_v14, %v2481_v30  ;;  %v2560_v19 = vmul.f32 %v7126_v2, %v1744_v39  ;;  %vm1008_vm7 = vcmp.ge.f32.partialorder %v9290_v20, -0.2 }
 0x330   :  { %9308 = vst [vmem:[#allocation290_spill] sm:$0xff] %v7130_v22  ;;  %v7142_v1 = vsel %vm1252_vm4, 1.0, %v9041_v41  ;;  %v7145_v24 = vsel %vm1253_vm5, 1.0, %v9041_v41  ;;  %v2528_v13 = vmul.f32 1.25, %v2512_v6  ;;  %v2561_v44 = vmul.f32 %v7130_v22, %v1745_v40 }
 0x331   :  { %9309 = vst [vmem:[#allocation291_spill] sm:$0xff] %v7135_v31  ;;  %v5057_v43 = vpop.eup %5056  ;;  %v7149_v29 = vsel %vm1250_vm6, 1.0, %v9041_v41  ;;  %v2529_v32 = vmul.f32 1.25, %v2513_v42  ;;  %v2576_v28 = vadd.f32 %v2560_v19, %v2544_v33  ;;  %vm1009_vm8 = vcmp.ge.f32.partialorder %v9291_v45, -0.2 }
 0x332   :  { %9310 = vst [vmem:[#allocation292_spill] sm:$0xff] %v7142_v1  ;;  %v5059_v17 = vpop.eup %5058  ;;  %v2577_v12 = vadd.f32 %v2561_v44, %v2545_v48  ;;  %v7152_v30 = vadd.f32 1.0, %v5057_v43  ;;  %v7155_v27 = vsel %vm1008_vm7, 1.0, %v9041_v41  ;;  %vm1056_vm9 = vcmp.ge.f32.partialorder %v9290_v20, 0.2 }
 0x333   :  { %9311 = vst [vmem:[#allocation293_spill] sm:$0xff] %v7145_v24  ;;  %v7158_v21 = vmul.f32 1.25, %v2576_v28  ;;  %v3056_v14 = vmul.f32 %v7085_v9, %v2528_v13  ;;  %v7161_v6 = vadd.f32 1.0, %v5059_v17  ;;  %vm1057_vm0 = vcmp.ge.f32.partialorder %v9291_v45, 0.2 }
 0x334   :  { %9312 = vst [vmem:[#allocation294_spill] sm:$0xff] %v7149_v29  ;;  %v7164_v33 = vmul.f32 1.25, %v2577_v12  ;;  %v3057_v42 = vmul.f32 %v7088_v49, %v2529_v32  ;;  %5060 = vrcp.f32 %v7152_v30  ;;  %vm1104_vm10 = vcmp.ge.f32.partialorder %v9290_v20, 0.6 }
 0x335   :  { %9313 = vst [vmem:[#allocation295_spill] sm:$0xff] %v7155_v27  ;;  %v3072_v48 = vmul.f32 %v7158_v21, %v1744_v39  ;;  %v567_v19 = vand.u32 2147483648, %v7152_v30  ;;  %5062 = vrcp.f32 %v7161_v6  ;;  %v7175_v9 = vsel %vm1009_vm8, 1.0, %v9041_v41 }
 0x336   :  { %9314 = vst [vmem:[#allocation296_spill] sm:$0xff] %v7158_v21  ;;  %v3073_v13 = vmul.f32 %v7164_v33, %v1745_v40  ;;  %v4535_v44 = vsel %vm1056_vm9, 1.0, %v9041_v41  ;;  %v4536_v49 = vsel %vm1057_vm0, 1.0, %v9041_v41  ;;  %vm1105_vm11 = vcmp.ge.f32.partialorder %v9291_v45, 0.6 }
 0x337   :  { %9315 = vst [vmem:[#allocation297_spill] sm:$0xff] %v7164_v33  ;;  %v3088_v43 = vadd.f32 %v3072_v48, %v3056_v14  ;;  %v565_v39 = vand.u32 2147483647, %v7152_v30  ;;  %v582_v32 = vand.u32 2147483648, %v7161_v6  ;;  %v4551_v28 = vsel %vm1104_vm10, 1.0, %v9041_v41 }
 0x338   :  { %9316 = vst [vmem:[#allocation298_spill] sm:$0xff] %v7175_v9  ;;  %v3089_v17 = vadd.f32 %v3073_v13, %v3057_v42  ;;  %v580_v12 = vand.u32 2147483647, %v7161_v6  ;;  %vm1152_vm12 = vcmp.ge.f32.partialorder %v9290_v20, 1.0  ;;  %vm1153_vm13 = vcmp.ge.f32.partialorder %v9291_v45, 1.0 }
 0x339   :  { %vm561_vm14 = vweird.f32 %v7152_v30  ;;  %v568_v40 = vor.u32 1.1754944e-38, %v567_v19  ;;  %v4552_v8 = vsel %vm1105_vm11, 1.0, %v9041_v41  ;;  %vm1200_vm15 = vcmp.ge.f32.partialorder %v9290_v20, 1.4 }
 0x33a   :  { %v5061_v14 = vpop.eup %5060  ;;  %v3104_v48 = vmul.f32 0.8333333, %v3088_v43  ;;  %v3105_v31 = vmul.f32 0.8333333, %v3089_v17  ;;  %vm576_vm1 = vweird.f32 %v7161_v6  ;;  %vm1201_vm2 = vcmp.ge.f32.partialorder %v9291_v45, 1.4 }
 0x33b   :  { %v5063_v42 = vpop.eup %5062  ;;  %v557_v13 = vmul.f32 %v5061_v14, %v7152_v30  ;;  %vm7193_vm3 = vcmp.eq.f32.partialorder %v565_v39, 8.507059e+37  ;;  %v583_v46 = vor.u32 1.1754944e-38, %v582_v32  ;;  %v4567_v19 = vsel %vm1152_vm12, 1.0, %v9041_v41 }
 0x33c   :  { %v4568_v33 = vsel %vm1153_vm13, 1.0, %v9041_v41  ;;  %v3120_v3 = vpack.c.bf16 %v3105_v31, %v3104_v48  ;;  %v572_v43 = vmul.f32 %v5063_v42, %v7161_v6  ;;  %vm7200_vm4 = vcmp.eq.f32.partialorder %v580_v12, 8.507059e+37 }
 0x33d   :  { %v7205_v21 = vsel %vm1200_vm15, 1.0, %v9041_v41  ;;  %v7208_v39 = vsub.f32 %v7155_v27, %v4535_v44  ;;  %v558_v18 = vsub.f32 1.0, %v557_v13  ;;  %vm562_vm5 = vweird.f32 %v5061_v14 }
 0x33e   :  { %v7211_v32 = vsel %vm1201_vm2, 1.0, %v9041_v41  ;;  %v7214_v22 = vsub.f32 %v7175_v9, %v4536_v49  ;;  %3167 = vmatpush.bf16.msra.mxu1 %v3120_v3  ;;  %4986 = vmatpush.bf16.msra.mxu3 %v3120_v3  ;;  %v573_v31 = vsub.f32 1.0, %v572_v43  ;;  %vm577_vm6 = vweird.f32 %v5063_v42  ;;  %vm563_vm7 = vmor %vm561_vm14, %vm562_vm5 }
 0x33f   :  { %9321 = vst [vmem:[#allocation299_spill] sm:$0xff] %v7208_v39  ;;  %v1440_v12 = vsub.f32 %v4535_v44, %v4551_v28  ;;  %v1441_v48 = vsub.f32 %v4536_v49, %v4552_v8  ;;  %v559_v38 = vmul.f32 %v5061_v14, %v558_v18  ;;  %v1456_v2 = vsub.f32 %v4551_v28, %v4567_v19  ;;  %vm578_vm8 = vmor %vm576_vm1, %vm577_vm6 }
 0x340   :  { %9322 = vst [vmem:[#allocation300_spill] sm:$0xff] %v7211_v32  ;;  %v1457_v25 = vsub.f32 %v4552_v8, %v4568_v33  ;;  %v7217_v50 = vsub.f32 %v4567_v19, %v7205_v21  ;;  %v574_v13 = vmul.f32 %v5063_v42, %v573_v31  ;;  %v7220_v27 = vsub.f32 %v4568_v33, %v7211_v32 }
 0x341   :  { %9323 = vst [vmem:[#allocation301_spill] sm:$0xff] %v7214_v22  ;;  %v7223_v16 = vadd.f32 0.2, %v9290_v20  ;;  %v7226_v9 = vadd.f32 0.2, %v9291_v45  ;;  %v560_v3 = vadd.f32 %v5061_v14, %v559_v38  ;;  %v7265_v34 = vsub.f32 1.0, %v9291_v45 }
 0x342   :  { %9324 = vst [vmem:[#allocation302_spill] sm:$0xff] %v7217_v50  ;;  %v7229_v44 = vsub.f32 0.6, %v9290_v20  ;;  %v7232_v18 = vsub.f32 0.6, %v9291_v45  ;;  %v575_v33 = vadd.f32 %v5063_v42, %v574_v13 }
 0x343   :  { %9325 = vst [vmem:[#allocation303_spill] sm:$0xff] %v7220_v27  ;;  %v7235_v8 = vadd.f32 -0.2, %v9290_v20  ;;  %v2016_v49 = vmul.f32 %v7223_v16, %v7208_v39  ;;  %v2017_v38 = vmul.f32 %v7226_v9, %v7214_v22  ;;  %v7245_v28 = vadd.f32 -0.2, %v9291_v45 }
 0x344   :  { %9326 = vst [vmem:[#allocation304_spill] sm:$0xff] %v7229_v44  ;;  %v564_v19 = vsel %vm563_vm7, %v5061_v14, %v560_v3  ;;  %v2048_v43 = vmul.f32 %v7229_v44, %v1440_v12  ;;  %v2049_v30 = vmul.f32 %v7232_v18, %v1441_v48  ;;  %v579_v32 = vsel %vm578_vm8, %v5063_v42, %v575_v33  ;;  %v9337_v44 = vld [vmem:[#allocation23_spill] sm:$0xff] }
 0x345   :  { %9327 = vst [vmem:[#allocation305_spill] sm:$0xff] %v7232_v18  ;;  %v2112_v31 = vmul.f32 %v7235_v8, %v1440_v12  ;;  %v569_v13 = vsel %vm7193_vm3, %v568_v40, %v564_v19  ;;  %v2113_v22 = vmul.f32 %v7245_v28, %v1441_v48  ;;  %v7257_v39 = vsub.f32 1.0, %v9290_v20 }
 0x346   :  { %9328 = vst [vmem:[#allocation306_spill] sm:$0xff] %v7235_v8  ;;  %vm1251_vm9 = vcmp.ge.f32.partialorder %v5345_v54, 1.8  ;;  %v584_v6 = vsel %vm7200_vm4, %v583_v46, %v579_v32  ;;  %v740_v14 = vmul.f32 %v569_v13, %v5347_v55  ;;  %v2064_v3 = vadd.f32 %v2048_v43, %v2016_v49  ;;  %v9349_v55 = vld [vmem:[#allocation33_spill] sm:$0xff] }
 0x347   :  { %9329 = vst [vmem:[#allocation307_spill] sm:$0xff] %v7245_v28  ;;  %v2065_v18 = vadd.f32 %v2049_v30, %v2017_v38  ;;  %v741_v12 = vmul.f32 %v584_v6, %v5349_v57  ;;  %v2144_v40 = vmul.f32 %v7257_v39, %v1456_v2  ;;  %v7269_v42 = vadd.f32 -0.6, %v9290_v20 }
 0x348   :  { %9330 = vst [vmem:[#allocation308_spill] sm:$0xff] %v7257_v39  ;;  %v7271_v48 = vmul.f32 2.5, %v2064_v3  ;;  %v7276_v46 = vadd.f32 -0.6, %v9291_v45  ;;  %v2224_v17 = vsub.f32 1.4, %v9290_v20  ;;  %v2145_v49 = vmul.f32 %v7265_v34, %v1457_v25 }
 0x349   :  { %9331 = vst [vmem:[#allocation309_spill] sm:$0xff] %v7265_v34  ;;  %v7273_v33 = vmul.f32 2.5, %v2065_v18  ;;  %v754_v32 = vpack.c.bf16 %v741_v12, %v740_v14  ;;  %v2160_v38 = vadd.f32 %v2144_v40, %v2112_v31  ;;  %v2208_v19 = vmul.f32 %v7269_v42, %v1456_v2  ;;  %v9336_v12 = vld [vmem:[#allocation34_spill] sm:$0xff] }
 0x34a   :  { %9332 = vst [vmem:[#allocation310_spill] sm:$0xff] %v7269_v42  ;;  %v2209_v43 = vmul.f32 %v7276_v46, %v1457_v25  ;;  %v2225_v30 = vsub.f32 1.4, %v9291_v45  ;;  %v2240_v13 = vmul.f32 %v2224_v17, %v7217_v50  ;;  %v2800_v18 = vmul.f32 %v7223_v16, %v7271_v48  ;;  %v9338_v25 = vld [vmem:[#allocation37_spill] sm:$0xff] }
 0x34b   :  { %9333 = vst [vmem:[#allocation311_spill] sm:$0xff] %v7271_v48  ;;  %3218 = vmatpush.bf16.msra.mxu2 %v754_v32  ;;  %v2161_v6 = vadd.f32 %v2145_v49, %v2113_v22  ;;  %v2176_v3 = vmul.f32 2.5, %v2160_v38  ;;  %v2801_v14 = vmul.f32 %v7226_v9, %v7273_v33  ;;  %v1422_v31 = vsub.f32 %v9337_v44, %v9336_v12  ;;  %v9341_v44 = vld [vmem:[#allocation24_spill] sm:$0xff] }
 0x34c   :  { %9334 = vst [vmem:[#allocation312_spill] sm:$0xff] %v7273_v33  ;;  %v2241_v2 = vmul.f32 %v2225_v30, %v7220_v27  ;;  %v2256_v40 = vadd.f32 %v2240_v13, %v2208_v19  ;;  %v7294_v50 = vadd.f32 1.0, %v5367_v0  ;;  %v7299_v49 = vadd.f32 1.0, %v5400_v10 }
 0x34d   :  { %9335 = vst [vmem:[#allocation313_spill] sm:$0xff] %v7276_v46  ;;  %v9339_v46 = vld [vmem:[#allocation28_spill] sm:$0xff]  ;;  %v2177_v57 = vmul.f32 2.5, %v2161_v6  ;;  %v2816_v32 = vmul.f32 %v2176_v3, %v7257_v39  ;;  %v2864_v22 = vmul.f32 %v7235_v8, %v2176_v3  ;;  %v1854_v13 = vsub.f32 -0.2, %v5367_v0 }
 0x34e   :  { %v1423_v42 = vsub.f32 %v9339_v46, %v9338_v25  ;;  %v2257_v38 = vadd.f32 %v2241_v2, %v2209_v43  ;;  %v7301_v33 = vmul.f32 2.5, %v2256_v40  ;;  %v1838_v19 = vmul.f32 %v7294_v50, %v9341_v44  ;;  %v9342_v25 = vld [vmem:[#allocation29_spill] sm:$0xff] }
 0x34f   :  { %v2817_v46 = vmul.f32 %v2177_v57, %v7265_v34  ;;  %v2832_v12 = vadd.f32 %v2816_v32, %v2800_v18  ;;  %v2865_v6 = vmul.f32 %v7245_v28, %v2177_v57  ;;  %v1839_v27 = vmul.f32 %v7299_v49, %v9342_v25  ;;  %v9346_v18 = vld [vmem:[#allocation32_spill] sm:$0xff]  ;;  %v9347_v57 = vld [vmem:[#allocation26_spill] sm:$0xff] }
 0x350   :  { %9340 = vst [vmem:[#allocation34_spill] sm:$0xff] %v7301_v33  ;;  %v7310_v3 = vmul.f32 2.5, %v2257_v38  ;;  %v2880_v8 = vmul.f32 %v7301_v33, %v2224_v17  ;;  %v1855_v43 = vsub.f32 -0.2, %v5400_v10  ;;  %v1870_v2 = vmul.f32 %v1854_v13, %v1422_v31 }
 0x351   :  { %v7317_v40 = vsel %vm1251_vm9, 1.0, %v9041_v41  ;;  %v2833_v44 = vadd.f32 %v2817_v46, %v2801_v14  ;;  %v7319_v34 = vmul.f32 1.25, %v2832_v12  ;;  %v2622_v32 = vmul.f32 %v9347_v57, %v9346_v18  ;;  %v9352_v14 = vld [vmem:[#allocation25_spill] sm:$0xff] }
 0x352   :  { %9343 = vst [vmem:[#allocation23_spill] sm:$0xff] %v7310_v3  ;;  %v2881_v25 = vmul.f32 %v7310_v3, %v2225_v30  ;;  %v2896_v38 = vadd.f32 %v2880_v8, %v2864_v22  ;;  %v1871_v28 = vmul.f32 %v1855_v43, %v1423_v42  ;;  %v1886_v39 = vadd.f32 %v1870_v2, %v1838_v19 }
 0x353   :  { %9344 = vst [vmem:[#allocation37_spill] sm:$0xff] %v7317_v40  ;;  %v7324_v33 = vmul.f32 1.25, %v2833_v44  ;;  %v3806_v48 = vmul.f32 %v7223_v16, %v7319_v34  ;;  %v2623_v26 = vmul.f32 %v9350_v51, %v9349_v55  ;;  %v3256_v46 = vmul.f32 %v9352_v14, %v9351_v47 }
 0x354   :  { %9345 = vst [vmem:[#allocation28_spill] sm:$0xff] %v7319_v34  ;;  %v2897_v12 = vadd.f32 %v2881_v25, %v2865_v6  ;;  %v7332_v5 = vmul.f32 1.25, %v2896_v38  ;;  %v1887_v18 = vadd.f32 %v1871_v28, %v1839_v27  ;;  %v1902_v59 = vmul.f32 2.5, %v1886_v39  ;;  %v9355_v28 = vld [vmem:[#allocation38_spill] sm:$0xff]  ;;  %v4793_v25 = vld [vmem:[#allocation2 + $0x4] sm:$0xf] }
 0x355   :  { %9348 = vst [vmem:[#allocation24_spill] sm:$0xff] %v7324_v33  ;;  %v3807_v8 = vmul.f32 %v7226_v9, %v7324_v33  ;;  %v7337_v22 = vadd.f32 0.6, %v5367_v0  ;;  %v7340_v19 = vadd.f32 0.6, %v5400_v10 }
 0x356   :  { %9353 = vst [vmem:[#allocation29_spill] sm:$0xff] %v7332_v5  ;;  %v1950_v16 = vsub.f32 0.2, %v5367_v0  ;;  %v7343_v55 = vmul.f32 1.25, %v2897_v12  ;;  %v3822_v47 = vmul.f32 %v7332_v5, %v2224_v17  ;;  %v1903_v6 = vmul.f32 2.5, %v1887_v18  ;;  %v9356_v18 = vld [vmem:[#allocation36_spill] sm:$0xff] }
 0x357   :  { %v2638_v2 = vmul.f32 %v1902_v59, %v1854_v13  ;;  %v1934_v27 = vmul.f32 %v7337_v22, %v1422_v31  ;;  %v1935_v39 = vmul.f32 %v7340_v19, %v1423_v42  ;;  %v7349_v9 = vsub.f32 0.2, %v5400_v10  ;;  %v4947_v33 = vld [vmem:[#allocation2 + $0x24] sm:$0xf0]  ;;  %v4801_v34 = vld [vmem:[#allocation2 + $0x94] sm:$0xf] }
 0x358   :  { %9354 = vst [vmem:[#allocation32_spill] sm:$0xff] %v7343_v55  ;;  %v1966_v44 = vmul.f32 %v1950_v16, %v9355_v28  ;;  %v3823_v38 = vmul.f32 %v7343_v55, %v2225_v30  ;;  %v3838_v14 = vadd.f32 %v3822_v47, %v3806_v48  ;;  %v2639_v3 = vmul.f32 %v1903_v6, %v1855_v43  ;;  %v4949_v17 = vld [vmem:[#allocation2 + $0xb4] sm:$0xf0]  ;;  %v9357_v31 = vld [vmem:[#allocation30_spill] sm:$0xff] }
 0x359   :  { %v2654_v12 = vadd.f32 %v2638_v2, %v2622_v32  ;;  %vm1248_vm0 = vcmp.ge.f32.partialorder %v9290_v20, 1.8  ;;  %v3257_v5 = vmul.f32 %v9357_v31, %v9356_v18  ;;  %v9358_v42 = vld [vmem:[#allocation39_spill] sm:$0xff]  ;;  %v2686_v28 = vmul.f32 %v7294_v50, %v1902_v59 }
 0x35a   :  { %v1967_v10 = vmul.f32 %v7349_v9, %v9358_v42  ;;  %v1982_v0 = vadd.f32 %v1966_v44, %v1934_v27  ;;  %v3839_v58 = vadd.f32 %v3823_v38, %v3807_v8  ;;  %v2655_v56 = vadd.f32 %v2639_v3, %v2623_v26  ;;  %v9362_v44 = vld [vmem:[#allocation51_spill] sm:$0xff]  ;;  %v9363_v42 = vld [vmem:[#allocation52_spill] sm:$0xff] }
 0x35b   :  { %v2670_v30 = vmul.f32 1.25, %v2654_v12  ;;  %v2687_v48 = vmul.f32 %v7299_v49, %v1903_v6  ;;  %v4794_v2 = vor.u32 %v4947_v33, %v4793_v25  ;;  %v4802_v55 = vor.u32 %v4949_v17, %v4801_v34  ;;  %v9359_v34 = vld [vmem:[#allocation60_spill] sm:$0xff] }
 0x35c   :  { %v1983_v32 = vadd.f32 %v1967_v10, %v1935_v39  ;;  %v7360_v47 = vmul.f32 2.5, %v1982_v0  ;;  %v3854_v11 = vmul.f32 0.8333333, %v3838_v14  ;;  %v3855_v52 = vmul.f32 0.8333333, %v3839_v58  ;;  %v9361_v39 = vld [vmem:[#allocation61_spill] sm:$0xff] }
 0x35d   :  { %v2671_v15 = vmul.f32 1.25, %v2655_v56  ;;  %v3272_v18 = vmul.f32 %v2670_v30, %v1854_v13  ;;  %3168 = vmatmul.bf16.vlgmr.msra.gmra.mxu1 %v4794_v2  ;;  %3178 = vmatmul.bf16.vlgmr.msra.gmra.mxu3 %v4802_v55  ;;  %v4425_v59 = vmul.f32 -1.442695, %v5343_v53  ;;  %v4426_v26 = vmul.f32 -1.442695, %v5345_v54  ;;  %v9360_v13 = vld [vmem:[#allocation50_spill] sm:$0xff] }
 0x35e   :  { %v7362_v31 = vmul.f32 2.5, %v1983_v32  ;;  %v2702_v27 = vmul.f32 %v7360_v47, %v1950_v16  ;;  %v3870_v3 = vpack.c.bf16 %v3855_v52, %v3854_v11  ;;  %v3397_v33 = vmul.f32 %v9347_v57, %v2670_v30  ;;  %v9364_v30 = vld [vmem:[#allocation53_spill] sm:$0xff] }
 0x35f   :  { %v3273_v10 = vmul.f32 %v2671_v15, %v1855_v43  ;;  %v3288_v0 = vadd.f32 %v3272_v18, %v3256_v46  ;;  %5064 = vpow2.f32 %v4425_v59  ;;  %v1420_v8 = vsub.f32 %v9360_v13, %v9359_v34  ;;  %v9371_v34 = vld [vmem:[#allocation58_spill] sm:$0xff]  ;;  %v9372_v13 = vld [vmem:[#allocation56_spill] sm:$0xff] }
 0x360   :  { %v2703_v58 = vmul.f32 %v7362_v31, %v7349_v9  ;;  %v2718_v56 = vadd.f32 %v2702_v27, %v2686_v28  ;;  %3917 = vmatpush.bf16.msrb.mxu0 %v3870_v3  ;;  %5066 = vpow2.f32 %v4426_v26  ;;  %v1421_v25 = vsub.f32 %v9362_v44, %v9361_v39 }
 0x361   :  { %v3289_v6 = vadd.f32 %v3273_v10, %v3257_v5  ;;  %v3304_v55 = vmul.f32 0.8333333, %v3288_v0  ;;  %v7377_v43 = vadd.f32 1.0, %v5363_v7  ;;  %v7380_v57 = vadd.f32 1.0, %v5365_v63 }
 0x362   :  { %v2719_v52 = vadd.f32 %v2703_v58, %v2687_v48  ;;  %v7374_v11 = vmul.f32 1.25, %v2718_v56  ;;  %v3398_v38 = vmul.f32 %v9350_v51, %v2671_v15  ;;  %v7384_v14 = vsub.f32 -0.2, %v5363_v7 }
 0x363   :  { %v3305_v46 = vmul.f32 0.8333333, %v3289_v6  ;;  %v7387_v5 = vsub.f32 -0.2, %v5365_v63  ;;  %v1836_v28 = vmul.f32 %v7377_v43, %v9363_v42  ;;  %v1837_v48 = vmul.f32 %v7380_v57, %v9364_v30  ;;  %v9373_v6 = vld [vmem:[#allocation59_spill] sm:$0xff] }
 0x364   :  { %v7389_v12 = vmul.f32 1.25, %v2719_v52  ;;  %v3413_v17 = vmul.f32 %v7374_v11, %v1950_v16  ;;  %v7399_v51 = vsel %vm1248_vm0, 1.0, %v9041_v41  ;;  %v1868_v32 = vmul.f32 %v7384_v14, %v1420_v8  ;;  %v9377_v42 = vld [vmem:[#allocation63_spill] sm:$0xff]  ;;  %v9404_v41 = vld [vmem:[#allocation98_spill] sm:$0xff] }
 0x365   :  { %9365 = vst [vmem:[#allocation26_spill] sm:$0xff] %v7399_v51  ;;  %v3313_v15 = vpack.c.bf16 %v3305_v46, %v3304_v55  ;;  %v1869_v2 = vmul.f32 %v7387_v5, %v1421_v25  ;;  %v5065_v18 = vpop.eup %5064  ;;  %v7405_v16 = vsub.f32 %v6673_v23, %v7142_v1  ;;  %v7409_v27 = vsub.f32 %v6679_v4, %v7145_v24  ;;  %v9374_v55 = vld [vmem:[#allocation57_spill] sm:$0xff]  ;;  %v9376_v46 = vld [vmem:[#allocation54_spill] sm:$0xff] }
 0x366   :  { %v3414_v59 = vmul.f32 %v7389_v12, %v7349_v9  ;;  %v3429_v26 = vadd.f32 %v3413_v17, %v3397_v33  ;;  %v5067_v3 = vpop.eup %5066  ;;  %v7415_v10 = vsub.f32 %v6941_v36, %v7149_v29  ;;  %v7419_v0 = vsub.f32 %v6947_v35, %v7317_v40  ;;  %v9382_v40 = vld [vmem:[#allocation65_spill] sm:$0xff] }
 0x367   :  { %9366 = vst [vmem:[#allocation33_spill] sm:$0xff] %v7405_v16  ;;  %3346 = vmatpush.bf16.msrb.mxu3 %v3313_v15  ;;  %v7421_v23 = vadd.f32 1.0, %v5065_v18  ;;  %v1884_v58 = vadd.f32 %v1868_v32, %v1836_v28  ;;  %v7425_v4 = vsub.f32 %v7205_v21, %v7399_v51  ;;  %v7427_v9 = vadd.f32 1.0, %v5067_v3  ;;  %v9375_v21 = vld [vmem:[#allocation62_spill] sm:$0xff]  ;;  %v9378_v28 = vld [vmem:[#allocation55_spill] sm:$0xff] }
 0x368   :  { %9367 = vst [vmem:[#allocation31_spill] sm:$0xff] %v7409_v27  ;;  %v3430_v56 = vadd.f32 %v3414_v59, %v3398_v38  ;;  %v1885_v33 = vadd.f32 %v1869_v2, %v1837_v48  ;;  %v2620_v35 = vmul.f32 %v9372_v13, %v9371_v34  ;;  %v2621_v39 = vmul.f32 %v9374_v55, %v9373_v6 }
 0x369   :  { %9368 = vst [vmem:[#allocation35_spill] sm:$0xff] %v7415_v10  ;;  %5068 = vrcp.f32 %v7421_v23  ;;  %v537_v36 = vand.u32 2147483648, %v7421_v23  ;;  %v3445_v44 = vmul.f32 0.8333333, %v3429_v26  ;;  %v3254_v38 = vmul.f32 %v9376_v46, %v9375_v21  ;;  %v9379_v21 = vld [vmem:[#allocation64_spill] sm:$0xff] }
 0x36a   :  { %9369 = vst [vmem:[#allocation25_spill] sm:$0xff] %v7419_v0  ;;  %v3446_v52 = vmul.f32 0.8333333, %v3430_v56  ;;  %5070 = vrcp.f32 %v7427_v9  ;;  %v1900_v17 = vmul.f32 2.5, %v1884_v58  ;;  %v3255_v30 = vmul.f32 %v9378_v28, %v9377_v42 }
 0x36b   :  { %9370 = vst [vmem:[#allocation38_spill] sm:$0xff] %v7425_v4  ;;  %v7441_v48 = vadd.f32 0.6, %v5363_v7  ;;  %v7444_v15 = vadd.f32 0.6, %v5365_v63  ;;  %v1901_v59 = vmul.f32 2.5, %v1885_v33  ;;  %vm531_vm10 = vweird.f32 %v7421_v23 }
 0x36c   :  { %v3454_v32 = vpack.c.bf16 %v3446_v52, %v3445_v44  ;;  %v535_v2 = vand.u32 2147483647, %v7421_v23  ;;  %v550_v18 = vand.u32 2147483647, %v7427_v9  ;;  %v538_v26 = vor.u32 1.1754944e-38, %v537_v36 }
 0x36d   :  { %v2636_v3 = vmul.f32 %v1900_v17, %v7384_v14  ;;  %v1932_v58 = vmul.f32 %v7441_v48, %v1420_v8  ;;  %v7451_v56 = vsub.f32 0.2, %v5363_v7  ;;  %v552_v34 = vand.u32 2147483648, %v7427_v9 }
 0x36e   :  { %3487 = vmatpush.bf16.msrb.mxu1 %v3454_v32  ;;  %v2637_v6 = vmul.f32 %v1901_v59, %v7387_v5  ;;  %v1933_v44 = vmul.f32 %v7444_v15, %v1421_v25  ;;  %v1949_v52 = vsub.f32 0.2, %v5365_v63  ;;  %vm546_vm11 = vweird.f32 %v7427_v9 }
 0x36f   :  { %v5069_v33 = vpop.eup %5068  ;;  %v2652_v36 = vadd.f32 %v2636_v3, %v2620_v35  ;;  %v1964_v8 = vmul.f32 %v7451_v56, %v9379_v21  ;;  %v2684_v46 = vmul.f32 %v7377_v43, %v1900_v17  ;;  %v4423_v42 = vmul.f32 -1.442695, %v9290_v20 }
 0x370   :  { %v5071_v28 = vpop.eup %5070  ;;  %v527_v32 = vmul.f32 %v5069_v33, %v7421_v23  ;;  %vm7464_vm12 = vcmp.eq.f32.partialorder %v535_v2, 8.507059e+37  ;;  %v2653_v25 = vadd.f32 %v2637_v6, %v2621_v39  ;;  %v1965_v29 = vmul.f32 %v1949_v52, %v9382_v40 }
 0x371   :  { %v2685_v24 = vmul.f32 %v7380_v57, %v1901_v59  ;;  %v542_v35 = vmul.f32 %v5071_v28, %v7427_v9  ;;  %v2668_v3 = vmul.f32 1.25, %v2652_v36  ;;  %v1980_v21 = vadd.f32 %v1964_v8, %v1932_v58 }
 0x372   :  { %v4424_v17 = vmul.f32 -1.442695, %v9291_v45  ;;  %v528_v1 = vsub.f32 1.0, %v527_v32  ;;  %v2669_v4 = vmul.f32 1.25, %v2653_v25  ;;  %v1981_v0 = vadd.f32 %v1965_v29, %v1933_v44 }
 0x373   :  { %5072 = vpow2.f32 %v4423_v42  ;;  %vm532_vm13 = vweird.f32 %v5069_v33  ;;  %v543_v2 = vsub.f32 1.0, %v542_v35  ;;  %v3270_v10 = vmul.f32 %v2668_v3, %v7384_v14 }
 0x374   :  { %v7473_v27 = vmul.f32 2.5, %v1980_v21  ;;  %v529_v39 = vmul.f32 %v5069_v33, %v528_v1  ;;  %vm547_vm14 = vweird.f32 %v5071_v28  ;;  %v3271_v40 = vmul.f32 %v2669_v4, %v7387_v5  ;;  %vm533_vm1 = vmor %vm531_vm10, %vm532_vm13 }
 0x375   :  { %v7476_v59 = vmul.f32 2.5, %v1981_v0  ;;  %v544_v6 = vmul.f32 %v5071_v28, %v543_v2  ;;  %v3286_v58 = vadd.f32 %v3270_v10, %v3254_v38  ;;  %5074 = vpow2.f32 %v4424_v17  ;;  %vm548_vm2 = vmor %vm546_vm11, %vm547_vm14  ;;  %v9385_v2 = vld [vmem:[#allocation94_spill] sm:$0xff] }
 0x376   :  { %v2700_v36 = vmul.f32 %v7473_v27, %v7451_v56  ;;  %v530_v29 = vadd.f32 %v5069_v33, %v529_v39  ;;  %vm7480_vm15 = vcmp.eq.f32.partialorder %v550_v18, 8.507059e+37  ;;  %v3287_v14 = vadd.f32 %v3271_v40, %v3255_v30  ;;  %v9386_v39 = vld [vmem:[#allocation84_spill] sm:$0xff] }
 0x377   :  { %v2701_v8 = vmul.f32 %v7476_v59, %v1949_v52  ;;  %v545_v1 = vadd.f32 %v5071_v28, %v544_v6  ;;  %v553_v5 = vor.u32 1.1754944e-38, %v552_v34  ;;  %v3395_v10 = vmul.f32 %v9372_v13, %v2668_v3  ;;  %v9387_v6 = vld [vmem:[#allocation97_spill] sm:$0xff] }
 0x378   :  { %v2716_v0 = vadd.f32 %v2700_v36, %v2684_v46  ;;  %v534_v42 = vsel %vm533_vm1, %v5069_v33, %v530_v29  ;;  %v3302_v18 = vmul.f32 0.8333333, %v3286_v58  ;;  %v3303_v32 = vmul.f32 0.8333333, %v3287_v14  ;;  %v9388_v58 = vld [vmem:[#allocation85_spill] sm:$0xff] }
 0x379   :  { %v5073_v38 = vpop.eup %5072  ;;  %v2717_v30 = vadd.f32 %v2701_v8, %v2685_v24  ;;  %v539_v25 = vsel %vm7464_vm12, %v538_v26, %v534_v42  ;;  %v549_v35 = vsel %vm548_vm2, %v5071_v28, %v545_v1  ;;  %v3396_v9 = vmul.f32 %v9374_v55, %v2669_v4  ;;  %v9390_v42 = vld [vmem:[#allocation87_spill] sm:$0xff] }
 0x37a   :  { %v7494_v23 = vmul.f32 1.25, %v2716_v0  ;;  %v7496_v21 = vadd.f32 1.0, %v5073_v38  ;;  %v554_v13 = vsel %vm7480_vm15, %v553_v5, %v549_v35  ;;  %v3312_v34 = vpack.c.bf16 %v3303_v32, %v3302_v18  ;;  %v9389_v5 = vld [vmem:[#allocation86_spill] sm:$0xff] }
 0x37b   :  { %v7500_v33 = vmul.f32 1.25, %v2717_v30  ;;  %v5075_v46 = vpop.eup %5074  ;;  %v738_v3 = vmul.f32 %v539_v25, %v5343_v53  ;;  %v739_v24 = vmul.f32 %v554_v13, %v5345_v54  ;;  %v1418_v4 = vsub.f32 %v9386_v39, %v9385_v2  ;;  %v9391_v13 = vld [vmem:[#allocation92_spill] sm:$0xff] }
 0x37c   :  { %v3411_v51 = vmul.f32 %v7494_v23, %v7451_v56  ;;  %5076 = vrcp.f32 %v7496_v21  ;;  %3347 = vmatpush.bf16.msrb.mxu3 %v3312_v34  ;;  %v7509_v28 = vadd.f32 1.0, %v5075_v46  ;;  %v507_v17 = vand.u32 2147483648, %v7496_v21  ;;  %v9392_v34 = vld [vmem:[#allocation90_spill] sm:$0xff]  ;;  %v9393_v46 = vld [vmem:[#allocation93_spill] sm:$0xff] }
 0x37d   :  { %v3412_v26 = vmul.f32 %v7500_v33, %v1949_v52  ;;  %v753_v55 = vpack.c.bf16 %v739_v24, %v738_v3  ;;  %v1419_v36 = vsub.f32 %v9388_v58, %v9387_v6  ;;  %v7517_v29 = vadd.f32 1.0, %v5359_v62  ;;  %v9394_v3 = vld [vmem:[#allocation91_spill] sm:$0xff]  ;;  %v9399_v58 = vld [vmem:[#allocation96_spill] sm:$0xff] }
 0x37e   :  { %v3427_v40 = vadd.f32 %v3411_v51, %v3395_v10  ;;  %v505_v44 = vand.u32 2147483647, %v7496_v21  ;;  %5078 = vrcp.f32 %v7509_v28  ;;  %v7522_v52 = vadd.f32 1.0, %v5361_v37 }
 0x37f   :  { %v3428_v56 = vadd.f32 %v3412_v26, %v3396_v9  ;;  %3219 = vmatpush.bf16.msra.mxu2 %v753_v55  ;;  %v508_v8 = vor.u32 1.1754944e-38, %v507_v17  ;;  %v522_v1 = vand.u32 2147483648, %v7509_v28  ;;  %v1834_v0 = vmul.f32 %v7517_v29, %v9389_v5  ;;  %v9397_v55 = vld [vmem:[#allocation95_spill] sm:$0xff]  ;;  %v9409_v17 = vld [vmem:[#allocation45_spill] sm:$0xff] }
 0x380   :  { %v3443_v14 = vmul.f32 0.8333333, %v3427_v40  ;;  %vm501_vm3 = vweird.f32 %v7496_v21  ;;  %v520_v38 = vand.u32 2147483647, %v7509_v28  ;;  %v1835_v18 = vmul.f32 %v7522_v52, %v9390_v42  ;;  %v9398_v40 = vld [vmem:[#allocation88_spill] sm:$0xff] }
 0x381   :  { %v3444_v10 = vmul.f32 0.8333333, %v3428_v56  ;;  %v7532_v32 = vsub.f32 -0.2, %v5359_v62  ;;  %v523_v25 = vor.u32 1.1754944e-38, %v522_v1  ;;  %v2618_v9 = vmul.f32 %v9392_v34, %v9391_v13  ;;  %v9400_v56 = vld [vmem:[#allocation89_spill] sm:$0xff] }
 0x382   :  { %v5077_v30 = vpop.eup %5076  ;;  %v7535_v35 = vsub.f32 -0.2, %v5361_v37  ;;  %v2619_v24 = vmul.f32 %v9394_v3, %v9393_v46  ;;  %vm7542_vm5 = vcmp.eq.f32.partialorder %v505_v44, 8.507059e+37  ;;  %vm516_vm6 = vweird.f32 %v7509_v28 }
 0x383   :  { %v3453_v51 = vpack.c.bf16 %v3444_v10, %v3443_v14  ;;  %v497_v26 = vmul.f32 %v5077_v30, %v7496_v21  ;;  %vm502_vm4 = vweird.f32 %v5077_v30  ;;  %v1866_v2 = vmul.f32 %v7532_v32, %v1418_v4  ;;  %v9407_v21 = vld [vmem:[#allocation44_spill] sm:$0xff] }
 0x384   :  { %v1867_v39 = vmul.f32 %v7535_v35, %v1419_v36  ;;  %v3252_v6 = vmul.f32 %v9398_v40, %v9397_v55  ;;  %v3253_v1 = vmul.f32 %v9400_v56, %v9399_v58  ;;  %v7554_v14 = vadd.f32 0.6, %v5359_v62  ;;  %v5079_v5 = vpop.eup %5078  ;;  %vm503_vm9 = vmor %vm501_vm3, %vm502_vm4  ;;  %v4943_v55 = vld [vmem:[#allocation2 + $0x20] sm:$0xf0] }
 0x385   :  { %3488 = vmatpush.bf16.msrb.mxu1 %v3453_v51  ;;  %v498_v44 = vsub.f32 1.0, %v497_v26  ;;  %v1882_v10 = vadd.f32 %v1866_v2, %v1834_v0  ;;  %v7557_v42 = vadd.f32 0.6, %v5361_v37  ;;  %v7560_v13 = vsub.f32 0.2, %v5359_v62 }
 0x386   :  { %v512_v46 = vmul.f32 %v5079_v5, %v7509_v28  ;;  %vm517_vm7 = vweird.f32 %v5079_v5  ;;  %vm7563_vm8 = vcmp.eq.f32.partialorder %v520_v38, 8.507059e+37  ;;  %v1883_v40 = vadd.f32 %v1867_v39, %v1835_v18  ;;  %v9405_v18 = vld [vmem:[#allocation99_spill] sm:$0xff] }
 0x387   :  { %9401 = vst [vmem:[#allocation36_spill] sm:$0xff] %v7557_v42  ;;  %v1930_v58 = vmul.f32 %v7554_v14, %v1418_v4  ;;  %v499_v56 = vmul.f32 %v5077_v30, %v498_v44  ;;  %v1898_v51 = vmul.f32 2.5, %v1882_v10  ;;  %v1931_v0 = vmul.f32 %v7557_v42, %v1419_v36  ;;  %vm518_vm0 = vmor %vm516_vm6, %vm517_vm7 }
 0x388   :  { %v1947_v26 = vsub.f32 0.2, %v5361_v37  ;;  %v513_v2 = vsub.f32 1.0, %v512_v46  ;;  %v1899_v16 = vmul.f32 2.5, %v1883_v40  ;;  %v1962_v62 = vmul.f32 %v7560_v13, %v9404_v41 }
 0x389   :  { %v2750_v38 = vmul.f32 %v7337_v22, %v7360_v47  ;;  %v500_v63 = vadd.f32 %v5077_v30, %v499_v56  ;;  %v2634_v7 = vmul.f32 %v1898_v51, %v7532_v32  ;;  %v2682_v4 = vmul.f32 %v7517_v29, %v1898_v51 }
 0x38a   :  { %v1963_v39 = vmul.f32 %v1947_v26, %v9405_v18  ;;  %v514_v36 = vmul.f32 %v5079_v5, %v513_v2  ;;  %v2635_v44 = vmul.f32 %v1899_v16, %v7535_v35  ;;  %v1978_v10 = vadd.f32 %v1962_v62, %v1930_v58 }
 0x38b   :  { %v2683_v41 = vmul.f32 %v7522_v52, %v1899_v16  ;;  %v504_v46 = vsel %vm503_vm9, %v5077_v30, %v500_v63  ;;  %v2650_v40 = vadd.f32 %v2634_v7, %v2618_v9  ;;  %v2751_v56 = vmul.f32 %v7340_v19, %v7362_v31  ;;  %v9406_v7 = vld [vmem:[#allocation40_spill] sm:$0xff] }
 0x38c   :  { %v1979_v47 = vadd.f32 %v1963_v39, %v1931_v0  ;;  %v509_v18 = vsel %vm7542_vm5, %v508_v8, %v504_v46  ;;  %v515_v51 = vadd.f32 %v5079_v5, %v514_v36  ;;  %v2651_v37 = vadd.f32 %v2635_v44, %v2619_v24  ;;  %v9408_v24 = vld [vmem:[#allocation41_spill] sm:$0xff] }
 0x38d   :  { %v7586_v54 = vmul.f32 2.5, %v1978_v10  ;;  %v736_v62 = vmul.f32 %v509_v18, %v9290_v20  ;;  %v2666_v16 = vmul.f32 1.25, %v2650_v40  ;;  %v2766_v30 = vmul.f32 %v9407_v21, %v9406_v7  ;;  %v4809_v18 = vld [vmem:[#allocation2] sm:$0xf] }
 0x38e   :  { %v7592_v63 = vmul.f32 2.5, %v1979_v47  ;;  %v519_v31 = vsel %vm518_vm0, %v5079_v5, %v515_v51  ;;  %v2667_v9 = vmul.f32 1.25, %v2651_v37  ;;  %v2767_v58 = vmul.f32 %v9409_v17, %v9408_v24 }
 0x38f   :  { %v2698_v8 = vmul.f32 %v7586_v54, %v7560_v13  ;;  %v524_v28 = vsel %vm7563_vm8, %v523_v25, %v519_v31  ;;  %v3268_v0 = vmul.f32 %v2666_v16, %v7532_v32  ;;  %v3393_v39 = vmul.f32 %v9392_v34, %v2666_v16 }
 0x390   :  { %v2699_v2 = vmul.f32 %v7592_v63, %v1947_v26  ;;  %v737_v36 = vmul.f32 %v524_v28, %v9291_v45  ;;  %v3269_v5 = vmul.f32 %v2667_v9, %v7535_v35  ;;  %v3394_v44 = vmul.f32 %v9394_v3, %v2667_v9  ;;  %v9410_v9 = vld [vmem:[#allocation132_spill] sm:$0xff] }
 0x391   :  { %v2714_v37 = vadd.f32 %v2698_v8, %v2682_v4  ;;  %v3284_v10 = vadd.f32 %v3268_v0, %v3252_v6  ;;  %v2782_v40 = vadd.f32 %v2766_v30, %v2750_v38  ;;  %v2783_v47 = vadd.f32 %v2767_v58, %v2751_v56  ;;  %v9413_v58 = vld [vmem:[#allocation119_spill] sm:$0xff] }
 0x392   :  { %v2715_v46 = vadd.f32 %v2699_v2, %v2683_v41  ;;  %v752_v25 = vpack.c.bf16 %v737_v36, %v736_v62  ;;  %v3285_v51 = vadd.f32 %v3269_v5, %v3253_v1  ;;  %v3538_v34 = vmul.f32 %v7294_v50, %v7374_v11  ;;  %v9414_v36 = vld [vmem:[#allocation126_spill] sm:$0xff]  ;;  %v9415_v5 = vld [vmem:[#allocation124_spill] sm:$0xff] }
 0x393   :  { %v7608_v32 = vmul.f32 1.25, %v2714_v37  ;;  %v3300_v16 = vmul.f32 0.8333333, %v3284_v10  ;;  %v2798_v35 = vmul.f32 1.25, %v2782_v40  ;;  %v2799_v4 = vmul.f32 1.25, %v2783_v47 }
 0x394   :  { %v7612_v21 = vmul.f32 1.25, %v2715_v46  ;;  %3220 = vmatpush.bf16.msra.mxu2 %v752_v25  ;;  %v3301_v3 = vmul.f32 0.8333333, %v3285_v51  ;;  %v3539_v38 = vmul.f32 %v7299_v49, %v7389_v12  ;;  %v4810_v41 = vor.u32 %v4943_v55, %v4809_v18  ;;  %v9417_v46 = vld [vmem:[#allocation121_spill] sm:$0xff]  ;;  %v9418_v51 = vld [vmem:[#allocation127_spill] sm:$0xff] }
 0x395   :  { %v3409_v6 = vmul.f32 %v7608_v32, %v7560_v13  ;;  %v3554_v56 = vmul.f32 %v2798_v35, %v9406_v7  ;;  %v3555_v50 = vmul.f32 %v2799_v4, %v9408_v24  ;;  %v7622_v11 = vmul.f32 %v7337_v22, %v2798_v35  ;;  %v9411_v13 = vld [vmem:[#allocation117_spill] sm:$0xff] }
 0x396   :  { %v3410_v1 = vmul.f32 %v7612_v21, %v1947_v26  ;;  %v3311_v62 = vpack.c.bf16 %v3301_v3, %v3300_v16  ;;  %v7625_v31 = vmul.f32 %v7340_v19, %v2799_v4  ;;  %v1416_v8 = vsub.f32 %v9411_v13, %v9410_v9  ;;  %v9412_v26 = vld [vmem:[#allocation135_spill] sm:$0xff]  ;;  %v9420_v35 = vld [vmem:[#allocation133_spill] sm:$0xff]  ;;  %v9421_v4 = vld [vmem:[#allocation122_spill] sm:$0xff] }
 0x397   :  { %v3425_v30 = vadd.f32 %v3409_v6, %v3393_v39  ;;  %v3570_v49 = vadd.f32 %v3554_v56, %v3538_v34  ;;  %v3571_v12 = vadd.f32 %v3555_v50, %v3539_v38  ;;  %3221 = vmatmul.bf16.vlgmr.msra.gmra.mxu2 %v4810_v41  ;;  %v1417_v7 = vsub.f32 %v9413_v58, %v9412_v26  ;;  %v9419_v34 = vld [vmem:[#allocation125_spill] sm:$0xff]  ;;  %v9422_v41 = vld [vmem:[#allocation134_spill] sm:$0xff] }
 0x398   :  { %v3426_v17 = vadd.f32 %v3410_v1, %v3394_v44  ;;  %3348 = vmatpush.bf16.msrb.mxu3 %v3311_v62  ;;  %v7632_v22 = vadd.f32 1.0, %v5355_v60  ;;  %v7635_v28 = vadd.f32 1.0, %v5357_v61  ;;  %v1848_v19 = vsub.f32 -0.2, %v5355_v60  ;;  %v9416_v44 = vld [vmem:[#allocation120_spill] sm:$0xff]  ;;  %v9423_v1 = vld [vmem:[#allocation123_spill] sm:$0xff] }
 0x399   :  { %v3441_v24 = vmul.f32 0.8333333, %v3425_v30  ;;  %v3586_v2 = vmul.f32 0.8333333, %v3570_v49  ;;  %v3587_v39 = vmul.f32 0.8333333, %v3571_v12  ;;  %v2616_v37 = vmul.f32 %v9415_v5, %v9414_v36 }
 0x39a   :  { %v3442_v0 = vmul.f32 0.8333333, %v3426_v17  ;;  %v1832_v10 = vmul.f32 %v7632_v22, %v9416_v44  ;;  %v1833_v40 = vmul.f32 %v7635_v28, %v9417_v46  ;;  %v1849_v47 = vsub.f32 -0.2, %v5357_v61  ;;  %v9428_v36 = vld [vmem:[#allocation68_spill] sm:$0xff] }
 0x39b   :  { %v1864_v18 = vmul.f32 %v1848_v19, %v1416_v8  ;;  %v3595_v25 = vpack.c.bf16 %v3587_v39, %v3586_v2  ;;  %v2617_v16 = vmul.f32 %v9419_v34, %v9418_v51  ;;  %v3250_v3 = vmul.f32 %v9421_v4, %v9420_v35  ;;  %v9427_v2 = vld [vmem:[#allocation137_spill] sm:$0xff]  ;;  %v9429_v44 = vld [vmem:[#allocation76_spill] sm:$0xff] }
 0x39c   :  { %v3452_v55 = vpack.c.bf16 %v3442_v0, %v3441_v24  ;;  %v1865_v6 = vmul.f32 %v1849_v47, %v1417_v7  ;;  %v3251_v56 = vmul.f32 %v9423_v1, %v9422_v41  ;;  %v7652_v50 = vadd.f32 0.6, %v5355_v60  ;;  %v9426_v24 = vld [vmem:[#allocation136_spill] sm:$0xff] }
 0x39d   :  { %v1880_v38 = vadd.f32 %v1864_v18, %v1832_v10  ;;  %3628 = vmatpush.bf16.msrb.mxu2 %v3595_v25  ;;  %v7655_v62 = vadd.f32 0.6, %v5357_v61  ;;  %v1944_v30 = vsub.f32 0.2, %v5355_v60  ;;  %v1945_v9 = vsub.f32 0.2, %v5357_v61 }
 0x39e   :  { %9424 = vst [vmem:[#allocation30_spill] sm:$0xff] %v7652_v50  ;;  %3489 = vmatpush.bf16.msrb.mxu1 %v3452_v55  ;;  %v2748_v13 = vmul.f32 %v7441_v48, %v7473_v27  ;;  %v1881_v17 = vadd.f32 %v1865_v6, %v1833_v40  ;;  %v1928_v12 = vmul.f32 %v7652_v50, %v1416_v8  ;;  %v9430_v40 = vld [vmem:[#allocation69_spill] sm:$0xff]  ;;  %v4805_v61 = vld [vmem:[#allocation2 + $0xdc] sm:$0xf] }
 0x39f   :  { %9425 = vst [vmem:[#allocation39_spill] sm:$0xff] %v7655_v62  ;;  %v1896_v49 = vmul.f32 2.5, %v1880_v38  ;;  %v2749_v26 = vmul.f32 %v7444_v15, %v7476_v59  ;;  %v1929_v58 = vmul.f32 %v7655_v62, %v1417_v7  ;;  %v1960_v0 = vmul.f32 %v1944_v30, %v9426_v24  ;;  %v9431_v55 = vld [vmem:[#allocation77_spill] sm:$0xff] }
 0x3a0   :  { %v1961_v39 = vmul.f32 %v1945_v9, %v9427_v2  ;;  %v2764_v10 = vmul.f32 %v9429_v44, %v9428_v36  ;;  %v1897_v46 = vmul.f32 2.5, %v1881_v17  ;;  %v2765_v25 = vmul.f32 %v9431_v55, %v9430_v40  ;;  %v9432_v24 = vld [vmem:[#allocation173_spill] sm:$0xff]  ;;  %v9434_v2 = vld [vmem:[#allocation176_spill] sm:$0xff] }
 0x3a1   :  { %v2632_v18 = vmul.f32 %v1896_v49, %v1848_v19  ;;  %v2680_v27 = vmul.f32 %v7632_v22, %v1896_v49  ;;  %v1976_v8 = vadd.f32 %v1960_v0, %v1928_v12  ;;  %v3536_v59 = vmul.f32 %v7377_v43, %v7494_v23  ;;  %v9433_v43 = vld [vmem:[#allocation156_spill] sm:$0xff] }
 0x3a2   :  { %v1977_v51 = vadd.f32 %v1961_v39, %v1929_v58  ;;  %v2780_v35 = vadd.f32 %v2764_v10, %v2748_v13  ;;  %v2633_v7 = vmul.f32 %v1897_v46, %v1849_v47  ;;  %v2681_v6 = vmul.f32 %v7635_v28, %v1897_v46  ;;  %v9435_v39 = vld [vmem:[#allocation158_spill] sm:$0xff] }
 0x3a3   :  { %v2648_v4 = vadd.f32 %v2632_v18, %v2616_v37  ;;  %v2781_v38 = vadd.f32 %v2765_v25, %v2749_v26  ;;  %v7675_v41 = vmul.f32 2.5, %v1976_v8  ;;  %v3537_v49 = vmul.f32 %v7380_v57, %v7500_v33  ;;  %v9436_v25 = vld [vmem:[#allocation14_spill] sm:$0xff] }
 0x3a4   :  { %v7677_v1 = vmul.f32 2.5, %v1977_v51  ;;  %v7679_v17 = vmul.f32 1.25, %v2780_v35  ;;  %v2649_v12 = vadd.f32 %v2633_v7, %v2617_v16  ;;  %v1414_v23 = vsub.f32 %v9433_v43, %v9432_v24 }
 0x3a5   :  { %v2664_v58 = vmul.f32 1.25, %v2648_v4  ;;  %v7683_v13 = vmul.f32 1.25, %v2781_v38  ;;  %v2696_v37 = vmul.f32 %v7675_v41, %v1944_v30  ;;  %v1415_v44 = vsub.f32 %v9435_v39, %v9434_v2 }
 0x3a6   :  { %v2697_v26 = vmul.f32 %v7677_v1, %v1945_v9  ;;  %v3552_v0 = vmul.f32 %v7679_v17, %v9428_v36  ;;  %v2665_v10 = vmul.f32 1.25, %v2649_v12  ;;  %v7697_v8 = vadd.f32 1.0, %v9436_v25 }
 0x3a7   :  { %v3266_v46 = vmul.f32 %v2664_v58, %v1848_v19  ;;  %v3391_v57 = vmul.f32 %v9415_v5, %v2664_v58  ;;  %v3553_v33 = vmul.f32 %v7683_v13, %v9430_v40  ;;  %v2712_v16 = vadd.f32 %v2696_v37, %v2680_v27  ;;  %v9437_v5 = vld [vmem:[#allocation15_spill] sm:$0xff] }
 0x3a8   :  { %v2713_v18 = vadd.f32 %v2697_v26, %v2681_v6  ;;  %v3568_v55 = vadd.f32 %v3552_v0, %v3536_v59  ;;  %v3267_v51 = vmul.f32 %v2665_v10, %v1849_v47  ;;  %v3392_v36 = vmul.f32 %v9419_v34, %v2665_v10  ;;  %v9438_v59 = vld [vmem:[#allocation159_spill] sm:$0xff]  ;;  %v9439_v34 = vld [vmem:[#allocation160_spill] sm:$0xff] }
 0x3a9   :  { %v3282_v35 = vadd.f32 %v3266_v46, %v3250_v3  ;;  %v3569_v7 = vadd.f32 %v3553_v33, %v3537_v49  ;;  %v7700_v4 = vmul.f32 1.25, %v2712_v16  ;;  %v7705_v12 = vadd.f32 1.0, %v9437_v5  ;;  %v9440_v0 = vld [vmem:[#allocation167_spill] sm:$0xff]  ;;  %v9442_v33 = vld [vmem:[#allocation169_spill] sm:$0xff]  ;;  %v9443_v16 = vld [vmem:[#allocation164_spill] sm:$0xff] }
 0x3aa   :  { %v7702_v38 = vmul.f32 1.25, %v2713_v18  ;;  %v3584_v19 = vmul.f32 0.8333333, %v3568_v55  ;;  %v3283_v40 = vadd.f32 %v3267_v51, %v3251_v56  ;;  %v1830_v58 = vmul.f32 %v7697_v8, %v9438_v59  ;;  %v9441_v56 = vld [vmem:[#allocation163_spill] sm:$0xff]  ;;  %v9444_v55 = vld [vmem:[#allocation174_spill] sm:$0xff]  ;;  %v9445_v51 = vld [vmem:[#allocation161_spill] sm:$0xff] }
 0x3ab   :  { %v3298_v27 = vmul.f32 0.8333333, %v3282_v35  ;;  %v3585_v6 = vmul.f32 0.8333333, %v3569_v7  ;;  %v3407_v47 = vmul.f32 %v7700_v4, %v1944_v30  ;;  %v1831_v49 = vmul.f32 %v7705_v12, %v9439_v34  ;;  %v9446_v7 = vld [vmem:[#allocation175_spill] sm:$0xff] }
 0x3ac   :  { %v3408_v3 = vmul.f32 %v7702_v38, %v1945_v9  ;;  %v1846_v24 = vsub.f32 -0.2, %v9436_v25  ;;  %v3299_v43 = vmul.f32 0.8333333, %v3283_v40  ;;  %v1847_v26 = vsub.f32 -0.2, %v9437_v5 }
 0x3ad   :  { %v3594_v37 = vpack.c.bf16 %v3585_v6, %v3584_v19  ;;  %v2614_v2 = vmul.f32 %v9441_v56, %v9440_v0  ;;  %v3423_v39 = vadd.f32 %v3407_v47, %v3391_v57  ;;  %v2615_v30 = vmul.f32 %v9443_v16, %v9442_v33  ;;  %v9447_v40 = vld [vmem:[#allocation162_spill] sm:$0xff] }
 0x3ae   :  { %v3424_v10 = vadd.f32 %v3408_v3, %v3392_v36  ;;  %v1862_v46 = vmul.f32 %v1846_v24, %v1414_v23  ;;  %v3310_v18 = vpack.c.bf16 %v3299_v43, %v3298_v27  ;;  %v1863_v9 = vmul.f32 %v1847_v26, %v1415_v44 }
 0x3af   :  { %3629 = vmatpush.bf16.msrb.mxu2 %v3594_v37  ;;  %v3248_v35 = vmul.f32 %v9445_v51, %v9444_v55  ;;  %v3249_v19 = vmul.f32 %v9447_v40, %v9446_v7  ;;  %v3439_v6 = vmul.f32 0.8333333, %v3423_v39  ;;  %v7724_v0 = vadd.f32 0.6, %v9436_v25  ;;  %v9452_v7 = vld [vmem:[#allocation102_spill] sm:$0xff]  ;;  %v9453_v40 = vld [vmem:[#allocation109_spill] sm:$0xff] }
 0x3b0   :  { %v3440_v59 = vmul.f32 0.8333333, %v3424_v10  ;;  %v1878_v34 = vadd.f32 %v1862_v46, %v1830_v58  ;;  %3349 = vmatpush.bf16.msrb.mxu3 %v3310_v18  ;;  %v1879_v57 = vadd.f32 %v1863_v9, %v1831_v49  ;;  %v7727_v36 = vadd.f32 0.6, %v9437_v5  ;;  %v9450_v46 = vld [vmem:[#allocation177_spill] sm:$0xff]  ;;  %v9451_v49 = vld [vmem:[#allocation178_spill] sm:$0xff] }
 0x3b1   :  { %9448 = vst [vmem:[#allocation60_spill] sm:$0xff] %v7724_v0  ;;  %v1942_v27 = vsub.f32 0.2, %v9436_v25  ;;  %v1943_v47 = vsub.f32 0.2, %v9437_v5  ;;  %v1926_v37 = vmul.f32 %v7724_v0, %v1414_v23  ;;  %v2746_v39 = vmul.f32 %v7554_v14, %v7586_v54  ;;  %v9454_v5 = vld [vmem:[#allocation103_spill] sm:$0xff] }
 0x3b2   :  { %9449 = vst [vmem:[#allocation50_spill] sm:$0xff] %v7727_v36  ;;  %v3451_v3 = vpack.c.bf16 %v3440_v59, %v3439_v6  ;;  %v1894_v43 = vmul.f32 2.5, %v1878_v34  ;;  %v1895_v58 = vmul.f32 2.5, %v1879_v57  ;;  %v1927_v10 = vmul.f32 %v7727_v36, %v1415_v44  ;;  %v4797_v44 = vld [vmem:[#allocation2 + $0x4c] sm:$0xf] }
 0x3b3   :  { %v1958_v33 = vmul.f32 %v1942_v27, %v9450_v46  ;;  %v1959_v18 = vmul.f32 %v1943_v47, %v9451_v49  ;;  %v2747_v51 = vmul.f32 %v7557_v42, %v7592_v63  ;;  %v2762_v23 = vmul.f32 %v9453_v40, %v9452_v7  ;;  %v4948_v57 = vld [vmem:[#allocation2 + $0x6c] sm:$0xf0]  ;;  %v4950_v63 = vld [vmem:[#allocation2 + $0xfc] sm:$0xf0] }
 0x3b4   :  { %3490 = vmatpush.bf16.msrb.mxu1 %v3451_v3  ;;  %v2630_v9 = vmul.f32 %v1894_v43, %v1846_v24  ;;  %v2678_v55 = vmul.f32 %v7697_v8, %v1894_v43  ;;  %v2631_v6 = vmul.f32 %v1895_v58, %v1847_v26  ;;  %v2679_v34 = vmul.f32 %v7705_v12, %v1895_v58  ;;  %v9455_v49 = vld [vmem:[#allocation110_spill] sm:$0xff] }
 0x3b5   :  { %v1974_v59 = vadd.f32 %v1958_v33, %v1926_v37  ;;  %v1975_v54 = vadd.f32 %v1959_v18, %v1927_v10  ;;  %v2763_v3 = vmul.f32 %v9455_v49, %v9454_v5  ;;  %v2778_v25 = vadd.f32 %v2762_v23, %v2746_v39 }
 0x3b6   :  { %v2646_v46 = vadd.f32 %v2630_v9, %v2614_v2  ;;  %v3534_v43 = vmul.f32 %v7517_v29, %v7608_v32  ;;  %v2647_v60 = vadd.f32 %v2631_v6, %v2615_v30  ;;  %v3535_v37 = vmul.f32 %v7522_v52, %v7612_v21 }
 0x3b7   :  { %v7747_v42 = vmul.f32 2.5, %v1974_v59  ;;  %v7749_v40 = vmul.f32 2.5, %v1975_v54  ;;  %v2779_v10 = vadd.f32 %v2763_v3, %v2747_v51  ;;  %v7753_v2 = vmul.f32 1.25, %v2778_v25  ;;  %v9457_v54 = vld [vmem:[#allocation197_spill] sm:$0xff]  ;;  %v9460_v3 = vld [vmem:[#allocation12_spill] sm:$0xff] }
 0x3b8   :  { %v2662_v58 = vmul.f32 1.25, %v2646_v46  ;;  %v4798_v33 = vor.u32 %v4948_v57, %v4797_v44  ;;  %v2663_v18 = vmul.f32 1.25, %v2647_v60  ;;  %v4806_v32 = vor.u32 %v4950_v63, %v4805_v61 }
 0x3b9   :  { %v2694_v39 = vmul.f32 %v7747_v42, %v1942_v27  ;;  %v2695_v29 = vmul.f32 %v7749_v40, %v1943_v47  ;;  %v7758_v23 = vmul.f32 1.25, %v2779_v10  ;;  %v3550_v6 = vmul.f32 %v7753_v2, %v9452_v7  ;;  %v9458_v7 = vld [vmem:[#allocation217_spill] sm:$0xff] }
 0x3ba   :  { %v3264_v9 = vmul.f32 %v2662_v58, %v1846_v24  ;;  %v3389_v30 = vmul.f32 %v9441_v56, %v2662_v58  ;;  %3173 = vmatmul.bf16.gmra.mxu1 %v4798_v33  ;;  %v3265_v52 = vmul.f32 %v2663_v18, %v1847_v26  ;;  %v3390_v51 = vmul.f32 %v9443_v16, %v2663_v18  ;;  %v9456_v24 = vld [vmem:[#allocation214_spill] sm:$0xff]  ;;  %v9459_v26 = vld [vmem:[#allocation199_spill] sm:$0xff]  ;;  %v9461_v58 = vld [vmem:[#allocation13_spill] sm:$0xff] }
 0x3bb   :  { %v2710_v21 = vadd.f32 %v2694_v39, %v2678_v55  ;;  %v2711_v25 = vadd.f32 %v2695_v29, %v2679_v34  ;;  %3183 = vmatmul.bf16.gmra.mxu3 %v4806_v32  ;;  %v3551_v59 = vmul.f32 %v7758_v23, %v9454_v5  ;;  %v3566_v61 = vadd.f32 %v3550_v6, %v3534_v43  ;;  %v9462_v33 = vld [vmem:[#allocation200_spill] sm:$0xff]  ;;  %v9463_v6 = vld [vmem:[#allocation201_spill] sm:$0xff] }
 0x3bc   :  { %v3280_v60 = vadd.f32 %v3264_v9, %v3248_v35  ;;  %v1412_v56 = vsub.f32 %v9457_v54, %v9456_v24  ;;  %v3281_v44 = vadd.f32 %v3265_v52, %v3249_v19  ;;  %v1413_v55 = vsub.f32 %v9459_v26, %v9458_v7  ;;  %v9466_v54 = vld [vmem:[#allocation209_spill] sm:$0xff]  ;;  %v9468_v26 = vld [vmem:[#allocation215_spill] sm:$0xff] }
 0x3bd   :  { %v7767_v57 = vmul.f32 1.25, %v2710_v21  ;;  %v7769_v46 = vmul.f32 1.25, %v2711_v25  ;;  %v3567_v49 = vadd.f32 %v3551_v59, %v3535_v37  ;;  %v3582_v16 = vmul.f32 0.8333333, %v3566_v61  ;;  %v9464_v25 = vld [vmem:[#allocation208_spill] sm:$0xff] }
 0x3be   :  { %v3296_v34 = vmul.f32 0.8333333, %v3280_v60  ;;  %v7774_v35 = vadd.f32 1.0, %v9460_v3  ;;  %v3297_v63 = vmul.f32 0.8333333, %v3281_v44  ;;  %v7779_v19 = vadd.f32 1.0, %v9461_v58 }
 0x3bf   :  { %v3405_v5 = vmul.f32 %v7767_v57, %v1942_v27  ;;  %v3406_v43 = vmul.f32 %v7769_v46, %v1943_v47  ;;  %v3583_v10 = vmul.f32 0.8333333, %v3567_v49  ;;  %v1844_v39 = vsub.f32 -0.2, %v9460_v3  ;;  %v9465_v60 = vld [vmem:[#allocation204_spill] sm:$0xff]  ;;  %v9467_v44 = vld [vmem:[#allocation205_spill] sm:$0xff] }
 0x3c0   :  { %v1828_v18 = vmul.f32 %v7774_v35, %v9462_v33  ;;  %v1845_v37 = vsub.f32 -0.2, %v9461_v58  ;;  %v3309_v29 = vpack.c.bf16 %v3297_v63, %v3296_v34  ;;  %v1829_v52 = vmul.f32 %v7779_v19, %v9463_v6  ;;  %v9469_v49 = vld [vmem:[#allocation202_spill] sm:$0xff]  ;;  %v9470_v63 = vld [vmem:[#allocation216_spill] sm:$0xff] }
 0x3c1   :  { %v3421_v32 = vadd.f32 %v3405_v5, %v3389_v30  ;;  %v3422_v9 = vadd.f32 %v3406_v43, %v3390_v51  ;;  %v3593_v27 = vpack.c.bf16 %v3583_v10, %v3582_v16  ;;  %v1860_v21 = vmul.f32 %v1844_v39, %v1412_v56  ;;  %v9471_v5 = vld [vmem:[#allocation203_spill] sm:$0xff] }
 0x3c2   :  { %v1861_v47 = vmul.f32 %v1845_v37, %v1413_v55  ;;  %v2612_v59 = vmul.f32 %v9465_v60, %v9464_v25  ;;  %3350 = vmatpush.bf16.msrb.mxu3 %v3309_v29  ;;  %v2613_v7 = vmul.f32 %v9467_v44, %v9466_v54  ;;  %v3246_v34 = vmul.f32 %v9469_v49, %v9468_v26  ;;  %v9475_v25 = vld [vmem:[#allocation219_spill] sm:$0xff] }
 0x3c3   :  { %v3437_v61 = vmul.f32 0.8333333, %v3421_v32  ;;  %v3438_v24 = vmul.f32 0.8333333, %v3422_v9  ;;  %3630 = vmatpush.bf16.msrb.mxu2 %v3593_v27  ;;  %v1876_v30 = vadd.f32 %v1860_v21, %v1828_v18  ;;  %v3247_v16 = vmul.f32 %v9471_v5, %v9470_v63  ;;  %v9474_v21 = vld [vmem:[#allocation218_spill] sm:$0xff]  ;;  %v9476_v63 = vld [vmem:[#allocation140_spill] sm:$0xff] }
 0x3c4   :  { %v1877_v51 = vadd.f32 %v1861_v47, %v1829_v52  ;;  %v7796_v43 = vadd.f32 0.6, %v9460_v3  ;;  %v7799_v33 = vadd.f32 0.6, %v9461_v58  ;;  %v1940_v29 = vsub.f32 0.2, %v9460_v3 }
 0x3c5   :  { %v3450_v10 = vpack.c.bf16 %v3438_v24, %v3437_v61  ;;  %v1941_v32 = vsub.f32 0.2, %v9461_v58  ;;  %v1892_v9 = vmul.f32 2.5, %v1876_v30  ;;  %v2744_v18 = vmul.f32 %v7652_v50, %v7675_v41  ;;  %v9477_v41 = vld [vmem:[#allocation147_spill] sm:$0xff] }
 0x3c6   :  { %9472 = vst [vmem:[#allocation61_spill] sm:$0xff] %v7796_v43  ;;  %v1893_v6 = vmul.f32 2.5, %v1877_v51  ;;  %v1924_v27 = vmul.f32 %v7796_v43, %v1412_v56  ;;  %v1925_v52 = vmul.f32 %v7799_v33, %v1413_v55  ;;  %v1956_v47 = vmul.f32 %v1940_v29, %v9474_v21  ;;  %v9479_v55 = vld [vmem:[#allocation148_spill] sm:$0xff] }
 0x3c7   :  { %9473 = vst [vmem:[#allocation51_spill] sm:$0xff] %v7799_v33  ;;  %3491 = vmatpush.bf16.msrb.mxu1 %v3450_v10  ;;  %v1957_v61 = vmul.f32 %v1941_v32, %v9475_v25  ;;  %v2745_v24 = vmul.f32 %v7655_v62, %v7677_v1  ;;  %v2628_v54 = vmul.f32 %v1892_v9, %v1844_v39  ;;  %v9478_v10 = vld [vmem:[#allocation141_spill] sm:$0xff] }
 0x3c8   :  { %v2629_v26 = vmul.f32 %v1893_v6, %v1845_v37  ;;  %v2676_v49 = vmul.f32 %v7774_v35, %v1892_v9  ;;  %v2677_v30 = vmul.f32 %v7779_v19, %v1893_v6  ;;  %v1972_v56 = vadd.f32 %v1956_v47, %v1924_v27 }
 0x3c9   :  { %v1973_v51 = vadd.f32 %v1957_v61, %v1925_v52  ;;  %v2760_v5 = vmul.f32 %v9477_v41, %v9476_v63  ;;  %v2761_v58 = vmul.f32 %v9479_v55, %v9478_v10  ;;  %v2644_v21 = vadd.f32 %v2628_v54, %v2612_v59  ;;  %v9480_v61 = vld [vmem:[#allocation255_spill] sm:$0xff]  ;;  %v9481_v41 = vld [vmem:[#allocation238_spill] sm:$0xff]  ;;  %v9483_v59 = vld [vmem:[#allocation240_spill] sm:$0xff] }
 0x3ca   :  { %v2645_v3 = vadd.f32 %v2629_v26, %v2613_v7  ;;  %v3532_v25 = vmul.f32 %v7632_v22, %v7700_v4  ;;  %v3533_v1 = vmul.f32 %v7635_v28, %v7702_v38  ;;  %v7821_v62 = vmul.f32 2.5, %v1972_v56  ;;  %v9482_v55 = vld [vmem:[#allocation258_spill] sm:$0xff] }
 0x3cb   :  { %v7823_v9 = vmul.f32 2.5, %v1973_v51  ;;  %v2776_v6 = vadd.f32 %v2760_v5, %v2744_v18  ;;  %v2777_v27 = vadd.f32 %v2761_v58, %v2745_v24  ;;  %v2660_v52 = vmul.f32 1.25, %v2644_v21 }
 0x3cc   :  { %v2661_v47 = vmul.f32 1.25, %v2645_v3  ;;  %v1410_v50 = vsub.f32 %v9481_v41, %v9480_v61  ;;  %v1411_v7 = vsub.f32 %v9483_v59, %v9482_v55  ;;  %v2692_v54 = vmul.f32 %v7821_v62, %v1940_v29 }
 0x3cd   :  { %v2693_v22 = vmul.f32 %v7823_v9, %v1941_v32  ;;  %v7831_v4 = vmul.f32 1.25, %v2776_v6  ;;  %v7833_v28 = vmul.f32 1.25, %v2777_v27  ;;  %v3262_v38 = vmul.f32 %v2660_v52, %v1844_v39  ;;  %v9486_v27 = vld [vmem:[#allocation11_spill] sm:$0xff] }
 0x3ce   :  { %v3263_v26 = vmul.f32 %v2661_v47, %v1845_v37  ;;  %v3387_v58 = vmul.f32 %v9465_v60, %v2660_v52  ;;  %v3388_v3 = vmul.f32 %v9467_v44, %v2661_v47  ;;  %v2708_v18 = vadd.f32 %v2692_v54, %v2676_v49 }
 0x3cf   :  { %9484 = vst [vmem:[#allocation52_spill] sm:$0xff] %v7831_v4  ;;  %v2709_v24 = vadd.f32 %v2693_v22, %v2677_v30  ;;  %v3548_v56 = vmul.f32 %v7831_v4, %v9476_v63  ;;  %v3549_v51 = vmul.f32 %v7833_v28, %v9478_v10  ;;  %v3278_v5 = vadd.f32 %v3262_v38, %v3246_v34  ;;  %v9487_v63 = vld [vmem:[#allocation241_spill] sm:$0xff]  ;;  %v9488_v10 = vld [vmem:[#allocation242_spill] sm:$0xff] }
 0x3d0   :  { %9485 = vst [vmem:[#allocation53_spill] sm:$0xff] %v7833_v28  ;;  %v3279_v21 = vadd.f32 %v3263_v26, %v3247_v16  ;;  %v7842_v6 = vadd.f32 1.0, %v5343_v53  ;;  %v7845_v39 = vadd.f32 1.0, %v9486_v27  ;;  %v7847_v37 = vmul.f32 1.25, %v2708_v18  ;;  %v9490_v22 = vld [vmem:[#allocation245_spill] sm:$0xff] }
 0x3d1   :  { %v7849_v60 = vmul.f32 1.25, %v2709_v24  ;;  %v3564_v44 = vadd.f32 %v3548_v56, %v3532_v25  ;;  %v3565_v49 = vadd.f32 %v3549_v51, %v3533_v1  ;;  %v3294_v30 = vmul.f32 0.8333333, %v3278_v5  ;;  %v9489_v1 = vld [vmem:[#allocation249_spill] sm:$0xff]  ;;  %v9491_v56 = vld [vmem:[#allocation250_spill] sm:$0xff] }
 0x3d2   :  { %v3295_v52 = vmul.f32 0.8333333, %v3279_v21  ;;  %v1826_v47 = vmul.f32 %v7842_v6, %v9487_v63  ;;  %v1827_v34 = vmul.f32 %v7845_v39, %v9488_v10  ;;  %v3403_v16 = vmul.f32 %v7847_v37, %v1940_v29  ;;  %v9492_v51 = vld [vmem:[#allocation246_spill] sm:$0xff] }
 0x3d3   :  { %v3404_v61 = vmul.f32 %v7849_v60, %v1941_v32  ;;  %v3580_v41 = vmul.f32 0.8333333, %v3564_v44  ;;  %v3581_v55 = vmul.f32 0.8333333, %v3565_v49  ;;  %v1842_v54 = vsub.f32 -0.2, %v5343_v53 }
 0x3d4   :  { %v3308_v59 = vpack.c.bf16 %v3295_v52, %v3294_v30  ;;  %v1843_v25 = vsub.f32 -0.2, %v9486_v27  ;;  %v2610_v38 = vmul.f32 %v9490_v22, %v9489_v1  ;;  %v3419_v26 = vadd.f32 %v3403_v16, %v3387_v58  ;;  %v9493_v32 = vld [vmem:[#allocation256_spill] sm:$0xff]  ;;  %v9494_v44 = vld [vmem:[#allocation243_spill] sm:$0xff]  ;;  %v9495_v30 = vld [vmem:[#allocation257_spill] sm:$0xff] }
 0x3d5   :  { %v3420_v18 = vadd.f32 %v3404_v61, %v3388_v3  ;;  %v3592_v24 = vpack.c.bf16 %v3581_v55, %v3580_v41  ;;  %v2611_v5 = vmul.f32 %v9492_v51, %v9491_v56  ;;  %v1858_v29 = vmul.f32 %v1842_v54, %v1410_v50  ;;  %v9496_v52 = vld [vmem:[#allocation244_spill] sm:$0xff] }
 0x3d6   :  { %3351 = vmatpush.bf16.msrb.mxu3 %v3308_v59  ;;  %v1859_v21 = vmul.f32 %v1843_v25, %v1411_v7  ;;  %v3244_v49 = vmul.f32 %v9494_v44, %v9493_v32  ;;  %v3245_v63 = vmul.f32 %v9496_v52, %v9495_v30  ;;  %v3435_v10 = vmul.f32 0.8333333, %v3419_v26  ;;  %v9502_v44 = vld [vmem:[#allocation188_spill] sm:$0xff]  ;;  %v9504_v52 = vld [vmem:[#allocation189_spill] sm:$0xff] }
 0x3d7   :  { %v3436_v28 = vmul.f32 0.8333333, %v3420_v18  ;;  %3631 = vmatpush.bf16.msrb.mxu2 %v3592_v24  ;;  %v7868_v1 = vadd.f32 0.6, %v5343_v53  ;;  %v2742_v58 = vmul.f32 %v7724_v0, %v7747_v42  ;;  %v1874_v3 = vadd.f32 %v1858_v29, %v1826_v47  ;;  %v9499_v42 = vld [vmem:[#allocation259_spill] sm:$0xff] }
 0x3d8   :  { %v1875_v16 = vadd.f32 %v1859_v21, %v1827_v34  ;;  %v7873_v61 = vadd.f32 0.6, %v9486_v27  ;;  %v1938_v41 = vsub.f32 0.2, %v5343_v53  ;;  %v1939_v26 = vsub.f32 0.2, %v9486_v27 }
 0x3d9   :  { %9497 = vst [vmem:[#allocation58_spill] sm:$0xff] %v7868_v1  ;;  %v3449_v55 = vpack.c.bf16 %v3436_v28, %v3435_v10  ;;  %v1922_v59 = vmul.f32 %v7868_v1, %v1410_v50  ;;  %v2743_v18 = vmul.f32 %v7727_v36, %v7749_v40  ;;  %v1890_v24 = vmul.f32 2.5, %v1874_v3  ;;  %v9500_v34 = vld [vmem:[#allocation260_spill] sm:$0xff]  ;;  %v9501_v21 = vld [vmem:[#allocation181_spill] sm:$0xff]  ;;  %v9503_v28 = vld [vmem:[#allocation182_spill] sm:$0xff] }
 0x3da   :  { %9498 = vst [vmem:[#allocation56_spill] sm:$0xff] %v7873_v61  ;;  %v1891_v56 = vmul.f32 2.5, %v1875_v16  ;;  %v1923_v32 = vmul.f32 %v7873_v61, %v1411_v7  ;;  %v1954_v47 = vmul.f32 %v1938_v41, %v9499_v42  ;;  %v1955_v29 = vmul.f32 %v1939_v26, %v9500_v34  ;;  %v4813_v7 = vld [vmem:[#allocation2 + $0x48] sm:$0xf]  ;;  %v4944_v53 = vld [vmem:[#allocation2 + $0x68] sm:$0xf0] }
 0x3db   :  { %3492 = vmatpush.bf16.msrb.mxu1 %v3449_v55  ;;  %v2758_v30 = vmul.f32 %v9502_v44, %v9501_v21  ;;  %v2759_v50 = vmul.f32 %v9504_v52, %v9503_v28  ;;  %v3530_v10 = vmul.f32 %v7697_v8, %v7767_v57  ;;  %v2626_v27 = vmul.f32 %v1890_v24, %v1842_v54 }
 0x3dc   :  { %v2627_v40 = vmul.f32 %v1891_v56, %v1843_v25  ;;  %v1970_v3 = vadd.f32 %v1954_v47, %v1922_v59  ;;  %v2674_v16 = vmul.f32 %v7842_v6, %v1890_v24  ;;  %v1971_v42 = vadd.f32 %v1955_v29, %v1923_v32 }
 0x3dd   :  { %v2675_v55 = vmul.f32 %v7845_v39, %v1891_v56  ;;  %v2774_v34 = vadd.f32 %v2758_v30, %v2742_v58  ;;  %v2775_v36 = vadd.f32 %v2759_v50, %v2743_v18  ;;  %v2642_v0 = vadd.f32 %v2626_v27, %v2610_v38  ;;  %v9505_v58 = vld [vmem:[#allocation295_spill] sm:$0xff] }
 0x3de   :  { %v2643_v44 = vadd.f32 %v2627_v40, %v2611_v5  ;;  %v7891_v4 = vmul.f32 2.5, %v1970_v3  ;;  %v3531_v52 = vmul.f32 %v7705_v12, %v7769_v46  ;;  %v7895_v8 = vmul.f32 2.5, %v1971_v42  ;;  %v9506_v18 = vld [vmem:[#allocation279_spill] sm:$0xff]  ;;  %v9507_v46 = vld [vmem:[#allocation298_spill] sm:$0xff] }
 0x3df   :  { %v7897_v57 = vmul.f32 1.25, %v2774_v34  ;;  %v7899_v59 = vmul.f32 1.25, %v2775_v36  ;;  %v4814_v24 = vor.u32 %v4944_v53, %v4813_v7  ;;  %v2658_v47 = vmul.f32 1.25, %v2642_v0  ;;  %v9508_v36 = vld [vmem:[#allocation281_spill] sm:$0xff] }
 0x3e0   :  { %v2659_v32 = vmul.f32 1.25, %v2643_v44  ;;  %v2690_v56 = vmul.f32 %v7891_v4, %v1938_v41  ;;  %v1408_v27 = vsub.f32 %v9506_v18, %v9505_v58  ;;  %v2691_v38 = vmul.f32 %v7895_v8, %v1939_v26 }
 0x3e1   :  { %v3546_v5 = vmul.f32 %v7897_v57, %v9501_v21  ;;  %v3547_v12 = vmul.f32 %v7899_v59, %v9503_v28  ;;  %3226 = vmatmul.bf16.gmra.mxu2 %v4814_v24  ;;  %v1409_v29 = vsub.f32 %v9508_v36, %v9507_v46  ;;  %v3260_v53 = vmul.f32 %v2658_v47, %v1842_v54 }
 0x3e2   :  { %v3261_v0 = vmul.f32 %v2659_v32, %v1843_v25  ;;  %v2706_v30 = vadd.f32 %v2690_v56, %v2674_v16  ;;  %v3385_v50 = vmul.f32 %v9490_v22, %v2658_v47  ;;  %v2707_v40 = vadd.f32 %v2691_v38, %v2675_v55 }
 0x3e3   :  { %v3386_v3 = vmul.f32 %v9492_v51, %v2659_v32  ;;  %v3562_v7 = vadd.f32 %v3546_v5, %v3530_v10  ;;  %v3563_v42 = vadd.f32 %v3547_v12, %v3531_v52  ;;  %v3276_v34 = vadd.f32 %v3260_v53, %v3244_v49  ;;  %v9509_v10 = vld [vmem:[#allocation282_spill] sm:$0xff]  ;;  %v9510_v52 = vld [vmem:[#allocation283_spill] sm:$0xff]  ;;  %v9511_v5 = vld [vmem:[#allocation289_spill] sm:$0xff] }
 0x3e4   :  { %v3277_v44 = vadd.f32 %v3261_v0, %v3245_v63  ;;  %v7913_v21 = vmul.f32 1.25, %v2706_v30  ;;  %v7916_v28 = vadd.f32 1.0, %v9290_v20  ;;  %v7918_v24 = vmul.f32 1.25, %v2707_v40  ;;  %v9512_v12 = vld [vmem:[#allocation286_spill] sm:$0xff]  ;;  %v9514_v0 = vld [vmem:[#allocation287_spill] sm:$0xff]  ;;  %v9516_v40 = vld [vmem:[#allocation284_spill] sm:$0xff] }
 0x3e5   :  { %v3578_v58 = vmul.f32 0.8333333, %v3562_v7  ;;  %v3579_v54 = vmul.f32 0.8333333, %v3563_v42  ;;  %v7921_v25 = vadd.f32 1.0, %v9291_v45  ;;  %v2608_v46 = vmul.f32 %v9512_v12, %v9511_v5  ;;  %v9513_v53 = vld [vmem:[#allocation290_spill] sm:$0xff] }
 0x3e6   :  { %v3292_v22 = vmul.f32 0.8333333, %v3276_v34  ;;  %v3293_v16 = vmul.f32 0.8333333, %v3277_v44  ;;  %v3401_v51 = vmul.f32 %v7913_v21, %v1938_v41  ;;  %v1824_v49 = vmul.f32 %v7916_v28, %v9509_v10  ;;  %v9517_v44 = vld [vmem:[#allocation297_spill] sm:$0xff] }
 0x3e7   :  { %v3402_v63 = vmul.f32 %v7918_v24, %v1939_v26  ;;  %v3591_v55 = vpack.c.bf16 %v3579_v54, %v3578_v58  ;;  %v1825_v47 = vmul.f32 %v7921_v25, %v9510_v52  ;;  %v1840_v32 = vsub.f32 -0.2, %v9290_v20  ;;  %v9515_v26 = vld [vmem:[#allocation296_spill] sm:$0xff]  ;;  %v9518_v58 = vld [vmem:[#allocation285_spill] sm:$0xff] }
 0x3e8   :  { %v3307_v56 = vpack.c.bf16 %v3293_v16, %v3292_v22  ;;  %v3417_v18 = vadd.f32 %v3401_v51, %v3385_v50  ;;  %v1841_v38 = vsub.f32 -0.2, %v9291_v45  ;;  %v2609_v30 = vmul.f32 %v9514_v0, %v9513_v53  ;;  %v9521_v53 = vld [vmem:[#allocation299_spill] sm:$0xff] }
 0x3e9   :  { %v3418_v36 = vadd.f32 %v3402_v63, %v3386_v3  ;;  %3632 = vmatpush.bf16.msrb.mxu2 %v3591_v55  ;;  %v1856_v41 = vmul.f32 %v1840_v32, %v1408_v27  ;;  %v3242_v7 = vmul.f32 %v9516_v40, %v9515_v26  ;;  %v3243_v50 = vmul.f32 %v9518_v58, %v9517_v44 }
 0x3ea   :  { %3352 = vmatpush.bf16.msrb.mxu3 %v3307_v56  ;;  %v3433_v42 = vmul.f32 0.8333333, %v3417_v18  ;;  %v1857_v34 = vmul.f32 %v1841_v38, %v1409_v29  ;;  %v7940_v54 = vadd.f32 0.6, %v9290_v20  ;;  %v7943_v3 = vadd.f32 0.6, %v9291_v45 }
 0x3eb   :  { %v3434_v22 = vmul.f32 0.8333333, %v3418_v36  ;;  %v1872_v16 = vadd.f32 %v1856_v41, %v1824_v49  ;;  %v1936_v51 = vsub.f32 0.2, %v9290_v20  ;;  %v1937_v55 = vsub.f32 0.2, %v9291_v45 }
 0x3ec   :  { %9519 = vst [vmem:[#allocation59_spill] sm:$0xff] %v7940_v54  ;;  %v1873_v10 = vadd.f32 %v1857_v34, %v1825_v47  ;;  %v1920_v63 = vmul.f32 %v7940_v54, %v1408_v27  ;;  %v2740_v52 = vmul.f32 %v7796_v43, %v7821_v62  ;;  %v1921_v5 = vmul.f32 %v7943_v3, %v1409_v29  ;;  %v9522_v41 = vld [vmem:[#allocation301_spill] sm:$0xff]  ;;  %v9523_v47 = vld [vmem:[#allocation222_spill] sm:$0xff] }
 0x3ed   :  { %9520 = vst [vmem:[#allocation57_spill] sm:$0xff] %v7943_v3  ;;  %v3448_v56 = vpack.c.bf16 %v3434_v22, %v3433_v42  ;;  %v1888_v18 = vmul.f32 2.5, %v1872_v16  ;;  %v1952_v36 = vmul.f32 %v1936_v51, %v9521_v53  ;;  %v1953_v26 = vmul.f32 %v1937_v55, %v9522_v41  ;;  %v9524_v34 = vld [vmem:[#allocation229_spill] sm:$0xff]  ;;  %v9525_v42 = vld [vmem:[#allocation223_spill] sm:$0xff]  ;;  %v9526_v22 = vld [vmem:[#allocation230_spill] sm:$0xff] }
 0x3ee   :  { %v1889_v49 = vmul.f32 2.5, %v1873_v10  ;;  %v2741_v40 = vmul.f32 %v7799_v33, %v7823_v9  ;;  %v2756_v27 = vmul.f32 %v9524_v34, %v9523_v47  ;;  %v2757_v16 = vmul.f32 %v9526_v22, %v9525_v42 }
 0x3ef   :  { %3493 = vmatpush.bf16.msrb.mxu1 %v3448_v56  ;;  %v2624_v44 = vmul.f32 %v1888_v18, %v1840_v32  ;;  %v1968_v58 = vadd.f32 %v1952_v36, %v1920_v63  ;;  %v2672_v62 = vmul.f32 %v7916_v28, %v1888_v18  ;;  %v1969_v20 = vadd.f32 %v1953_v26, %v1921_v5 }
 0x3f0   :  { %v2625_v29 = vmul.f32 %v1889_v49, %v1841_v38  ;;  %v2673_v10 = vmul.f32 %v7921_v25, %v1889_v49  ;;  %v2772_v53 = vadd.f32 %v2756_v27, %v2740_v52  ;;  %v2773_v9 = vadd.f32 %v2757_v16, %v2741_v40 }
 0x3f1   :  { %v2640_v41 = vadd.f32 %v2624_v44, %v2608_v46  ;;  %v7961_v45 = vmul.f32 2.5, %v1968_v58  ;;  %v3528_v34 = vmul.f32 %v7774_v35, %v7847_v37  ;;  %v7965_v33 = vmul.f32 2.5, %v1969_v20  ;;  %v9528_v46 = vld [vmem:[#allocation46_spill] sm:$0xff]  ;;  %v9529_v35 = vld [vmem:[#allocation47_spill] sm:$0xff] }
 0x3f2   :  { %v2641_v56 = vadd.f32 %v2625_v29, %v2609_v30  ;;  %v7967_v63 = vmul.f32 1.25, %v2772_v53  ;;  %v3529_v18 = vmul.f32 %v7779_v19, %v7849_v60  ;;  %v7972_v49 = vmul.f32 1.25, %v2773_v9 }
 0x3f3   :  { %v2656_v36 = vmul.f32 1.25, %v2640_v41  ;;  %v2688_v5 = vmul.f32 %v7961_v45, %v1936_v51  ;;  %v3711_v52 = vadd.f32 %v9528_v46, %v7622_v11  ;;  %v2689_v40 = vmul.f32 %v7965_v33, %v1937_v55  ;;  %v9532_v46 = vld [vmem:[#allocation150_spill] sm:$0xff] }
 0x3f4   :  { %9527 = vst [vmem:[#allocation62_spill] sm:$0xff] %v7972_v49  ;;  %v2657_v26 = vmul.f32 1.25, %v2641_v56  ;;  %v3544_v20 = vmul.f32 %v7967_v63, %v9523_v47  ;;  %v3712_v37 = vadd.f32 %v9529_v35, %v7625_v31  ;;  %v3545_v60 = vmul.f32 %v7972_v49, %v9525_v42  ;;  %v9530_v42 = vld [vmem:[#allocation22_spill] sm:$0xff] }
 0x3f5   :  { %v3258_v30 = vmul.f32 %v2656_v36, %v1840_v32  ;;  %v2704_v27 = vadd.f32 %v2688_v5, %v2672_v62  ;;  %v3383_v19 = vmul.f32 %v9512_v12, %v2656_v36  ;;  %v2705_v58 = vadd.f32 %v2689_v40, %v2673_v10 }
 0x3f6   :  { %v3259_v44 = vmul.f32 %v2657_v26, %v1841_v38  ;;  %v3384_v11 = vmul.f32 %v9514_v0, %v2657_v26  ;;  %v3560_v22 = vadd.f32 %v3544_v20, %v3528_v34  ;;  %v3561_v53 = vadd.f32 %v3545_v60, %v3529_v18  ;;  %v9533_v20 = vld [vmem:[#allocation165_spill] sm:$0xff]  ;;  %v9536_v60 = vld [vmem:[#allocation270_spill] sm:$0xff] }
 0x3f7   :  { %v3274_v16 = vadd.f32 %v3258_v30, %v3242_v7  ;;  %v7985_v29 = vmul.f32 1.25, %v2704_v27  ;;  %v3727_v47 = vmul.f32 0.8333333, %v3711_v52  ;;  %v7987_v9 = vmul.f32 1.25, %v2705_v58  ;;  %v9531_v7 = vld [vmem:[#allocation27_spill] sm:$0xff] }
 0x3f8   :  { %v3275_v41 = vadd.f32 %v3259_v44, %v3243_v50  ;;  %v3576_v31 = vmul.f32 0.8333333, %v3560_v22  ;;  %v3728_v32 = vmul.f32 0.8333333, %v3712_v37  ;;  %v3577_v56 = vmul.f32 0.8333333, %v3561_v53 }
 0x3f9   :  { %v3290_v62 = vmul.f32 0.8333333, %v3274_v16  ;;  %v3399_v12 = vmul.f32 %v7985_v29, %v1936_v51  ;;  %v2334_v38 = vsub.f32 1.8, %v9530_v42  ;;  %v3400_v0 = vmul.f32 %v7987_v9, %v1937_v55  ;;  %v9534_v55 = vld [vmem:[#allocation170_spill] sm:$0xff]  ;;  %v9535_v27 = vld [vmem:[#allocation263_spill] sm:$0xff] }
 0x3fa   :  { %v3291_v10 = vmul.f32 0.8333333, %v3275_v41  ;;  %v3736_v34 = vpack.c.bf16 %v3728_v32, %v3727_v47  ;;  %v2335_v36 = vsub.f32 1.8, %v9531_v7  ;;  %v3590_v18 = vpack.c.bf16 %v3577_v56, %v3576_v31  ;;  %v9537_v44 = vld [vmem:[#allocation264_spill] sm:$0xff]  ;;  %v9538_v58 = vld [vmem:[#allocation271_spill] sm:$0xff] }
 0x3fb   :  { %v3415_v5 = vadd.f32 %v3399_v12, %v3383_v19  ;;  %v2350_v50 = vmul.f32 %v2334_v38, %v9532_v46  ;;  %v2738_v52 = vmul.f32 %v7868_v1, %v7891_v4  ;;  %v3416_v40 = vadd.f32 %v3400_v0, %v3384_v11  ;;  %v9539_v4 = vld [vmem:[#allocation171_spill] sm:$0xff]  ;;  %v9541_v0 = vld [vmem:[#allocation80_spill] sm:$0xff] }
 0x3fc   :  { %v3306_v26 = vpack.c.bf16 %v3291_v10, %v3290_v62  ;;  %v2351_v51 = vmul.f32 %v2335_v36, %v9533_v20  ;;  %v2739_v35 = vmul.f32 %v7873_v61, %v7895_v8  ;;  %3633 = vmatpush.bf16.msrb.mxu2 %v3590_v18  ;;  %v2754_v19 = vmul.f32 %v9536_v60, %v9535_v27  ;;  %v9540_v10 = vld [vmem:[#allocation72_spill] sm:$0xff] }
 0x3fd   :  { %v3431_v37 = vmul.f32 0.8333333, %v3415_v5  ;;  %v2366_v30 = vadd.f32 %v2350_v50, %v9534_v55  ;;  %v2755_v22 = vmul.f32 %v9538_v58, %v9537_v44  ;;  %v3432_v16 = vmul.f32 0.8333333, %v3416_v40  ;;  %v9545_v5 = vld [vmem:[#allocation81_spill] sm:$0xff]  ;;  %v9546_v50 = vld [vmem:[#allocation20_spill] sm:$0xff] }
 0x3fe   :  { %3353 = vmatpush.bf16.msrb.mxu3 %v3306_v26  ;;  %v2367_v53 = vadd.f32 %v2351_v51, %v9539_v4  ;;  %v3526_v11 = vmul.f32 %v7842_v6, %v7913_v21  ;;  %v3527_v8 = vmul.f32 %v7845_v39, %v7918_v24  ;;  %v2770_v41 = vadd.f32 %v2754_v19, %v2738_v52  ;;  %v9548_v26 = vld [vmem:[#allocation172_spill] sm:$0xff]  ;;  %v9549_v55 = vld [vmem:[#allocation191_spill] sm:$0xff]  ;;  %v9550_v19 = vld [vmem:[#allocation66_spill] sm:$0xff] }
 0x3ff   :  { %v8009_v47 = vmul.f32 2.5, %v2366_v30  ;;  %v2771_v31 = vadd.f32 %v2755_v22, %v2739_v35  ;;  %v3677_v32 = vmul.f32 %v7441_v48, %v7679_v17  ;;  %v3447_v62 = vpack.c.bf16 %v3432_v16, %v3431_v37  ;;  %v9551_v22 = vld [vmem:[#allocation67_spill] sm:$0xff] }
 0x400   :  { %v8013_v12 = vmul.f32 2.5, %v2367_v53  ;;  %v3678_v56 = vmul.f32 %v7444_v15, %v7683_v13  ;;  %v3693_v6 = vmul.f32 %v9541_v0, %v9540_v10  ;;  %v8020_v39 = vmul.f32 1.25, %v2770_v41  ;;  %v9547_v15 = vld [vmem:[#allocation21_spill] sm:$0xff]  ;;  %v9553_v10 = vld [vmem:[#allocation74_spill] sm:$0xff] }
 0x401   :  { %v2958_v21 = vmul.f32 %v8009_v47, %v2334_v38  ;;  %v8022_v24 = vmul.f32 1.25, %v2771_v31  ;;  %3494 = vmatpush.bf16.msrb.mxu1 %v3447_v62  ;;  %v8028_v52 = vadd.f32 -1.0, %v9546_v50  ;;  %v8031_v13 = vadd.f32 -1.0, %v9547_v15 }
 0x402   :  { %3769 = vmatpush.bf16.msra.mxu3 %v3736_v34  ;;  %9542 = vst [vmem:[#allocation54_spill] sm:$0xff] %v8020_v39  ;;  %v9544_v34 = vld [vmem:[#allocation73_spill] sm:$0xff]  ;;  %v2959_v48 = vmul.f32 %v8013_v12, %v2335_v36  ;;  %v3709_v17 = vadd.f32 %v3693_v6, %v3677_v32  ;;  %v3542_v51 = vmul.f32 %v8020_v39, %v9535_v27  ;;  %v8051_v62 = vsub.f32 1.8, %v9547_v15 }
 0x403   :  { %9543 = vst [vmem:[#allocation63_spill] sm:$0xff] %v8022_v24  ;;  %v3694_v18 = vmul.f32 %v9545_v5, %v9544_v34  ;;  %v2974_v40 = vadd.f32 %v2958_v21, %v9548_v26  ;;  %v3543_v35 = vmul.f32 %v8022_v24, %v9537_v44  ;;  %v2316_v58 = vmul.f32 %v8028_v52, %v9550_v19  ;;  %v4825_v32 = vld [vmem:[#allocation2 + $0x8] sm:$0xf] }
 0x404   :  { %v2975_v30 = vadd.f32 %v2959_v48, %v9549_v55  ;;  %v3725_v60 = vmul.f32 0.8333333, %v3709_v17  ;;  %v2317_v16 = vmul.f32 %v8031_v13, %v9551_v22  ;;  %v3558_v53 = vadd.f32 %v3542_v51, %v3526_v11  ;;  %v4951_v11 = vld [vmem:[#allocation2 + $0x28] sm:$0xf0]  ;;  %v9555_v17 = vld [vmem:[#allocation211_spill] sm:$0xff]  ;;  %v9559_v22 = vld [vmem:[#allocation82_spill] sm:$0xff] }
 0x405   :  { %v3710_v37 = vadd.f32 %v3694_v18, %v3678_v56  ;;  %v8043_v4 = vmul.f32 1.25, %v2974_v40  ;;  %v3559_v41 = vadd.f32 %v3543_v35, %v3527_v8  ;;  %v8048_v44 = vsub.f32 1.8, %v9546_v50  ;;  %v9552_v56 = vld [vmem:[#allocation78_spill] sm:$0xff]  ;;  %v9556_v40 = vld [vmem:[#allocation79_spill] sm:$0xff] }
 0x406   :  { %v8045_v27 = vmul.f32 1.25, %v2975_v30  ;;  %v2940_v0 = vmul.f32 %v9553_v10, %v9552_v56  ;;  %v3574_v21 = vmul.f32 0.8333333, %v3558_v53  ;;  %v9554_v18 = vld [vmem:[#allocation210_spill] sm:$0xff]  ;;  %v2349_v26 = vmul.f32 %v8051_v62, %v9555_v17  ;;  %v9557_v51 = vld [vmem:[#allocation75_spill] sm:$0xff]  ;;  %v9558_v30 = vld [vmem:[#allocation48_spill] sm:$0xff] }
 0x407   :  { %v3726_v31 = vmul.f32 0.8333333, %v3710_v37  ;;  %v3977_v6 = vmul.f32 %v8043_v4, %v2334_v38  ;;  %v3575_v34 = vmul.f32 0.8333333, %v3559_v41  ;;  %v2348_v48 = vmul.f32 %v8048_v44, %v9554_v18  ;;  %v4841_v37 = vld [vmem:[#allocation2 + $0xc] sm:$0xf] }
 0x408   :  { %v3978_v8 = vmul.f32 %v8045_v27, %v2335_v36  ;;  %v2941_v35 = vmul.f32 %v9557_v51, %v9556_v40  ;;  %v4955_v55 = vld [vmem:[#allocation2 + $0x2c] sm:$0xf0]  ;;  %v9561_v41 = vld [vmem:[#allocation83_spill] sm:$0xff]  ;;  %v9563_v56 = vld [vmem:[#allocation49_spill] sm:$0xff]  ;;  %v2365_v1 = vadd.f32 %v2349_v26, %v2317_v16  ;;  %v4826_v39 = vor.u32 %v4951_v11, %v4825_v32 }
 0x409   :  { %v3735_v5 = vpack.c.bf16 %v3726_v31, %v3725_v60  ;;  %v3993_v19 = vadd.f32 %v3977_v6, %v9558_v30  ;;  %v3589_v38 = vpack.c.bf16 %v3575_v34, %v3574_v21  ;;  %v9560_v60 = vld [vmem:[#allocation70_spill] sm:$0xff]  ;;  %v9562_v36 = vld [vmem:[#allocation71_spill] sm:$0xff]  ;;  %v2364_v24 = vadd.f32 %v2348_v48, %v2316_v58  ;;  %v9564_v30 = vld [vmem:[#allocation304_spill] sm:$0xff] }
 0x40a   :  { %v3959_v53 = vmul.f32 %v9560_v60, %v9559_v22  ;;  %v3960_v31 = vmul.f32 %v9562_v36, %v9561_v41  ;;  %v3994_v61 = vadd.f32 %v3978_v8, %v9563_v56  ;;  %v4842_v40 = vor.u32 %v4955_v55, %v4841_v37  ;;  %3354 = vmatmul.bf16.vlgmr.msrb.gmra.mxu3 %v4826_v39  ;;  %v9565_v8 = vld [vmem:[#allocation311_spill] sm:$0xff]  ;;  %v9566_v16 = vld [vmem:[#allocation305_spill] sm:$0xff]  ;;  %v9567_v32 = vld [vmem:[#allocation312_spill] sm:$0xff] }
 0x40b   :  { %3770 = vmatpush.bf16.msra.mxu3 %v3735_v5  ;;  %v4009_v49 = vmul.f32 0.8333333, %v3993_v19  ;;  %3634 = vmatpush.bf16.msrb.mxu2 %v3589_v38  ;;  %v2736_v43 = vmul.f32 %v7940_v54, %v7961_v45  ;;  %v2737_v6 = vmul.f32 %v7943_v3, %v7965_v33  ;;  %v8073_v34 = vmul.f32 2.5, %v2364_v24  ;;  %v9568_v37 = vld [vmem:[#allocation36_spill] sm:$0xff]  ;;  %v9569_v19 = vld [vmem:[#allocation106_spill] sm:$0xff]  ;;  %v9571_v38 = vld [vmem:[#allocation107_spill] sm:$0xff] }
 0x40c   :  { %v4010_v21 = vmul.f32 0.8333333, %v3994_v61  ;;  %v8075_v5 = vmul.f32 2.5, %v2365_v1  ;;  %v2752_v58 = vmul.f32 %v9565_v8, %v9564_v30  ;;  %3495 = vmatmul.bf16.vlgmr.msrb.gmra.mxu1 %v4842_v40  ;;  %v2753_v11 = vmul.f32 %v9567_v32, %v9566_v16  ;;  %v9574_v22 = vld [vmem:[#allocation18_spill] sm:$0xff]  ;;  %v9576_v56 = vld [vmem:[#allocation19_spill] sm:$0xff]  ;;  %v9605_v3 = vld [vmem:[#allocation145_spill] sm:$0xff] }
 0x40d   :  { %v3524_v48 = vmul.f32 %v7916_v28, %v7985_v29  ;;  %v3525_v45 = vmul.f32 %v7921_v25, %v7987_v9  ;;  %v3675_v33 = vmul.f32 %v7554_v14, %v7753_v2  ;;  %v2956_v1 = vmul.f32 %v8073_v34, %v8048_v44  ;;  %v9570_v28 = vld [vmem:[#allocation114_spill] sm:$0xff]  ;;  %v9572_v25 = vld [vmem:[#allocation115_spill] sm:$0xff] }
 0x40e   :  { %v4018_v61 = vpack.c.bf16 %v4010_v21, %v4009_v49  ;;  %v2957_v39 = vmul.f32 %v8075_v5, %v8051_v62  ;;  %v2768_v24 = vadd.f32 %v2752_v58, %v2736_v43  ;;  %v2769_v26 = vadd.f32 %v2753_v11, %v2737_v6  ;;  %v9578_v11 = vld [vmem:[#allocation101_spill] sm:$0xff] }
 0x40f   :  { %v3676_v55 = vmul.f32 %v9568_v37, %v7758_v23  ;;  %v3691_v29 = vmul.f32 %v9570_v28, %v9569_v19  ;;  %v3692_v9 = vmul.f32 %v9572_v25, %v9571_v38  ;;  %v2972_v14 = vadd.f32 %v2956_v1, %v2940_v0  ;;  %v9581_v25 = vld [vmem:[#allocation232_spill] sm:$0xff] }
 0x410   :  { %4051 = vmatpush.bf16.msra.mxu1 %v4018_v61  ;;  %v2973_v2 = vadd.f32 %v2957_v39, %v2941_v35  ;;  %v8097_v49 = vmul.f32 1.25, %v2768_v24  ;;  %v8100_v60 = vadd.f32 -1.0, %v9574_v22  ;;  %v8102_v41 = vmul.f32 1.25, %v2769_v26  ;;  %v9577_v35 = vld [vmem:[#allocation100_spill] sm:$0xff] }
 0x411   :  { %v3707_v43 = vadd.f32 %v3691_v29, %v3675_v33  ;;  %v3708_v36 = vadd.f32 %v3692_v9, %v3676_v55  ;;  %v8105_v23 = vadd.f32 -1.0, %v9576_v56  ;;  %v8107_v40 = vmul.f32 1.25, %v2972_v14  ;;  %v9579_v55 = vld [vmem:[#allocation112_spill] sm:$0xff] }
 0x412   :  { %9573 = vst [vmem:[#allocation55_spill] sm:$0xff] %v8097_v49  ;;  %v8109_v6 = vmul.f32 1.25, %v2973_v2  ;;  %v3540_v0 = vmul.f32 %v8097_v49, %v9564_v30  ;;  %v2314_v21 = vmul.f32 %v8100_v60, %v9577_v35  ;;  %v3541_v8 = vmul.f32 %v8102_v41, %v9566_v16  ;;  %v9580_v16 = vld [vmem:[#allocation108_spill] sm:$0xff] }
 0x413   :  { %9575 = vst [vmem:[#allocation64_spill] sm:$0xff] %v8102_v41  ;;  %v3723_v58 = vmul.f32 0.8333333, %v3707_v43  ;;  %v3724_v32 = vmul.f32 0.8333333, %v3708_v36  ;;  %v2315_v33 = vmul.f32 %v8105_v23, %v9578_v11  ;;  %v3975_v61 = vmul.f32 %v8107_v40, %v8048_v44  ;;  %v9582_v44 = vld [vmem:[#allocation251_spill] sm:$0xff] }
 0x414   :  { %v3976_v1 = vmul.f32 %v8109_v6, %v8051_v62  ;;  %v3556_v39 = vadd.f32 %v3540_v0, %v3524_v48  ;;  %v2330_v30 = vsub.f32 1.8, %v9574_v22  ;;  %v3557_v24 = vadd.f32 %v3541_v8, %v3525_v45  ;;  %v9583_v62 = vld [vmem:[#allocation113_spill] sm:$0xff]  ;;  %v9584_v48 = vld [vmem:[#allocation111_spill] sm:$0xff]  ;;  %v9585_v36 = vld [vmem:[#allocation116_spill] sm:$0xff] }
 0x415   :  { %v3734_v26 = vpack.c.bf16 %v3724_v32, %v3723_v58  ;;  %v2331_v37 = vsub.f32 1.8, %v9576_v56  ;;  %v2938_v19 = vmul.f32 %v9580_v16, %v9579_v55  ;;  %v3991_v28 = vadd.f32 %v3975_v61, %v3959_v53  ;;  %v9586_v45 = vld [vmem:[#allocation104_spill] sm:$0xff]  ;;  %v9587_v32 = vld [vmem:[#allocation118_spill] sm:$0xff]  ;;  %v9588_v11 = vld [vmem:[#allocation105_spill] sm:$0xff] }
 0x416   :  { %v3992_v29 = vadd.f32 %v3976_v1, %v3960_v31  ;;  %v3572_v38 = vmul.f32 0.8333333, %v3556_v39  ;;  %v2346_v9 = vmul.f32 %v2330_v30, %v9581_v25  ;;  %v3573_v14 = vmul.f32 0.8333333, %v3557_v24  ;;  %v9606_v41 = vld [vmem:[#allocation154_spill] sm:$0xff] }
 0x417   :  { %3771 = vmatpush.bf16.msra.mxu3 %v3734_v26  ;;  %v2347_v2 = vmul.f32 %v2331_v37, %v9582_v44  ;;  %v2939_v43 = vmul.f32 %v9584_v48, %v9583_v62  ;;  %v3957_v0 = vmul.f32 %v9586_v45, %v9585_v36  ;;  %v4007_v35 = vmul.f32 0.8333333, %v3991_v28 }
 0x418   :  { %v4008_v8 = vmul.f32 0.8333333, %v3992_v29  ;;  %v2362_v58 = vadd.f32 %v2346_v9, %v2314_v21  ;;  %v3958_v53 = vmul.f32 %v9588_v11, %v9587_v32  ;;  %v3588_v31 = vpack.c.bf16 %v3573_v14, %v3572_v38  ;;  %v9590_v14 = vld [vmem:[#allocation128_spill] sm:$0xff] }
 0x419   :  { %v2363_v61 = vadd.f32 %v2347_v2, %v2315_v33  ;;  %v4789_v1 = vadd.f32 -1.4, %v9530_v42  ;;  %v4790_v39 = vadd.f32 -1.4, %v9531_v7  ;;  %v2430_v55 = vsub.f32 2.2, %v9530_v42 }
 0x41a   :  { %v4017_v24 = vpack.c.bf16 %v4008_v8, %v4007_v35  ;;  %v8137_v26 = vmul.f32 2.5, %v2362_v58  ;;  %v2431_v62 = vsub.f32 2.2, %v9531_v7  ;;  %3635 = vmatpush.bf16.msrb.mxu2 %v3588_v31  ;;  %v9589_v33 = vld [vmem:[#allocation166_spill] sm:$0xff]  ;;  %v9593_v42 = vld [vmem:[#allocation129_spill] sm:$0xff]  ;;  %v9594_v35 = vld [vmem:[#allocation131_spill] sm:$0xff]  ;;  %v3690_v54 = vmul.f32 %v9606_v41, %v9605_v3 }
 0x41b   :  { %v8141_v28 = vmul.f32 2.5, %v2363_v61  ;;  %v2414_v21 = vmul.f32 %v4789_v1, %v9532_v46  ;;  %v2415_v29 = vmul.f32 %v4790_v39, %v9533_v20  ;;  %v3006_v38 = vmul.f32 %v9589_v33, %v8009_v47  ;;  %v9591_v2 = vld [vmem:[#allocation130_spill] sm:$0xff]  ;;  %v9596_v58 = vld [vmem:[#allocation168_spill] sm:$0xff]  ;;  %v9598_v47 = vld [vmem:[#allocation43_spill] sm:$0xff] }
 0x41c   :  { %4052 = vmatpush.bf16.msra.mxu1 %v4017_v24  ;;  %v2954_v9 = vmul.f32 %v8137_v26, %v2330_v30  ;;  %v9592_v36 = vsub.f32 %v9590_v14, %v9591_v2  ;;  %v9595_v7 = vsub.f32 %v9593_v42, %v9594_v35  ;;  %v3007_v32 = vmul.f32 %v9596_v58, %v8013_v12  ;;  %v9597_v20 = vld [vmem:[#allocation42_spill] sm:$0xff]  ;;  %v9599_v61 = vld [vmem:[#allocation52_spill] sm:$0xff]  ;;  %v9601_v2 = vld [vmem:[#allocation53_spill] sm:$0xff] }
 0x41d   :  { %v2955_v46 = vmul.f32 %v8141_v28, %v2331_v37  ;;  %v4102_v11 = vmul.f32 %v9597_v20, %v8043_v4  ;;  %v4103_v31 = vmul.f32 %v9598_v47, %v8045_v27  ;;  %v9600_v1 = vld [vmem:[#allocation30_spill] sm:$0xff]  ;;  %v9604_v12 = vld [vmem:[#allocation153_spill] sm:$0xff]  ;;  %v9607_v4 = vld [vmem:[#allocation16_spill] sm:$0xff]  ;;  %vm1308_vm10 = vcmp.ge.f32.partialorder %v9546_v50, 2.2 }
 0x41e   :  { %v2446_v45 = vmul.f32 %v2430_v55, %v9592_v36  ;;  %v2447_v8 = vmul.f32 %v2431_v62, %v9595_v7  ;;  %v3673_v39 = vmul.f32 %v9600_v1, %v9599_v61  ;;  %v2970_v24 = vadd.f32 %v2954_v9, %v2938_v19  ;;  %v9602_v36 = vld [vmem:[#allocation39_spill] sm:$0xff]  ;;  %v9603_v7 = vld [vmem:[#allocation144_spill] sm:$0xff]  ;;  %v9609_v19 = vld [vmem:[#allocation17_spill] sm:$0xff] }
 0x41f   :  { %v3674_v42 = vmul.f32 %v9602_v36, %v9601_v2  ;;  %v2971_v35 = vadd.f32 %v2955_v46, %v2939_v43  ;;  %v3689_v58 = vmul.f32 %v9604_v12, %v9603_v7  ;;  %v8170_v20 = vadd.f32 -1.0, %v9607_v4  ;;  %v9612_v1 = vld [vmem:[#allocation139_spill] sm:$0xff] }
 0x420   :  { %v2462_v33 = vadd.f32 %v2446_v45, %v2414_v21  ;;  %v2463_v14 = vadd.f32 %v2447_v8, %v2415_v29  ;;  %v8172_v27 = vmul.f32 1.25, %v2970_v24  ;;  %v8175_v21 = vadd.f32 -1.0, %v9609_v19  ;;  %v9611_v45 = vld [vmem:[#allocation138_spill] sm:$0xff] }
 0x421   :  { %9608 = vst [vmem:[#allocation65_spill] sm:$0xff] %v8170_v20  ;;  %v8177_v29 = vmul.f32 1.25, %v2971_v35  ;;  %v3705_v9 = vadd.f32 %v3689_v58, %v3673_v39  ;;  %v3706_v43 = vadd.f32 %v3690_v54, %v3674_v42  ;;  %v2312_v8 = vmul.f32 %v8170_v20, %v9611_v45  ;;  %v9613_v58 = vld [vmem:[#allocation252_spill] sm:$0xff] }
 0x422   :  { %v2478_v47 = vmul.f32 2.5, %v2462_v33  ;;  %v2479_v61 = vmul.f32 2.5, %v2463_v14  ;;  %9610 = vst [vmem:[#allocation94_spill] sm:$0xff] %v8175_v21  ;;  %v3973_v46 = vmul.f32 %v8172_v27, %v2330_v30  ;;  %v2313_v24 = vmul.f32 %v8175_v21, %v9612_v1 }
 0x423   :  { %v3974_v33 = vmul.f32 %v8177_v29, %v2331_v37  ;;  %v3721_v14 = vmul.f32 0.8333333, %v3705_v9  ;;  %v3722_v2 = vmul.f32 0.8333333, %v3706_v43  ;;  %v2328_v36 = vsub.f32 1.8, %v9607_v4 }
 0x424   :  { %v3022_v3 = vmul.f32 %v2478_v47, %v2430_v55  ;;  %v3023_v41 = vmul.f32 %v2479_v61, %v2431_v62  ;;  %v3989_v35 = vadd.f32 %v3973_v46, %v3957_v0  ;;  %v2329_v54 = vsub.f32 1.8, %v9609_v19  ;;  %v9614_v47 = vld [vmem:[#allocation151_spill] sm:$0xff]  ;;  %v9615_v61 = vld [vmem:[#allocation146_spill] sm:$0xff]  ;;  %v9616_v37 = vld [vmem:[#allocation253_spill] sm:$0xff] }
 0x425   :  { %v3990_v42 = vadd.f32 %v3974_v33, %v3958_v53  ;;  %v3733_v12 = vpack.c.bf16 %v3722_v2, %v3721_v14  ;;  %v2344_v30 = vmul.f32 %v2328_v36, %v9613_v58  ;;  %v2936_v45 = vmul.f32 %v9615_v61, %v9614_v47  ;;  %v9617_v0 = vld [vmem:[#allocation152_spill] sm:$0xff]  ;;  %v9619_v46 = vld [vmem:[#allocation155_spill] sm:$0xff]  ;;  %v9621_v2 = vld [vmem:[#allocation157_spill] sm:$0xff] }
 0x426   :  { %v3038_v7 = vadd.f32 %v3022_v3, %v3006_v38  ;;  %v3039_v39 = vadd.f32 %v3023_v41, %v3007_v32  ;;  %v4005_v49 = vmul.f32 0.8333333, %v3989_v35  ;;  %v2345_v9 = vmul.f32 %v2329_v54, %v9616_v37  ;;  %v9618_v38 = vld [vmem:[#allocation149_spill] sm:$0xff]  ;;  %v9620_v3 = vld [vmem:[#allocation142_spill] sm:$0xff]  ;;  %v9622_v58 = vld [vmem:[#allocation143_spill] sm:$0xff] }
 0x427   :  { %v4006_v43 = vmul.f32 0.8333333, %v3990_v42  ;;  %3772 = vmatpush.bf16.msra.mxu3 %v3733_v12  ;;  %v2360_v20 = vadd.f32 %v2344_v30, %v2312_v8  ;;  %v2937_v32 = vmul.f32 %v9618_v38, %v9617_v0  ;;  %v3955_v53 = vmul.f32 %v9620_v3, %v9619_v46 }
 0x428   :  { %v3054_v1 = vmul.f32 1.25, %v3038_v7  ;;  %v3055_v21 = vmul.f32 1.25, %v3039_v39  ;;  %v2361_v14 = vadd.f32 %v2345_v9, %v2313_v24  ;;  %v3956_v47 = vmul.f32 %v9622_v58, %v9621_v2  ;;  %v9625_v9 = vld [vmem:[#allocation207_spill] sm:$0xff]  ;;  %v4817_v2 = vld [vmem:[#allocation2 + $0x90] sm:$0xf] }
 0x429   :  { %v4016_v35 = vpack.c.bf16 %v4006_v43, %v4005_v49  ;;  %v8197_v7 = vmul.f32 2.5, %v2360_v20  ;;  %vm1309_vm11 = vcmp.ge.f32.partialorder %v9547_v15, 2.2  ;;  %v9623_v12 = vmov 0.0  }
 0x42a   :  { %v4118_v41 = vmul.f32 %v3054_v1, %v2430_v55  ;;  %v4119_v33 = vmul.f32 %v3055_v21, %v2431_v62  ;;  %v8201_v42 = vmul.f32 2.5, %v2361_v14  ;;  %v4627_v30 = vsel %vm1308_vm10, 1.0, %v9623_v12  ;;  %v9624_v21 = vld [vmem:[#allocation206_spill] sm:$0xff] }
 0x42b   :  { %4053 = vmatpush.bf16.msra.mxu1 %v4016_v35  ;;  %v2952_v55 = vmul.f32 %v8197_v7, %v2328_v36  ;;  %v4628_v62 = vsel %vm1309_vm11, 1.0, %v9623_v12  ;;  %v1516_v24 = vsub.f32 %v9624_v21, %v4627_v30  ;;  %v4787_v49 = vadd.f32 -1.4, %v9546_v50  ;;  %v4945_v35 = vld [vmem:[#allocation2 + $0xb0] sm:$0xf0] }
 0x42c   :  { %v4134_v8 = vadd.f32 %v4118_v41, %v4102_v11  ;;  %v4135_v39 = vadd.f32 %v4119_v33, %v4103_v31  ;;  %v2953_v1 = vmul.f32 %v8201_v42, %v2329_v54  ;;  %v1517_v11 = vsub.f32 %v9625_v9, %v4628_v62  ;;  %v9627_v21 = vld [vmem:[#allocation50_spill] sm:$0xff] }
 0x42d   :  { %v2968_v31 = vadd.f32 %v2952_v55, %v2936_v45  ;;  %v4788_v43 = vadd.f32 -1.4, %v9547_v15  ;;  %v2412_v0 = vmul.f32 %v4787_v49, %v9554_v18  ;;  %v2428_v46 = vsub.f32 2.2, %v9546_v50  ;;  %v9628_v49 = vld [vmem:[#allocation185_spill] sm:$0xff] }
 0x42e   :  { %v4150_v20 = vmul.f32 0.8333333, %v4134_v8  ;;  %v4151_v58 = vmul.f32 0.8333333, %v4135_v39  ;;  %v2969_v41 = vadd.f32 %v2953_v1, %v2937_v32  ;;  %v2429_v33 = vsub.f32 2.2, %v9547_v15 }
 0x42f   :  { %v3004_v14 = vmul.f32 %v8028_v52, %v8073_v34  ;;  %v8218_v8 = vmul.f32 1.25, %v2968_v31  ;;  %v2413_v45 = vmul.f32 %v4788_v43, %v9555_v17  ;;  %v2444_v39 = vmul.f32 %v2428_v46, %v1516_v24  ;;  %v9626_v17 = vld [vmem:[#allocation60_spill] sm:$0xff]  ;;  %v9632_v1 = vld [vmem:[#allocation14_spill] sm:$0xff] }
 0x430   :  { %v8213_v3 = vpack.c.bf16 %v4151_v58, %v4150_v20  ;;  %v3005_v18 = vmul.f32 %v8031_v13, %v8075_v5  ;;  %v8224_v50 = vmul.f32 1.25, %v2969_v41  ;;  %v2445_v32 = vmul.f32 %v2429_v33, %v1517_v11  ;;  %v9629_v20 = vld [vmem:[#allocation194_spill] sm:$0xff] }
 0x431   :  { %v4100_v15 = vmul.f32 %v9553_v10, %v8107_v40  ;;  %v4101_v52 = vmul.f32 %v9557_v51, %v8109_v6  ;;  %v3971_v34 = vmul.f32 %v8218_v8, %v2328_v36  ;;  %v2460_v30 = vadd.f32 %v2444_v39, %v2412_v0  ;;  %v9630_v51 = vld [vmem:[#allocation186_spill] sm:$0xff]  ;;  %v9631_v6 = vld [vmem:[#allocation195_spill] sm:$0xff] }
 0x432   :  { %4987 = vmatpush.bf16.msra.mxu2 %v8213_v3  ;;  %v4818_v55 = vor.u32 %v4945_v35, %v4817_v2  ;;  %v3671_v62 = vmul.f32 %v9626_v17, %v7897_v57  ;;  %v3972_v13 = vmul.f32 %v8224_v50, %v2329_v54  ;;  %v2461_v5 = vadd.f32 %v2445_v32, %v2413_v45  ;;  %v9633_v54 = vld [vmem:[#allocation15_spill] sm:$0xff]  ;;  %v9635_v32 = vld [vmem:[#allocation180_spill] sm:$0xff] }
 0x433   :  { %v3672_v24 = vmul.f32 %v9627_v21, %v7899_v59  ;;  %v3687_v58 = vmul.f32 %v9629_v20, %v9628_v49  ;;  %v3987_v10 = vadd.f32 %v3971_v34, %v3955_v53  ;;  %v2476_v40 = vmul.f32 2.5, %v2460_v30  ;;  %v9634_v2 = vld [vmem:[#allocation179_spill] sm:$0xff]  ;;  %v9638_v49 = vld [vmem:[#allocation193_spill] sm:$0xff]  ;;  %v9639_v20 = vld [vmem:[#allocation190_spill] sm:$0xff] }
 0x434   :  { %3231 = vmatmul.bf16.gmra.mxu2 %v4818_v55  ;;  %v3688_v36 = vmul.f32 %v9631_v6, %v9630_v51  ;;  %v8241_v9 = vadd.f32 -1.0, %v9632_v1  ;;  %v3988_v11 = vadd.f32 %v3972_v13, %v3956_v47  ;;  %v2477_v57 = vmul.f32 2.5, %v2461_v5  ;;  %v9636_v5 = vld [vmem:[#allocation192_spill] sm:$0xff]  ;;  %v9637_v21 = vld [vmem:[#allocation187_spill] sm:$0xff] }
 0x435   :  { %v3703_v31 = vadd.f32 %v3687_v58, %v3671_v62  ;;  %v8244_v43 = vadd.f32 -1.0, %v9633_v54  ;;  %v4003_v0 = vmul.f32 0.8333333, %v3987_v10  ;;  %v3020_v59 = vmul.f32 %v2476_v40, %v2428_v46  ;;  %v9640_v51 = vld [vmem:[#allocation288_spill] sm:$0xff] }
 0x436   :  { %v3704_v41 = vadd.f32 %v3688_v36, %v3672_v24  ;;  %v2310_v53 = vmul.f32 %v8241_v9, %v9634_v2  ;;  %v4004_v35 = vmul.f32 0.8333333, %v3988_v11  ;;  %v3021_v45 = vmul.f32 %v2477_v57, %v2429_v33  ;;  %v9641_v36 = vld [vmem:[#allocation291_spill] sm:$0xff]  ;;  %v9642_v57 = vld [vmem:[#allocation196_spill] sm:$0xff] }
 0x437   :  { %v3719_v39 = vmul.f32 0.8333333, %v3703_v31  ;;  %v2311_v34 = vmul.f32 %v8244_v43, %v9635_v32  ;;  %v3036_v30 = vadd.f32 %v3020_v59, %v3004_v14  ;;  %v2326_v47 = vsub.f32 1.8, %v9632_v1  ;;  %v9643_v31 = vld [vmem:[#allocation183_spill] sm:$0xff] }
 0x438   :  { %v3720_v55 = vmul.f32 0.8333333, %v3704_v41  ;;  %v2327_v17 = vsub.f32 1.8, %v9633_v54  ;;  %v4015_v62 = vpack.c.bf16 %v4004_v35, %v4003_v0  ;;  %v3037_v13 = vadd.f32 %v3021_v45, %v3005_v18  ;;  %v9644_v41 = vld [vmem:[#allocation198_spill] sm:$0xff]  ;;  %v9645_v0 = vld [vmem:[#allocation184_spill] sm:$0xff] }
 0x439   :  { %v2934_v24 = vmul.f32 %v9637_v21, %v9636_v5  ;;  %v2935_v58 = vmul.f32 %v9639_v20, %v9638_v49  ;;  %v3052_v10 = vmul.f32 1.25, %v3036_v30  ;;  %v2342_v6 = vmul.f32 %v2326_v47, %v9640_v51  ;;  %v9646_v49 = vld [vmem:[#allocation212_spill] sm:$0xff] }
 0x43a   :  { %v3732_v40 = vpack.c.bf16 %v3720_v55, %v3719_v39  ;;  %v2343_v11 = vmul.f32 %v2327_v17, %v9641_v36  ;;  %4054 = vmatpush.bf16.msra.mxu1 %v4015_v62  ;;  %v3053_v14 = vmul.f32 1.25, %v3037_v13  ;;  %v3953_v59 = vmul.f32 %v9643_v31, %v9642_v57 }
 0x43b   :  { %v3954_v18 = vmul.f32 %v9645_v0, %v9644_v41  ;;  %vm1306_vm12 = vcmp.ge.f32.partialorder %v9574_v22, 2.2  ;;  %v4116_v2 = vmul.f32 %v3052_v10, %v2428_v46  ;;  %v2358_v35 = vadd.f32 %v2342_v6, %v2310_v53  ;;  %v9647_v10 = vld [vmem:[#allocation213_spill] sm:$0xff] }
 0x43c   :  { %3773 = vmatpush.bf16.msra.mxu3 %v3732_v40  ;;  %v2359_v45 = vadd.f32 %v2343_v11, %v2311_v34  ;;  %vm1307_vm13 = vcmp.ge.f32.partialorder %v9576_v56, 2.2  ;;  %v4117_v39 = vmul.f32 %v3053_v14, %v2429_v33  ;;  %v4625_v32 = vsel %vm1306_vm12, 1.0, %v9623_v12 }
 0x43d   :  { %v4626_v30 = vsel %vm1307_vm13, 1.0, %v9623_v12  ;;  %v4785_v55 = vadd.f32 -1.4, %v9574_v22  ;;  %v4132_v62 = vadd.f32 %v4116_v2, %v4100_v15  ;;  %v8267_v13 = vmul.f32 2.5, %v2358_v35 }
 0x43e   :  { %v8269_v5 = vmul.f32 2.5, %v2359_v45  ;;  %v1514_v57 = vsub.f32 %v9646_v49, %v4625_v32  ;;  %v4133_v46 = vadd.f32 %v4117_v39, %v4101_v52  ;;  %v1515_v53 = vsub.f32 %v9647_v10, %v4626_v30  ;;  %v9655_v49 = vld [vmem:[#allocation236_spill] sm:$0xff] }
 0x43f   :  { %v4786_v34 = vadd.f32 -1.4, %v9576_v56  ;;  %v2410_v33 = vmul.f32 %v4785_v55, %v9581_v25  ;;  %v4148_v40 = vmul.f32 0.8333333, %v4132_v62  ;;  %v2950_v6 = vmul.f32 %v8267_v13, %v2326_v47  ;;  %v9652_v55 = vld [vmem:[#allocation226_spill] sm:$0xff]  ;;  %v9653_v62 = vld [vmem:[#allocation235_spill] sm:$0xff] }
 0x440   :  { %v2951_v11 = vmul.f32 %v8269_v5, %v2327_v17  ;;  %v2426_v15 = vsub.f32 2.2, %v9574_v22  ;;  %v4149_v14 = vmul.f32 0.8333333, %v4133_v46  ;;  %v2427_v41 = vsub.f32 2.2, %v9576_v56 }
 0x441   :  { %v2411_v31 = vmul.f32 %v4786_v34, %v9582_v44  ;;  %v3002_v52 = vmul.f32 %v8100_v60, %v8137_v26  ;;  %v2966_v0 = vadd.f32 %v2950_v6, %v2934_v24  ;;  %v3003_v25 = vmul.f32 %v8105_v23, %v8141_v28  ;;  %v9649_v26 = vld [vmem:[#allocation61_spill] sm:$0xff]  ;;  %v9650_v28 = vld [vmem:[#allocation62_spill] sm:$0xff]  ;;  %v9656_v10 = vld [vmem:[#allocation12_spill] sm:$0xff] }
 0x442   :  { %v2967_v2 = vadd.f32 %v2951_v11, %v2935_v58  ;;  %v2442_v35 = vmul.f32 %v2426_v15, %v1514_v57  ;;  %v8284_v45 = vpack.c.bf16 %v4149_v14, %v4148_v40  ;;  %v2443_v39 = vmul.f32 %v2427_v41, %v1515_v53  ;;  %v9651_v58 = vld [vmem:[#allocation51_spill] sm:$0xff]  ;;  %v9657_v40 = vld [vmem:[#allocation13_spill] sm:$0xff] }
 0x443   :  { %v4098_v22 = vmul.f32 %v9580_v16, %v8172_v27  ;;  %v4099_v44 = vmul.f32 %v9584_v48, %v8177_v29  ;;  %v8290_v32 = vmul.f32 1.25, %v2966_v0  ;;  %v3669_v24 = vmul.f32 %v9649_v26, %v7967_v63  ;;  %v9654_v27 = vld [vmem:[#allocation227_spill] sm:$0xff]  ;;  %v9658_v0 = vld [vmem:[#allocation220_spill] sm:$0xff] }
 0x444   :  { %9648 = vst [vmem:[#allocation84_spill] sm:$0xff] %v8284_v45  ;;  %v8292_v56 = vmul.f32 1.25, %v2967_v2  ;;  %v2458_v60 = vadd.f32 %v2442_v35, %v2410_v33  ;;  %4988 = vmatpush.bf16.msra.mxu2 %v8284_v45  ;;  %v2459_v23 = vadd.f32 %v2443_v39, %v2411_v31  ;;  %v3670_v30 = vmul.f32 %v9651_v58, %v9650_v28 }
 0x445   :  { %v3685_v16 = vmul.f32 %v9653_v62, %v9652_v55  ;;  %v3686_v48 = vmul.f32 %v9655_v49, %v9654_v27  ;;  %v3969_v29 = vmul.f32 %v8290_v32, %v2326_v47  ;;  %v8306_v53 = vadd.f32 -1.0, %v9656_v10  ;;  %v9661_v55 = vld [vmem:[#allocation228_spill] sm:$0xff]  ;;  %v9662_v49 = vld [vmem:[#allocation33_spill] sm:$0xff] }
 0x446   :  { %v3970_v57 = vmul.f32 %v8292_v56, %v2327_v17  ;;  %v2474_v46 = vmul.f32 2.5, %v2458_v60  ;;  %v2475_v63 = vmul.f32 2.5, %v2459_v23  ;;  %v8309_v6 = vadd.f32 -1.0, %v9657_v40  ;;  %v9659_v17 = vld [vmem:[#allocation221_spill] sm:$0xff] }
 0x447   :  { %v3701_v34 = vadd.f32 %v3685_v16, %v3669_v24  ;;  %v3702_v33 = vadd.f32 %v3686_v48, %v3670_v30  ;;  %v3985_v11 = vadd.f32 %v3969_v29, %v3953_v59  ;;  %v2308_v2 = vmul.f32 %v8306_v53, %v9658_v0  ;;  %v9663_v29 = vld [vmem:[#allocation234_spill] sm:$0xff] }
 0x448   :  { %v3986_v14 = vadd.f32 %v3970_v57, %v3954_v18  ;;  %v3018_v31 = vmul.f32 %v2474_v46, %v2426_v15  ;;  %v3019_v35 = vmul.f32 %v2475_v63, %v2427_v41  ;;  %v2309_v60 = vmul.f32 %v8309_v6, %v9659_v17  ;;  %v9660_v18 = vld [vmem:[#allocation233_spill] sm:$0xff]  ;;  %v9664_v57 = vld [vmem:[#allocation231_spill] sm:$0xff] }
 0x449   :  { %v3717_v47 = vmul.f32 0.8333333, %v3701_v34  ;;  %v3718_v39 = vmul.f32 0.8333333, %v3702_v33  ;;  %v4001_v26 = vmul.f32 0.8333333, %v3985_v11  ;;  %v2932_v62 = vmul.f32 %v9661_v55, %v9660_v18 }
 0x44a   :  { %v4002_v28 = vmul.f32 0.8333333, %v3986_v14  ;;  %v3034_v23 = vadd.f32 %v3018_v31, %v3002_v52  ;;  %v2324_v24 = vsub.f32 1.8, %v9656_v10  ;;  %v3035_v58 = vadd.f32 %v3019_v35, %v3003_v25  ;;  %v9665_v52 = vld [vmem:[#allocation31_spill] sm:$0xff]  ;;  %v9666_v25 = vld [vmem:[#allocation237_spill] sm:$0xff] }
 0x44b   :  { %v3731_v30 = vpack.c.bf16 %v3718_v39, %v3717_v47  ;;  %v8317_v59 = vsub.f32 1.8, %v9657_v40  ;;  %v2933_v46 = vmul.f32 %v9664_v57, %v9663_v29  ;;  %v9667_v33 = vld [vmem:[#allocation224_spill] sm:$0xff]  ;;  %v9668_v14 = vld [vmem:[#allocation239_spill] sm:$0xff]  ;;  %v9669_v31 = vld [vmem:[#allocation225_spill] sm:$0xff] }
 0x44c   :  { %v4014_v16 = vpack.c.bf16 %v4002_v28, %v4001_v26  ;;  %v3050_v27 = vmul.f32 1.25, %v3034_v23  ;;  %v2340_v48 = vmul.f32 %v2324_v24, %v9662_v49  ;;  %v3051_v63 = vmul.f32 1.25, %v3035_v58  ;;  %v9670_v35 = vld [vmem:[#allocation9_spill] sm:$0xff]  ;;  %v9671_v18 = vld [vmem:[#allocation247_spill] sm:$0xff] }
 0x44d   :  { %3774 = vmatpush.bf16.msra.mxu3 %v3731_v30  ;;  %v2341_v34 = vmul.f32 %v8317_v59, %v9665_v52  ;;  %v3951_v11 = vmul.f32 %v9667_v33, %v9666_v25  ;;  %v3952_v0 = vmul.f32 %v9669_v31, %v9668_v14  ;;  %vm1249_vm14 = vcmp.ge.f32.partialorder %v9670_v35, 1.8  ;;  %v9672_v25 = vld [vmem:[#allocation248_spill] sm:$0xff] }
 0x44e   :  { %4055 = vmatpush.bf16.msra.mxu1 %v4014_v16  ;;  %v4114_v47 = vmul.f32 %v3050_v27, %v2426_v15  ;;  %v2356_v39 = vadd.f32 %v2340_v48, %v2308_v2  ;;  %vm1304_vm15 = vcmp.ge.f32.partialorder %v9607_v4, 2.2  ;;  %vm1305_vm1 = vcmp.ge.f32.partialorder %v9609_v19, 2.2  ;;  %v9673_v14 = vld [vmem:[#allocation252_spill] sm:$0xff] }
 0x44f   :  { %v4115_v17 = vmul.f32 %v3051_v63, %v2427_v41  ;;  %v2357_v26 = vadd.f32 %v2341_v34, %v2309_v60  ;;  %v4623_v28 = vsel %vm1304_vm15, 1.0, %v9623_v12  ;;  %v4624_v23 = vsel %vm1305_vm1, 1.0, %v9623_v12 }
 0x450   :  { %v4130_v58 = vadd.f32 %v4114_v47, %v4098_v22  ;;  %v8335_v30 = vmul.f32 2.5, %v2356_v39  ;;  %v1512_v29 = vsub.f32 %v9671_v18, %v4623_v28  ;;  %v1513_v33 = vsub.f32 %v9672_v25, %v4624_v23  ;;  %v4829_v47 = vld [vmem:[#allocation2 + $0x50] sm:$0xf]  ;;  %v9674_v28 = vld [vmem:[#allocation65_spill] sm:$0xff]  ;;  %v4845_v18 = vld [vmem:[#allocation2 + $0x54] sm:$0xf] }
 0x451   :  { %v4131_v16 = vadd.f32 %v4115_v17, %v4099_v44  ;;  %v8339_v15 = vmul.f32 2.5, %v2357_v26  ;;  %v4783_v2 = vadd.f32 -1.4, %v9607_v4  ;;  %v4784_v27 = vadd.f32 -1.4, %v9609_v19 }
 0x452   :  { %v4146_v41 = vmul.f32 0.8333333, %v4130_v58  ;;  %v2948_v60 = vmul.f32 %v8335_v30, %v2324_v24  ;;  %v2424_v48 = vsub.f32 2.2, %v9607_v4  ;;  %v2425_v22 = vsub.f32 2.2, %v9609_v19 }
 0x453   :  { %v4147_v63 = vmul.f32 0.8333333, %v4131_v16  ;;  %v2949_v34 = vmul.f32 %v8339_v15, %v8317_v59  ;;  %v2408_v31 = vmul.f32 %v4783_v2, %v9673_v14  ;;  %v2409_v44 = vmul.f32 %v4784_v27, %v9616_v37  ;;  %v4952_v58 = vld [vmem:[#allocation2 + $0x70] sm:$0xf0]  ;;  %v4956_v4 = vld [vmem:[#allocation2 + $0x74] sm:$0xf0] }
 0x454   :  { %v2964_v39 = vadd.f32 %v2948_v60, %v2932_v62  ;;  %v2440_v17 = vmul.f32 %v2424_v48, %v1512_v29  ;;  %v2441_v26 = vmul.f32 %v2425_v22, %v1513_v33  ;;  %v3000_v23 = vmul.f32 %v9674_v28, %v8197_v7  ;;  %v9676_v16 = vld [vmem:[#allocation94_spill] sm:$0xff]  ;;  %v9680_v14 = vld [vmem:[#allocation56_spill] sm:$0xff] }
 0x455   :  { %v8352_v25 = vpack.c.bf16 %v4147_v63, %v4146_v41  ;;  %v2965_v19 = vadd.f32 %v2949_v34, %v2933_v46  ;;  %v3001_v45 = vmul.f32 %v9676_v16, %v8201_v42  ;;  %v4096_v2 = vmul.f32 %v9615_v61, %v8218_v8  ;;  %v9677_v46 = vld [vmem:[#allocation54_spill] sm:$0xff]  ;;  %v9679_v8 = vld [vmem:[#allocation63_spill] sm:$0xff] }
 0x456   :  { %v8358_v37 = vmul.f32 1.25, %v2964_v39  ;;  %v2456_v62 = vadd.f32 %v2440_v17, %v2408_v31  ;;  %v2457_v29 = vadd.f32 %v2441_v26, %v2409_v44  ;;  %v4097_v33 = vmul.f32 %v9618_v38, %v8224_v50  ;;  %v9678_v60 = vld [vmem:[#allocation58_spill] sm:$0xff]  ;;  %v9681_v44 = vld [vmem:[#allocation267_spill] sm:$0xff]  ;;  %v9683_v17 = vld [vmem:[#allocation268_spill] sm:$0xff] }
 0x457   :  { %9675 = vst [vmem:[#allocation97_spill] sm:$0xff] %v8352_v25  ;;  %4989 = vmatpush.bf16.msra.mxu2 %v8352_v25  ;;  %v8363_v7 = vmul.f32 1.25, %v2965_v19  ;;  %v4830_v27 = vor.u32 %v4952_v58, %v4829_v47  ;;  %v4846_v41 = vor.u32 %v4956_v4, %v4845_v18  ;;  %v3667_v63 = vmul.f32 %v9678_v60, %v9677_v46  ;;  %v9682_v47 = vld [vmem:[#allocation276_spill] sm:$0xff]  ;;  %v9685_v4 = vld [vmem:[#allocation10_spill] sm:$0xff]  ;;  %v9686_v46 = vld [vmem:[#allocation11_spill] sm:$0xff] }
 0x458   :  { %v3967_v42 = vmul.f32 %v8358_v37, %v2324_v24  ;;  %v2472_v34 = vmul.f32 2.5, %v2456_v62  ;;  %v2473_v61 = vmul.f32 2.5, %v2457_v29  ;;  %v3668_v31 = vmul.f32 %v9680_v14, %v9679_v8  ;;  %v9684_v24 = vld [vmem:[#allocation277_spill] sm:$0xff] }
 0x459   :  { %v8373_v38 = vsel %vm1249_vm14, 1.0, %v9623_v12  ;;  %v3968_v50 = vmul.f32 %v8363_v7, %v8317_v59  ;;  %3359 = vmatmul.bf16.gmra.mxu3 %v4830_v27  ;;  %3500 = vmatmul.bf16.gmra.mxu1 %v4846_v41  ;;  %v3683_v39 = vmul.f32 %v9682_v47, %v9681_v44  ;;  %v3684_v26 = vmul.f32 %v9684_v24, %v9683_v17  ;;  %v9687_v8 = vld [vmem:[#allocation261_spill] sm:$0xff] }
 0x45a   :  { %v3983_v28 = vadd.f32 %v3967_v42, %v3951_v11  ;;  %v3016_v58 = vmul.f32 %v2472_v34, %v2424_v48  ;;  %v3017_v18 = vmul.f32 %v2473_v61, %v2425_v22  ;;  %v8382_v19 = vadd.f32 -1.0, %v9685_v4  ;;  %v9688_v42 = vld [vmem:[#allocation262_spill] sm:$0xff]  ;;  %v9691_v24 = vld [vmem:[#allocation269_spill] sm:$0xff] }
 0x45b   :  { %v3984_v16 = vadd.f32 %v3968_v50, %v3952_v0  ;;  %v3699_v62 = vadd.f32 %v3683_v39, %v3667_v63  ;;  %v3700_v29 = vadd.f32 %v3684_v26, %v3668_v31  ;;  %v8385_v60 = vadd.f32 -1.0, %v9686_v46  ;;  %v9689_v31 = vld [vmem:[#allocation300_spill] sm:$0xff]  ;;  %v9690_v39 = vld [vmem:[#allocation274_spill] sm:$0xff] }
 0x45c   :  { %v3999_v59 = vmul.f32 0.8333333, %v3983_v28  ;;  %v3032_v27 = vadd.f32 %v3016_v58, %v3000_v23  ;;  %v3033_v41 = vadd.f32 %v3017_v18, %v3001_v45  ;;  %v2306_v14 = vmul.f32 %v8382_v19, %v9687_v8  ;;  %v9692_v18 = vld [vmem:[#allocation35_spill] sm:$0xff] }
 0x45d   :  { %v4000_v44 = vmul.f32 0.8333333, %v3984_v16  ;;  %v3715_v47 = vmul.f32 0.8333333, %v3699_v62  ;;  %v3716_v11 = vmul.f32 0.8333333, %v3700_v29  ;;  %v2307_v34 = vmul.f32 %v8385_v60, %v9688_v42 }
 0x45e   :  { %v3048_v61 = vmul.f32 1.25, %v3032_v27  ;;  %v3049_v17 = vmul.f32 1.25, %v3033_v41  ;;  %v2322_v0 = vsub.f32 1.8, %v9685_v4  ;;  %v2323_v63 = vsub.f32 1.8, %v9686_v46 }
 0x45f   :  { %v8395_v50 = vsub.f32 %v9689_v31, %v8373_v38  ;;  %v4013_v45 = vpack.c.bf16 %v4000_v44, %v3999_v59  ;;  %v3730_v23 = vpack.c.bf16 %v3716_v11, %v3715_v47  ;;  %v2930_v26 = vmul.f32 %v9691_v24, %v9690_v39  ;;  %v9693_v62 = vld [vmem:[#allocation25_spill] sm:$0xff]  ;;  %v9694_v27 = vld [vmem:[#allocation275_spill] sm:$0xff]  ;;  %v9695_v41 = vld [vmem:[#allocation272_spill] sm:$0xff] }
 0x460   :  { %v4112_v28 = vmul.f32 %v3048_v61, %v2424_v48  ;;  %v4113_v58 = vmul.f32 %v3049_v17, %v2425_v22  ;;  %v2338_v16 = vmul.f32 %v2322_v0, %v9692_v18  ;;  %v2339_v29 = vmul.f32 %v2323_v63, %v9693_v62 }
 0x461   :  { %4056 = vmatpush.bf16.msra.mxu1 %v4013_v45  ;;  %3775 = vmatpush.bf16.msra.mxu3 %v3730_v23  ;;  %v2931_v8 = vmul.f32 %v9695_v41, %v9694_v27  ;;  %vm1302_vm2 = vcmp.ge.f32.partialorder %v9632_v1, 2.2  ;;  %vm1303_vm3 = vcmp.ge.f32.partialorder %v9633_v54, 2.2  ;;  %v4781_v59 = vadd.f32 -1.4, %v9632_v1 }
 0x462   :  { %v4128_v44 = vadd.f32 %v4112_v28, %v4096_v2  ;;  %v4129_v47 = vadd.f32 %v4113_v58, %v4097_v33  ;;  %v2354_v11 = vadd.f32 %v2338_v16, %v2306_v14  ;;  %v2355_v48 = vadd.f32 %v2339_v29, %v2307_v34  ;;  %v9696_v27 = vld [vmem:[#allocation254_spill] sm:$0xff]  ;;  %v9697_v2 = vld [vmem:[#allocation273_spill] sm:$0xff] }
 0x463   :  { %v4621_v22 = vsel %vm1302_vm2, 1.0, %v9623_v12  ;;  %v4622_v42 = vsel %vm1303_vm3, 1.0, %v9623_v12  ;;  %v4782_v61 = vadd.f32 -1.4, %v9633_v54  ;;  %v2406_v17 = vmul.f32 %v4781_v59, %v9640_v51  ;;  %v9698_v29 = vld [vmem:[#allocation278_spill] sm:$0xff]  ;;  %v9699_v59 = vld [vmem:[#allocation265_spill] sm:$0xff] }
 0x464   :  { %v4144_v31 = vmul.f32 0.8333333, %v4128_v44  ;;  %v4145_v45 = vmul.f32 0.8333333, %v4129_v47  ;;  %v8410_v23 = vmul.f32 2.5, %v2354_v11  ;;  %v8412_v39 = vmul.f32 2.5, %v2355_v48 }
 0x465   :  { %v1510_v25 = vsub.f32 %v9696_v27, %v4621_v22  ;;  %v1511_v33 = vsub.f32 %v9697_v2, %v4622_v42  ;;  %v2407_v14 = vmul.f32 %v4782_v61, %v9641_v36  ;;  %v2422_v34 = vsub.f32 2.2, %v9632_v1  ;;  %v9700_v47 = vld [vmem:[#allocation280_spill] sm:$0xff]  ;;  %v9701_v11 = vld [vmem:[#allocation266_spill] sm:$0xff]  ;;  %v9703_v27 = vld [vmem:[#allocation59_spill] sm:$0xff] }
 0x466   :  { %v8418_v28 = vpack.c.bf16 %v4145_v45, %v4144_v31  ;;  %v2946_v58 = vmul.f32 %v8410_v23, %v2322_v0  ;;  %v2947_v51 = vmul.f32 %v8412_v39, %v2323_v63  ;;  %v2423_v16 = vsub.f32 2.2, %v9633_v54  ;;  %v9702_v54 = vld [vmem:[#allocation55_spill] sm:$0xff] }
 0x467   :  { %v3949_v44 = vmul.f32 %v9699_v59, %v9698_v29  ;;  %v3950_v48 = vmul.f32 %v9701_v11, %v9700_v47  ;;  %v2438_v22 = vmul.f32 %v2422_v34, %v1510_v25  ;;  %v2998_v36 = vmul.f32 %v8241_v9, %v8267_v13  ;;  %v9704_v29 = vld [vmem:[#allocation64_spill] sm:$0xff]  ;;  %v9705_v59 = vld [vmem:[#allocation57_spill] sm:$0xff] }
 0x468   :  { %4990 = vmatpush.bf16.msra.mxu2 %v8418_v28  ;;  %v2962_v1 = vadd.f32 %v2946_v58, %v2930_v26  ;;  %v2963_v42 = vadd.f32 %v2947_v51, %v2931_v8  ;;  %v2439_v61 = vmul.f32 %v2423_v16, %v1511_v33  ;;  %v2999_v31 = vmul.f32 %v8244_v43, %v8269_v5  ;;  %v9706_v47 = vld [vmem:[#allocation308_spill] sm:$0xff]  ;;  %v9708_v26 = vld [vmem:[#allocation309_spill] sm:$0xff] }
 0x469   :  { %v2454_v45 = vadd.f32 %v2438_v22, %v2406_v17  ;;  %v3665_v2 = vmul.f32 %v9703_v27, %v9702_v54  ;;  %v3666_v41 = vmul.f32 %v9705_v59, %v9704_v29  ;;  %v9707_v25 = vld [vmem:[#allocation28_spill] sm:$0xff]  ;;  %v4094_v43 = vmul.f32 %v9637_v21, %v8290_v32 }
 0x46a   :  { %v3681_v11 = vmul.f32 %v9707_v25, %v9706_v47  ;;  %v8438_v24 = vmul.f32 1.25, %v2962_v1  ;;  %v8440_v9 = vmul.f32 1.25, %v2963_v42  ;;  %v2455_v13 = vadd.f32 %v2439_v61, %v2407_v14  ;;  %v9709_v8 = vld [vmem:[#allocation24_spill] sm:$0xff]  ;;  %v9711_v61 = vld [vmem:[#allocation302_spill] sm:$0xff]  ;;  %v9712_v25 = vld [vmem:[#allocation303_spill] sm:$0xff] }
 0x46b   :  { %v3682_v33 = vmul.f32 %v9709_v8, %v9708_v26  ;;  %v2470_v58 = vmul.f32 2.5, %v2454_v45  ;;  %v9710_v17 = vld [vmem:[#allocation8_spill] sm:$0xff]  ;;  %v8452_v14 = vadd.f32 -1.0, %v9670_v35  ;;  %vm1300_vm4 = vcmp.ge.f32.partialorder %v9656_v10, 2.2 }
 0x46c   :  { %v3697_v5 = vadd.f32 %v3681_v11, %v3665_v2  ;;  %v8447_v51 = vadd.f32 -1.0, %v9710_v17  ;;  %v3965_v22 = vmul.f32 %v8438_v24, %v2322_v0  ;;  %v3966_v54 = vmul.f32 %v8440_v9, %v2323_v63 }
 0x46d   :  { %v2471_v1 = vmul.f32 2.5, %v2455_v13  ;;  %v3698_v27 = vadd.f32 %v3682_v33, %v3666_v41  ;;  %v3014_v42 = vmul.f32 %v2470_v58, %v2422_v34  ;;  %v2305_v0 = vmul.f32 %v8452_v14, %v9712_v25 }
 0x46e   :  { %v3713_v29 = vmul.f32 0.8333333, %v3697_v5  ;;  %v2304_v45 = vmul.f32 %v8447_v51, %v9711_v61  ;;  %v3981_v59 = vadd.f32 %v3965_v22, %v3949_v44  ;;  %v3982_v21 = vadd.f32 %v3966_v54, %v3950_v48  ;;  %v9713_v44 = vld [vmem:[#allocation38_spill] sm:$0xff]  ;;  %v9717_v61 = vld [vmem:[#allocation313_spill] sm:$0xff] }
 0x46f   :  { %v3015_v32 = vmul.f32 %v2471_v1, %v2423_v16  ;;  %v3714_v2 = vmul.f32 0.8333333, %v3698_v27  ;;  %v3030_v47 = vadd.f32 %v3014_v42, %v2998_v36  ;;  %v2320_v63 = vsub.f32 1.8, %v9710_v17  ;;  %v9714_v54 = vld [vmem:[#allocation34_spill] sm:$0xff]  ;;  %v9716_v42 = vld [vmem:[#allocation23_spill] sm:$0xff] }
 0x470   :  { %v2321_v41 = vsub.f32 1.8, %v9670_v35  ;;  %v3997_v11 = vmul.f32 0.8333333, %v3981_v59  ;;  %v3998_v13 = vmul.f32 0.8333333, %v3982_v21  ;;  %v4095_v58 = vmul.f32 %v9639_v20, %v8292_v56 }
 0x471   :  { %v3031_v26 = vadd.f32 %v3015_v32, %v2999_v31  ;;  %v3729_v8 = vpack.c.bf16 %v3714_v2, %v3713_v29  ;;  %v3046_v33 = vmul.f32 1.25, %v3030_v47  ;;  %v2336_v48 = vmul.f32 %v2320_v63, %v9713_v44  ;;  %v9715_v1 = vld [vmem:[#allocation310_spill] sm:$0xff] }
 0x472   :  { %v2337_v5 = vmul.f32 %v2321_v41, %v8395_v50  ;;  %v4012_v36 = vpack.c.bf16 %v3998_v13, %v3997_v11  ;;  %v2928_v27 = vmul.f32 %v9715_v1, %v9714_v54  ;;  %v2929_v59 = vmul.f32 %v9717_v61, %v9716_v42  ;;  %v9719_v13 = vld [vmem:[#allocation293_spill] sm:$0xff] }
 0x473   :  { %v3047_v22 = vmul.f32 1.25, %v3031_v26  ;;  %3776 = vmatpush.bf16.msra.mxu3 %v3729_v8  ;;  %v4110_v21 = vmul.f32 %v3046_v33, %v2422_v34  ;;  %v2352_v31 = vadd.f32 %v2336_v48, %v2304_v45  ;;  %vm1301_vm5 = vcmp.ge.f32.partialorder %v9657_v40, 2.2  ;;  %v9718_v45 = vld [vmem:[#allocation292_spill] sm:$0xff] }
 0x474   :  { %v2353_v29 = vadd.f32 %v2337_v5, %v2305_v0  ;;  %4057 = vmatpush.bf16.msra.mxu1 %v4012_v36  ;;  %v4619_v56 = vsel %vm1300_vm4, 1.0, %v9623_v12  ;;  %v4779_v32 = vadd.f32 -1.4, %v9656_v10  ;;  %v4620_v11 = vsel %vm1301_vm5, 1.0, %v9623_v12  ;;  %v4821_v5 = vld [vmem:[#allocation2 + $0xd8] sm:$0xf] }
 0x475   :  { %v4111_v20 = vmul.f32 %v3047_v22, %v2423_v16  ;;  %v4126_v2 = vadd.f32 %v4110_v21, %v4094_v43  ;;  %v8472_v47 = vmul.f32 2.5, %v2352_v31  ;;  %v1508_v0 = vsub.f32 %v9718_v45, %v4619_v56  ;;  %v4946_v36 = vld [vmem:[#allocation2 + $0xf8] sm:$0xf0] }
 0x476   :  { %v8474_v25 = vmul.f32 2.5, %v2353_v29  ;;  %v1509_v26 = vsub.f32 %v9719_v13, %v4620_v11  ;;  %v4780_v16 = vadd.f32 -1.4, %v9657_v40  ;;  %v2404_v43 = vmul.f32 %v4779_v32, %v9662_v49  ;;  %v9720_v29 = vld [vmem:[#allocation29_spill] sm:$0xff]  ;;  %v9723_v11 = vld [vmem:[#allocation307_spill] sm:$0xff] }
 0x477   :  { %v4127_v34 = vadd.f32 %v4111_v20, %v4095_v58  ;;  %v4142_v8 = vmul.f32 0.8333333, %v4126_v2  ;;  %v2944_v33 = vmul.f32 %v8472_v47, %v2320_v63  ;;  %v2420_v58 = vsub.f32 2.2, %v9656_v10  ;;  %v9721_v20 = vld [vmem:[#allocation306_spill] sm:$0xff]  ;;  %v9722_v2 = vld [vmem:[#allocation32_spill] sm:$0xff] }
 0x478   :  { %v2945_v48 = vmul.f32 %v8474_v25, %v2321_v41  ;;  %v2405_v54 = vmul.f32 %v4780_v16, %v9665_v52  ;;  %v2421_v42 = vsub.f32 2.2, %v9657_v40  ;;  %v3947_v56 = vmul.f32 %v9721_v20, %v9720_v29 }
 0x479   :  { %v4143_v22 = vmul.f32 0.8333333, %v4127_v34  ;;  %v2960_v21 = vadd.f32 %v2944_v33, %v2928_v27  ;;  %v3948_v45 = vmul.f32 %v9723_v11, %v9722_v2  ;;  %v2436_v49 = vmul.f32 %v2420_v58, %v1508_v0 }
 0x47a   :  { %v2961_v31 = vadd.f32 %v2945_v48, %v2929_v59  ;;  %v2437_v32 = vmul.f32 %v2421_v42, %v1509_v26  ;;  %v2996_v34 = vmul.f32 %v8306_v53, %v8335_v30  ;;  %v2997_v40 = vmul.f32 %v8309_v6, %v8339_v15  ;;  %v9724_v15 = vld [vmem:[#allocation294_spill] sm:$0xff]  ;;  %v9725_v48 = vld [vmem:[#allocation37_spill] sm:$0xff] }
 0x47b   :  { %v8490_v13 = vpack.c.bf16 %v4143_v22, %v4142_v8  ;;  %v8494_v52 = vmul.f32 1.25, %v2960_v21  ;;  %v4822_v27 = vor.u32 %v4946_v36, %v4821_v5  ;;  %v2452_v59 = vadd.f32 %v2436_v49, %v2404_v43 }
 0x47c   :  { %v8496_v10 = vmul.f32 1.25, %v2961_v31  ;;  %v2453_v16 = vadd.f32 %v2437_v32, %v2405_v54  ;;  %vm1298_vm6 = vcmp.ge.f32.partialorder %v9685_v4, 2.2  ;;  %vm1299_vm7 = vcmp.ge.f32.partialorder %v9686_v46, 2.2 }
 0x47d   :  { %4991 = vmatpush.bf16.msra.mxu2 %v8490_v13  ;;  %v3963_v0 = vmul.f32 %v8494_v52, %v2320_v63  ;;  %v4617_v30 = vsel %vm1298_vm6, 1.0, %v9623_v12  ;;  %v4618_v26 = vsel %vm1299_vm7, 1.0, %v9623_v12  ;;  %v2468_v8 = vmul.f32 2.5, %v2452_v59 }
 0x47e   :  { %v3964_v53 = vmul.f32 %v8496_v10, %v2321_v41  ;;  %3236 = vmatmul.bf16.gmra.mxu2 %v4822_v27  ;;  %v2469_v6 = vmul.f32 2.5, %v2453_v16  ;;  %v1506_v33 = vsub.f32 %v9724_v15, %v4617_v30  ;;  %v1507_v43 = vsub.f32 %v9725_v48, %v4618_v26  ;;  %v4833_v15 = vld [vmem:[#allocation2 + $0x98] sm:$0xf] }
 0x47f   :  { %v3979_v5 = vadd.f32 %v3963_v0, %v3947_v56  ;;  %v4777_v22 = vadd.f32 -1.4, %v9685_v4  ;;  %v4778_v54 = vadd.f32 -1.4, %v9686_v46  ;;  %v3012_v63 = vmul.f32 %v2468_v8, %v2420_v58  ;;  %v9726_v8 = vld [vmem:[#allocation26_spill] sm:$0xff] }
 0x480   :  { %v3980_v36 = vadd.f32 %v3964_v53, %v3948_v45  ;;  %v3013_v21 = vmul.f32 %v2469_v6, %v2421_v42  ;;  %v2418_v41 = vsub.f32 2.2, %v9685_v4  ;;  %v2419_v31 = vsub.f32 2.2, %v9686_v46 }
 0x481   :  { %v3995_v29 = vmul.f32 0.8333333, %v3979_v5  ;;  %v2402_v2 = vmul.f32 %v4777_v22, %v9692_v18  ;;  %v2403_v11 = vmul.f32 %v4778_v54, %v9693_v62  ;;  %v3028_v49 = vadd.f32 %v3012_v63, %v2996_v34  ;;  %v9727_v5 = vld [vmem:[#allocation84_spill] sm:$0xff]  ;;  %v9728_v22 = vld [vmem:[#allocation269_spill] sm:$0xff] }
 0x482   :  { %v3996_v20 = vmul.f32 0.8333333, %v3980_v36  ;;  %v3029_v32 = vadd.f32 %v3013_v21, %v2997_v40  ;;  %v2434_v56 = vmul.f32 %v2418_v41, %v1506_v33  ;;  %v2435_v45 = vmul.f32 %v2419_v31, %v1507_v43  ;;  %v4953_v36 = vld [vmem:[#allocation2 + $0xb8] sm:$0xf0] }
 0x483   :  { %v4092_v59 = vmul.f32 %v9661_v55, %v8358_v37  ;;  %v4093_v16 = vmul.f32 %v9664_v57, %v8363_v7  ;;  %v3044_v4 = vmul.f32 1.25, %v3028_v49  ;;  %v2994_v18 = vmul.f32 %v8382_v19, %v8410_v23 }
 0x484   :  { %v4011_v27 = vpack.c.bf16 %v3996_v20, %v3995_v29  ;;  %v3045_v0 = vmul.f32 1.25, %v3029_v32  ;;  %v2450_v46 = vadd.f32 %v2434_v56, %v2402_v2  ;;  %v2451_v53 = vadd.f32 %v2435_v45, %v2403_v11  ;;  %v4849_v29 = vld [vmem:[#allocation2 + $0x9c] sm:$0xf]  ;;  %v9729_v11 = vld [vmem:[#allocation272_spill] sm:$0xff]  ;;  %v4857_v32 = vld [vmem:[#allocation2 + $0x10] sm:$0xf] }
 0x485   :  { %v2995_v62 = vmul.f32 %v8385_v60, %v8412_v39  ;;  %vm1296_vm8 = vcmp.ge.f32.partialorder %v9710_v17, 2.2  ;;  %vm1297_vm9 = vcmp.ge.f32.partialorder %v9670_v35, 2.2  ;;  %v4108_v34 = vmul.f32 %v3044_v4, %v2420_v58  ;;  %v4959_v56 = vld [vmem:[#allocation2 + $0x30] sm:$0xf0] }
 0x486   :  { %4058 = vmatpush.bf16.msra.mxu1 %v4011_v27  ;;  %v4109_v55 = vmul.f32 %v3045_v0, %v2421_v42  ;;  %v2466_v57 = vmul.f32 2.5, %v2450_v46  ;;  %v2467_v37 = vmul.f32 2.5, %v2451_v53  ;;  %v4615_v7 = vsel %vm1296_vm8, 1.0, %v9623_v12  ;;  %v9730_v4 = vld [vmem:[#allocation97_spill] sm:$0xff] }
 0x487   :  { %v4616_v40 = vsel %vm1297_vm9, 1.0, %v9623_v12  ;;  %v4775_v30 = vadd.f32 -1.4, %v9710_v17  ;;  %v4776_v19 = vadd.f32 -1.4, %v9670_v35  ;;  %v4124_v23 = vadd.f32 %v4108_v34, %v4092_v59 }
 0x488   :  { %v4125_v60 = vadd.f32 %v4109_v55, %v4093_v16  ;;  %v3010_v39 = vmul.f32 %v2466_v57, %v2418_v41  ;;  %v3011_v26 = vmul.f32 %v2467_v37, %v2419_v31  ;;  %v1504_v6 = vsub.f32 %v9726_v8, %v4615_v7  ;;  %v4889_v57 = vld [vmem:[#allocation2 + $0x18] sm:$0xf] }
 0x489   :  { %v1505_v58 = vsub.f32 %v8373_v38, %v4616_v40  ;;  %v2416_v42 = vsub.f32 2.2, %v9710_v17  ;;  %v4140_v33 = vmul.f32 0.8333333, %v4124_v23  ;;  %v4090_v54 = vmul.f32 %v9728_v22, %v8438_v24  ;;  %v4967_v40 = vld [vmem:[#allocation2 + $0x38] sm:$0xf0] }
 0x48a   :  { %4192 = vmatpush.bf16.msrb.mxu1 %v8213_v3  ;;  %v2400_v3 = vmul.f32 %v4775_v30, %v9713_v44  ;;  %v4141_v48 = vmul.f32 0.8333333, %v4125_v60  ;;  %v3026_v12 = vadd.f32 %v3010_v39, %v2994_v18  ;;  %v3027_v43 = vadd.f32 %v3011_v26, %v2995_v62  ;;  %v4957_v44 = vld [vmem:[#allocation2 + $0xbc] sm:$0xf0]  ;;  %v4954_v39 = vld [vmem:[#allocation2 + $0x100] sm:$0xf0] }
 0x48b   :  { %v2401_v63 = vmul.f32 %v4776_v19, %v8395_v50  ;;  %v2417_v21 = vsub.f32 2.2, %v9670_v35  ;;  %v2432_v38 = vmul.f32 %v2416_v42, %v1504_v6  ;;  %v4091_v49 = vmul.f32 %v9729_v11, %v8440_v9  ;;  %v4853_v6 = vld [vmem:[#allocation2 + $0xe4] sm:$0xf]  ;;  %v4905_v22 = vld [vmem:[#allocation2 + $0x1c] sm:$0xf]  ;;  %v3169_v11 = vpop.f32.mrf.mxu1 }
 0x48c   :  { %v4154_v20 = vpack.c.bf16 %v4141_v48, %v4140_v33  ;;  %v3042_v17 = vmul.f32 1.25, %v3026_v12  ;;  %v3043_v2 = vmul.f32 1.25, %v3027_v43  ;;  %v4834_v59 = vor.u32 %v4953_v36, %v4833_v15  ;;  %v4861_v33 = vld [vmem:[#allocation2 + $0x58] sm:$0xf] }
 0x48d   :  { %v2433_v45 = vmul.f32 %v2417_v21, %v1505_v58  ;;  %v2448_v27 = vadd.f32 %v2432_v38, %v2400_v3  ;;  %v4850_v50 = vor.u32 %v4957_v44, %v4849_v29  ;;  %v2992_v46 = vmul.f32 %v8447_v51, %v8472_v47  ;;  %v4958_v58 = vld [vmem:[#allocation2 + $0x104] sm:$0xf0]  ;;  %v4963_v36 = vld [vmem:[#allocation2 + $0x34] sm:$0xf0]  ;;  %v4961_v38 = vld [vmem:[#allocation2 + $0xc0] sm:$0xf0] }
 0x48e   :  { %4193 = vmatpush.bf16.msrb.mxu1 %v9727_v5  ;;  %4992 = vmatpush.bf16.msra.mxu2 %v4154_v20  ;;  %v4106_v24 = vmul.f32 %v3042_v17, %v2418_v41  ;;  %v4107_v16 = vmul.f32 %v3043_v2, %v2419_v31  ;;  %v4858_v53 = vor.u32 %v4959_v56, %v4857_v32  ;;  %v4873_v5 = vld [vmem:[#allocation2 + $0x14] sm:$0xf]  ;;  %v4897_v17 = vld [vmem:[#allocation2 + $0xa8] sm:$0xf]  ;;  %v4969_v2 = vld [vmem:[#allocation2 + $0xc8] sm:$0xf0] }
 0x48f   :  { %v2449_v35 = vadd.f32 %v2433_v45, %v2401_v63  ;;  %v2464_v0 = vmul.f32 2.5, %v2448_v27  ;;  %3364 = vmatmul.bf16.gmra.mxu3 %v4834_v59  ;;  %3505 = vmatmul.bf16.gmra.mxu1 %v4850_v50  ;;  %v2993_v34 = vmul.f32 %v8452_v14, %v8474_v25  ;;  %v4890_v47 = vor.u32 %v4967_v40, %v4889_v57  ;;  %v4877_v45 = vld [vmem:[#allocation2 + $0x5c] sm:$0xf]  ;;  %v4964_v27 = vld [vmem:[#allocation2 + $0x7c] sm:$0xf0] }
 0x490   :  { %v4122_v18 = vadd.f32 %v4106_v24, %v4090_v54  ;;  %v4123_v9 = vadd.f32 %v4107_v16, %v4091_v49  ;;  %3636 = vmatmul.bf16.vlgmr.msrb.gmra.mxu2 %v4858_v53  ;;  %v4088_v23 = vmul.f32 %v9715_v1, %v8494_v52  ;;  %v4089_v25 = vmul.f32 %v9717_v61, %v8496_v10  ;;  %v4960_v1 = vld [vmem:[#allocation2 + $0x78] sm:$0xf0]  ;;  %v4893_v61 = vld [vmem:[#allocation2 + $0x60] sm:$0xf]  ;;  %v4968_v10 = vld [vmem:[#allocation2 + $0x80] sm:$0xf0]  ;;  %v3222_v49 = vpop.f32.mrf.mxu2 }
 0x491   :  { %v2465_v62 = vmul.f32 2.5, %v2449_v35  ;;  %v3008_v55 = vmul.f32 %v2464_v0, %v2416_v42  ;;  %3918 = vmatmul.bf16.vlgmr.msrb.gmra.mxu0 %v4890_v47  ;;  %v4854_v52 = vor.u32 %v4958_v58, %v4853_v6  ;;  %v4862_v12 = vor.u32 %v4960_v1, %v4861_v33  ;;  %v4971_v54 = vld [vmem:[#allocation2 + $0x3c] sm:$0xf0]  ;;  %v4909_v24 = vld [vmem:[#allocation2 + $0x64] sm:$0xf] }
 0x492   :  { %4194 = vmatpush.bf16.msrb.mxu1 %v9730_v4  ;;  %v4138_v41 = vmul.f32 0.8333333, %v4122_v18  ;;  %v4139_v31 = vmul.f32 0.8333333, %v4123_v9  ;;  %v4874_v63 = vor.u32 %v4963_v36, %v4873_v5  ;;  %v4906_v29 = vor.u32 %v4971_v54, %v4905_v22  ;;  %v4972_v16 = vld [vmem:[#allocation2 + $0x84] sm:$0xf0] }
 0x493   :  { %v3009_v37 = vmul.f32 %v2465_v62, %v2417_v21  ;;  %v3024_v7 = vadd.f32 %v3008_v55, %v2992_v46  ;;  %v4898_v32 = vor.u32 %v4969_v2, %v4897_v17  ;;  %v3223_v56 = vadd.f32 %v3222_v49, %v3169_v11  ;;  %v4869_v4 = vld [vmem:[#allocation2 + $0xe8] sm:$0xf]  ;;  %v4962_v35 = vld [vmem:[#allocation2 + $0x108] sm:$0xf0]  ;;  %v3171_v0 = vpop.f32.mrf.mxu1  ;;  %v4901_v62 = vld [vmem:[#allocation2 + $0xf0] sm:$0xf] }
 0x494   :  { %v4153_v51 = vpack.c.bf16 %v4139_v31, %v4138_v41  ;;  %v4878_v50 = vor.u32 %v4964_v27, %v4877_v45  ;;  %v4910_v46 = vor.u32 %v4972_v16, %v4909_v24  ;;  %v4870_v53 = vor.u32 %v4962_v35, %v4869_v4  ;;  %v4881_v57 = vld [vmem:[#allocation2 + $0xa4] sm:$0xf]  ;;  %v4973_v47 = vld [vmem:[#allocation2 + $0xcc] sm:$0xf0]  ;;  %v4885_v58 = vld [vmem:[#allocation2 + $0xec] sm:$0xf] }
 0x495   :  { %v3025_v30 = vadd.f32 %v3009_v37, %v2993_v34  ;;  %v3040_v19 = vmul.f32 1.25, %v3024_v7  ;;  %v4970_v34 = vld [vmem:[#allocation2 + $0x110] sm:$0xf0]  ;;  %v4965_v37 = vld [vmem:[#allocation2 + $0xc4] sm:$0xf0] }
 0x496   :  { %4195 = vmatpush.bf16.msrb.mxu1 %v8418_v28  ;;  %4993 = vmatpush.bf16.msra.mxu2 %v4153_v51  ;;  %v4837_v28 = vld [vmem:[#allocation2 + $0xe0] sm:$0xf]  ;;  %v4902_v41 = vor.u32 %v4970_v34, %v4901_v62  ;;  %v4917_v1 = vld [vmem:[#allocation2 + $0xf4] sm:$0xf]  ;;  %v4933_v17 = vld [vmem:[#allocation2 + $0xf8] sm:$0xf] }
 0x497   :  { %v3041_v14 = vmul.f32 1.25, %v3025_v30  ;;  %v4104_v60 = vmul.f32 %v3040_v19, %v2416_v42  ;;  %v4838_v15 = vor.u32 %v4954_v39, %v4837_v28  ;;  %v4894_v42 = vor.u32 %v4968_v10, %v4893_v61  ;;  %v4977_v61 = vld [vmem:[#allocation2 + $0xd0] sm:$0xf0] }
 0x498   :  { %v3224_v9 = vpop.f32.mrf.mxu2  ;;  %v4882_v19 = vor.u32 %v4965_v37, %v4881_v57  ;;  %v4231_v27 = vld [vmem:[%s8598_s4 + $0x10] sm:$0xff]  ;;  %v4233_v57 = vld [vmem:[%s8598_s4 + $0x20] sm:$0xff] }
 0x499   :  { %v4105_v26 = vmul.f32 %v3041_v14, %v2417_v21  ;;  %v4120_v8 = vadd.f32 %v4104_v60, %v4088_v23  ;;  %v4865_v21 = vld [vmem:[#allocation2 + $0xa0] sm:$0xf]  ;;  %v3225_v55 = vadd.f32 %v3224_v9, %v3171_v0  ;;  %v4925_v23 = vld [vmem:[#allocation2 + $0x68] sm:$0xf]  ;;  %v4976_v14 = vld [vmem:[#allocation2 + $0x88] sm:$0xf0] }
 0x49a   :  { %4196 = vmatpush.bf16.msrb.mxu1 %v8490_v13  ;;  %v4866_v44 = vor.u32 %v4961_v38, %v4865_v21  ;;  %v4926_v60 = vor.u32 %v4976_v14, %v4925_v23  ;;  %v4921_v38 = vld [vmem:[#allocation2 + $0x20] sm:$0xf]  ;;  %v4235_v4 = vld [vmem:[%s8598_s4 + $0x30] sm:$0xff]  ;;  %v4232_v9 = vld [vmem:[%s8598_s4 + $0x18] sm:$0xff] }
 0x49b   :  { %v4121_v3 = vadd.f32 %v4105_v26, %v4089_v25  ;;  %v4136_v48 = vmul.f32 0.8333333, %v4120_v8  ;;  %v3174_v31 = vpop.f32.mrf.mxu1  ;;  %4302 = vperm.xlu2 %5007, %v4232_v9  }
 0x49d   :  { %v4137_v13 = vmul.f32 0.8333333, %v4121_v3  ;;  %v4966_v3 = vld [vmem:[#allocation2 + $0x10c] sm:$0xf0] }
 0x49e   :  { %4197 = vmatpush.bf16.msrb.mxu1 %v4154_v20  ;;  %v3179_v20 = vpop.f32.mrf.mxu3 }
 0x49f   :  { %v4152_v43 = vpack.c.bf16 %v4137_v13, %v4136_v48  ;;  %3369 = vmatmul.bf16.gmra.mxu3 %v4838_v15  ;;  %3510 = vmatmul.bf16.gmra.mxu1 %v4854_v52  ;;  %v4974_v52 = vld [vmem:[#allocation2 + $0x114] sm:$0xf0] }
 0x4a0   :  { %3641 = vmatmul.bf16.gmra.mxu2 %v4862_v12  ;;  %v3227_v40 = vpop.f32.mrf.mxu2  ;;  %v4886_v12 = vor.u32 %v4966_v3, %v4885_v58  ;;  %v4918_v10 = vor.u32 %v4974_v52, %v4917_v1 }
 0x4a1   :  { %4994 = vmatpush.bf16.msra.mxu2 %v4152_v43  ;;  %3923 = vmatmul.bf16.gmra.mxu0 %v4894_v42  ;;  %v3228_v30 = vadd.f32 %v3227_v40, %v3174_v31 }
 0x4a2   :  { %4198 = vmatpush.bf16.msrb.mxu1 %v4153_v51  ;;  %v4913_v51 = vld [vmem:[#allocation2 + $0xac] sm:$0xf] }
 0x4a3   :  { %v4914_v25 = vor.u32 %v4973_v47, %v4913_v51  ;;  %v3176_v28 = vpop.f32.mrf.mxu1  ;;  %4307 = vperm.xlu2 %5007, %v4233_v57  }
 0x4a6   :  { %4199 = vmatpush.bf16.msrb.mxu1 %v4152_v43  ;;  %v3181_v59 = vpop.f32.mrf.mxu3  ;;  %v4929_v43 = vld [vmem:[#allocation2 + $0xb0] sm:$0xf] }
 0x4a7   :  { %v4930_v42 = vor.u32 %v4977_v61, %v4929_v43 }
 0x4a8   :  { %v3229_v39 = vpop.f32.mrf.mxu2 }
 0x4a9   :  { %v3230_v8 = vadd.f32 %v3229_v39, %v3176_v28 }
 0x4ae   :  { %v8552_v18 = vpop.f32.mrf.mxu3 }
 0x4af   :  { %3777 = vmatmul.bf16.vlgmr.msra.gmra.mxu3 %v4874_v63  ;;  %4059 = vmatmul.bf16.vlgmr.msra.gmra.mxu1 %v4906_v29  ;;  %v3496_v63 = vpop.f32.mrf.mxu1  ;;  %v4975_v29 = vld [vmem:[#allocation2 + $0x40] sm:$0xf0] }
 0x4b0   :  { %3646 = vmatmul.bf16.gmra.mxu2 %v4866_v44  ;;  %v4922_v2 = vor.u32 %v4975_v29, %v4921_v38 }
 0x4b1   :  { %3928 = vmatmul.bf16.gmra.mxu0 %v4898_v32  ;;  %v4230_v32 = vld [vmem:[%s8598_s4 + $0x8] sm:$0xff] }
 0x4b2   :  { %4292 = vperm.xlu1 %5006, %v4230_v32  }
 0x4b6   :  { %v8554_v7 = vpop.f32.mrf.mxu3 }
 0x4b7   :  { %v3232_v15 = vpop.f32.mrf.mxu2  ;;  %v3498_v49 = vpop.f32.mrf.mxu1 }
 0x4b8   :  { %v3233_v48 = vadd.f32 %v3232_v15, %v3179_v20  ;;  %v4978_v20 = vld [vmem:[#allocation2 + $0x118] sm:$0xf0] }
 0x4b9   :  { %v4934_v11 = vor.u32 %v4978_v20, %v4933_v17 }
 0x4ba   :  { %4297 = vperm.xlu1 %5006, %v4231_v27  }
 0x4be   :  { %v3355_v26 = vpop.f32.mrf.mxu3 }
 0x4bf   :  { %3782 = vmatmul.bf16.gmra.mxu3 %v4878_v50  ;;  %4064 = vmatmul.bf16.gmra.mxu1 %v4910_v46  ;;  %v3375_v6 = vadd.f32 %v3355_v26, %v3223_v56  ;;  %v3234_v5 = vpop.f32.mrf.mxu2 }
 0x4c0   :  { %3651 = vmatmul.bf16.gmra.mxu2 %v4870_v53  ;;  %v3235_v22 = vadd.f32 %v3234_v5, %v3181_v59 }
 0x4c1   :  { %3933 = vmatmul.bf16.gmra.mxu0 %v4902_v41  ;;  %v3516_v45 = vadd.f32 %v3496_v63, %v3375_v6 }
 0x4c2   :  { %4317 = vperm.xlu1 %5006, %v4235_v4  }
 0x4c6   :  { %v3357_v33 = vpop.f32.mrf.mxu3 }
 0x4c7   :  { %v3376_v13 = vadd.f32 %v3357_v33, %v3225_v55 }
 0x4c9   :  { %v3517_v50 = vadd.f32 %v3498_v49, %v3376_v13 }
 0x4cf   :  { %3787 = vmatmul.bf16.gmra.mxu3 %v4882_v19  ;;  %4069 = vmatmul.bf16.gmra.mxu1 %v4914_v25  ;;  %v4236_v19 = vld [vmem:[%s8598_s4 + $0x38] sm:$0xff]  ;;  %s5143_s4 = smov [#allocation5]  }
 0x4d0   :  { %4205 = vmatmul.bf16.vlgmr.msra.gmra.mxu2 %v4926_v60  ;;  %4322 = vperm.xlu2 %5007, %v4236_v19   ;;  %s4345_s6 = sshll.u32 %s5143_s4, 4  ;;  %s4346_s6 = int_to_ptr.vmem [resolvable:$true] %s4345_s6 }
 0x4d6   :  { %v3501_v56 = vpop.f32.mrf.mxu1 }
 0x4dc   :  { %v3360_v36 = vpop.f32.mrf.mxu3 }
 0x4dd   :  { %v3377_v54 = vadd.f32 %v3360_v36, %v3228_v30 }
 0x4de   :  { %v3503_v16 = vpop.f32.mrf.mxu1 }
 0x4df   :  { %3792 = vmatmul.bf16.gmra.mxu3 %v4886_v12  ;;  %4074 = vmatmul.bf16.gmra.mxu1 %v4918_v10  ;;  %v3518_v46 = vadd.f32 %v3501_v56, %v3377_v54 }
 0x4e0   :  { %4210 = vmatmul.bf16.gmra.mxu2 %v4930_v42 }
 0x4e4   :  { %v3362_v21 = vpop.f32.mrf.mxu3 }
 0x4e5   :  { %v3378_v44 = vadd.f32 %v3362_v21, %v3230_v8 }
 0x4e7   :  { %v3519_v62 = vadd.f32 %v3503_v16, %v3378_v44 }
 0x4ef   :  { %4200 = vmatmul.bf16.vlgmr.msrb.gmra.mxu1 %v4922_v2 }
 0x4f0   :  { %4215 = vmatmul.bf16.gmra.mxu2 %v4934_v11 }
 0x501   :  { %v3237_v59 = vpop.f32.mrf.mxu2 }
 0x502   :  { %v3238_v24 = vadd.f32 %v3237_v59, %v8552_v18 }
 0x509   :  { %v3239_v35 = vpop.f32.mrf.mxu2 }
 0x50a   :  { %v3240_v0 = vadd.f32 %v3239_v35, %v8554_v7 }
 0x50c   :  { %v3506_v53 = vpop.f32.mrf.mxu1 }
 0x50e   :  { %v3919_v1 = vpop.f32.mrf.mxu0 }
 0x512   :  { %v3365_v34 = vpop.f32.mrf.mxu3 }
 0x513   :  { %v3379_v18 = vadd.f32 %v3365_v34, %v3233_v48  ;;  %v3637_v55 = vpop.f32.mrf.mxu2 }
 0x514   :  { %v3508_v41 = vpop.f32.mrf.mxu1  ;;  %v3657_v31 = vadd.f32 %v3637_v55, %v3516_v45 }
 0x515   :  { %v3520_v37 = vadd.f32 %v3506_v53, %v3379_v18 }
 0x516   :  { %v3921_v12 = vpop.f32.mrf.mxu0 }
 0x51a   :  { %v3367_v7 = vpop.f32.mrf.mxu3 }
 0x51b   :  { %v3380_v40 = vadd.f32 %v3367_v7, %v3235_v22  ;;  %v3639_v51 = vpop.f32.mrf.mxu2 }
 0x51c   :  { %v3511_v47 = vpop.f32.mrf.mxu1  ;;  %v3658_v30 = vadd.f32 %v3639_v51, %v3517_v50 }
 0x51d   :  { %v3521_v23 = vadd.f32 %v3508_v41, %v3380_v40 }
 0x51e   :  { %v3924_v5 = vpop.f32.mrf.mxu0 }
 0x522   :  { %v3370_v14 = vpop.f32.mrf.mxu3 }
 0x523   :  { %v3381_v25 = vadd.f32 %v3370_v14, %v3238_v24  ;;  %v3642_v28 = vpop.f32.mrf.mxu2 }
 0x524   :  { %v3513_v60 = vpop.f32.mrf.mxu1  ;;  %v3659_v26 = vadd.f32 %v3642_v28, %v3518_v46 }
 0x525   :  { %v3522_v39 = vadd.f32 %v3511_v47, %v3381_v25 }
 0x526   :  { %v3926_v38 = vpop.f32.mrf.mxu0 }
 0x52a   :  { %v3372_v8 = vpop.f32.mrf.mxu3 }
 0x52b   :  { %v3382_v6 = vadd.f32 %v3372_v8, %v3240_v0  ;;  %v3644_v3 = vpop.f32.mrf.mxu2 }
 0x52c   :  { %v4060_v58 = vpop.f32.mrf.mxu1  ;;  %v3660_v33 = vadd.f32 %v3644_v3, %v3519_v62 }
 0x52d   :  { %v3523_v15 = vadd.f32 %v3513_v60, %v3382_v6 }
 0x52e   :  { %v3929_v49 = vpop.f32.mrf.mxu0 }
 0x532   :  { %v3778_v52 = vpop.f32.mrf.mxu3 }
 0x533   :  { %v3647_v13 = vpop.f32.mrf.mxu2  ;;  %v3798_v36 = vadd.f32 %v3778_v52, %v3657_v31  ;;  %v5142_v52 = vmov 64.0  }
 0x534   :  { %v4062_v48 = vpop.f32.mrf.mxu1  ;;  %v3661_v0 = vadd.f32 %v3647_v13, %v3520_v37  ;;  %5080 = vrcp.f32 %v5142_v52 }
 0x535   :  { %v3939_v63 = vadd.f32 %v3919_v1, %v3798_v36 }
 0x536   :  { %v3931_v27 = vpop.f32.mrf.mxu0 }
 0x537   :  { %v4080_v17 = vadd.f32 %v4060_v58, %v3939_v63 }
 0x53a   :  { %v3780_v43 = vpop.f32.mrf.mxu3 }
 0x53b   :  { %v3649_v10 = vpop.f32.mrf.mxu2  ;;  %v3799_v4 = vadd.f32 %v3780_v43, %v3658_v30 }
 0x53c   :  { %v4065_v61 = vpop.f32.mrf.mxu1  ;;  %v3662_v18 = vadd.f32 %v3649_v10, %v3521_v23 }
 0x53d   :  { %v3940_v34 = vadd.f32 %v3921_v12, %v3799_v4 }
 0x53e   :  { %v3934_v50 = vpop.f32.mrf.mxu0 }
 0x53f   :  { %v4081_v37 = vadd.f32 %v4062_v48, %v3940_v34  ;;  %v4293_v34 = vpop.permute.xlu1 %4292 }
 0x542   :  { %v3783_v42 = vpop.f32.mrf.mxu3 }
 0x543   :  { %v3652_v54 = vpop.f32.mrf.mxu2  ;;  %v3800_v35 = vadd.f32 %v3783_v42, %v3659_v26 }
 0x544   :  { %v4067_v22 = vpop.f32.mrf.mxu1  ;;  %v3663_v41 = vadd.f32 %v3652_v54, %v3522_v39  ;;  %v5081_v54 = vpop.eup %5080 }
 0x545   :  { %v3941_v55 = vadd.f32 %v3924_v5, %v3800_v35  ;;  %vm4263_vm0 = vweird.f32 %v5081_v54 }
 0x546   :  { %v3936_v25 = vpop.f32.mrf.mxu0 }
 0x547   :  { %v4082_v19 = vadd.f32 %v4065_v61, %v3941_v55 }
 0x54a   :  { %v3785_v21 = vpop.f32.mrf.mxu3 }
 0x54b   :  { %v3654_v44 = vpop.f32.mrf.mxu2  ;;  %v3801_v46 = vadd.f32 %v3785_v21, %v3660_v33 }
 0x54c   :  { %v4070_v29 = vpop.f32.mrf.mxu1  ;;  %v3664_v7 = vadd.f32 %v3654_v44, %v3523_v15 }
 0x54d   :  { %v3942_v31 = vadd.f32 %v3926_v38, %v3801_v46 }
 0x54f   :  { %v4083_v60 = vadd.f32 %v4067_v22, %v3942_v31 }
 0x552   :  { %v3788_v20 = vpop.f32.mrf.mxu3 }
 0x553   :  { %v4206_v11 = vpop.f32.mrf.mxu2  ;;  %v3802_v62 = vadd.f32 %v3788_v20, %v3661_v0  ;;  %v4259_v20 = vmul.f32 64.0, %v5081_v54 }
 0x554   :  { %v4072_v2 = vpop.f32.mrf.mxu1  ;;  %v8578_v8 = vadd.f32 %v4206_v11, %v4082_v19 }
 0x555   :  { %v3943_v51 = vadd.f32 %v3929_v49, %v3802_v62  ;;  %v4303_v62 = vpop.permute.xlu2 %4302 }
 0x556   :  { %v4239_v48 = vmul.f32 %v8578_v8, %v8578_v8 }
 0x557   :  { %v4084_v3 = vadd.f32 %v4070_v29, %v3943_v51  ;;  %v4298_v51 = vpop.permute.xlu1 %4297 }
 0x55a   :  { %v3790_v32 = vpop.f32.mrf.mxu3 }
 0x55b   :  { %v4208_v45 = vpop.f32.mrf.mxu2  ;;  %v3803_v40 = vadd.f32 %v3790_v32, %v3662_v18 }
 0x55c   :  { %v4075_v56 = vpop.f32.mrf.mxu1  ;;  %v4224_v39 = vadd.f32 %v4208_v45, %v4083_v60 }
 0x55d   :  { %v3944_v23 = vadd.f32 %v3931_v27, %v3803_v40  ;;  %v4308_v40 = vpop.permute.xlu2 %4307 }
 0x55e   :  { %v4240_v61 = vmul.f32 %v4224_v39, %v4224_v39 }
 0x55f   :  { %v4085_v12 = vadd.f32 %v4072_v2, %v3944_v23  ;;  %v4260_v2 = vsub.f32 1.0, %v4259_v20 }
 0x562   :  { %v3793_v16 = vpop.f32.mrf.mxu3 }
 0x563   :  { %v4211_v24 = vpop.f32.mrf.mxu2  ;;  %v3804_v47 = vadd.f32 %v3793_v16, %v3663_v41  ;;  %v4261_v16 = vmul.f32 %v5081_v54, %v4260_v2  ;;  %v4288_v41 = vpop.permute.xlu0 %4287 }
 0x564   :  { %v4077_v59 = vpop.f32.mrf.mxu1  ;;  %v4225_v13 = vadd.f32 %v4211_v24, %v4084_v3 }
 0x565   :  { %v3945_v58 = vadd.f32 %v3934_v50, %v3804_v47 }
 0x566   :  { %v4241_v63 = vmul.f32 %v4225_v13, %v4225_v13 }
 0x567   :  { %v4086_v5 = vadd.f32 %v4075_v56, %v3945_v58 }
 0x56a   :  { %v3795_v57 = vpop.f32.mrf.mxu3 }
 0x56b   :  { %v4213_v9 = vpop.f32.mrf.mxu2  ;;  %v3805_v14 = vadd.f32 %v3795_v57, %v3664_v7 }
 0x56c   :  { %v4201_v53 = vpop.f32.mrf.mxu1  ;;  %v4226_v10 = vadd.f32 %v4213_v9, %v4085_v12 }
 0x56d   :  { %v8576_v30 = vadd.f32 %v4201_v53, %v4080_v17  ;;  %v3946_v15 = vadd.f32 %v3936_v25, %v3805_v14 }
 0x56e   :  { %v4242_v44 = vmul.f32 %v4226_v10, %v4226_v10 }
 0x56f   :  { %v4237_v33 = vmul.f32 %v8576_v30, %v8576_v30  ;;  %v4087_v36 = vadd.f32 %v4077_v59, %v3946_v15  ;;  %v4262_v59 = vadd.f32 %v5081_v54, %v4261_v16 }
 0x571   :  { %v4264_v0 = vsel %vm4263_vm0, %v5081_v54, %v4262_v59 }
 0x573   :  { %v4216_v26 = vpop.f32.mrf.mxu2 }
 0x574   :  { %v4203_v28 = vpop.f32.mrf.mxu1  ;;  %v4227_v38 = vadd.f32 %v4216_v26, %v4086_v5 }
 0x575   :  { %v8580_v6 = vadd.f32 %v4203_v28, %v4081_v37  ;;  %v4313_v28 = vpop.permute.xlu0 %4312 }
 0x576   :  { %v4243_v11 = vmul.f32 %v4227_v38, %v4227_v38 }
 0x577   :  { %v4238_v1 = vmul.f32 %v8580_v6, %v8580_v6 }
 0x579   :  { %v4245_v43 = vadd.f32 %v4238_v1, %v4237_v33 }
 0x57b   :  { %v4246_v42 = vadd.f32 %v4245_v43, %v4239_v48  ;;  %v4218_v22 = vpop.f32.mrf.mxu2  ;;  %v4323_v43 = vpop.permute.xlu2 %4322 }
 0x57c   :  { %v4228_v29 = vadd.f32 %v4218_v22, %v4087_v36 }
 0x57d   :  { %v4247_v21 = vadd.f32 %v4246_v42, %v4240_v61 }
 0x57e   :  { %v4244_v32 = vmul.f32 %v4228_v29, %v4228_v29 }
 0x57f   :  { %v4248_v17 = vadd.f32 %v4247_v21, %v4241_v63 }
 0x581   :  { %v4249_v49 = vadd.f32 %v4248_v17, %v4242_v44 }
 0x583   :  { %v4250_v45 = vadd.f32 %v4249_v49, %v4243_v11 }
 0x585   :  { %v4251_v27 = vadd.f32 %v4250_v45, %v4244_v32 }
 0x587   :  { %v4252_v24 = vrot.slane %v4251_v27, 4 }
 0x589   :  { %v4253_v50 = vadd.f32 %v4252_v24, %v4251_v27 }
 0x58b   :  { %v4254_v56 = vrot.slane %v4253_v50, 2 }
 0x58d   :  { %v4255_v4 = vadd.f32 %v4254_v56, %v4253_v50 }
 0x58f   :  { %v4256_v35 = vrot.slane %v4255_v4, 1 }
 0x591   :  { %v4257_v46 = vadd.f32 %v4256_v35, %v4255_v4 }
 0x593   :  { %v4265_v53 = vmul.f32 %v4264_v0, %v4257_v46 }
 0x595   :  { %v4266_v9 = vadd.f32 1.1920929e-07, %v4265_v53 }
 0x597   :  { %5082 = vrsqrt.f32 %v4266_v9  ;;  %vm4273_vm11 = vweird.f32 %v4266_v9 }
 0x59d   :  { %v5083_v18 = vpop.eup %5082 }
 0x59e   :  { %v4268_v55 = vmul.f32 %v5083_v18, %v4266_v9  ;;  %vm4274_vm10 = vweird.f32 %v5083_v18 }
 0x59f   :  { %vm4275_vm12 = vmor %vm4273_vm11, %vm4274_vm10 }
 0x5a0   :  { %v4269_v31 = vmul.f32 %v5083_v18, %v4268_v55 }
 0x5a2   :  { %v4270_v57 = vmul.f32 0.5, %v4269_v31 }
 0x5a4   :  { %v4271_v7 = vsub.f32 1.5, %v4270_v57 }
 0x5a6   :  { %v4272_v47 = vmul.f32 %v5083_v18, %v4271_v7 }
 0x5a8   :  { %v4276_v19 = vsel %vm4275_vm12, %v5083_v18, %v4272_v47 }
 0x5a9   :  { %v4277_v14 = vmul.f32 %v4276_v19, %v8576_v30  ;;  %v4280_v25 = vmul.f32 %v4276_v19, %v4224_v39  ;;  %v4282_v37 = vmul.f32 %v4276_v19, %v4226_v10  ;;  %v4278_v60 = vmul.f32 %v4276_v19, %v8580_v6 }
 0x5aa   :  { %v4281_v26 = vmul.f32 %v4276_v19, %v4225_v13  ;;  %v4279_v23 = vmul.f32 %v4276_v19, %v8578_v8  ;;  %v4284_v58 = vmul.f32 %v4276_v19, %v4228_v29  ;;  %v4283_v3 = vmul.f32 %v4276_v19, %v4227_v38  ;;  %v4318_v8 = vpop.permute.xlu1 %4317 }
 0x5ab   :  { %v4325_v15 = vmul.f32 %v4288_v41, %v4277_v14  ;;  %v4328_v33 = vmul.f32 %v4303_v62, %v4280_v25  ;;  %v4330_v1 = vmul.f32 %v4313_v28, %v4282_v37  ;;  %v4326_v52 = vmul.f32 %v4293_v34, %v4278_v60 }
 0x5ac   :  { %v4329_v48 = vmul.f32 %v4308_v40, %v4281_v26  ;;  %v4327_v12 = vmul.f32 %v4298_v51, %v4279_v23  ;;  %v4332_v30 = vmul.f32 %v4323_v43, %v4284_v58  ;;  %v4331_v6 = vmul.f32 %v4318_v8, %v4283_v3 }
 0x5ad   :  { %4333 = vst [vmem:[#allocation5] sm:$0xff] %v4325_v15 }
 0x5ae   :  { %4336 = vst [vmem:[#allocation5 + $0x18] sm:$0xff] %v4328_v33 }
 0x5af   :  { %4338 = vst [vmem:[#allocation5 + $0x28] sm:$0xff] %v4330_v1 }
 0x5b0   :  { %4334 = vst [vmem:[#allocation5 + $0x8] sm:$0xff] %v4326_v52 }
 0x5b1   :  { %4337 = vst [vmem:[#allocation5 + $0x20] sm:$0xff] %v4329_v48 }
 0x5b2   :  { %4335 = vst [vmem:[#allocation5 + $0x10] sm:$0xff] %v4327_v12 }
 0x5b3   :  { %4340 = vst [vmem:[#allocation5 + $0x38] sm:$0xff] %v4332_v30 }
 0x5b4   :  { %4339 = vst [vmem:[#allocation5 + $0x30] sm:$0xff] %v4331_v6 }
 0x5b5   :  { %4353 = dma.vmem_to_hbm [thread:$0]  %s4346_s6, 1024, %s4348_s7, [#allocation4], %s5144_s8, %s5144_s8, %s5145_s9  }
 0x5b6   :  { %5134 = dma.done.wait [#allocation4], 1024  }
 0x5b7   :  { %5135 = vsyncadd [#allocation4], 4294966272 }
 0x5b8   :  { %4358 = vsyncpa [#allocation3], 1 }
 0x5b9   :  { %4359 = vsyncpa [#allocation4], 1 }

</bundles_post_ra>
